<compile_context>
chip_gen: v6e
topology: v6e:2x2x1
jax: 0.10.0
libtpu: 0.0.40
codegen_flags: <defaults>
</compile_context>

<pallas_src>
import functools

import numpy as np
import jax
import jax.numpy as jnp
from jax import lax
from jax.experimental import pallas as pl
from jax.experimental.pallas import tpu as pltpu


# ----------------------------------------------------------------------------
# In-kernel helpers
# ----------------------------------------------------------------------------

_INV_SQRT2 = 0.7071067811865476
# Abramowitz & Stegun 7.1.26 erf coefficients (|err| < 1.5e-7).
_ERF_P = 0.3275911
_ERF_A1 = 0.254829592
_ERF_A2 = -0.284496736
_ERF_A3 = 1.421413741
_ERF_A4 = -1.453152027
_ERF_A5 = 1.061405429


def _gelu(x):
    """Exact (erf-based) GELU, matching nn.GELU().

    erf is evaluated with the A&S 7.1.26 rational approximation (max abs
    error 1.5e-7) using only exp / mul / add, which lower cleanly in Mosaic.
    # TODO(synk): switch to a native erf primitive if/when Mosaic exposes one.
    """
    z = x * _INV_SQRT2
    a = jnp.abs(z)
    t = 1.0 / (1.0 + _ERF_P * a)
    poly = t * (_ERF_A1 + t * (_ERF_A2 + t * (_ERF_A3 + t * (_ERF_A4 + t * _ERF_A5))))
    erf_a = 1.0 - poly * jnp.exp(-a * a)
    erf_z = jnp.where(z >= 0.0, erf_a, -erf_a)
    return 0.5 * x * (1.0 + erf_z)


def _group_norm(y, gamma, beta, eps, inv_n):
    """GroupNorm(1, C): normalize over all C*HW elements of one sample."""
    # Two single-axis reductions (lane then sublane) -> (1, 1).
    tot = jnp.sum(jnp.sum(y, axis=-1, keepdims=True), axis=0, keepdims=True)
    mu = tot * inv_n
    d = y - mu
    tot2 = jnp.sum(jnp.sum(d * d, axis=-1, keepdims=True), axis=0, keepdims=True)
    var = tot2 * inv_n
    inv = lax.rsqrt(var + eps)
    return d * inv * gamma + beta


# ----------------------------------------------------------------------------
# Fused kernel: one batch element per grid step
# ----------------------------------------------------------------------------

def _naf_block_kernel(x_ref, w1_ref, w2_ref, shift_ref, wsca_ref, w3_ref,
                      w4_ref, w5_ref, vec_ref, o_ref, *, hw, eps, inv_n):
    """
    x_ref     : (1, C, HW)      input features, lane-dense
    w1_ref    : (C, C)          conv1 1x1 weight
    w2_ref    : (C, 9)          conv2 depthwise 3x3 taps
    shift_ref : (HW, 9*HW)      constant stacked shift matrices (zero padded)
    wsca_ref  : (C, C)          SCA 1x1 conv weight
    w3/4/5_ref: (C, C)          conv3/4/5 1x1 weights
    vec_ref   : (C, 12)         packed per-channel vectors (see wrapper)
    o_ref     : (1, C, HW)      output
    """
    x = x_ref[0]                                   # (C, HW)
    vec = vec_ref[...]
    gn1_g, gn1_b = vec[:, 0:1], vec[:, 1:2]
    b1, b2, b3 = vec[:, 2:3], vec[:, 3:4], vec[:, 4:5]
    bsca, beta1 = vec[:, 5:6], vec[:, 6:7]
    gn2_g, gn2_b = vec[:, 7:8], vec[:, 8:9]
    b4, b5, beta2 = vec[:, 9:10], vec[:, 10:11], vec[:, 11:12]

    # -------- first residual branch --------
    y = _group_norm(x, gn1_g, gn1_b, eps, inv_n)
    y = jnp.dot(w1_ref[...], y, preferred_element_type=jnp.float32) + b1

    # Depthwise 3x3 conv (padding 1) as one lane-dense MXU matmul against the
    # 9 stacked shift matrices, then a per-channel 9-tap weighted sum.
    big = jnp.dot(y, shift_ref[...], preferred_element_type=jnp.float32)  # (C, 9*HW)
    taps = w2_ref[...]                                                    # (C, 9)
    y = b2 + taps[:, 0:1] * big[:, 0:hw]
    for k in range(1, 9):
        y = y + taps[:, k:k + 1] * big[:, k * hw:(k + 1) * hw]

    y = _gelu(y)

    # SCA: global average pool -> 1x1 conv -> channel-wise scale.
    g = jnp.mean(y, axis=-1, keepdims=True)                               # (C, 1)
    s = jnp.dot(wsca_ref[...], g, preferred_element_type=jnp.float32) + bsca
    y = y * s

    y = jnp.dot(w3_ref[...], y, preferred_element_type=jnp.float32) + b3
    z = x + y * beta1                                                     # identity + y*beta1

    # -------- second residual branch --------
    y = _group_norm(z, gn2_g, gn2_b, eps, inv_n)
    y = jnp.dot(w4_ref[...], y, preferred_element_type=jnp.float32) + b4
    y = _gelu(y)
    y = jnp.dot(w5_ref[...], y, preferred_element_type=jnp.float32) + b5

    o_ref[0] = z + y * beta2


# ----------------------------------------------------------------------------
# Wrapper
# ----------------------------------------------------------------------------

def _shift_matrix(H, W):
    """(HW, 9*HW) constant: column block k holds the (dy,dx) shift with zero
    padding, so (y @ S)[:, k*HW + p] == y[:, pos(p) + (dy,dx)] (0 if OOB)."""
    HW = H * W
    S = np.zeros((HW, 9 * HW), dtype=np.float32)
    k = 0
    for dy in (-1, 0, 1):
        for dx in (-1, 0, 1):
            for h in range(H):
                hh = h + dy
                if 0 <= hh < H:
                    for w in range(W):
                        ww = w + dx
                        if 0 <= ww < W:
                            S[hh * W + ww, k * HW + h * W + w] = 1.0
            k += 1
    return jnp.asarray(S)


def residual_block_nobn_naf(x, params):
    B, C, H, W = x.shape
    HW = H * W
    xf = x.reshape(B, C, HW)

    shift = _shift_matrix(H, W)                          # (HW, 9*HW)
    w2 = params["conv2_w"].reshape(C, 9)                 # depthwise taps

    # Pack all per-channel vectors into one (C, 12) matrix (column order is
    # mirrored inside the kernel).
    vecs = jnp.stack(
        [params["gn1_w"], params["gn1_b"],
         params["conv1_b"], params["conv2_b"], params["conv3_b"],
         params["sca_b"], params["beta1"],
         params["gn2_w"], params["gn2_b"],
         params["conv4_b"], params["conv5_b"], params["beta2"]],
        axis=1).astype(jnp.float32)                      # (C, 12)

    kernel = functools.partial(_naf_block_kernel, hw=HW, eps=1e-5,
                               inv_n=1.0 / float(C * HW))

    flops = int(B * (8 * C * C * HW        # conv1/3/4/5
                     + 18 * C * HW * HW    # depthwise-conv shift matmul
                     + 2 * C * C           # SCA matvec
                     + 40 * C * HW))       # elementwise / norm / gelu
    cost = pl.CostEstimate(
        flops=flops,
        transcendentals=int(2 * B * C * HW + 4 * B),
        bytes_accessed=int((2 * B * C * HW + 5 * C * C + 9 * C
                            + 9 * HW * HW + 12 * C) * 4))

    out = pl.pallas_call(
        kernel,
        out_shape=jax.ShapeDtypeStruct((B, C, HW), x.dtype),
        grid=(B,),
        in_specs=[
            pl.BlockSpec((1, C, HW), lambda b: (b, 0, 0)),     # x
            pl.BlockSpec((C, C), lambda b: (0, 0)),            # conv1 w
            pl.BlockSpec((C, 9), lambda b: (0, 0)),            # conv2 taps
            pl.BlockSpec((HW, 9 * HW), lambda b: (0, 0)),      # shift matrices
            pl.BlockSpec((C, C), lambda b: (0, 0)),            # sca w
            pl.BlockSpec((C, C), lambda b: (0, 0)),            # conv3 w
            pl.BlockSpec((C, C), lambda b: (0, 0)),            # conv4 w
            pl.BlockSpec((C, C), lambda b: (0, 0)),            # conv5 w
            pl.BlockSpec((C, 12), lambda b: (0, 0)),           # packed vectors
        ],
        out_specs=pl.BlockSpec((1, C, HW), lambda b: (b, 0, 0)),
        compiler_params=pltpu.CompilerParams(dimension_semantics=("parallel",)),
        cost_estimate=cost,
    )(xf, params["conv1_w"], w2, shift, params["sca_w"], params["conv3_w"],
      params["conv4_w"], params["conv5_w"], vecs)

    return out.reshape(B, C, H, W)


# ----------------------------------------------------------------------------
# Pure-JAX reference (mirrors the PyTorch forward exactly) + params
# ----------------------------------------------------------------------------

def residual_block_nobn_naf_ref(x, params):
    B, C, H, W = x.shape
    eps = 1e-5
    hi = lax.Precision.HIGHEST

    def gn(y, g, b):
        mu = jnp.mean(y, axis=(1, 2, 3), keepdims=True)
        var = jnp.mean(jnp.square(y - mu), axis=(1, 2, 3), keepdims=True)
        return (y - mu) / jnp.sqrt(var + eps) * g.reshape(1, C, 1, 1) + b.reshape(1, C, 1, 1)

    def c1x1(y, w, b):
        return jnp.einsum("oc,bchw->bohw", w, y, precision=hi) + b.reshape(1, C, 1, 1)

    def gelu(y):
        return 0.5 * y * (1.0 + lax.erf(y * _INV_SQRT2))

    identity = x
    y = gn(x, params["gn1_w"], params["gn1_b"])
    y = c1x1(y, params["conv1_w"], params["conv1_b"])
    y = lax.conv_general_dilated(
        y, params["conv2_w"], (1, 1), ((1, 1), (1, 1)),
        dimension_numbers=("NCHW", "OIHW", "NCHW"),
        feature_group_count=C, precision=hi) + params["conv2_b"].reshape(1, C, 1, 1)
    y = gelu(y)
    gap = jnp.mean(y, axis=(2, 3), keepdims=True)
    s = jnp.einsum("oc,bcij->boij", params["sca_w"], gap,
                   precision=hi) + params["sca_b"].reshape(1, C, 1, 1)
    y = y * s
    y = c1x1(y, params["conv3_w"], params["conv3_b"])
    y = identity + y * params["beta1"].reshape(1, C, 1, 1)
    identity = y
    y = gn(y, params["gn2_w"], params["gn2_b"])
    y = c1x1(y, params["conv4_w"], params["conv4_b"])
    y = gelu(y)
    y = c1x1(y, params["conv5_w"], params["conv5_b"])
    return identity + y * params["beta2"].reshape(1, C, 1, 1)


def init_params(key, num_feat=64):
    C = num_feat
    ks = jax.random.split(key, 18)

    def u(k, shape, fan_in):
        b = 1.0 / (fan_in ** 0.5)
        return jax.random.uniform(k, shape, jnp.float32, -b, b)

    return {
        "gn1_w": 1.0 + 0.1 * jax.random.normal(ks[0], (C,), jnp.float32),
        "gn1_b": 0.1 * jax.random.normal(ks[1], (C,), jnp.float32),
        "conv1_w": u(ks[2], (C, C), C), "conv1_b": u(ks[3], (C,), C),
        "conv2_w": u(ks[4], (C, 1, 3, 3), 9), "conv2_b": u(ks[5], (C,), 9),
        "sca_w": u(ks[6], (C, C), C), "sca_b": u(ks[7], (C,), C),
        "conv3_w": u(ks[8], (C, C), C), "conv3_b": u(ks[9], (C,), C),
        "beta1": 1.0 + 0.1 * jax.random.normal(ks[10], (C,), jnp.float32),
        "gn2_w": 1.0 + 0.1 * jax.random.normal(ks[11], (C,), jnp.float32),
        "gn2_b": 0.1 * jax.random.normal(ks[12], (C,), jnp.float32),
        "conv4_w": u(ks[13], (C, C), C), "conv4_b": u(ks[14], (C,), C),
        "conv5_w": u(ks[15], (C, C), C), "conv5_b": u(ks[16], (C,), C),
        "beta2": 1.0 + 0.1 * jax.random.normal(ks[17], (C,), jnp.float32),
    }


if __name__ == "__main__":
    key = jax.random.PRNGKey(0)
    kx, kp = jax.random.split(key)

    B, C, H, W = 2, 64, 16, 16          # num_feat=64 (module default)
    x = jax.random.normal(kx, (B, C, H, W), jnp.float32)
    params = init_params(kp, num_feat=C)

    out = residual_block_nobn_naf(x, params)
    out = jax.block_until_ready(out)

    ref = residual_block_nobn_naf_ref(x, params)
    assert out.shape == (B, C, H, W)
    max_diff = float(jnp.max(jnp.abs(out - ref)))
    assert jnp.allclose(out, ref, atol=5e-4, rtol=5e-4), \
        f"mismatch vs reference: max abs diff {max_diff}"

    print("KERNEL_OK")
</pallas_src>

<mosaic_0001>
module attributes {stable_mosaic.version = 11 : i64} {
  func.func @_naf_block_kernel(%arg0: i32, %arg1: memref<1x64x256xf32, #tpu.memory_space<vmem>>, %arg2: memref<64x64xf32, #tpu.memory_space<vmem>>, %arg3: memref<64x9xf32, #tpu.memory_space<vmem>>, %arg4: memref<256x2304xf32, #tpu.memory_space<vmem>>, %arg5: memref<64x64xf32, #tpu.memory_space<vmem>>, %arg6: memref<64x64xf32, #tpu.memory_space<vmem>>, %arg7: memref<64x64xf32, #tpu.memory_space<vmem>>, %arg8: memref<64x64xf32, #tpu.memory_space<vmem>>, %arg9: memref<64x12xf32, #tpu.memory_space<vmem>>, %arg10: memref<1x64x256xf32, #tpu.memory_space<vmem>>) attributes {dimension_semantics = [#tpu.dimension_semantics<parallel>], iteration_bounds = array<i64: 2>, scalar_prefetch = 0 : i64, scratch_operands = 0 : i64, tpu.core_type = #tpu.core_type<tc>, window_params = [{transform_indices = @transform_0, window_bounds = array<i64: 1, 64, 256>}, {pipeline_mode = #tpu.pipeline_mode<synchronous>, transform_indices = @transform_1, window_bounds = array<i64: 64, 64>}, {pipeline_mode = #tpu.pipeline_mode<synchronous>, transform_indices = @transform_2, window_bounds = array<i64: 64, 9>}, {pipeline_mode = #tpu.pipeline_mode<synchronous>, transform_indices = @transform_3, window_bounds = array<i64: 256, 2304>}, {pipeline_mode = #tpu.pipeline_mode<synchronous>, transform_indices = @transform_4, window_bounds = array<i64: 64, 64>}, {pipeline_mode = #tpu.pipeline_mode<synchronous>, transform_indices = @transform_5, window_bounds = array<i64: 64, 64>}, {pipeline_mode = #tpu.pipeline_mode<synchronous>, transform_indices = @transform_6, window_bounds = array<i64: 64, 64>}, {pipeline_mode = #tpu.pipeline_mode<synchronous>, transform_indices = @transform_7, window_bounds = array<i64: 64, 64>}, {pipeline_mode = #tpu.pipeline_mode<synchronous>, transform_indices = @transform_8, window_bounds = array<i64: 64, 12>}, {transform_indices = @transform_9, window_bounds = array<i64: 1, 64, 256>}]} {
    %c0 = arith.constant 0 : index
    %c0_0 = arith.constant 0 : index
    %c0_1 = arith.constant 0 : index
    %0 = vector.load %arg1[%c0, %c0_0, %c0_1] : memref<1x64x256xf32, #tpu.memory_space<vmem>>, vector<1x64x256xf32>
    %1 = vector.shape_cast %0 : vector<1x64x256xf32> to vector<64x256xf32>
    %c0_2 = arith.constant 0 : index
    %c0_3 = arith.constant 0 : index
    %2 = vector.load %arg9[%c0_2, %c0_3] : memref<64x12xf32, #tpu.memory_space<vmem>>, vector<64x12xf32>
    %3 = vector.extract_strided_slice %2 {offsets = [0, 0], sizes = [64, 1], strides = [1, 1]} : vector<64x12xf32> to vector<64x1xf32>
    %4 = vector.extract_strided_slice %2 {offsets = [0, 1], sizes = [64, 1], strides = [1, 1]} : vector<64x12xf32> to vector<64x1xf32>
    %5 = vector.extract_strided_slice %2 {offsets = [0, 2], sizes = [64, 1], strides = [1, 1]} : vector<64x12xf32> to vector<64x1xf32>
    %6 = vector.extract_strided_slice %2 {offsets = [0, 3], sizes = [64, 1], strides = [1, 1]} : vector<64x12xf32> to vector<64x1xf32>
    %7 = vector.extract_strided_slice %2 {offsets = [0, 4], sizes = [64, 1], strides = [1, 1]} : vector<64x12xf32> to vector<64x1xf32>
    %8 = vector.extract_strided_slice %2 {offsets = [0, 5], sizes = [64, 1], strides = [1, 1]} : vector<64x12xf32> to vector<64x1xf32>
    %9 = vector.extract_strided_slice %2 {offsets = [0, 6], sizes = [64, 1], strides = [1, 1]} : vector<64x12xf32> to vector<64x1xf32>
    %10 = vector.extract_strided_slice %2 {offsets = [0, 7], sizes = [64, 1], strides = [1, 1]} : vector<64x12xf32> to vector<64x1xf32>
    %11 = vector.extract_strided_slice %2 {offsets = [0, 8], sizes = [64, 1], strides = [1, 1]} : vector<64x12xf32> to vector<64x1xf32>
    %12 = vector.extract_strided_slice %2 {offsets = [0, 9], sizes = [64, 1], strides = [1, 1]} : vector<64x12xf32> to vector<64x1xf32>
    %13 = vector.extract_strided_slice %2 {offsets = [0, 10], sizes = [64, 1], strides = [1, 1]} : vector<64x12xf32> to vector<64x1xf32>
    %14 = vector.extract_strided_slice %2 {offsets = [0, 11], sizes = [64, 1], strides = [1, 1]} : vector<64x12xf32> to vector<64x1xf32>
    %cst = arith.constant dense<0.000000e+00> : vector<64xf32>
    %15 = vector.multi_reduction <add>, %1, %cst [1] : vector<64x256xf32> to vector<64xf32>
    %16 = vector.shape_cast %15 : vector<64xf32> to vector<64x1xf32>
    %cst_4 = arith.constant dense<0.000000e+00> : vector<1xf32>
    %17 = vector.multi_reduction <add>, %16, %cst_4 [0] : vector<64x1xf32> to vector<1xf32>
    %18 = vector.shape_cast %17 : vector<1xf32> to vector<1x1xf32>
    %cst_5 = arith.constant 6.10351563E-5 : f32
    %19 = vector.broadcast %cst_5 : f32 to vector<1x1xf32>
    %20 = arith.mulf %18, %19 : vector<1x1xf32>
    %21 = vector.broadcast %20 : vector<1x1xf32> to vector<64x256xf32>
    %22 = arith.subf %1, %21 : vector<64x256xf32>
    %23 = arith.mulf %22, %22 : vector<64x256xf32>
    %cst_6 = arith.constant dense<0.000000e+00> : vector<64xf32>
    %24 = vector.multi_reduction <add>, %23, %cst_6 [1] : vector<64x256xf32> to vector<64xf32>
    %25 = vector.shape_cast %24 : vector<64xf32> to vector<64x1xf32>
    %cst_7 = arith.constant dense<0.000000e+00> : vector<1xf32>
    %26 = vector.multi_reduction <add>, %25, %cst_7 [0] : vector<64x1xf32> to vector<1xf32>
    %27 = vector.shape_cast %26 : vector<1xf32> to vector<1x1xf32>
    %cst_8 = arith.constant 6.10351563E-5 : f32
    %28 = vector.broadcast %cst_8 : f32 to vector<1x1xf32>
    %29 = arith.mulf %27, %28 : vector<1x1xf32>
    %cst_9 = arith.constant 9.99999974E-6 : f32
    %30 = vector.broadcast %cst_9 : f32 to vector<1x1xf32>
    %31 = arith.addf %29, %30 : vector<1x1xf32>
    %32 = math.rsqrt %31 : vector<1x1xf32>
    %33 = vector.broadcast %32 : vector<1x1xf32> to vector<64x256xf32>
    %34 = arith.mulf %22, %33 : vector<64x256xf32>
    %35 = vector.broadcast %3 : vector<64x1xf32> to vector<64x256xf32>
    %36 = arith.mulf %34, %35 : vector<64x256xf32>
    %37 = vector.broadcast %4 : vector<64x1xf32> to vector<64x256xf32>
    %38 = arith.addf %36, %37 : vector<64x256xf32>
    %c0_10 = arith.constant 0 : index
    %c0_11 = arith.constant 0 : index
    %39 = vector.load %arg2[%c0_10, %c0_11] : memref<64x64xf32, #tpu.memory_space<vmem>>, vector<64x64xf32>
    %cst_12 = arith.constant dense<0.000000e+00> : vector<64x256xf32>
    %40 = tpu.matmul %39, %38, %cst_12 {dimension_numbers = #tpu.dot_dimension_numbers<[1], [0], [0], [1], [0, 0, 1, 1], [], []>} : vector<64x64xf32>, vector<64x256xf32>, vector<64x256xf32> -> vector<64x256xf32>
    %41 = vector.broadcast %5 : vector<64x1xf32> to vector<64x256xf32>
    %42 = arith.addf %40, %41 : vector<64x256xf32>
    %c0_13 = arith.constant 0 : index
    %c0_14 = arith.constant 0 : index
    %43 = vector.load %arg4[%c0_13, %c0_14] : memref<256x2304xf32, #tpu.memory_space<vmem>>, vector<256x2304xf32>
    %cst_15 = arith.constant dense<0.000000e+00> : vector<64x2304xf32>
    %44 = tpu.matmul %42, %43, %cst_15 {dimension_numbers = #tpu.dot_dimension_numbers<[1], [0], [0], [1], [0, 0, 1, 1], [], []>} : vector<64x256xf32>, vector<256x2304xf32>, vector<64x2304xf32> -> vector<64x2304xf32>
    %c0_16 = arith.constant 0 : index
    %c0_17 = arith.constant 0 : index
    %45 = vector.load %arg3[%c0_16, %c0_17] : memref<64x9xf32, #tpu.memory_space<vmem>>, vector<64x9xf32>
    %46 = vector.extract_strided_slice %45 {offsets = [0, 0], sizes = [64, 1], strides = [1, 1]} : vector<64x9xf32> to vector<64x1xf32>
    %47 = vector.extract_strided_slice %44 {offsets = [0, 0], sizes = [64, 256], strides = [1, 1]} : vector<64x2304xf32> to vector<64x256xf32>
    %48 = vector.broadcast %46 : vector<64x1xf32> to vector<64x256xf32>
    %49 = arith.mulf %48, %47 : vector<64x256xf32>
    %50 = vector.broadcast %6 : vector<64x1xf32> to vector<64x256xf32>
    %51 = arith.addf %50, %49 : vector<64x256xf32>
    %52 = vector.extract_strided_slice %45 {offsets = [0, 1], sizes = [64, 1], strides = [1, 1]} : vector<64x9xf32> to vector<64x1xf32>
    %53 = vector.extract_strided_slice %44 {offsets = [0, 256], sizes = [64, 256], strides = [1, 1]} : vector<64x2304xf32> to vector<64x256xf32>
    %54 = vector.broadcast %52 : vector<64x1xf32> to vector<64x256xf32>
    %55 = arith.mulf %54, %53 : vector<64x256xf32>
    %56 = arith.addf %51, %55 : vector<64x256xf32>
    %57 = vector.extract_strided_slice %45 {offsets = [0, 2], sizes = [64, 1], strides = [1, 1]} : vector<64x9xf32> to vector<64x1xf32>
    %58 = vector.extract_strided_slice %44 {offsets = [0, 512], sizes = [64, 256], strides = [1, 1]} : vector<64x2304xf32> to vector<64x256xf32>
    %59 = vector.broadcast %57 : vector<64x1xf32> to vector<64x256xf32>
    %60 = arith.mulf %59, %58 : vector<64x256xf32>
    %61 = arith.addf %56, %60 : vector<64x256xf32>
    %62 = vector.extract_strided_slice %45 {offsets = [0, 3], sizes = [64, 1], strides = [1, 1]} : vector<64x9xf32> to vector<64x1xf32>
    %63 = vector.extract_strided_slice %44 {offsets = [0, 768], sizes = [64, 256], strides = [1, 1]} : vector<64x2304xf32> to vector<64x256xf32>
    %64 = vector.broadcast %62 : vector<64x1xf32> to vector<64x256xf32>
    %65 = arith.mulf %64, %63 : vector<64x256xf32>
    %66 = arith.addf %61, %65 : vector<64x256xf32>
    %67 = vector.extract_strided_slice %45 {offsets = [0, 4], sizes = [64, 1], strides = [1, 1]} : vector<64x9xf32> to vector<64x1xf32>
    %68 = vector.extract_strided_slice %44 {offsets = [0, 1024], sizes = [64, 256], strides = [1, 1]} : vector<64x2304xf32> to vector<64x256xf32>
    %69 = vector.broadcast %67 : vector<64x1xf32> to vector<64x256xf32>
    %70 = arith.mulf %69, %68 : vector<64x256xf32>
    %71 = arith.addf %66, %70 : vector<64x256xf32>
    %72 = vector.extract_strided_slice %45 {offsets = [0, 5], sizes = [64, 1], strides = [1, 1]} : vector<64x9xf32> to vector<64x1xf32>
    %73 = vector.extract_strided_slice %44 {offsets = [0, 1280], sizes = [64, 256], strides = [1, 1]} : vector<64x2304xf32> to vector<64x256xf32>
    %74 = vector.broadcast %72 : vector<64x1xf32> to vector<64x256xf32>
    %75 = arith.mulf %74, %73 : vector<64x256xf32>
    %76 = arith.addf %71, %75 : vector<64x256xf32>
    %77 = vector.extract_strided_slice %45 {offsets = [0, 6], sizes = [64, 1], strides = [1, 1]} : vector<64x9xf32> to vector<64x1xf32>
    %78 = vector.extract_strided_slice %44 {offsets = [0, 1536], sizes = [64, 256], strides = [1, 1]} : vector<64x2304xf32> to vector<64x256xf32>
    %79 = vector.broadcast %77 : vector<64x1xf32> to vector<64x256xf32>
    %80 = arith.mulf %79, %78 : vector<64x256xf32>
    %81 = arith.addf %76, %80 : vector<64x256xf32>
    %82 = vector.extract_strided_slice %45 {offsets = [0, 7], sizes = [64, 1], strides = [1, 1]} : vector<64x9xf32> to vector<64x1xf32>
    %83 = vector.extract_strided_slice %44 {offsets = [0, 1792], sizes = [64, 256], strides = [1, 1]} : vector<64x2304xf32> to vector<64x256xf32>
    %84 = vector.broadcast %82 : vector<64x1xf32> to vector<64x256xf32>
    %85 = arith.mulf %84, %83 : vector<64x256xf32>
    %86 = arith.addf %81, %85 : vector<64x256xf32>
    %87 = vector.extract_strided_slice %45 {offsets = [0, 8], sizes = [64, 1], strides = [1, 1]} : vector<64x9xf32> to vector<64x1xf32>
    %88 = vector.extract_strided_slice %44 {offsets = [0, 2048], sizes = [64, 256], strides = [1, 1]} : vector<64x2304xf32> to vector<64x256xf32>
    %89 = vector.broadcast %87 : vector<64x1xf32> to vector<64x256xf32>
    %90 = arith.mulf %89, %88 : vector<64x256xf32>
    %91 = arith.addf %86, %90 : vector<64x256xf32>
    %cst_18 = arith.constant 0.707106769 : f32
    %92 = vector.broadcast %cst_18 : f32 to vector<64x256xf32>
    %93 = arith.mulf %91, %92 : vector<64x256xf32>
    %94 = math.absf %93 : vector<64x256xf32>
    %cst_19 = arith.constant 0.327591091 : f32
    %95 = vector.broadcast %cst_19 : f32 to vector<64x256xf32>
    %96 = arith.mulf %95, %94 : vector<64x256xf32>
    %cst_20 = arith.constant 1.000000e+00 : f32
    %97 = vector.broadcast %cst_20 : f32 to vector<64x256xf32>
    %98 = arith.addf %97, %96 : vector<64x256xf32>
    %cst_21 = arith.constant 1.000000e+00 : f32
    %99 = vector.broadcast %cst_21 : f32 to vector<64x256xf32>
    %100 = arith.divf %99, %98 : vector<64x256xf32>
    %cst_22 = arith.constant 1.06140542 : f32
    %101 = vector.broadcast %cst_22 : f32 to vector<64x256xf32>
    %102 = arith.mulf %100, %101 : vector<64x256xf32>
    %cst_23 = arith.constant -1.45315206 : f32
    %103 = vector.broadcast %cst_23 : f32 to vector<64x256xf32>
    %104 = arith.addf %103, %102 : vector<64x256xf32>
    %105 = arith.mulf %100, %104 : vector<64x256xf32>
    %cst_24 = arith.constant 1.42141378 : f32
    %106 = vector.broadcast %cst_24 : f32 to vector<64x256xf32>
    %107 = arith.addf %106, %105 : vector<64x256xf32>
    %108 = arith.mulf %100, %107 : vector<64x256xf32>
    %cst_25 = arith.constant -0.284496725 : f32
    %109 = vector.broadcast %cst_25 : f32 to vector<64x256xf32>
    %110 = arith.addf %109, %108 : vector<64x256xf32>
    %111 = arith.mulf %100, %110 : vector<64x256xf32>
    %cst_26 = arith.constant 0.254829586 : f32
    %112 = vector.broadcast %cst_26 : f32 to vector<64x256xf32>
    %113 = arith.addf %112, %111 : vector<64x256xf32>
    %114 = arith.mulf %100, %113 : vector<64x256xf32>
    %cst_27 = arith.constant 0.000000e+00 : f32
    %115 = vector.broadcast %cst_27 : f32 to vector<64x256xf32>
    %116 = arith.subf %115, %94 : vector<64x256xf32>
    %117 = arith.mulf %116, %94 : vector<64x256xf32>
    %118 = math.exp %117 : vector<64x256xf32>
    %119 = arith.mulf %114, %118 : vector<64x256xf32>
    %cst_28 = arith.constant 1.000000e+00 : f32
    %120 = vector.broadcast %cst_28 : f32 to vector<64x256xf32>
    %121 = arith.subf %120, %119 : vector<64x256xf32>
    %cst_29 = arith.constant 0.000000e+00 : f32
    %122 = vector.broadcast %cst_29 : f32 to vector<64x256xf32>
    %123 = arith.cmpf oge, %93, %122 : vector<64x256xf32>
    %cst_30 = arith.constant 0.000000e+00 : f32
    %124 = vector.broadcast %cst_30 : f32 to vector<64x256xf32>
    %125 = arith.subf %124, %121 : vector<64x256xf32>
    %126 = arith.select %123, %121, %125 : vector<64x256xi1>, vector<64x256xf32>
    %cst_31 = arith.constant 5.000000e-01 : f32
    %127 = vector.broadcast %cst_31 : f32 to vector<64x256xf32>
    %128 = arith.mulf %127, %91 : vector<64x256xf32>
    %cst_32 = arith.constant 1.000000e+00 : f32
    %129 = vector.broadcast %cst_32 : f32 to vector<64x256xf32>
    %130 = arith.addf %129, %126 : vector<64x256xf32>
    %131 = arith.mulf %128, %130 : vector<64x256xf32>
    %cst_33 = arith.constant dense<0.000000e+00> : vector<64xf32>
    %132 = vector.multi_reduction <add>, %131, %cst_33 [1] : vector<64x256xf32> to vector<64xf32>
    %133 = vector.shape_cast %132 : vector<64xf32> to vector<64x1xf32>
    %cst_34 = arith.constant 2.560000e+02 : f32
    %134 = vector.broadcast %cst_34 : f32 to vector<64x1xf32>
    %135 = arith.divf %133, %134 : vector<64x1xf32>
    %c0_35 = arith.constant 0 : index
    %c0_36 = arith.constant 0 : index
    %136 = vector.load %arg5[%c0_35, %c0_36] : memref<64x64xf32, #tpu.memory_space<vmem>>, vector<64x64xf32>
    %cst_37 = arith.constant dense<0.000000e+00> : vector<64x1xf32>
    %137 = tpu.matmul %136, %135, %cst_37 {dimension_numbers = #tpu.dot_dimension_numbers<[1], [0], [0], [1], [0, 0, 1, 1], [], []>} : vector<64x64xf32>, vector<64x1xf32>, vector<64x1xf32> -> vector<64x1xf32>
    %138 = arith.addf %137, %8 : vector<64x1xf32>
    %139 = vector.broadcast %138 : vector<64x1xf32> to vector<64x256xf32>
    %140 = arith.mulf %131, %139 : vector<64x256xf32>
    %c0_38 = arith.constant 0 : index
    %c0_39 = arith.constant 0 : index
    %141 = vector.load %arg6[%c0_38, %c0_39] : memref<64x64xf32, #tpu.memory_space<vmem>>, vector<64x64xf32>
    %cst_40 = arith.constant dense<0.000000e+00> : vector<64x256xf32>
    %142 = tpu.matmul %141, %140, %cst_40 {dimension_numbers = #tpu.dot_dimension_numbers<[1], [0], [0], [1], [0, 0, 1, 1], [], []>} : vector<64x64xf32>, vector<64x256xf32>, vector<64x256xf32> -> vector<64x256xf32>
    %143 = vector.broadcast %7 : vector<64x1xf32> to vector<64x256xf32>
    %144 = arith.addf %142, %143 : vector<64x256xf32>
    %145 = vector.broadcast %9 : vector<64x1xf32> to vector<64x256xf32>
    %146 = arith.mulf %144, %145 : vector<64x256xf32>
    %147 = arith.addf %1, %146 : vector<64x256xf32>
    %cst_41 = arith.constant dense<0.000000e+00> : vector<64xf32>
    %148 = vector.multi_reduction <add>, %147, %cst_41 [1] : vector<64x256xf32> to vector<64xf32>
    %149 = vector.shape_cast %148 : vector<64xf32> to vector<64x1xf32>
    %cst_42 = arith.constant dense<0.000000e+00> : vector<1xf32>
    %150 = vector.multi_reduction <add>, %149, %cst_42 [0] : vector<64x1xf32> to vector<1xf32>
    %151 = vector.shape_cast %150 : vector<1xf32> to vector<1x1xf32>
    %cst_43 = arith.constant 6.10351563E-5 : f32
    %152 = vector.broadcast %cst_43 : f32 to vector<1x1xf32>
    %153 = arith.mulf %151, %152 : vector<1x1xf32>
    %154 = vector.broadcast %153 : vector<1x1xf32> to vector<64x256xf32>
    %155 = arith.subf %147, %154 : vector<64x256xf32>
    %156 = arith.mulf %155, %155 : vector<64x256xf32>
    %cst_44 = arith.constant dense<0.000000e+00> : vector<64xf32>
    %157 = vector.multi_reduction <add>, %156, %cst_44 [1] : vector<64x256xf32> to vector<64xf32>
    %158 = vector.shape_cast %157 : vector<64xf32> to vector<64x1xf32>
    %cst_45 = arith.constant dense<0.000000e+00> : vector<1xf32>
    %159 = vector.multi_reduction <add>, %158, %cst_45 [0] : vector<64x1xf32> to vector<1xf32>
    %160 = vector.shape_cast %159 : vector<1xf32> to vector<1x1xf32>
    %cst_46 = arith.constant 6.10351563E-5 : f32
    %161 = vector.broadcast %cst_46 : f32 to vector<1x1xf32>
    %162 = arith.mulf %160, %161 : vector<1x1xf32>
    %cst_47 = arith.constant 9.99999974E-6 : f32
    %163 = vector.broadcast %cst_47 : f32 to vector<1x1xf32>
    %164 = arith.addf %162, %163 : vector<1x1xf32>
    %165 = math.rsqrt %164 : vector<1x1xf32>
    %166 = vector.broadcast %165 : vector<1x1xf32> to vector<64x256xf32>
    %167 = arith.mulf %155, %166 : vector<64x256xf32>
    %168 = vector.broadcast %10 : vector<64x1xf32> to vector<64x256xf32>
    %169 = arith.mulf %167, %168 : vector<64x256xf32>
    %170 = vector.broadcast %11 : vector<64x1xf32> to vector<64x256xf32>
    %171 = arith.addf %169, %170 : vector<64x256xf32>
    %c0_48 = arith.constant 0 : index
    %c0_49 = arith.constant 0 : index
    %172 = vector.load %arg7[%c0_48, %c0_49] : memref<64x64xf32, #tpu.memory_space<vmem>>, vector<64x64xf32>
    %cst_50 = arith.constant dense<0.000000e+00> : vector<64x256xf32>
    %173 = tpu.matmul %172, %171, %cst_50 {dimension_numbers = #tpu.dot_dimension_numbers<[1], [0], [0], [1], [0, 0, 1, 1], [], []>} : vector<64x64xf32>, vector<64x256xf32>, vector<64x256xf32> -> vector<64x256xf32>
    %174 = vector.broadcast %12 : vector<64x1xf32> to vector<64x256xf32>
    %175 = arith.addf %173, %174 : vector<64x256xf32>
    %cst_51 = arith.constant 0.707106769 : f32
    %176 = vector.broadcast %cst_51 : f32 to vector<64x256xf32>
    %177 = arith.mulf %175, %176 : vector<64x256xf32>
    %178 = math.absf %177 : vector<64x256xf32>
    %cst_52 = arith.constant 0.327591091 : f32
    %179 = vector.broadcast %cst_52 : f32 to vector<64x256xf32>
    %180 = arith.mulf %179, %178 : vector<64x256xf32>
    %cst_53 = arith.constant 1.000000e+00 : f32
    %181 = vector.broadcast %cst_53 : f32 to vector<64x256xf32>
    %182 = arith.addf %181, %180 : vector<64x256xf32>
    %cst_54 = arith.constant 1.000000e+00 : f32
    %183 = vector.broadcast %cst_54 : f32 to vector<64x256xf32>
    %184 = arith.divf %183, %182 : vector<64x256xf32>
    %cst_55 = arith.constant 1.06140542 : f32
    %185 = vector.broadcast %cst_55 : f32 to vector<64x256xf32>
    %186 = arith.mulf %184, %185 : vector<64x256xf32>
    %cst_56 = arith.constant -1.45315206 : f32
    %187 = vector.broadcast %cst_56 : f32 to vector<64x256xf32>
    %188 = arith.addf %187, %186 : vector<64x256xf32>
    %189 = arith.mulf %184, %188 : vector<64x256xf32>
    %cst_57 = arith.constant 1.42141378 : f32
    %190 = vector.broadcast %cst_57 : f32 to vector<64x256xf32>
    %191 = arith.addf %190, %189 : vector<64x256xf32>
    %192 = arith.mulf %184, %191 : vector<64x256xf32>
    %cst_58 = arith.constant -0.284496725 : f32
    %193 = vector.broadcast %cst_58 : f32 to vector<64x256xf32>
    %194 = arith.addf %193, %192 : vector<64x256xf32>
    %195 = arith.mulf %184, %194 : vector<64x256xf32>
    %cst_59 = arith.constant 0.254829586 : f32
    %196 = vector.broadcast %cst_59 : f32 to vector<64x256xf32>
    %197 = arith.addf %196, %195 : vector<64x256xf32>
    %198 = arith.mulf %184, %197 : vector<64x256xf32>
    %cst_60 = arith.constant 0.000000e+00 : f32
    %199 = vector.broadcast %cst_60 : f32 to vector<64x256xf32>
    %200 = arith.subf %199, %178 : vector<64x256xf32>
    %201 = arith.mulf %200, %178 : vector<64x256xf32>
    %202 = math.exp %201 : vector<64x256xf32>
    %203 = arith.mulf %198, %202 : vector<64x256xf32>
    %cst_61 = arith.constant 1.000000e+00 : f32
    %204 = vector.broadcast %cst_61 : f32 to vector<64x256xf32>
    %205 = arith.subf %204, %203 : vector<64x256xf32>
    %cst_62 = arith.constant 0.000000e+00 : f32
    %206 = vector.broadcast %cst_62 : f32 to vector<64x256xf32>
    %207 = arith.cmpf oge, %177, %206 : vector<64x256xf32>
    %cst_63 = arith.constant 0.000000e+00 : f32
    %208 = vector.broadcast %cst_63 : f32 to vector<64x256xf32>
    %209 = arith.subf %208, %205 : vector<64x256xf32>
    %210 = arith.select %207, %205, %209 : vector<64x256xi1>, vector<64x256xf32>
    %cst_64 = arith.constant 5.000000e-01 : f32
    %211 = vector.broadcast %cst_64 : f32 to vector<64x256xf32>
    %212 = arith.mulf %211, %175 : vector<64x256xf32>
    %cst_65 = arith.constant 1.000000e+00 : f32
    %213 = vector.broadcast %cst_65 : f32 to vector<64x256xf32>
    %214 = arith.addf %213, %210 : vector<64x256xf32>
    %215 = arith.mulf %212, %214 : vector<64x256xf32>
    %c0_66 = arith.constant 0 : index
    %c0_67 = arith.constant 0 : index
    %216 = vector.load %arg8[%c0_66, %c0_67] : memref<64x64xf32, #tpu.memory_space<vmem>>, vector<64x64xf32>
    %cst_68 = arith.constant dense<0.000000e+00> : vector<64x256xf32>
    %217 = tpu.matmul %216, %215, %cst_68 {dimension_numbers = #tpu.dot_dimension_numbers<[1], [0], [0], [1], [0, 0, 1, 1], [], []>} : vector<64x64xf32>, vector<64x256xf32>, vector<64x256xf32> -> vector<64x256xf32>
    %218 = vector.broadcast %13 : vector<64x1xf32> to vector<64x256xf32>
    %219 = arith.addf %217, %218 : vector<64x256xf32>
    %220 = vector.broadcast %14 : vector<64x1xf32> to vector<64x256xf32>
    %221 = arith.mulf %219, %220 : vector<64x256xf32>
    %222 = arith.addf %147, %221 : vector<64x256xf32>
    %c0_69 = arith.constant 0 : index
    %c0_70 = arith.constant 0 : index
    %c0_71 = arith.constant 0 : index
    %223 = vector.load %arg10[%c0_69, %c0_70, %c0_71] : memref<1x64x256xf32, #tpu.memory_space<vmem>>, vector<1x64x256xf32>
    %224 = vector.shape_cast %223 : vector<1x64x256xf32> to vector<64x256xf32>
    %225 = vector.shape_cast %222 : vector<64x256xf32> to vector<1x64x256xf32>
    tpu.vector_store %arg10[%c0_69, %c0_70, %c0_71], %225 {strides = array<i32>} : memref<1x64x256xf32, #tpu.memory_space<vmem>>, vector<1x64x256xf32>,
    return
  }
  func.func @transform_0(%arg0: i32) -> (i32, i32, i32) {
    %c0_i32 = arith.constant 0 : i32
    %c0_i32_0 = arith.constant 0 : i32
    %c0_i32_1 = arith.constant 0 : i32
    return %arg0, %c0_i32, %c0_i32_0 : i32, i32, i32
  }
  func.func @transform_1(%arg0: i32) -> (i32, i32) {
    %c0_i32 = arith.constant 0 : i32
    %c0_i32_0 = arith.constant 0 : i32
    %c0_i32_1 = arith.constant 0 : i32
    return %c0_i32, %c0_i32_0 : i32, i32
  }
  func.func @transform_2(%arg0: i32) -> (i32, i32) {
    %c0_i32 = arith.constant 0 : i32
    %c0_i32_0 = arith.constant 0 : i32
    %c0_i32_1 = arith.constant 0 : i32
    return %c0_i32, %c0_i32_0 : i32, i32
  }
  func.func @transform_3(%arg0: i32) -> (i32, i32) {
    %c0_i32 = arith.constant 0 : i32
    %c0_i32_0 = arith.constant 0 : i32
    %c0_i32_1 = arith.constant 0 : i32
    return %c0_i32, %c0_i32_0 : i32, i32
  }
  func.func @transform_4(%arg0: i32) -> (i32, i32) {
    %c0_i32 = arith.constant 0 : i32
    %c0_i32_0 = arith.constant 0 : i32
    %c0_i32_1 = arith.constant 0 : i32
    return %c0_i32, %c0_i32_0 : i32, i32
  }
  func.func @transform_5(%arg0: i32) -> (i32, i32) {
    %c0_i32 = arith.constant 0 : i32
    %c0_i32_0 = arith.constant 0 : i32
    %c0_i32_1 = arith.constant 0 : i32
    return %c0_i32, %c0_i32_0 : i32, i32
  }
  func.func @transform_6(%arg0: i32) -> (i32, i32) {
    %c0_i32 = arith.constant 0 : i32
    %c0_i32_0 = arith.constant 0 : i32
    %c0_i32_1 = arith.constant 0 : i32
    return %c0_i32, %c0_i32_0 : i32, i32
  }
  func.func @transform_7(%arg0: i32) -> (i32, i32) {
    %c0_i32 = arith.constant 0 : i32
    %c0_i32_0 = arith.constant 0 : i32
    %c0_i32_1 = arith.constant 0 : i32
    return %c0_i32, %c0_i32_0 : i32, i32
  }
  func.func @transform_8(%arg0: i32) -> (i32, i32) {
    %c0_i32 = arith.constant 0 : i32
    %c0_i32_0 = arith.constant 0 : i32
    %c0_i32_1 = arith.constant 0 : i32
    return %c0_i32, %c0_i32_0 : i32, i32
  }
  func.func @transform_9(%arg0: i32) -> (i32, i32, i32) {
    %c0_i32 = arith.constant 0 : i32
    %c0_i32_0 = arith.constant 0 : i32
    %c0_i32_1 = arith.constant 0 : i32
    return %arg0, %c0_i32, %c0_i32_0 : i32, i32, i32
  }
}

</mosaic_0001>

<bundles_post_ra>
// kernel: tpu_custom_call.1
= control target key start
LH: loop header
LB: loop body
LE: loop exit
PB: predicated region body
PF: predicated region fallthrough
CT: control target
= control target key end

     0   :  { %s8792_s0 = inlined_call_operand.hbm [shape: f32[2,64,256], index: 0, kind: input, shape index: {}]   ;;  %s8793_s1 = inlined_call_operand.hbm [shape: f32[64,64], index: 1, kind: input, shape index: {}]   ;;  %s8794_s2 = inlined_call_operand.vmem [shape: f32[64,9], index: 2, kind: input, shape index: {}]   ;;  %s8795_s3 = inlined_call_operand.hbm [shape: f32[256,2304], index: 3, kind: input, shape index: {}]   ;;  %s8796_s4 = inlined_call_operand.hbm [shape: f32[64,64], index: 4, kind: input, shape index: {}]   ;;  %s8797_s5 = inlined_call_operand.hbm [shape: f32[64,64], index: 5, kind: input, shape index: {}]   ;;  %s8798_s6 = inlined_call_operand.hbm [shape: f32[64,64], index: 6, kind: input, shape index: {}]   ;;  %s8799_s7 = inlined_call_operand.hbm [shape: f32[64,64], index: 7, kind: input, shape index: {}]   ;;  %s8800_s8 = inlined_call_operand.vmem [shape: f32[64,12], index: 8, kind: input, shape index: {}]   ;;  %s8801_s9 = inlined_call_operand.hbm [shape: f32[2,64,256], index: 9, kind: output, shape index: {}]  }
   0x1   :  { %8894 = sst [smem:[#allocation58_spill]] %s8793_s1 }
   0x2   :  { %8895 = sst [smem:[#allocation59_spill]] %s8795_s3 }
   0x3   :  { %8896 = sst [smem:[#allocation60_spill]] %s8796_s4 }
   0x4   :  { %14 = vsyncpa [#allocation3], 0 }
   0x5   :  { %16 = vsyncpa [#allocation3 + $0x1], 0 }
   0x6   :  { %17 = vsyncpa [#allocation6], 0 }
   0x7   :  { %18 = vsyncpa [#allocation9], 0 }
   0x8   :  { %19 = vsyncpa [#allocation12], 0 }
   0x9   :  { %20 = vsyncpa [#allocation4], 0 }
   0xa   :  { %22 = vsyncpa [#allocation4 + $0x1], 0  ;;  %s6100_s30 = smov 0   ;;  %s6102_s10 = smov 0  }
   0xb   :  { %s6104_s11 = smov 0   ;;  %s6106_s12 = smov 0  }
   0xc LB: > { %s6020_s13 = smov [#allocation5]   ;;  %s6121_s15 = sadd.s32 4294967295, %s6018_s12   ;;  %s6018_s12 = sphi %s6106_s12, %s9125_s12   ;;  %s6014_s11 = sphi %s6104_s11, %s9124_s11   ;;  %s6010_s10 = sphi %s6102_s10, %s9123_s10   ;;  %s6006_s30 = sphi %s6100_s30, %s9122_s30  }
   0xd   : > { %s265_s14 = sshll.u32 %s6020_s13, 4  ;;  %p5243_p0 = scmp.ge.s32.totalorder %s6018_s12, 1  ;;  %s266_s14 = int_to_ptr.vmem [resolvable:$true] %s265_s14 }
   0xe   : > { %p8802_p1 = scmp.eq.s32.totalorder %s6121_s15, 0  ;;  %p253_p2 = scmp.lt.s32.totalorder %s6018_s12, 3 }
   0xf   : > { %s6021_s17 = smov [#allocation8]   ;;  %s6022_s20 = smov [#allocation11]  }
  0x10   : > { %p6126_p3 = pnand %p5243_p0, %p253_p2  ;;  %s294_s18 = sshll.u32 %s6021_s17, 4  ;;  %s6139_s18 = int_to_ptr.vmem [resolvable:$true] %s294_s18 }
  0x11   : > { %s320_s21 = sshll.u32 %s6022_s20, 4  ;;  %s5769_s23 = scalar_lea.vmem %s266_s14, 1024  ;;  %s6141_s21 = int_to_ptr.vmem [resolvable:$true] %s320_s21 }
  0x12   : > { %s8897_s16 = scalar_select %p6126_p3, 1, 0 }
  0x13   : > { %p5382_p5 = pneg %p6126_p3  ;;  %p5770_p8 = scmp.ne.s32.totalorder %s266_s14, %s5769_s23 }
  0x14   : > { %p5777_p11 = scmp.lt.s32.totalorder %s266_s14, %s266_s14  ;;  %p5778_p12 = scmp.lt.s32.totalorder %s5769_s23, %s5769_s23 }
  0x15   : > { %p6135_p6 = pnand %p5382_p5, %p8802_p1 }
  0x16   : > { %p5779_p13 = por %p5778_p12, %p5777_p11 }
  0x17   : > { %p6145_p7 = pneg %p6135_p6 }
  0x19   : > { %p5772_p9 = pnand %p5770_p8, %p6145_p7 }
  0x1b   : > { %p5773_p10 = pneg %p5772_p9 }
  0x1d   : > { %p5780_p0 = pnand %p5779_p13, %p5773_p10 }
  0x1f   : > { %5783 = shalt.err (!%p5780_p0)
}
  0x20   : > { %s6023_s24 = smov 128   ;;  %s6024_s25 = smov 8  }
  0x21   : > { %s8900_s1 = sld [smem:[#allocation58_spill]]  ;;  %s5795_s28 = scalar_lea.vmem %s6139_s18, 1024 }
  0x22   : > { %p5796_p2 = scmp.ne.s32.totalorder %s6139_s18, %s5795_s28  ;;  %p5803_p9 = scmp.lt.s32.totalorder %s6139_s18, %s6139_s18 }
  0x23   : > { %p5804_p10 = scmp.lt.s32.totalorder %s5795_s28, %s5795_s28 }
  0x24   : > { %p5798_p5 = pnand %p5796_p2, %p6145_p7 }
  0x25   : > { %p5805_p11 = por %p5804_p10, %p5803_p9 }
  0x26   : > { %p5799_p8 = pneg %p5798_p5 }
  0x27   : > { %5385 = dma.hbm_to_vmem [thread:$0]  (!%p6135_p6), %s8900_s1, 1024, %s266_s14, [#allocation6], %s6023_s24, %s6023_s24, %s6024_s25  }
  0x28   : > { %p5806_p12 = pnand %p5805_p11, %p5799_p8 }
  0x2a   : > { %5809 = shalt.err (!%p5806_p12)
}
  0x2b   : > { %s8901_s4 = sld [smem:[#allocation60_spill]]  ;;  %s5821_s14 = scalar_lea.vmem %s6141_s21, 1024 }
  0x2c   : > { %p5822_p13 = scmp.ne.s32.totalorder %s6141_s21, %s5821_s14  ;;  %p5829_p5 = scmp.lt.s32.totalorder %s6141_s21, %s6141_s21 }
  0x2d   : > { %p5830_p8 = scmp.lt.s32.totalorder %s5821_s14, %s5821_s14 }
  0x2e   : > { %p5824_p0 = pnand %p5822_p13, %p6145_p7 }
  0x2f   : > { %p5831_p9 = por %p5830_p8, %p5829_p5 }
  0x30   : > { %p5825_p2 = pneg %p5824_p0 }
  0x31   : > { %5391 = dma.hbm_to_vmem [thread:$0]  (!%p6135_p6), %s8901_s4, 1024, %s6139_s18, [#allocation9], %s6023_s24, %s6023_s24, %s6024_s25  }
  0x32   : > { %p5832_p10 = pnand %p5831_p9, %p5825_p2 }
  0x34   : > { %5835 = shalt.err (!%p5832_p10)
}
  0x35   : > { %5397 = dma.hbm_to_vmem [thread:$0]  (!%p6135_p6), %s8798_s6, 1024, %s6141_s21, [#allocation12], %s6023_s24, %s6023_s24, %s6024_s25  }
  0x36   : > { %s6025_s18 = smov [#allocation7]  }
  0x37   : > { %s281_s23 = sshll.u32 %s6025_s18, 4  ;;  %s282_s23 = int_to_ptr.vmem [resolvable:$true] %s281_s23 }
  0x38   : > { %s5847_s26 = scalar_lea.vmem %s282_s23, 73728  ;;  %p5855_p0 = scmp.lt.s32.totalorder %s282_s23, %s282_s23 }
  0x39   : > { %p5848_p11 = scmp.ne.s32.totalorder %s282_s23, %s5847_s26  ;;  %p5856_p2 = scmp.lt.s32.totalorder %s5847_s26, %s5847_s26 }
  0x3b   : > { %p5850_p12 = pnand %p5848_p11, %p6145_p7  ;;  %p5857_p5 = por %p5856_p2, %p5855_p0 }
  0x3d   : > { %p5851_p13 = pneg %p5850_p12 }
  0x3f   : > { %p5858_p8 = pnand %p5857_p5, %p5851_p13 }
  0x41   : > { %5861 = shalt.err (!%p5858_p8)
}
  0x42   : > { %s6026_s27 = smov 2304   ;;  %s6027_s28 = smov 144  }
  0x43   : > { %s8902_s3 = sld [smem:[#allocation59_spill]]  ;;  %s6028_s13 = smov [#allocation10]  }
  0x44   : > { %s307_s14 = sshll.u32 %s6028_s13, 4  ;;  %s6029_s17 = smov [#allocation13]   ;;  %s308_s14 = int_to_ptr.vmem [resolvable:$true] %s307_s14 }
  0x45   : > { %s333_s20 = sshll.u32 %s6029_s17, 4  ;;  %s5873_s18 = scalar_lea.vmem %s308_s14, 1024  ;;  %s334_s20 = int_to_ptr.vmem [resolvable:$true] %s333_s20 }
  0x46   : > { %p5874_p9 = scmp.ne.s32.totalorder %s308_s14, %s5873_s18  ;;  %p5881_p12 = scmp.lt.s32.totalorder %s308_s14, %s308_s14 }
  0x47   : > { %p5882_p13 = scmp.lt.s32.totalorder %s5873_s18, %s5873_s18 }
  0x48   : > { %p5876_p10 = pnand %p5874_p9, %p6145_p7 }
  0x49   : > { %5388 = dma.hbm_to_vmem [thread:$0]  (!%p6135_p6), %s8902_s3, 73728, %s282_s23, [#allocation6], %s6026_s27, %s6026_s27, %s6027_s28  }
  0x4a   : > { %p5877_p11 = pneg %p5876_p10  ;;  %p5883_p0 = por %p5882_p13, %p5881_p12 }
  0x4c   : > { %p5884_p2 = pnand %p5883_p0, %p5877_p11 }
  0x4e   : > { %5887 = shalt.err (!%p5884_p2)
}
  0x4f   : > { %5394 = dma.hbm_to_vmem [thread:$0]  (!%p6135_p6), %s8797_s5, 1024, %s308_s14, [#allocation9], %s6023_s24, %s6023_s24, %s6024_s25  }
  0x50   : > { %s5899_s27 = scalar_lea.vmem %s334_s20, 1024  ;;  %p5907_p10 = scmp.lt.s32.totalorder %s334_s20, %s334_s20 }
  0x51   : > { %p5900_p5 = scmp.ne.s32.totalorder %s334_s20, %s5899_s27  ;;  %p5908_p4 = scmp.lt.s32.totalorder %s5899_s27, %s5899_s27 }
  0x53   : > { %p5902_p8 = pnand %p5900_p5, %p6145_p7  ;;  %p5909_p12 = por %p5908_p4, %p5907_p10 }
  0x55   : > { %p5903_p9 = pneg %p5902_p8 }
  0x57   : > { %p5910_p11 = pnand %p5909_p12, %p5903_p9 }
  0x59   : > { %5913 = shalt.err (!%p5910_p11)
}
  0x5a   : > { %5400 = dma.hbm_to_vmem [thread:$0]  (!%p6135_p6), %s8799_s7, 1024, %s334_s20, [#allocation12], %s6023_s24, %s6023_s24, %s6024_s25  }
  0x5b   : > { %s5242_s19 = sadd.s32 4294967294, %s6018_s12   ;;  %s6218_s22 = sadd.s32 1, %s6018_s12  }
  0x5c   : > { %s32_s21 = ssub.s32 %s6018_s12, %s6218_s22  ;;  %s35_s13 = sadd.s32 1, %s6014_s11 }
  0x5d   : > { %p33_p4 = scmp.eq.s32.totalorder %s32_s21, 0  ;;  %p42_p7 = scmp.ne.s32.totalorder %s6014_s11, %s6010_s10 }
  0x5e   : > { %p43_p13 = scmp.eq.s32.totalorder %s6018_s12, 0  ;;  %p48_p0 = scmp.ne.s32.totalorder %s6010_s10, %s6006_s30 }
  0x5f   : > { %s6229_s14 = scalar_select %p33_p4, %s6014_s11, %s35_s13  }
  0x60   : > { %p6231_p2 = por %p43_p13, %p42_p7  ;;  %p6237_p6 = por %p8802_p1, %p48_p0 }
  0x61   : > { %p240_p5 = scmp.eq.s32.totalorder %s6121_s15, 1  ;;  %p246_p8 = scmp.eq.s32.totalorder %s5242_s19, 1 }
  0x62   : > { %s8904_s24 = scalar_select %p6237_p6, 1, 0 }
  0x63   : > { %p5415_p9 = scmp.lt.s32.totalorder %s6018_s12, 2  ;;  %s350_s25 = sand.u32 1, %s6014_s11  }
  0x64   : > { %p6244_p10 = por %p240_p5, %p42_p7  ;;  %p6248_p12 = por %p246_p8, %p48_p0 }
  0x65   : > { %s5251_s23 = sshll.u32 %s350_s25, 7  ;;  %s5308_s26 = sshll.u32 %s6018_s12, 11 }
  0x66   : > { %s8905_s20 = scalar_select %p6244_p10, 1, 0 }
  0x67   : > { %s8906_s18 = scalar_select %p6248_p12, 1, 0 }
  0x68   : > { %s6256_s29 = scalar_lea.hbm %s8792_s0, %s5308_s26  ;;  %s354_s19 = scalar_lea.vmem [#allocation2], %s5251_s23 }
  0x69   : > { %s361_s21 = sshll.u32 %s354_s19, 4  ;;  %p6262_p11 = pnand %p5415_p9, %p6231_p2  ;;  %s6258_s21 = int_to_ptr.vmem [resolvable:$true] %s361_s21 }
  0x6a   : > { %s6266_s1 = scalar_lea.sflag [#allocation3], %s350_s25  ;;  %s5914_s3 = scalar_lea.hbm %s6256_s29, 2048 }
  0x6b   : > { %p5915_p4 = scmp.ne.s32.totalorder %s6256_s29, %s5914_s3  ;;  %p5916_p7 = pneg %p6262_p11 }
  0x6c   : > { %s5919_s23 = scalar_lea.hbm %s8792_s0, 4096  ;;  %p5920_p2 = scmp.lt.s32.totalorder %s6256_s29, %s8792_s0 }
  0x6d   : > { %p5917_p13 = pnand %p5916_p7, %p5915_p4  ;;  %p5921_p5 = scmp.lt.s32.totalorder %s5919_s23, %s5914_s3 }
  0x6f   : > { %p5918_p0 = pneg %p5917_p13  ;;  %p5922_p8 = por %p5921_p5, %p5920_p2 }
  0x71   : > { %p5923_p9 = pnand %p5922_p8, %p5918_p0 }
  0x73   : > { %5926 = shalt.err (!%p5923_p9)
}
  0x74   : > { %s5927_s17 = scalar_lea.vmem %s6258_s21, 2048  ;;  %s6030_s25 = smov [#allocation2]  }
  0x75   : > { %p5928_p1 = scmp.ne.s32.totalorder %s6258_s21, %s5927_s17  ;;  %s5932_s4 = sshll.u32 %s6030_s25, 4  ;;  %s5933_s4 = int_to_ptr.vmem [resolvable:$false] %s5932_s4 }
  0x76   : > { %s5934_s26 = scalar_lea.vmem %s5933_s4, 4096  ;;  %p5935_p13 = scmp.lt.s32.totalorder %s6258_s21, %s5933_s4 }
  0x77   : > { %p5930_p12 = pnand %p5928_p1, %p5916_p7  ;;  %p5936_p10 = scmp.lt.s32.totalorder %s5934_s26, %s5927_s17 }
  0x79   : > { %p5931_p4 = pneg %p5930_p12  ;;  %p5937_p6 = por %p5936_p10, %p5935_p13 }
  0x7b   : > { %p5938_p3 = pnand %p5937_p6, %p5931_p4 }
  0x7d   : > { %5941 = shalt.err (!%p5938_p3)
}
  0x7e   : > { %s6031_s3 = smov 256   ;;  %s6032_s27 = smov 16  }
  0x7f   : > { %5404 = dma.hbm_to_vmem [thread:$0]  (!%p6262_p11), %s6256_s29, 2048, %s6258_s21, %s6266_s1, %s6031_s3, %s6031_s3, %s6032_s27  }
  0x80   : > { %p8908_p1 = scmp.ne.s32.totalorder %s8897_s16, 0 }
  0x82   : > { %373 = sbr.rel (%p8908_p1) target bundleno = 3092 (0xc14), region = 56 }
  0x87   : > { %s6290_s23 = sand.u32 1, %s6010_s10   ;;  %p8909_p3 = scmp.ne.s32.totalorder %s8904_s24, 0 }
  0x88   : > { %s5255_s4 = sshll.u32 %s6290_s23, 7  ;;  %s376_s28 = scalar_lea.sflag [#allocation3], %s6290_s23 }
  0x89   : > { %s6296_s19 = scalar_lea.vmem [#allocation2], %s5255_s4 }
  0x8a   : > { %5985 = dma.done.wait (%p8909_p3), %s376_s28, 2048  }
  0x8b   : > { %5987 = vsyncadd (%p8909_p3), %s376_s28, 4294965248  ;;  %p8910_p6 = scmp.eq.s32.totalorder %s6121_s15, 0 }
  0x8d   : > { %5989 = dma.done.wait (%p8910_p6), [#allocation6], 74752   ;;  %p8911_p10 = pmov %p8910_p6 }
  0x8e   : > { %p8912_p12 = pmov %p8910_p6 }
  0x8f   : > { %5991 = vsyncadd (%p8911_p10), [#allocation6], 4294892544 }
  0x90   : > { %5993 = dma.done.wait (%p8912_p12), [#allocation9], 2048   ;;  %p8913_p11 = pmov %p8910_p6 }
  0x91   : > { %p8914_p7 = pmov %p8910_p6 }
  0x92   : > { %5995 = vsyncadd (%p8913_p11), [#allocation9], 4294965248 }
  0x93   : > { %5997 = dma.done.wait (%p8914_p7), [#allocation12], 2048   ;;  %p8915_p0 = pmov %p8910_p6 }
  0x94   : > { %v438_v0 = vld [vmem:[%s6296_s19] sm:$0xff]  ;;  %v439_v1 = vld [vmem:[%s6296_s19 + $0x8] sm:$0xff]  ;;  %v440_v5 = vld [vmem:[%s6296_s19 + $0x10] sm:$0xff]  ;;  %v8808_v24 = vmov 0   ;;  %vm732_vm0 = vcmask 523264   ;;  %s6043_s17 = smov 123  }
  0x95   : > { %5999 = vsyncadd (%p8915_p0), [#allocation12], 4294965248  ;;  %v442_v2 = vld [vmem:[%s6296_s19 + $0x20] sm:$0xff]  ;;  %v462_v3 = vadd.f32 %v439_v1, %v438_v0  ;;  %v443_v4 = vld [vmem:[%s6296_s19 + $0x28] sm:$0xff]  ;;  %5484 = vset.pattern.permute.xlu1 %v8808_v24  ;;  %5483 = vset.pattern.permute.xlu0 %v8808_v24  ;;  %s8703_s28 = scalar_lea.vmem [#allocation14], %s5255_s4  ;;  %s5309_s4 = sshll.u32 %s6121_s15, 11 }
  0x96   : > { %v441_v6 = vld [vmem:[%s6296_s19 + $0x18] sm:$0xff]  ;;  %v468_v7 = vadd.f32 %v443_v4, %v442_v2  ;;  %v444_v8 = vld [vmem:[%s6296_s19 + $0x30] sm:$0xff]  ;;  %v6323_v12 = vld [vmem:[%s6296_s19 + $0x40] sm:$0xff]  ;;  %s5112_s1 = sshll.u32 %s8703_s28, 4  ;;  %s8744_s29 = scalar_lea.hbm %s8801_s9, %s5309_s4  ;;  %s8746_s1 = int_to_ptr.vmem [resolvable:$true] %s5112_s1 }
  0x97   : > { %v445_v9 = vld [vmem:[%s6296_s19 + $0x38] sm:$0xff]  ;;  %463 = vadd.xlane.f32.xlu0 %v462_v3  ;;  %v465_v10 = vadd.f32 %v441_v6, %v440_v5  ;;  %v6326_v13 = vld [vmem:[%s6296_s19 + $0x48] sm:$0xff]  ;;  %v448_v14 = vld [vmem:[%s6296_s19 + $0x50] sm:$0xff]  ;;  %s5099_s15 = scalar_lea.sflag [#allocation4], %s6290_s23  ;;  %s5942_s21 = scalar_lea.vmem %s8746_s1, 2048 }
  0x98   : > { %469 = vadd.xlane.f32.xlu1 %v468_v7  ;;  %v471_v11 = vadd.f32 %v445_v9, %v444_v8  ;;  %v449_v15 = vld [vmem:[%s6296_s19 + $0x58] sm:$0xff]  ;;  %v474_v16 = vadd.f32 %v6326_v13, %v6323_v12  ;;  %v6333_v18 = vld [vmem:[%s6296_s19 + $0x60] sm:$0xff]  ;;  %v6336_v19 = vld [vmem:[%s6296_s19 + $0x68] sm:$0xff]  ;;  %p5943_p2 = scmp.ne.s32.totalorder %s8746_s1, %s5942_s21  ;;  %p9119_p5 = scmp.ne.s32.totalorder %s8905_s20, 0 }
  0x99   : > { %v477_v17 = vadd.f32 %v449_v15, %v448_v14  ;;  %v6339_v20 = vld [vmem:[%s6296_s19 + $0x70] sm:$0xff]  ;;  %v6342_v21 = vld [vmem:[%s6296_s19 + $0x78] sm:$0xff]  ;;  %v480_v22 = vadd.f32 %v6336_v19, %v6333_v18  ;;  %s6047_s13 = smov [#allocation14]  }
  0x9a   : > { %v483_v23 = vadd.f32 %v6342_v21, %v6339_v20  ;;  %p5944_p8 = pnand %p5943_p2, %p9119_p5  ;;  %s5946_s25 = sshll.u32 %s6047_s13, 4  ;;  %s5947_s25 = int_to_ptr.vmem [resolvable:$false] %s5946_s25 }
  0x9b   : > { %466 = vadd.xlane.f32.xlu0 %v465_v10  ;;  %s5948_s26 = scalar_lea.vmem %s5947_s25, 4096  ;;  %p5949_p4 = scmp.lt.s32.totalorder %s8746_s1, %s5947_s25 }
  0x9c   : > { %472 = vadd.xlane.f32.xlu1 %v471_v11  ;;  %p5945_p9 = pneg %p5944_p8  ;;  %p5950_p13 = scmp.lt.s32.totalorder %s5948_s26, %s5942_s21 }
  0x9e   : > { %p5951_p1 = por %p5950_p13, %p5949_p4 }
  0x9f   : > { %475 = vadd.xlane.f32.xlu0 %v474_v16 }
  0xa0   : > { %478 = vadd.xlane.f32.xlu1 %v477_v17  ;;  %p5952_p3 = pnand %p5951_p1, %p5945_p9 }
  0xa3   : > { %481 = vadd.xlane.f32.xlu0 %v480_v22  ;;  %v6034_v22 = vmov 1  }
  0xa4   : > { %484 = vadd.xlane.f32.xlu1 %v483_v23  ;;  %v459_v23 = vld [vmem:[%s8800_s8 + $0x28] sm:$0xff] }
 0x120   : > { %v464_v25 = vpop.xlane.xlu0 %463 }
 0x121   : > { %v470_v26 = vpop.xlane.xlu1 %469 }
 0x124   : > { %v467_v27 = vpop.xlane.xlu0 %466 }
 0x125   : > { %v486_v28 = vadd.f32 %v467_v27, %v464_v25  ;;  %v473_v29 = vpop.xlane.xlu1 %472  ;;  %v6447_v25 = vld [vmem:[%s8800_s8 + $0x10] sm:$0xff]  ;;  %v6460_v27 = vld [vmem:[%s8800_s8 + $0x20] sm:$0xff] }
 0x127   : > { %v487_v30 = vadd.f32 %v486_v28, %v470_v26  ;;  %v6454_v26 = vld [vmem:[%s8800_s8 + $0x8] sm:$0xff]  ;;  %v6466_v28 = vld [vmem:[%s8800_s8] sm:$0xff] }
 0x128   : > { %v476_v31 = vpop.xlane.xlu0 %475 }
 0x129   : > { %v488_v32 = vadd.f32 %v487_v30, %v473_v29  ;;  %v479_v33 = vpop.xlane.xlu1 %478 }
 0x12b   : > { %v489_v34 = vadd.f32 %v488_v32, %v476_v31 }
 0x12c   : > { %v482_v35 = vpop.xlane.xlu0 %481 }
 0x12d   : > { %v490_v36 = vadd.f32 %v489_v34, %v479_v33  ;;  %v485_v37 = vpop.xlane.xlu1 %484  ;;  %v6489_v34 = vld [vmem:[%s8800_s8 + $0x18] sm:$0xff] }
 0x12f   : > { %v491_v38 = vadd.f32 %v490_v36, %v482_v35  ;;  %v1141_v36 = vld [vmem:[#allocation7 + $0x878] sm:$0xff] }
 0x130   : > { %1446 = vmatprep.subr.mxu1 %v1141_v36  ;;  %v925_v36 = vld [vmem:[#allocation7 + $0x1b8] sm:$0xff] }
 0x131   : > { %v492_v39 = vadd.f32 %v491_v38, %v485_v37  ;;  %v6036_v37 = vmov 2   ;;  %v1140_v38 = vld [vmem:[#allocation7 + $0x870] sm:$0xff] }
 0x132   : > { %1447 = vmatpush1.msra.mxu1 %v1140_v38  ;;  %v6037_v38 = vmov 3  }
 0x133   : > { %v493_v40 = vrot.slane %v492_v39, 4 }
 0x135   : > { %v494_v41 = vadd.f32 %v493_v40, %v492_v39  ;;  %v1123_v39 = vld [vmem:[#allocation7 + $0x7e8] sm:$0xff] }
 0x136   : > { %1448 = vmatprep.subr.mxu1 %v1123_v39  ;;  %v924_v39 = vld [vmem:[#allocation7 + $0x1b0] sm:$0xff] }
 0x137   : > { %v495_v42 = vrot.slane %v494_v41, 2 }
 0x139   : > { %v496_v43 = vadd.f32 %v495_v42, %v494_v41  ;;  %v1122_v41 = vld [vmem:[#allocation7 + $0x7e0] sm:$0xff]  ;;  %v1105_v42 = vld [vmem:[#allocation7 + $0x758] sm:$0xff] }
 0x13a   : > { %1449 = vmatpush1.msra.mxu1 %v1122_v41 }
 0x13b   : > { %v497_v44 = vrot.slane %v496_v43, 1  ;;  %1450 = vmatprep.subr.mxu1 %v1105_v42  ;;  %v907_v42 = vld [vmem:[#allocation7 + $0x128] sm:$0xff] }
 0x13d   : > { %v498_v45 = vadd.f32 %v497_v44, %v496_v43  ;;  %v1104_v43 = vld [vmem:[#allocation7 + $0x750] sm:$0xff]  ;;  %v1087_v44 = vld [vmem:[#allocation7 + $0x6c8] sm:$0xff] }
 0x13e   : > { %1451 = vmatpush1.msra.mxu1 %v1104_v43 }
 0x13f   : > { %v6350_v46 = vmul.f32 6.1035156e-05, %v498_v45  ;;  %v1086_v45 = vld [vmem:[#allocation7 + $0x6c0] sm:$0xff]  ;;  %1452 = vmatprep.subr.mxu1 %v1087_v44 }
 0x140   : > { %1453 = vmatpush1.msra.mxu1 %v1086_v45  ;;  %v906_v44 = vld [vmem:[#allocation7 + $0x120] sm:$0xff]  ;;  %v888_v45 = vld [vmem:[#allocation7 + $0x90] sm:$0xff] }
 0x141   : > { %v6353_v47 = vsub.f32 %v440_v5, %v6350_v46  ;;  %v6356_v48 = vsub.f32 %v441_v6, %v6350_v46  ;;  %v6359_v49 = vsub.f32 %v438_v0, %v6350_v46  ;;  %v6362_v50 = vsub.f32 %v439_v1, %v6350_v46 }
 0x142   : > { %v6365_v51 = vsub.f32 %v444_v8, %v6350_v46  ;;  %v6368_v52 = vsub.f32 %v445_v9, %v6350_v46  ;;  %v6371_v53 = vsub.f32 %v442_v2, %v6350_v46  ;;  %v6374_v54 = vsub.f32 %v443_v4, %v6350_v46 }
 0x143   : > { %v518_v55 = vmul.f32 %v6353_v47, %v6353_v47  ;;  %v519_v56 = vmul.f32 %v6356_v48, %v6356_v48  ;;  %v516_v57 = vmul.f32 %v6359_v49, %v6359_v49  ;;  %v517_v58 = vmul.f32 %v6362_v50, %v6362_v50 }
 0x144   : > { %v522_v59 = vmul.f32 %v6365_v51, %v6365_v51  ;;  %v523_v60 = vmul.f32 %v6368_v52, %v6368_v52  ;;  %v520_v61 = vmul.f32 %v6371_v53, %v6371_v53  ;;  %v521_v62 = vmul.f32 %v6374_v54, %v6374_v54 }
 0x145   : > { %v535_v63 = vadd.f32 %v519_v56, %v518_v55  ;;  %v532_v0 = vadd.f32 %v517_v58, %v516_v57  ;;  %v6393_v1 = vsub.f32 %v448_v14, %v6350_v46  ;;  %v6396_v2 = vsub.f32 %v449_v15, %v6350_v46  ;;  %v1069_v55 = vld [vmem:[#allocation7 + $0x638] sm:$0xff]  ;;  %v1068_v56 = vld [vmem:[#allocation7 + $0x630] sm:$0xff]  ;;  %v1051_v58 = vld [vmem:[#allocation7 + $0x5a8] sm:$0xff] }
 0x146   : > { %v6400_v3 = vsub.f32 %v6323_v12, %v6350_v46  ;;  %v6404_v4 = vsub.f32 %v6326_v13, %v6350_v46  ;;  %v541_v5 = vadd.f32 %v523_v60, %v522_v59  ;;  %v538_v6 = vadd.f32 %v521_v62, %v520_v61  ;;  %1454 = vmatprep.subr.mxu1 %v1069_v55  ;;  %v1050_v59 = vld [vmem:[#allocation7 + $0x5a0] sm:$0xff]  ;;  %v1033_v60 = vld [vmem:[#allocation7 + $0x518] sm:$0xff]  ;;  %v1032_v61 = vld [vmem:[#allocation7 + $0x510] sm:$0xff] }
 0x147   : > { %536 = vadd.xlane.f32.xlu1 %v535_v63  ;;  %533 = vadd.xlane.f32.xlu0 %v532_v0  ;;  %v526_v7 = vmul.f32 %v6393_v1, %v6393_v1  ;;  %v527_v8 = vmul.f32 %v6396_v2, %v6396_v2  ;;  %v6416_v11 = vsub.f32 %v6333_v18, %v6350_v46  ;;  %v6429_v18 = vld [vmem:[%s8800_s8 + $0x30] sm:$0xff]  ;;  %v1015_v63 = vld [vmem:[#allocation7 + $0x488] sm:$0xff]  ;;  %v1014_v0 = vld [vmem:[#allocation7 + $0x480] sm:$0xff] }
 0x148   : > { %v524_v9 = vmul.f32 %v6400_v3, %v6400_v3  ;;  %v525_v10 = vmul.f32 %v6404_v4, %v6404_v4  ;;  %v6420_v12 = vsub.f32 %v6336_v19, %v6350_v46  ;;  %v6435_v19 = vld [vmem:[%s8800_s8 + $0x38] sm:$0xff]  ;;  %v6476_v29 = vsub.f32 %v6339_v20, %v6350_v46  ;;  %1455 = vmatpush1.msra.mxu1 %v1068_v56  ;;  %v871_v55 = vld [vmem:[#allocation7 + $0x8] sm:$0xff] }
 0x149   : > { %v547_v13 = vadd.f32 %v527_v8, %v526_v7  ;;  %v528_v15 = vmul.f32 %v6416_v11, %v6416_v11  ;;  %v6480_v30 = vsub.f32 %v6342_v21, %v6350_v46  ;;  %v8806_v20 = vmov 0.0   ;;  %1456 = vmatprep.subr.mxu1 %v1051_v58  ;;  %v996_v8 = vld [vmem:[#allocation7 + $0x3f0] sm:$0xff] }
 0x14a   : > { %v544_v14 = vadd.f32 %v525_v10, %v524_v9  ;;  %v529_v16 = vmul.f32 %v6420_v12, %v6420_v12  ;;  %v530_v31 = vmul.f32 %v6476_v29, %v6476_v29  ;;  %821 = vmatprep.mubr.f32.mxu0 %v8806_v20  ;;  %1457 = vmatpush1.msra.mxu1 %v1050_v59  ;;  %v6520_v9 = vld [vmem:[%s8794_s2 + $0x38] sm:$0xff]  ;;  %v979_v10 = vld [vmem:[#allocation7 + $0x368] sm:$0xff] }
 0x14b   : > { %542 = vadd.xlane.f32.xlu1 %v541_v5  ;;  %539 = vadd.xlane.f32.xlu0 %v538_v6  ;;  %v531_v32 = vmul.f32 %v6480_v30, %v6480_v30  ;;  %v997_v6 = vld [vmem:[#allocation7 + $0x3f8] sm:$0xff] }
 0x14c   : > { %v550_v17 = vadd.f32 %v529_v16, %v528_v15  ;;  %1458 = vmatprep.subr.mxu1 %v1033_v60  ;;  %v978_v15 = vld [vmem:[#allocation7 + $0x360] sm:$0xff]  ;;  %v1429_v59 = vld [vmem:[#allocation7 + $0x1178] sm:$0xff]  ;;  %v1428_v60 = vld [vmem:[#allocation7 + $0x1170] sm:$0xff] }
 0x14d   : > { %v553_v33 = vadd.f32 %v531_v32, %v530_v31  ;;  %1459 = vmatpush1.msra.mxu1 %v1032_v61  ;;  %v943_v31 = vld [vmem:[#allocation7 + $0x248] sm:$0xff] }
 0x14e   : > { %1460 = vmatprep.subr.mxu1 %v1015_v63  ;;  %v1411_v61 = vld [vmem:[#allocation7 + $0x10e8] sm:$0xff] }
 0x14f   : > { %548 = vadd.xlane.f32.xlu1 %v547_v13  ;;  %545 = vadd.xlane.f32.xlu0 %v544_v14  ;;  %v6525_v13 = vld [vmem:[%s8794_s2 + $0x30] sm:$0xff] }
 0x150   : > { %1461 = vmatpush1.msra.mxu1 %v1014_v0  ;;  %v1410_v0 = vld [vmem:[#allocation7 + $0x10e0] sm:$0xff] }
 0x151   : > { %1462 = vmatprep.subr.mxu1 %v997_v6 }
 0x152   : > { %1463 = vmatpush1.msra.mxu1 %v996_v8  ;;  %v1375_v8 = vld [vmem:[#allocation7 + $0xfc8] sm:$0xff] }
 0x153   : > { %551 = vadd.xlane.f32.xlu0 %v550_v17  ;;  %v961_v17 = vld [vmem:[#allocation7 + $0x2d8] sm:$0xff]  ;;  %1464 = vmatprep.subr.mxu1 %v979_v10 }
 0x154   : > { %1465 = vmatpush1.msra.mxu1 %v978_v15  ;;  %v1357_v15 = vld [vmem:[#allocation7 + $0xf38] sm:$0xff] }
 0x155   : > { %1466 = vmatprep.subr.mxu1 %v961_v17 }
 0x160   : > { %620 = vperm.xlu1 %5484, %v6429_v18  }
 0x164   : > { %5485 = vset.pattern.permute.xlu1 %v6034_v22 }
 0x165   : > { %673 = vperm.xlu1 %5485, %v6435_v19  }
 0x169   : > { %5486 = vset.pattern.permute.xlu1 %v8808_v24  ;;  %625 = vperm.xlu0 %5483, %v6435_v19  }
 0x16a   : > { %615 = vperm.xlu1 %5486, %v459_v23  }
 0x16d   : > { %600 = vperm.xlu0 %5483, %v6447_v25  }
 0x16e   : > { %5487 = vset.pattern.permute.xlu1 %v6034_v22 }
 0x16f   : > { %669 = vperm.xlu1 %5487, %v6429_v18  }
 0x171   : > { %595 = vperm.xlu0 %5483, %v6454_v26  }
 0x173   : > { %5488 = vset.pattern.permute.xlu1 %v8808_v24 }
 0x174   : > { %610 = vperm.xlu1 %5488, %v6460_v27  }
 0x175   : > { %590 = vperm.xlu0 %5483, %v6466_v28  }
 0x178   : > { %5489 = vset.pattern.permute.xlu1 %v6034_v22 }
 0x179   : > { %5492 = vset.pattern.permute.xlu0 %v6034_v22 }
 0x17a   : > { %645 = vperm.xlu0 %5492, %v6466_v28  }
 0x17e   : > { %5494 = vset.pattern.permute.xlu0 %v6036_v37 }
 0x17f   : > { %709 = vperm.xlu0 %5494, %v6447_v25  }
 0x183   : > { %721 = vperm.xlu0 %5494, %v459_v23  }
 0x187   : > { %729 = vperm.xlu0 %5494, %v6435_v19  }
 0x18b   : > { %5499 = vset.pattern.permute.xlu0 %v6034_v22 }
 0x18c   : > { %2600 = vperm.xlu0 %5499, %v6525_v13  }
 0x198   : > { %554 = vadd.xlane.f32.xlu1 %v553_v33  ;;  %v942_v33 = vld [vmem:[#allocation7 + $0x240] sm:$0xff] }
 0x1a9   : > { %665 = vperm.xlu1 %5489, %v459_v23   ;;  %v960_v23 = vld [vmem:[#allocation7 + $0x2d0] sm:$0xff] }
 0x1aa   : > { %1467 = vmatpush1.msra.mxu1 %v960_v23  ;;  %v1356_v23 = vld [vmem:[#allocation7 + $0xf30] sm:$0xff] }
 0x1ab   : > { %1468 = vmatprep.subr.mxu1 %v943_v31 }
 0x1ac   : > { %1469 = vmatpush1.msra.mxu1 %v942_v33  ;;  %v1338_v33 = vld [vmem:[#allocation7 + $0xea0] sm:$0xff] }
 0x1ad   : > { %5490 = vset.pattern.permute.xlu1 %v8808_v24  ;;  %1470 = vmatprep.subr.mxu1 %v925_v36 }
 0x1ae   : > { %605 = vperm.xlu1 %5490, %v6489_v34   ;;  %1471 = vmatpush1.msra.mxu1 %v924_v39  ;;  %v1320_v39 = vld [vmem:[#allocation7 + $0xe10] sm:$0xff] }
 0x1af   : > { %1472 = vmatprep.subr.mxu1 %v907_v42  ;;  %v1303_v42 = vld [vmem:[#allocation7 + $0xd88] sm:$0xff] }
 0x1b0   : > { %1473 = vmatpush1.msra.mxu1 %v906_v44  ;;  %v1302_v44 = vld [vmem:[#allocation7 + $0xd80] sm:$0xff] }
 0x1b2   : > { %5491 = vset.pattern.permute.xlu1 %v6034_v22 }
 0x1b3   : > { %661 = vperm.xlu1 %5491, %v6460_v27  }
 0x1b7   : > { %657 = vperm.xlu1 %5491, %v6489_v34  }
 0x1bb   : > { %653 = vperm.xlu1 %5491, %v6447_v25  }
 0x1bf   : > { %649 = vperm.xlu1 %5491, %v6454_v26  }
 0x1c3   : > { %5493 = vset.pattern.permute.xlu1 %v6036_v37 }
 0x1c4   : > { %701 = vperm.xlu1 %5493, %v6466_v28  }
 0x1c8   : > { %705 = vperm.xlu1 %5493, %v6454_v26  }
 0x1cc   : > { %713 = vperm.xlu1 %5493, %v6489_v34  }
 0x1d0   : > { %v537_v21 = vpop.xlane.xlu1 %536  ;;  %v534_v57 = vpop.xlane.xlu0 %533  ;;  %717 = vperm.xlu1 %5493, %v6460_v27  }
 0x1d1   : > { %v556_v7 = vadd.f32 %v537_v21, %v534_v57  ;;  %v870_v57 = vld [vmem:[#allocation7] sm:$0xff] }
 0x1d4   : > { %v6499_v35 = vpop.xlane.xlu1 %542  ;;  %v540_v5 = vpop.xlane.xlu0 %539  ;;  %725 = vperm.xlu1 %5493, %v6429_v18  }
 0x1d5   : > { %v557_v14 = vadd.f32 %v556_v7, %v540_v5  ;;  %v1392_v7 = vld [vmem:[#allocation7 + $0x1050] sm:$0xff] }
 0x1d7   : > { %v558_v32 = vadd.f32 %v557_v14, %v6499_v35  ;;  %v889_v35 = vld [vmem:[#allocation7 + $0x98] sm:$0xff]  ;;  %v1374_v14 = vld [vmem:[#allocation7 + $0xfc0] sm:$0xff] }
 0x1d8   : > { %v6505_v40 = vpop.xlane.xlu1 %548  ;;  %5495 = vset.pattern.permute.xlu1 %v8808_v24  ;;  %v546_v21 = vpop.xlane.xlu0 %545  ;;  %1474 = vmatprep.subr.mxu1 %v889_v35  ;;  %v6556_v35 = vld [vmem:[%s8794_s2 + $0x28] sm:$0xff] }
 0x1d9   : > { %2508 = vperm.xlu1 %5495, %v6520_v9   ;;  %v559_v43 = vadd.f32 %v558_v32, %v546_v21  ;;  %1475 = vmatpush1.msra.mxu1 %v888_v45  ;;  %v6549_v32 = vld [vmem:[%s8794_s2 + $0x20] sm:$0xff]  ;;  %v1321_v21 = vld [vmem:[#allocation7 + $0xe18] sm:$0xff] }
 0x1da   : > { %1476 = vmatprep.subr.mxu1 %v871_v55  ;;  %v1285_v45 = vld [vmem:[#allocation7 + $0xcf8] sm:$0xff] }
 0x1db   : > { %v560_v56 = vadd.f32 %v559_v43, %v6505_v40  ;;  %1477 = vmatpush1.msra.mxu1 %v870_v57  ;;  %v1393_v40 = vld [vmem:[#allocation7 + $0x1058] sm:$0xff]  ;;  %v1267_v57 = vld [vmem:[#allocation7 + $0xc68] sm:$0xff] }
 0x1dc   : > { %v6508_v46 = vpop.permute.xlu1 %620  ;;  %1478 = vmatprep.subr.mxu1 %v1429_v59 }
 0x1dd   : > { %5496 = vset.pattern.permute.xlu1 %v6037_v38  ;;  %1479 = vmatpush2.msra.mxu1 %v1428_v60  ;;  %v1249_v60 = vld [vmem:[#allocation7 + $0xbd8] sm:$0xff] }
 0x1de   : > { %2556 = vperm.xlu1 %5496, %v6435_v19   ;;  %v552_v19 = vpop.xlane.xlu0 %551  ;;  %1480 = vmatprep.subr.mxu1 %v1411_v61  ;;  %v1248_v61 = vld [vmem:[#allocation7 + $0xbd0] sm:$0xff] }
 0x1df   : > { %v561_v63 = vadd.f32 %v560_v56, %v552_v19  ;;  %1481 = vmatpush2.msra.mxu1 %v1410_v0  ;;  %v1284_v56 = vld [vmem:[#allocation7 + $0xcf0] sm:$0xff]  ;;  %v1266_v19 = vld [vmem:[#allocation7 + $0xc60] sm:$0xff] }
 0x1e0   : > { %v6514_v62 = vpop.permute.xlu1 %673  ;;  %1482 = vmatprep.subr.mxu1 %v1393_v40  ;;  %v1230_v0 = vld [vmem:[#allocation7 + $0xb40] sm:$0xff]  ;;  %v1213_v40 = vld [vmem:[#allocation7 + $0xab8] sm:$0xff] }
 0x1e1   : > { %1483 = vmatpush2.msra.mxu1 %v1392_v7  ;;  %v6565_v7 = vld [vmem:[%s8794_s2 + $0x18] sm:$0xff] }
 0x1e2   : > { %5497 = vset.pattern.permute.xlu1 %v6034_v22  ;;  %1484 = vmatprep.subr.mxu1 %v1375_v8  ;;  %v1195_v8 = vld [vmem:[#allocation7 + $0xa28] sm:$0xff] }
 0x1e3   : > { %2604 = vperm.xlu1 %5497, %v6520_v9   ;;  %1485 = vmatpush2.msra.mxu1 %v1374_v14  ;;  %v1194_v14 = vld [vmem:[#allocation7 + $0xa20] sm:$0xff] }
 0x1e4   : > { %1486 = vmatprep.subr.mxu1 %v1357_v15 }
 0x1e5   : > { %v6528_v16 = vpop.permute.xlu1 %615  ;;  %1487 = vmatpush2.msra.mxu1 %v1356_v23 }
 0x1e7   : > { %5498 = vset.pattern.permute.xlu1 %v6037_v38 }
 0x1e8   : > { %2552 = vperm.xlu1 %5498, %v6429_v18   ;;  %v1339_v18 = vld [vmem:[#allocation7 + $0xea8] sm:$0xff] }
 0x1e9   : > { %1488 = vmatprep.subr.mxu1 %v1339_v18 }
 0x1ea   : > { %v6534_v41 = vpop.permute.xlu1 %669  ;;  %1489 = vmatpush2.msra.mxu1 %v1338_v33  ;;  %v8812_v33 = vmov 4  }
 0x1eb   : > { %1490 = vmatprep.subr.mxu1 %v1321_v21 }
 0x1ec   : > { %5500 = vset.pattern.permute.xlu1 %v6036_v37  ;;  %1491 = vmatpush2.msra.mxu1 %v1320_v39 }
 0x1ed   : > { %2668 = vperm.xlu1 %5500, %v6520_v9   ;;  %1492 = vmatprep.subr.mxu1 %v1303_v42 }
 0x1ee   : > { %1493 = vmatpush2.msra.mxu1 %v1302_v44 }
 0x1ef   : > { %v6540_v58 = vpop.permute.xlu1 %610  ;;  %1494 = vmatprep.subr.mxu1 %v1285_v45 }
 0x1f0   : > { %1495 = vmatpush2.msra.mxu1 %v1284_v56 }
 0x1f1   : > { %5501 = vset.pattern.permute.xlu1 %v8808_v24  ;;  %1496 = vmatprep.subr.mxu1 %v1267_v57 }
 0x1f2   : > { %2493 = vperm.xlu1 %5501, %v6549_v32   ;;  %1497 = vmatpush2.msra.mxu1 %v1266_v19 }
 0x1f3   : > { %1498 = vmatprep.subr.mxu1 %v1249_v60 }
 0x1f4   : > { %1499 = vmatpush2.msra.mxu1 %v1248_v61 }
 0x1f6   : > { %5502 = vset.pattern.permute.xlu1 %v6034_v22 }
 0x1f7   : > { %2596 = vperm.xlu1 %5502, %v6556_v35  }
 0x1fb   : > { %5503 = vset.pattern.permute.xlu1 %v6036_v37 }
 0x1fc   : > { %2664 = vperm.xlu1 %5503, %v6525_v13  }
 0x200   : > { %5504 = vset.pattern.permute.xlu1 %v8808_v24 }
 0x201   : > { %2488 = vperm.xlu1 %5504, %v6565_v7  }
 0x205   : > { %5505 = vset.pattern.permute.xlu1 %v6034_v22 }
 0x206   : > { %2592 = vperm.xlu1 %5505, %v6549_v32  }
 0x20a   : > { %5506 = vset.pattern.permute.xlu1 %v6037_v38 }
 0x20b   : > { %2728 = vperm.xlu1 %5506, %v6525_v13  }
 0x20f   : > { %5507 = vset.pattern.permute.xlu1 %v8812_v33 }
 0x210   : > { %2796 = vperm.xlu1 %5507, %v6520_v9  }
 0x214   : > { %5508 = vset.pattern.permute.xlu1 %v6037_v38 }
 0x215   : > { %2540 = vperm.xlu1 %5508, %v6489_v34  }
 0x219   : > { %5509 = vset.pattern.permute.xlu1 %v6034_v22 }
 0x21a   : > { %2588 = vperm.xlu1 %5509, %v6565_v7  }
 0x21e   : > { %5510 = vset.pattern.permute.xlu1 %v6037_v38 }
 0x21f   : > { %2724 = vperm.xlu1 %5510, %v6556_v35  }
 0x221   : > { %v555_v5 = vpop.xlane.xlu1 %554 }
 0x222   : > { %v562_v6 = vadd.f32 %v561_v63, %v555_v5  ;;  %v1231_v63 = vld [vmem:[#allocation7 + $0xb48] sm:$0xff] }
 0x223   : > { %1500 = vmatprep.subr.mxu1 %v1231_v63  ;;  %5511 = vset.pattern.permute.xlu1 %v8812_v33 }
 0x224   : > { %v563_v10 = vrot.slane %v562_v6, 4  ;;  %1501 = vmatpush2.msra.mxu1 %v1230_v0  ;;  %2792 = vperm.xlu1 %5511, %v6525_v13  }
 0x225   : > { %1502 = vmatprep.subr.mxu1 %v1213_v40 }
 0x226   : > { %v564_v17 = vadd.f32 %v563_v10, %v562_v6  ;;  %v1212_v6 = vld [vmem:[#allocation7 + $0xab0] sm:$0xff]  ;;  %v666_v10 = vpop.permute.xlu1 %665 }
 0x227   : > { %1503 = vmatpush2.msra.mxu1 %v1212_v6 }
 0x228   : > { %v565_v31 = vrot.slane %v564_v17, 2  ;;  %1504 = vmatprep.subr.mxu1 %v1195_v8  ;;  %5512 = vset.pattern.permute.xlu1 %v8808_v24 }
 0x229   : > { %1505 = vmatpush2.msra.mxu1 %v1194_v14 }
 0x22a   : > { %v566_v36 = vadd.f32 %v565_v31, %v564_v17  ;;  %v606_v15 = vpop.permute.xlu1 %605  ;;  %v626_v17 = vpop.permute.xlu0 %625 }
 0x22c   : > { %v567_v43 = vrot.slane %v566_v36, 1 }
 0x22e   : > { %v568_v55 = vadd.f32 %v567_v43, %v566_v36  ;;  %v662_v23 = vpop.permute.xlu1 %661  ;;  %v601_v31 = vpop.permute.xlu0 %600 }
 0x230   : > { %v569_v59 = vmul.f32 6.1035156e-05, %v568_v55 }
 0x232   : > { %v570_v5 = vadd.f32 1e-05, %v569_v59  ;;  %v658_v43 = vpop.permute.xlu1 %657 }
 0x234   : > { %5584 = vrsqrt.f32 %v570_v5 }
 0x241   : > { %v5585_v18 = vpop.eup %5584 }
 0x242   : > { %v583_v21 = vmul.f32 %v5585_v18, %v6396_v2  ;;  %v587_v36 = vmul.f32 %v5585_v18, %v6480_v30  ;;  %v586_v39 = vmul.f32 %v5585_v18, %v6476_v29  ;;  %v582_v42 = vmul.f32 %v5585_v18, %v6393_v1  ;;  %v596_v2 = vpop.permute.xlu0 %595 }
 0x243   : > { %v585_v44 = vmul.f32 %v5585_v18, %v6420_v12  ;;  %v584_v45 = vmul.f32 %v5585_v18, %v6416_v11  ;;  %v581_v55 = vmul.f32 %v5585_v18, %v6404_v4  ;;  %v580_v19 = vmul.f32 %v5585_v18, %v6400_v3 }
 0x244   : > { %v643_v56 = vmul.f32 %v626_v17, %v587_v36  ;;  %v642_v57 = vmul.f32 %v626_v17, %v586_v39  ;;  %v639_v59 = vmul.f32 %v6528_v16, %v583_v21  ;;  %v579_v1 = vmul.f32 %v5585_v18, %v6368_v52 }
 0x245   : > { %v641_v30 = vmul.f32 %v6508_v46, %v585_v44  ;;  %v640_v29 = vmul.f32 %v6508_v46, %v584_v45  ;;  %v638_v4 = vmul.f32 %v6528_v16, %v582_v42  ;;  %v578_v11 = vmul.f32 %v5585_v18, %v6365_v51  ;;  %v1143_v45 = vld [vmem:[#allocation7 + $0x888] sm:$0xff] }
 0x246   : > { %v691_v60 = vadd.f32 %v6514_v62, %v643_v56  ;;  %v690_v12 = vadd.f32 %v6514_v62, %v642_v57  ;;  %v637_v3 = vmul.f32 %v6540_v58, %v581_v55  ;;  %v577_v46 = vmul.f32 %v5585_v18, %v6374_v54  ;;  %v654_v62 = vpop.permute.xlu1 %653  ;;  %v591_v6 = vpop.permute.xlu0 %590  ;;  %v1142_v55 = vld [vmem:[#allocation7 + $0x880] sm:$0xff]  ;;  %v1125_v56 = vld [vmem:[#allocation7 + $0x7f8] sm:$0xff]  ;;  %v1124_v57 = vld [vmem:[#allocation7 + $0x7f0] sm:$0xff] }
 0x247   : > { %v689_v61 = vadd.f32 %v6534_v41, %v641_v30  ;;  %v636_v52 = vmul.f32 %v6540_v58, %v580_v19  ;;  %v576_v63 = vmul.f32 %v5585_v18, %v6371_v53  ;;  %v688_v0 = vadd.f32 %v6534_v41, %v640_v29  ;;  %v693_v19 = vld [vmem:[#allocation5 + $0x8] sm:$0xff]  ;;  %v1106_v30 = vld [vmem:[#allocation7 + $0x760] sm:$0xff]  ;;  %v1089_v29 = vld [vmem:[#allocation7 + $0x6d8] sm:$0xff] }
 0x248   : > { %773 = vmatprep.subr.mxu0 %v691_v60  ;;  %v687_v16 = vadd.f32 %v666_v10, %v639_v59  ;;  %v635_v5 = vmul.f32 %v606_v15, %v579_v1  ;;  %v575_v51 = vmul.f32 %v5585_v18, %v6356_v48  ;;  %v686_v34 = vadd.f32 %v666_v10, %v638_v4  ;;  %v1088_v59 = vld [vmem:[#allocation7 + $0x6d0] sm:$0xff]  ;;  %v1071_v60 = vld [vmem:[#allocation7 + $0x648] sm:$0xff]  ;;  %v1053_v4 = vld [vmem:[#allocation7 + $0x5b8] sm:$0xff] }
 0x249   : > { %774 = vmatpush1.msra.mxu0 %v690_v12  ;;  %v634_v40 = vmul.f32 %v606_v15, %v578_v11  ;;  %v574_v54 = vmul.f32 %v5585_v18, %v6353_v47  ;;  %v685_v58 = vadd.f32 %v662_v23, %v637_v3  ;;  %v633_v8 = vmul.f32 %v601_v31, %v577_v46  ;;  %v694_v1 = vld [vmem:[#allocation5 + $0x10] sm:$0xff]  ;;  %v1070_v12 = vld [vmem:[#allocation7 + $0x640] sm:$0xff]  ;;  %v695_v3 = vld [vmem:[#allocation5 + $0x18] sm:$0xff] }
 0x24a   : > { %775 = vmatprep.subr.mxu0 %v689_v61  ;;  %v573_v53 = vmul.f32 %v5585_v18, %v6362_v50  ;;  %v684_v41 = vadd.f32 %v662_v23, %v636_v52  ;;  %v632_v14 = vmul.f32 %v601_v31, %v576_v63  ;;  %v572_v48 = vmul.f32 %v5585_v18, %v6359_v49  ;;  %v650_v21 = vpop.permute.xlu1 %649  ;;  %v646_v44 = vpop.permute.xlu0 %645  ;;  %v1052_v11 = vld [vmem:[#allocation7 + $0x5b0] sm:$0xff]  ;;  %v1035_v46 = vld [vmem:[#allocation7 + $0x528] sm:$0xff]  ;;  %v1034_v61 = vld [vmem:[#allocation7 + $0x520] sm:$0xff] }
 0x24b   : > { %776 = vmatpush1.msra.mxu0 %v688_v0  ;;  %v683_v10 = vadd.f32 %v658_v43, %v635_v5  ;;  %v631_v15 = vmul.f32 %v596_v2, %v575_v51  ;;  %v682_v47 = vadd.f32 %v658_v43, %v634_v40  ;;  %v630_v17 = vmul.f32 %v596_v2, %v574_v54  ;;  %v692_v43 = vld [vmem:[#allocation5] sm:$0xff]  ;;  %v1107_v2 = vld [vmem:[#allocation7 + $0x768] sm:$0xff]  ;;  %v1017_v52 = vld [vmem:[#allocation7 + $0x498] sm:$0xff] }
 0x24c   : > { %777 = vmatprep.subr.mxu0 %v687_v16  ;;  %v681_v36 = vadd.f32 %v654_v62, %v633_v8  ;;  %v629_v39 = vmul.f32 %v591_v6, %v573_v53  ;;  %v680_v50 = vadd.f32 %v654_v62, %v632_v14  ;;  %v628_v42 = vmul.f32 %v591_v6, %v572_v48  ;;  %v1016_v63 = vld [vmem:[#allocation7 + $0x490] sm:$0xff]  ;;  %v696_v62 = vld [vmem:[#allocation5 + $0x20] sm:$0xff]  ;;  %v999_v0 = vld [vmem:[#allocation7 + $0x408] sm:$0xff] }
 0x24d   : > { %778 = vmatpush1.msra.mxu0 %v686_v34  ;;  %v679_v49 = vadd.f32 %v650_v21, %v631_v15  ;;  %v678_v23 = vadd.f32 %v650_v21, %v630_v17  ;;  %v998_v16 = vld [vmem:[#allocation7 + $0x400] sm:$0xff]  ;;  %v981_v5 = vld [vmem:[#allocation7 + $0x378] sm:$0xff]  ;;  %v980_v51 = vld [vmem:[#allocation7 + $0x370] sm:$0xff] }
 0x24e   : > { %779 = vmatprep.subr.mxu0 %v685_v58  ;;  %v677_v18 = vadd.f32 %v646_v44, %v629_v39  ;;  %v676_v31 = vadd.f32 %v646_v44, %v628_v42  ;;  %v697_v34 = vld [vmem:[#allocation5 + $0x28] sm:$0xff]  ;;  %v962_v54 = vld [vmem:[#allocation7 + $0x2e0] sm:$0xff]  ;;  %v945_v6 = vld [vmem:[#allocation7 + $0x258] sm:$0xff] }
 0x24f   : > { %780 = vmatpush1.msra.mxu0 %v684_v41  ;;  %v963_v40 = vld [vmem:[#allocation7 + $0x2e8] sm:$0xff]  ;;  %v944_v58 = vld [vmem:[#allocation7 + $0x250] sm:$0xff]  ;;  %v926_v41 = vld [vmem:[#allocation7 + $0x1c0] sm:$0xff] }
 0x250   : > { %781 = vmatprep.subr.mxu0 %v683_v10  ;;  %v698_v8 = vld [vmem:[#allocation5 + $0x30] sm:$0xff]  ;;  %v927_v53 = vld [vmem:[#allocation7 + $0x1c8] sm:$0xff]  ;;  %v909_v14 = vld [vmem:[#allocation7 + $0x138] sm:$0xff] }
 0x251   : > { %782 = vmatpush1.msra.mxu0 %v682_v47  ;;  %v908_v48 = vld [vmem:[#allocation7 + $0x130] sm:$0xff]  ;;  %v699_v10 = vld [vmem:[#allocation5 + $0x38] sm:$0xff]  ;;  %v891_v15 = vld [vmem:[#allocation7 + $0xa8] sm:$0xff] }
 0x252   : > { %783 = vmatprep.subr.mxu0 %v681_v36  ;;  %v890_v47 = vld [vmem:[#allocation7 + $0xa0] sm:$0xff]  ;;  %v873_v17 = vld [vmem:[#allocation7 + $0x18] sm:$0xff]  ;;  %v872_v21 = vld [vmem:[#allocation7 + $0x10] sm:$0xff] }
 0x253   : > { %784 = vmatpush1.msra.mxu0 %v680_v50  ;;  %v1431_v36 = vld [vmem:[#allocation7 + $0x1188] sm:$0xff]  ;;  %v1430_v39 = vld [vmem:[#allocation7 + $0x1180] sm:$0xff]  ;;  %v1413_v50 = vld [vmem:[#allocation7 + $0x10f8] sm:$0xff] }
 0x254   : > { %785 = vmatprep.subr.mxu0 %v679_v49  ;;  %v1412_v42 = vld [vmem:[#allocation7 + $0x10f0] sm:$0xff]  ;;  %v1395_v44 = vld [vmem:[#allocation7 + $0x1068] sm:$0xff]  ;;  %v1394_v49 = vld [vmem:[#allocation7 + $0x1060] sm:$0xff] }
 0x255   : > { %786 = vmatpush1.msra.mxu0 %v678_v23  ;;  %v1377_v23 = vld [vmem:[#allocation7 + $0xfd8] sm:$0xff] }
 0x256   : > { %787 = vmatprep.subr.mxu0 %v677_v18  ;;  %v1376_v18 = vld [vmem:[#allocation7 + $0xfd0] sm:$0xff] }
 0x257   : > { %788 = vmatpush1.msra.mxu0 %v676_v31  ;;  %v1359_v31 = vld [vmem:[#allocation7 + $0xf48] sm:$0xff] }
 0x258   : > { %5263 = vmatmul.mubr.msk.f32.vlgmr.msra.gmra.mxu0 %vm732_vm0, %v692_v43  ;;  %1559 = vmatprep.subr.mxu0 %v1143_v45  ;;  %v1358_v43 = vld [vmem:[#allocation7 + $0xf40] sm:$0xff]  ;;  %v1341_v45 = vld [vmem:[#allocation7 + $0xeb8] sm:$0xff] }
 0x259   : > { %827 = vmatprep.mubr.f32.mxu0 %v8806_v20  ;;  %1560 = vmatpush1.msra.mxu0 %v1142_v55  ;;  %v1340_v55 = vld [vmem:[#allocation7 + $0xeb0] sm:$0xff] }
 0x25a   : > { %1561 = vmatprep.subr.mxu0 %v1125_v56  ;;  %v1323_v56 = vld [vmem:[#allocation7 + $0xe28] sm:$0xff] }
 0x25b   : > { %1562 = vmatpush1.msra.mxu0 %v1124_v57  ;;  %v1322_v57 = vld [vmem:[#allocation7 + $0xe20] sm:$0xff] }
 0x25c   : > { %5264 = vmatmul.mubr.msk.f32.gmra.mxu0 %vm732_vm0, %v693_v19  ;;  %1563 = vmatprep.subr.mxu0 %v1107_v2  ;;  %v1305_v19 = vld [vmem:[#allocation7 + $0xd98] sm:$0xff]  ;;  %v1304_v2 = vld [vmem:[#allocation7 + $0xd90] sm:$0xff] }
 0x25d   : > { %833 = vmatprep.mubr.f32.mxu0 %v8806_v20  ;;  %1564 = vmatpush1.msra.mxu0 %v1106_v30  ;;  %v1287_v30 = vld [vmem:[#allocation7 + $0xd08] sm:$0xff] }
 0x25e   : > { %1565 = vmatprep.subr.mxu0 %v1089_v29  ;;  %v1286_v29 = vld [vmem:[#allocation7 + $0xd00] sm:$0xff] }
 0x25f   : > { %1566 = vmatpush1.msra.mxu0 %v1088_v59  ;;  %v1269_v59 = vld [vmem:[#allocation7 + $0xc78] sm:$0xff] }
 0x260   : > { %5265 = vmatmul.mubr.msk.f32.gmra.mxu0 %vm732_vm0, %v694_v1  ;;  %1567 = vmatprep.subr.mxu0 %v1071_v60  ;;  %v1268_v1 = vld [vmem:[#allocation7 + $0xc70] sm:$0xff]  ;;  %v1251_v60 = vld [vmem:[#allocation7 + $0xbe8] sm:$0xff] }
 0x261   : > { %839 = vmatprep.mubr.f32.mxu0 %v8806_v20  ;;  %1568 = vmatpush1.msra.mxu0 %v1070_v12  ;;  %v1250_v12 = vld [vmem:[#allocation7 + $0xbe0] sm:$0xff] }
 0x262   : > { %1569 = vmatprep.subr.mxu0 %v1053_v4  ;;  %v1233_v4 = vld [vmem:[#allocation7 + $0xb58] sm:$0xff] }
 0x263   : > { %1570 = vmatpush1.msra.mxu0 %v1052_v11  ;;  %v1232_v11 = vld [vmem:[#allocation7 + $0xb50] sm:$0xff] }
 0x264   : > { %5266 = vmatmul.mubr.msk.f32.gmra.mxu0 %vm732_vm0, %v695_v3  ;;  %1571 = vmatprep.subr.mxu0 %v1035_v46  ;;  %v1215_v3 = vld [vmem:[#allocation7 + $0xac8] sm:$0xff]  ;;  %v1214_v46 = vld [vmem:[#allocation7 + $0xac0] sm:$0xff] }
 0x265   : > { %845 = vmatprep.mubr.f32.mxu0 %v8806_v20  ;;  %1572 = vmatpush1.msra.mxu0 %v1034_v61  ;;  %v1197_v61 = vld [vmem:[#allocation7 + $0xa38] sm:$0xff] }
 0x266   : > { %1573 = vmatprep.subr.mxu0 %v1017_v52  ;;  %v1196_v52 = vld [vmem:[#allocation7 + $0xa30] sm:$0xff] }
 0x267   : > { %1574 = vmatpush1.msra.mxu0 %v1016_v63  ;;  %v1177_v63 = vld [vmem:[#allocation7 + $0x998] sm:$0xff] }
 0x268   : > { %5267 = vmatmul.mubr.msk.f32.gmra.mxu0 %vm732_vm0, %v696_v62  ;;  %1575 = vmatprep.subr.mxu0 %v999_v0  ;;  %v1179_v62 = vld [vmem:[#allocation7 + $0x9a8] sm:$0xff]  ;;  %v1176_v0 = vld [vmem:[#allocation7 + $0x990] sm:$0xff] }
 0x269   : > { %851 = vmatprep.mubr.f32.mxu0 %v8806_v20  ;;  %1576 = vmatpush1.msra.mxu0 %v998_v16  ;;  %v1178_v16 = vld [vmem:[#allocation7 + $0x9a0] sm:$0xff] }
 0x26a   : > { %1577 = vmatprep.subr.mxu0 %v981_v5  ;;  %1506 = vmatprep.subr.mxu1 %v1177_v63  ;;  %v1159_v5 = vld [vmem:[#allocation7 + $0x908] sm:$0xff] }
 0x26b   : > { %1578 = vmatpush1.msra.mxu0 %v980_v51  ;;  %1507 = vmatpush2.msra.mxu1 %v1176_v0  ;;  %v1161_v51 = vld [vmem:[#allocation7 + $0x918] sm:$0xff]  ;;  %v1039_v0 = vld [vmem:[#allocation7 + $0x548] sm:$0xff] }
 0x26c   : > { %5268 = vmatmul.mubr.msk.f32.gmra.mxu0 %vm732_vm0, %v697_v34  ;;  %1579 = vmatprep.subr.mxu0 %v963_v40  ;;  %v1158_v34 = vld [vmem:[#allocation7 + $0x900] sm:$0xff]  ;;  %v1160_v40 = vld [vmem:[#allocation7 + $0x910] sm:$0xff] }
 0x26d   : > { %857 = vmatprep.mubr.f32.mxu0 %v8806_v20  ;;  %1580 = vmatpush1.msra.mxu0 %v962_v54  ;;  %v1145_v54 = vld [vmem:[#allocation7 + $0x898] sm:$0xff] }
 0x26e   : > { %1581 = vmatprep.subr.mxu0 %v945_v6  ;;  %1508 = vmatprep.subr.mxu1 %v1159_v5  ;;  %v1147_v6 = vld [vmem:[#allocation7 + $0x8a8] sm:$0xff] }
 0x26f   : > { %1582 = vmatpush1.msra.mxu0 %v944_v58  ;;  %1509 = vmatpush2.msra.mxu1 %v1158_v34  ;;  %v6628_v58 = vld [vmem:[%s8794_s2 + $0x8] sm:$0xff]  ;;  %v1038_v34 = vld [vmem:[#allocation7 + $0x540] sm:$0xff] }
 0x270   : > { %5269 = vmatmul.mubr.msk.f32.gmra.mxu0 %vm732_vm0, %v698_v8  ;;  %1583 = vmatprep.subr.mxu0 %v927_v53  ;;  %v2465_v8 = vld [vmem:[%s8794_s2 + $0x10] sm:$0xff]  ;;  %v8818_v53 = vmov 5  }
 0x271   : > { %863 = vmatprep.mubr.f32.mxu0 %v8806_v20  ;;  %1584 = vmatpush1.msra.mxu0 %v926_v41  ;;  %v2463_v41 = vld [vmem:[%s8794_s2] sm:$0xff]  ;;  %v1223_v20 = vld [vmem:[#allocation7 + $0xb08] sm:$0xff] }
 0x272   : > { %1585 = vmatprep.subr.mxu0 %v909_v14  ;;  %1672 = vmatprep.subr.mxu1 %v1145_v54  ;;  %v8810_v14 = vmov 7   ;;  %v1021_v54 = vld [vmem:[#allocation7 + $0x4b8] sm:$0xff] }
 0x273   : > { %1586 = vmatpush1.msra.mxu0 %v908_v48  ;;  %2478 = vperm.xlu1 %5512, %v6628_v58   ;;  %v1146_v48 = vld [vmem:[#allocation7 + $0x8a0] sm:$0xff] }
 0x274   : > { %5270 = vmatmul.mubr.msk.f32.gmra.mxu0 %vm732_vm0, %v699_v10  ;;  %1587 = vmatprep.subr.mxu0 %v891_v15  ;;  %v1129_v10 = vld [vmem:[#allocation7 + $0x818] sm:$0xff] }
 0x275   : > { %1588 = vmatpush1.msra.mxu0 %v890_v47  ;;  %2584 = vperm.xlu0 %5499, %v2465_v8  }
 0x276   : > { %1589 = vmatprep.subr.mxu0 %v873_v17  ;;  %v1126_v17 = vld [vmem:[#allocation7 + $0x800] sm:$0xff] }
 0x277   : > { %1590 = vmatpush1.msra.mxu0 %v872_v21  ;;  %5513 = vset.pattern.permute.xlu1 %v6037_v38  ;;  %v1128_v21 = vld [vmem:[#allocation7 + $0x810] sm:$0xff] }
 0x278   : > { %1591 = vmatprep.subr.mxu0 %v1431_v36  ;;  %2536 = vperm.xlu1 %5513, %v6447_v25   ;;  %v8816_v25 = vmov 6  }
 0x279   : > { %1592 = vmatpush2.msra.mxu0 %v1430_v39  ;;  %5514 = vset.pattern.permute.xlu0 %v8808_v24  ;;  %v1109_v39 = vld [vmem:[#allocation7 + $0x778] sm:$0xff]  ;;  %v1167_v24 = vld [vmem:[#allocation7 + $0x948] sm:$0xff] }
 0x27a   : > { %1593 = vmatprep.subr.mxu0 %v1413_v50  ;;  %2503 = vperm.xlu0 %5514, %v6525_v13   ;;  %v1111_v50 = vld [vmem:[#allocation7 + $0x788] sm:$0xff] }
 0x27b   : > { %1594 = vmatpush2.msra.mxu0 %v1412_v42  ;;  %v710_v42 = vpop.permute.xlu0 %709 }
 0x27c   : > { %1595 = vmatprep.subr.mxu0 %v1395_v44  ;;  %5515 = vset.pattern.permute.xlu1 %v6036_v37 }
 0x27d   : > { %1596 = vmatpush2.msra.mxu0 %v1394_v49  ;;  %2652 = vperm.xlu1 %5515, %v6565_v7  }
 0x27e   : > { %1597 = vmatprep.subr.mxu0 %v1377_v23  ;;  %2498 = vperm.xlu0 %5514, %v6556_v35   ;;  %v1108_v23 = vld [vmem:[#allocation7 + $0x770] sm:$0xff] }
 0x27f   : > { %1598 = vmatpush2.msra.mxu0 %v1376_v18  ;;  %v1110_v18 = vld [vmem:[#allocation7 + $0x780] sm:$0xff] }
 0x280   : > { %1599 = vmatprep.subr.mxu0 %v1359_v31  ;;  %v1091_v31 = vld [vmem:[#allocation7 + $0x6e8] sm:$0xff] }
 0x281   : > { %1600 = vmatpush2.msra.mxu0 %v1358_v43  ;;  %5516 = vset.pattern.permute.xlu1 %v6037_v38  ;;  %v1093_v43 = vld [vmem:[#allocation7 + $0x6f8] sm:$0xff] }
 0x282   : > { %1601 = vmatprep.subr.mxu0 %v1341_v45  ;;  %2720 = vperm.xlu1 %5516, %v6549_v32  }
 0x283   : > { %1602 = vmatpush2.msra.mxu0 %v1340_v55  ;;  %2483 = vperm.xlu0 %5514, %v2465_v8  }
 0x284   : > { %1603 = vmatprep.subr.mxu0 %v1323_v56  ;;  %v1090_v56 = vld [vmem:[#allocation7 + $0x6e0] sm:$0xff] }
 0x285   : > { %1604 = vmatpush2.msra.mxu0 %v1322_v57  ;;  %v1092_v57 = vld [vmem:[#allocation7 + $0x6f0] sm:$0xff] }
 0x286   : > { %1605 = vmatprep.subr.mxu0 %v1305_v19  ;;  %5517 = vset.pattern.permute.xlu1 %v8818_v53 }
 0x287   : > { %1606 = vmatpush2.msra.mxu0 %v1304_v2  ;;  %2856 = vperm.xlu1 %5517, %v6525_v13  }
 0x288   : > { %1607 = vmatprep.subr.mxu0 %v1287_v30  ;;  %2473 = vperm.xlu0 %5514, %v2463_v41   ;;  %v1073_v30 = vld [vmem:[#allocation7 + $0x658] sm:$0xff] }
 0x289   : > { %1608 = vmatpush2.msra.mxu0 %v1286_v29  ;;  %v1075_v29 = vld [vmem:[#allocation7 + $0x668] sm:$0xff] }
 0x28a   : > { %1609 = vmatprep.subr.mxu0 %v1269_v59 }
 0x28b   : > { %1610 = vmatpush2.msra.mxu0 %v1268_v1  ;;  %5518 = vset.pattern.permute.xlu1 %v8816_v25  ;;  %v1072_v1 = vld [vmem:[#allocation7 + $0x650] sm:$0xff] }
 0x28c   : > { %1611 = vmatprep.subr.mxu0 %v1251_v60  ;;  %2924 = vperm.xlu1 %5518, %v6520_v9   ;;  %v1074_v60 = vld [vmem:[#allocation7 + $0x660] sm:$0xff] }
 0x28d   : > { %1612 = vmatpush2.msra.mxu0 %v1250_v12  ;;  %5519 = vset.pattern.permute.xlu0 %v6036_v37 }
 0x28e   : > { %1613 = vmatprep.subr.mxu0 %v1233_v4  ;;  %2660 = vperm.xlu0 %5519, %v6556_v35   ;;  %v1055_v4 = vld [vmem:[#allocation7 + $0x5c8] sm:$0xff] }
 0x28f   : > { %1614 = vmatpush2.msra.mxu0 %v1232_v11  ;;  %v1057_v11 = vld [vmem:[#allocation7 + $0x5d8] sm:$0xff] }
 0x290   : > { %1615 = vmatprep.subr.mxu0 %v1215_v3  ;;  %5520 = vset.pattern.permute.xlu1 %v6037_v38 }
 0x291   : > { %1616 = vmatpush2.msra.mxu0 %v1214_v46  ;;  %2532 = vperm.xlu1 %5520, %v6454_v26   ;;  %v5716_v26 = vld [vmem:[%s8800_s8 + $0x28] sm:$0xff]  ;;  %v1054_v46 = vld [vmem:[#allocation7 + $0x5c0] sm:$0xff] }
 0x292   : > { %1617 = vmatprep.subr.mxu0 %v1197_v61  ;;  %2656 = vperm.xlu0 %5519, %v6549_v32   ;;  %v1056_v61 = vld [vmem:[#allocation7 + $0x5d0] sm:$0xff] }
 0x293   : > { %1618 = vmatpush2.msra.mxu0 %v1196_v52 }
 0x294   : > { %1619 = vmatprep.subr.mxu0 %v1179_v62  ;;  %v1037_v62 = vld [vmem:[#allocation7 + $0x538] sm:$0xff] }
 0x295   : > { %1620 = vmatpush2.msra.mxu0 %v1178_v16  ;;  %5521 = vset.pattern.permute.xlu1 %v6034_v22 }
 0x296   : > { %1621 = vmatprep.subr.mxu0 %v1161_v51  ;;  %2580 = vperm.xlu1 %5521, %v6628_v58   ;;  %v1036_v51 = vld [vmem:[#allocation7 + $0x530] sm:$0xff] }
 0x297   : > { %1622 = vmatpush2.msra.mxu0 %v1160_v40  ;;  %2648 = vperm.xlu0 %5519, %v2465_v8   ;;  %v1019_v40 = vld [vmem:[#allocation7 + $0x4a8] sm:$0xff] }
 0x298   : > { %1785 = vmatprep.subr.mxu0 %v1147_v6 }
 0x29a   : > { %5523 = vset.pattern.permute.xlu1 %v6037_v38 }
 0x29b   : > { %2716 = vperm.xlu1 %5523, %v6565_v7   ;;  %5522 = vset.pattern.permute.xlu0 %v6037_v38 }
 0x29c   : > { %2548 = vperm.xlu0 %5522, %v5716_v26  }
 0x29f   : > { %5524 = vset.pattern.permute.xlu1 %v8812_v33 }
 0x2a0   : > { %2784 = vperm.xlu1 %5524, %v6549_v32   ;;  %2732 = vperm.xlu0 %5522, %v6520_v9  }
 0x2a4   : > { %5525 = vset.pattern.permute.xlu1 %v8816_v25  ;;  %2544 = vperm.xlu0 %5522, %v6460_v27  }
 0x2a5   : > { %2920 = vperm.xlu1 %5525, %v6525_v13  }
 0x2a8   : > { %2528 = vperm.xlu0 %5522, %v6466_v28  }
 0x2a9   : > { %5526 = vset.pattern.permute.xlu1 %v8810_v14 }
 0x2aa   : > { %2988 = vperm.xlu1 %5526, %v6520_v9  }
 0x2ac   : > { %2712 = vperm.xlu0 %5522, %v2465_v8  }
 0x2ae   : > { %5527 = vset.pattern.permute.xlu1 %v6034_v22  ;;  %v702_v22 = vpop.permute.xlu1 %701 }
 0x2af   : > { %2576 = vperm.xlu1 %5527, %v2463_v41  }
 0x2b0   : > { %5529 = vset.pattern.permute.xlu0 %v8812_v33 }
 0x2b1   : > { %2788 = vperm.xlu0 %5529, %v6556_v35  }
 0x2b2   : > { %v706_v15 = vpop.permute.xlu1 %705 }
 0x2b3   : > { %5528 = vset.pattern.permute.xlu1 %v6036_v37 }
 0x2b4   : > { %2644 = vperm.xlu1 %5528, %v6628_v58  }
 0x2b5   : > { %2776 = vperm.xlu0 %5529, %v2465_v8   ;;  %v1018_v8 = vld [vmem:[#allocation7 + $0x4a0] sm:$0xff] }
 0x2b6   : > { %v714_v19 = vpop.permute.xlu1 %713 }
 0x2b8   : > { %5530 = vset.pattern.permute.xlu1 %v8812_v33 }
 0x2b9   : > { %2780 = vperm.xlu1 %5530, %v6565_v7   ;;  %2772 = vperm.xlu0 %5529, %v6628_v58  }
 0x2ba   : > { %v718_v63 = vpop.permute.xlu1 %717 }
 0x2bd   : > { %5531 = vset.pattern.permute.xlu1 %v8816_v25  ;;  %5539 = vset.pattern.permute.xlu0 %v8818_v53 }
 0x2be   : > { %2916 = vperm.xlu1 %5531, %v6556_v35   ;;  %2860 = vperm.xlu0 %5539, %v6520_v9   ;;  %v726_v26 = vpop.permute.xlu1 %725 }
 0x2c2   : > { %5532 = vset.pattern.permute.xlu1 %v8810_v14  ;;  %2852 = vperm.xlu0 %5539, %v6556_v35   ;;  %v1144_v35 = vld [vmem:[#allocation7 + $0x890] sm:$0xff]  ;;  %v1169_v14 = vld [vmem:[#allocation7 + $0x958] sm:$0xff] }
 0x2c3   : > { %2984 = vperm.xlu1 %5532, %v6525_v13  }
 0x2c6   : > { %2848 = vperm.xlu0 %5539, %v6549_v32  }
 0x2c7   : > { %5533 = vset.pattern.permute.xlu1 %v6036_v37 }
 0x2c8   : > { %2640 = vperm.xlu1 %5533, %v2463_v41   ;;  %v1020_v41 = vld [vmem:[#allocation7 + $0x4b0] sm:$0xff] }
 0x2ca   : > { %2836 = vperm.xlu0 %5539, %v6628_v58  }
 0x2cc   : > { %5534 = vset.pattern.permute.xlu1 %v6037_v38 }
 0x2cd   : > { %2708 = vperm.xlu1 %5534, %v6628_v58  }
 0x2d1   : > { %5535 = vset.pattern.permute.xlu1 %v8818_v53 }
 0x2d2   : > { %2844 = vperm.xlu1 %5535, %v6565_v7   ;;  %v1127_v7 = vld [vmem:[#allocation7 + $0x808] sm:$0xff] }
 0x2d6   : > { %5536 = vset.pattern.permute.xlu1 %v8816_v25 }
 0x2d7   : > { %2912 = vperm.xlu1 %5536, %v6549_v32  }
 0x318   : > { %v823_v27 = vpop.f32.mrf.mxu0 }
 0x319   : > { %v6698_v9 = vadd.f32 %v823_v27, %v702_v22  ;;  %v1003_v27 = vld [vmem:[#allocation7 + $0x428] sm:$0xff] }
 0x31a   : > { %v825_v28 = vpop.f32.mrf.mxu0 }
 0x31b   : > { %v6695_v37 = vadd.f32 %v825_v28, %v702_v22  ;;  %v1001_v22 = vld [vmem:[#allocation7 + $0x418] sm:$0xff]  ;;  %v722_v28 = vpop.permute.xlu0 %721 }
 0x31c   : > { %v829_v13 = vpop.f32.mrf.mxu0 }
 0x31d   : > { %1510 = vmatprep.mubr.f32.mxu1 %v6695_v37  ;;  %1623 = vmatprep.mubr.f32.mxu0 %v6695_v37  ;;  %v6706_v44 = vadd.f32 %v829_v13, %v706_v15 }
 0x31e   : > { %v831_v47 = vpop.f32.mrf.mxu0  ;;  %1511 = vmatmul.mubr.f32.vlgmr.msra.gmra.mxu1 %v6698_v9  ;;  %1624 = vmatmul.mubr.f32.vlgmr.msra.gmra.mxu0 %v6698_v9 }
 0x31f   : > { %v6704_v32 = vadd.f32 %v831_v47, %v706_v15  ;;  %1673 = vmatpush1.msra.mxu1 %v1144_v35  ;;  %1786 = vmatpush1.msra.mxu0 %v1146_v48  ;;  %v1000_v48 = vld [vmem:[#allocation7 + $0x410] sm:$0xff]  ;;  %v985_v15 = vld [vmem:[#allocation7 + $0x398] sm:$0xff]  ;;  %v6734_v47 = vpop.permute.xlu1 %2508 }
 0x320   : > { %1674 = vmatprep.subr.mxu1 %v1127_v7  ;;  %1787 = vmatprep.subr.mxu0 %v1129_v10  ;;  %v835_v36 = vpop.f32.mrf.mxu0  ;;  %v1002_v7 = vld [vmem:[#allocation7 + $0x420] sm:$0xff]  ;;  %v983_v10 = vld [vmem:[#allocation7 + $0x388] sm:$0xff] }
 0x321   : > { %1675 = vmatpush1.msra.mxu1 %v1126_v17  ;;  %1788 = vmatpush1.msra.mxu0 %v1128_v21  ;;  %v6714_v2 = vadd.f32 %v835_v36, %v710_v42  ;;  %v982_v21 = vld [vmem:[#allocation7 + $0x380] sm:$0xff]  ;;  %v984_v36 = vld [vmem:[#allocation7 + $0x390] sm:$0xff] }
 0x322   : > { %1516 = vmatprep.mubr.f32.mxu1 %v6704_v32  ;;  %1629 = vmatprep.mubr.f32.mxu0 %v6704_v32  ;;  %v837_v49 = vpop.f32.mrf.mxu0 }
 0x323   : > { %1676 = vmatprep.subr.mxu1 %v1109_v39  ;;  %1789 = vmatprep.subr.mxu0 %v1111_v50  ;;  %v6712_v45 = vadd.f32 %v837_v49, %v710_v42  ;;  %v965_v42 = vld [vmem:[#allocation7 + $0x2f8] sm:$0xff]  ;;  %v967_v49 = vld [vmem:[#allocation7 + $0x308] sm:$0xff] }
 0x324   : > { %1517 = vmatmul.mubr.f32.gmra.mxu1 %v6706_v44  ;;  %1630 = vmatmul.mubr.f32.gmra.mxu0 %v6706_v44  ;;  %v841_v55 = vpop.f32.mrf.mxu0 }
 0x325   : > { %1677 = vmatpush1.msra.mxu1 %v1108_v23  ;;  %1790 = vmatpush1.msra.mxu0 %v1110_v18  ;;  %v6722_v5 = vadd.f32 %v841_v55, %v714_v19  ;;  %v964_v23 = vld [vmem:[#allocation7 + $0x2f0] sm:$0xff]  ;;  %v966_v18 = vld [vmem:[#allocation7 + $0x300] sm:$0xff] }
 0x326   : > { %1678 = vmatprep.subr.mxu1 %v1091_v31  ;;  %1791 = vmatprep.subr.mxu0 %v1093_v43  ;;  %v843_v59 = vpop.f32.mrf.mxu0  ;;  %v947_v31 = vld [vmem:[#allocation7 + $0x268] sm:$0xff]  ;;  %v949_v43 = vld [vmem:[#allocation7 + $0x278] sm:$0xff] }
 0x327   : > { %1679 = vmatpush1.msra.mxu1 %v1090_v56  ;;  %1792 = vmatpush1.msra.mxu0 %v1092_v57  ;;  %v6718_v3 = vadd.f32 %v843_v59, %v714_v19  ;;  %v6744_v56 = vpop.permute.xlu1 %2556  ;;  %v946_v19 = vld [vmem:[#allocation7 + $0x260] sm:$0xff]  ;;  %v931_v59 = vld [vmem:[#allocation7 + $0x1e8] sm:$0xff] }
 0x328   : > { %1522 = vmatprep.mubr.f32.mxu1 %v6712_v45  ;;  %1635 = vmatprep.mubr.f32.mxu0 %v6712_v45  ;;  %v847_v12 = vpop.f32.mrf.mxu0 }
 0x329   : > { %1680 = vmatprep.subr.mxu1 %v1073_v30  ;;  %1793 = vmatprep.subr.mxu0 %v1075_v29  ;;  %v6730_v35 = vadd.f32 %v847_v12, %v718_v63  ;;  %v948_v30 = vld [vmem:[#allocation7 + $0x270] sm:$0xff]  ;;  %v929_v29 = vld [vmem:[#allocation7 + $0x1d8] sm:$0xff] }
 0x32a   : > { %1523 = vmatmul.mubr.f32.gmra.mxu1 %v6714_v2  ;;  %1636 = vmatmul.mubr.f32.gmra.mxu0 %v6714_v2  ;;  %v849_v52 = vpop.f32.mrf.mxu0 }
 0x32b   : > { %1681 = vmatpush1.msra.mxu1 %v1072_v1  ;;  %1794 = vmatpush1.msra.mxu0 %v1074_v60  ;;  %v6726_v58 = vadd.f32 %v849_v52, %v718_v63  ;;  %v730_v60 = vpop.permute.xlu0 %729  ;;  %v6754_v52 = vpop.permute.xlu1 %2604 }
 0x32c   : > { %1682 = vmatprep.subr.mxu1 %v1055_v4  ;;  %1795 = vmatprep.subr.mxu0 %v1057_v11  ;;  %v853_v16 = vpop.f32.mrf.mxu0  ;;  %v928_v4 = vld [vmem:[#allocation7 + $0x1d0] sm:$0xff]  ;;  %v930_v11 = vld [vmem:[#allocation7 + $0x1e0] sm:$0xff] }
 0x32d   : > { %1683 = vmatpush1.msra.mxu1 %v1054_v46  ;;  %1796 = vmatpush1.msra.mxu0 %v1056_v61  ;;  %v6740_v50 = vadd.f32 %v853_v16, %v722_v28  ;;  %v911_v46 = vld [vmem:[#allocation7 + $0x148] sm:$0xff]  ;;  %v913_v61 = vld [vmem:[#allocation7 + $0x158] sm:$0xff] }
 0x32e   : > { %1528 = vmatprep.mubr.f32.mxu1 %v6718_v3  ;;  %1641 = vmatprep.mubr.f32.mxu0 %v6718_v3  ;;  %v855_v6 = vpop.f32.mrf.mxu0 }
 0x32f   : > { %1684 = vmatprep.subr.mxu1 %v1037_v62  ;;  %1797 = vmatprep.subr.mxu0 %v1039_v0  ;;  %v6738_v17 = vadd.f32 %v855_v6, %v722_v28  ;;  %v910_v62 = vld [vmem:[#allocation7 + $0x140] sm:$0xff]  ;;  %v912_v0 = vld [vmem:[#allocation7 + $0x150] sm:$0xff]  ;;  %v875_v6 = vld [vmem:[#allocation7 + $0x28] sm:$0xff] }
 0x330   : > { %1529 = vmatmul.mubr.f32.gmra.mxu1 %v6722_v5  ;;  %1642 = vmatmul.mubr.f32.gmra.mxu0 %v6722_v5  ;;  %v859_v13 = vpop.f32.mrf.mxu0  ;;  %v1435_v28 = vld [vmem:[#allocation7 + $0x11a8] sm:$0xff] }
 0x331   : > { %1685 = vmatpush1.msra.mxu1 %v1036_v51  ;;  %1798 = vmatpush1.msra.mxu0 %v1038_v34  ;;  %v6750_v12 = vadd.f32 %v859_v13, %v726_v26  ;;  %v893_v51 = vld [vmem:[#allocation7 + $0xb8] sm:$0xff]  ;;  %v895_v34 = vld [vmem:[#allocation7 + $0xc8] sm:$0xff]  ;;  %v1432_v13 = vld [vmem:[#allocation7 + $0x1190] sm:$0xff] }
 0x332   : > { %1686 = vmatprep.subr.mxu1 %v1019_v40  ;;  %1799 = vmatprep.subr.mxu0 %v1021_v54  ;;  %v861_v39 = vpop.f32.mrf.mxu0  ;;  %v892_v40 = vld [vmem:[#allocation7 + $0xb0] sm:$0xff]  ;;  %v894_v54 = vld [vmem:[#allocation7 + $0xc0] sm:$0xff] }
 0x333   : > { %1687 = vmatpush1.msra.mxu1 %v1018_v8  ;;  %1800 = vmatpush1.msra.mxu0 %v1020_v41  ;;  %v6746_v57 = vadd.f32 %v861_v39, %v726_v26  ;;  %v6764_v8 = vpop.permute.xlu1 %2552  ;;  %v877_v41 = vld [vmem:[#allocation7 + $0x38] sm:$0xff]  ;;  %v874_v26 = vld [vmem:[#allocation7 + $0x20] sm:$0xff] }
 0x334   : > { %1534 = vmatprep.mubr.f32.mxu1 %v6726_v58  ;;  %1647 = vmatprep.mubr.f32.mxu0 %v6726_v58  ;;  %v865_v55 = vpop.f32.mrf.mxu0  ;;  %v1397_v39 = vld [vmem:[#allocation7 + $0x1078] sm:$0xff] }
 0x335   : > { %1688 = vmatprep.subr.mxu1 %v1001_v22  ;;  %1801 = vmatprep.subr.mxu0 %v1003_v27  ;;  %v6760_v16 = vadd.f32 %v865_v55, %v730_v60  ;;  %v876_v22 = vld [vmem:[#allocation7 + $0x30] sm:$0xff]  ;;  %v1433_v27 = vld [vmem:[#allocation7 + $0x1198] sm:$0xff] }
 0x336   : > { %1535 = vmatmul.mubr.f32.gmra.mxu1 %v6730_v35  ;;  %1648 = vmatmul.mubr.f32.gmra.mxu0 %v6730_v35  ;;  %v867_v1 = vpop.f32.mrf.mxu0  ;;  %v1380_v55 = vld [vmem:[#allocation7 + $0xff0] sm:$0xff] }
 0x337   : > { %1689 = vmatpush1.msra.mxu1 %v1000_v48  ;;  %1802 = vmatpush1.msra.mxu0 %v1002_v7  ;;  %v6758_v63 = vadd.f32 %v867_v1, %v730_v60  ;;  %v1434_v48 = vld [vmem:[#allocation7 + $0x11a0] sm:$0xff]  ;;  %v1415_v7 = vld [vmem:[#allocation7 + $0x1108] sm:$0xff] }
 0x338   : > { %1690 = vmatprep.subr.mxu1 %v983_v10  ;;  %1803 = vmatprep.subr.mxu0 %v985_v15  ;;  %v1417_v10 = vld [vmem:[#allocation7 + $0x1118] sm:$0xff]  ;;  %v1414_v15 = vld [vmem:[#allocation7 + $0x1100] sm:$0xff]  ;;  %v1343_v60 = vld [vmem:[#allocation7 + $0xec8] sm:$0xff] }
 0x339   : > { %1691 = vmatpush1.msra.mxu1 %v982_v21  ;;  %1804 = vmatpush1.msra.mxu0 %v984_v36  ;;  %v1416_v21 = vld [vmem:[#allocation7 + $0x1110] sm:$0xff]  ;;  %v6770_v36 = vpop.permute.xlu1 %2668 }
 0x33a   : > { %1540 = vmatprep.mubr.f32.mxu1 %v6738_v17  ;;  %1653 = vmatprep.mubr.f32.mxu0 %v6738_v17  ;;  %8916 = vst [vmem:[#allocation20_spill] sm:$0xff] %v6770_v36 }
 0x33b   : > { %1692 = vmatprep.subr.mxu1 %v965_v42  ;;  %1805 = vmatprep.subr.mxu0 %v967_v49  ;;  %v1399_v42 = vld [vmem:[#allocation7 + $0x1088] sm:$0xff]  ;;  %v1396_v49 = vld [vmem:[#allocation7 + $0x1070] sm:$0xff] }
 0x33c   : > { %1541 = vmatmul.mubr.f32.gmra.mxu1 %v6740_v50  ;;  %1654 = vmatmul.mubr.f32.gmra.mxu0 %v6740_v50 }
 0x33d   : > { %1693 = vmatpush1.msra.mxu1 %v964_v23  ;;  %1806 = vmatpush1.msra.mxu0 %v966_v18  ;;  %v1398_v23 = vld [vmem:[#allocation7 + $0x1080] sm:$0xff]  ;;  %v1379_v18 = vld [vmem:[#allocation7 + $0xfe8] sm:$0xff]  ;;  %v6772_v1 = vpop.permute.xlu1 %2493 }
 0x33e   : > { %1694 = vmatprep.subr.mxu1 %v947_v31  ;;  %1807 = vmatprep.subr.mxu0 %v949_v43  ;;  %v1381_v31 = vld [vmem:[#allocation7 + $0xff8] sm:$0xff]  ;;  %v1378_v43 = vld [vmem:[#allocation7 + $0xfe0] sm:$0xff] }
 0x33f   : > { %1695 = vmatpush1.msra.mxu1 %v946_v19  ;;  %1808 = vmatpush1.msra.mxu0 %v948_v30  ;;  %v1361_v19 = vld [vmem:[#allocation7 + $0xf58] sm:$0xff]  ;;  %v1363_v30 = vld [vmem:[#allocation7 + $0xf68] sm:$0xff] }
 0x340   : > { %1546 = vmatprep.mubr.f32.mxu1 %v6746_v57  ;;  %1659 = vmatprep.mubr.f32.mxu0 %v6746_v57 }
 0x341   : > { %1696 = vmatprep.subr.mxu1 %v929_v29  ;;  %1809 = vmatprep.subr.mxu0 %v931_v59  ;;  %v1360_v29 = vld [vmem:[#allocation7 + $0xf50] sm:$0xff]  ;;  %v1362_v59 = vld [vmem:[#allocation7 + $0xf60] sm:$0xff] }
 0x342   : > { %1547 = vmatmul.mubr.f32.gmra.mxu1 %v6750_v12  ;;  %1660 = vmatmul.mubr.f32.gmra.mxu0 %v6750_v12 }
 0x343   : > { %1697 = vmatpush1.msra.mxu1 %v928_v4  ;;  %1810 = vmatpush1.msra.mxu0 %v930_v11  ;;  %v1345_v4 = vld [vmem:[#allocation7 + $0xed8] sm:$0xff]  ;;  %v1342_v11 = vld [vmem:[#allocation7 + $0xec0] sm:$0xff] }
 0x344   : > { %1698 = vmatprep.subr.mxu1 %v911_v46  ;;  %1811 = vmatprep.subr.mxu0 %v913_v61  ;;  %v1344_v46 = vld [vmem:[#allocation7 + $0xed0] sm:$0xff]  ;;  %v1325_v61 = vld [vmem:[#allocation7 + $0xe38] sm:$0xff] }
 0x345   : > { %1699 = vmatpush1.msra.mxu1 %v910_v62  ;;  %1812 = vmatpush1.msra.mxu0 %v912_v0  ;;  %v1327_v62 = vld [vmem:[#allocation7 + $0xe48] sm:$0xff]  ;;  %v1324_v0 = vld [vmem:[#allocation7 + $0xe30] sm:$0xff] }
 0x346   : > { %1552 = vmatprep.mubr.f32.mxu1 %v6758_v63  ;;  %1665 = vmatprep.mubr.f32.mxu0 %v6758_v63 }
 0x347   : > { %1700 = vmatprep.subr.mxu1 %v893_v51  ;;  %1813 = vmatprep.subr.mxu0 %v895_v34  ;;  %v1326_v51 = vld [vmem:[#allocation7 + $0xe40] sm:$0xff]  ;;  %v1307_v34 = vld [vmem:[#allocation7 + $0xda8] sm:$0xff] }
 0x348   : > { %1553 = vmatmul.mubr.f32.gmra.mxu1 %v6760_v16  ;;  %1666 = vmatmul.mubr.f32.gmra.mxu0 %v6760_v16 }
 0x349   : > { %1701 = vmatpush1.msra.mxu1 %v892_v40  ;;  %1814 = vmatpush1.msra.mxu0 %v894_v54  ;;  %v1309_v40 = vld [vmem:[#allocation7 + $0xdb8] sm:$0xff]  ;;  %v1306_v54 = vld [vmem:[#allocation7 + $0xda0] sm:$0xff] }
 0x34a   : > { %1702 = vmatprep.subr.mxu1 %v875_v6  ;;  %1736 = vmatprep.mubr.f32.mxu1 %v6695_v37  ;;  %v1308_v6 = vld [vmem:[#allocation7 + $0xdb0] sm:$0xff] }
 0x34b   : > { %1815 = vmatprep.subr.mxu0 %v877_v41  ;;  %1849 = vmatprep.mubr.f32.mxu0 %v6695_v37  ;;  %v6774_v41 = vpop.permute.xlu1 %2596 }
 0x34c   : > { %1703 = vmatpush1.msra.mxu1 %v874_v26  ;;  %1816 = vmatpush1.msra.mxu0 %v876_v22  ;;  %v1289_v26 = vld [vmem:[#allocation7 + $0xd18] sm:$0xff]  ;;  %v1291_v22 = vld [vmem:[#allocation7 + $0xd28] sm:$0xff] }
 0x34d   : > { %1704 = vmatprep.subr.mxu1 %v1433_v27  ;;  %1817 = vmatprep.subr.mxu0 %v1435_v28  ;;  %v1288_v27 = vld [vmem:[#allocation7 + $0xd10] sm:$0xff]  ;;  %v1290_v28 = vld [vmem:[#allocation7 + $0xd20] sm:$0xff] }
 0x34e   : > { %1705 = vmatpush2.msra.mxu1 %v1432_v13  ;;  %1818 = vmatpush2.msra.mxu0 %v1434_v48  ;;  %v1271_v13 = vld [vmem:[#allocation7 + $0xc88] sm:$0xff]  ;;  %v1273_v48 = vld [vmem:[#allocation7 + $0xc98] sm:$0xff] }
 0x34f   : > { %1706 = vmatprep.subr.mxu1 %v1415_v7  ;;  %1819 = vmatprep.subr.mxu0 %v1417_v10  ;;  %v1270_v7 = vld [vmem:[#allocation7 + $0xc80] sm:$0xff]  ;;  %v1272_v10 = vld [vmem:[#allocation7 + $0xc90] sm:$0xff] }
 0x350   : > { %1707 = vmatpush2.msra.mxu1 %v1414_v15  ;;  %1820 = vmatpush2.msra.mxu0 %v1416_v21  ;;  %v1253_v15 = vld [vmem:[#allocation7 + $0xbf8] sm:$0xff]  ;;  %v1255_v21 = vld [vmem:[#allocation7 + $0xc08] sm:$0xff] }
 0x351   : > { %1708 = vmatprep.subr.mxu1 %v1397_v39  ;;  %1821 = vmatprep.subr.mxu0 %v1399_v42  ;;  %v1252_v39 = vld [vmem:[#allocation7 + $0xbf0] sm:$0xff]  ;;  %v1254_v42 = vld [vmem:[#allocation7 + $0xc00] sm:$0xff] }
 0x352   : > { %1709 = vmatpush2.msra.mxu1 %v1396_v49  ;;  %1822 = vmatpush2.msra.mxu0 %v1398_v23  ;;  %v6776_v49 = vpop.permute.xlu1 %2664  ;;  %v1235_v23 = vld [vmem:[#allocation7 + $0xb68] sm:$0xff] }
 0x353   : > { %1710 = vmatprep.subr.mxu1 %v1379_v18  ;;  %1823 = vmatprep.subr.mxu0 %v1381_v31  ;;  %8917 = vst [vmem:[#allocation21_spill] sm:$0xff] %v6776_v49  ;;  %v1237_v18 = vld [vmem:[#allocation7 + $0xb78] sm:$0xff]  ;;  %v1234_v31 = vld [vmem:[#allocation7 + $0xb60] sm:$0xff] }
 0x354   : > { %1711 = vmatpush2.msra.mxu1 %v1378_v43  ;;  %1824 = vmatpush2.msra.mxu0 %v1380_v55  ;;  %v1236_v43 = vld [vmem:[#allocation7 + $0xb70] sm:$0xff]  ;;  %v1217_v55 = vld [vmem:[#allocation7 + $0xad8] sm:$0xff] }
 0x355   : > { %1712 = vmatprep.subr.mxu1 %v1361_v19  ;;  %1825 = vmatprep.subr.mxu0 %v1363_v30  ;;  %v1219_v19 = vld [vmem:[#allocation7 + $0xae8] sm:$0xff]  ;;  %v1216_v30 = vld [vmem:[#allocation7 + $0xad0] sm:$0xff] }
 0x356   : > { %1713 = vmatpush2.msra.mxu1 %v1360_v29  ;;  %1826 = vmatpush2.msra.mxu0 %v1362_v59  ;;  %v1218_v29 = vld [vmem:[#allocation7 + $0xae0] sm:$0xff]  ;;  %v1199_v59 = vld [vmem:[#allocation7 + $0xa48] sm:$0xff] }
 0x357   : > { %1714 = vmatprep.subr.mxu1 %v1343_v60  ;;  %1827 = vmatprep.subr.mxu0 %v1345_v4  ;;  %v1201_v60 = vld [vmem:[#allocation7 + $0xa58] sm:$0xff]  ;;  %v1198_v4 = vld [vmem:[#allocation7 + $0xa40] sm:$0xff] }
 0x358   : > { %1715 = vmatpush2.msra.mxu1 %v1342_v11  ;;  %1828 = vmatpush2.msra.mxu0 %v1344_v46  ;;  %v1200_v11 = vld [vmem:[#allocation7 + $0xa50] sm:$0xff]  ;;  %v6778_v46 = vpop.permute.xlu1 %2488 }
 0x359   : > { %1716 = vmatprep.subr.mxu1 %v1325_v61  ;;  %1829 = vmatprep.subr.mxu0 %v1327_v62  ;;  %v1181_v61 = vld [vmem:[#allocation7 + $0x9b8] sm:$0xff]  ;;  %v1183_v62 = vld [vmem:[#allocation7 + $0x9c8] sm:$0xff] }
 0x35a   : > { %1717 = vmatpush2.msra.mxu1 %v1324_v0  ;;  %1830 = vmatpush2.msra.mxu0 %v1326_v51  ;;  %v1180_v0 = vld [vmem:[#allocation7 + $0x9b0] sm:$0xff]  ;;  %v1182_v51 = vld [vmem:[#allocation7 + $0x9c0] sm:$0xff] }
 0x35b   : > { %1718 = vmatprep.subr.mxu1 %v1307_v34  ;;  %1831 = vmatprep.subr.mxu0 %v1309_v40  ;;  %v1163_v34 = vld [vmem:[#allocation7 + $0x928] sm:$0xff]  ;;  %v1165_v40 = vld [vmem:[#allocation7 + $0x938] sm:$0xff] }
 0x35c   : > { %1719 = vmatpush2.msra.mxu1 %v1306_v54  ;;  %1832 = vmatpush2.msra.mxu0 %v1308_v6  ;;  %v1162_v54 = vld [vmem:[#allocation7 + $0x920] sm:$0xff]  ;;  %v1164_v6 = vld [vmem:[#allocation7 + $0x930] sm:$0xff] }
 0x35d   : > { %1720 = vmatprep.subr.mxu1 %v1289_v26  ;;  %1833 = vmatprep.subr.mxu0 %v1291_v22  ;;  %v1149_v26 = vld [vmem:[#allocation7 + $0x8b8] sm:$0xff]  ;;  %v1151_v22 = vld [vmem:[#allocation7 + $0x8c8] sm:$0xff] }
 0x35e   : > { %1721 = vmatpush2.msra.mxu1 %v1288_v27  ;;  %1834 = vmatpush2.msra.mxu0 %v1290_v28  ;;  %v6780_v27 = vpop.permute.xlu1 %2592  ;;  %v1148_v28 = vld [vmem:[#allocation7 + $0x8b0] sm:$0xff] }
 0x35f   : > { %1722 = vmatprep.subr.mxu1 %v1271_v13  ;;  %1835 = vmatprep.subr.mxu0 %v1273_v48  ;;  %v1150_v13 = vld [vmem:[#allocation7 + $0x8c0] sm:$0xff]  ;;  %v1131_v48 = vld [vmem:[#allocation7 + $0x828] sm:$0xff] }
 0x360   : > { %1723 = vmatpush2.msra.mxu1 %v1270_v7  ;;  %1836 = vmatpush2.msra.mxu0 %v1272_v10  ;;  %v1133_v7 = vld [vmem:[#allocation7 + $0x838] sm:$0xff]  ;;  %v1130_v10 = vld [vmem:[#allocation7 + $0x820] sm:$0xff] }
 0x361   : > { %1724 = vmatprep.subr.mxu1 %v1253_v15  ;;  %1837 = vmatprep.subr.mxu0 %v1255_v21  ;;  %v1132_v15 = vld [vmem:[#allocation7 + $0x830] sm:$0xff]  ;;  %v1113_v21 = vld [vmem:[#allocation7 + $0x798] sm:$0xff] }
 0x362   : > { %1725 = vmatpush2.msra.mxu1 %v1252_v39  ;;  %1838 = vmatpush2.msra.mxu0 %v1254_v42  ;;  %v1115_v39 = vld [vmem:[#allocation7 + $0x7a8] sm:$0xff]  ;;  %v6786_v42 = vpop.permute.xlu1 %2728 }
 0x363   : > { %1726 = vmatprep.subr.mxu1 %v1235_v23  ;;  %1839 = vmatprep.subr.mxu0 %v1237_v18  ;;  %8918 = vst [vmem:[#allocation22_spill] sm:$0xff] %v6786_v42  ;;  %v1112_v23 = vld [vmem:[#allocation7 + $0x790] sm:$0xff]  ;;  %v1114_v18 = vld [vmem:[#allocation7 + $0x7a0] sm:$0xff] }
 0x364   : > { %1727 = vmatpush2.msra.mxu1 %v1234_v31  ;;  %1840 = vmatpush2.msra.mxu0 %v1236_v43  ;;  %v1095_v31 = vld [vmem:[#allocation7 + $0x708] sm:$0xff]  ;;  %v1097_v43 = vld [vmem:[#allocation7 + $0x718] sm:$0xff] }
 0x365   : > { %1728 = vmatprep.subr.mxu1 %v1217_v55  ;;  %1841 = vmatprep.subr.mxu0 %v1219_v19  ;;  %v1094_v55 = vld [vmem:[#allocation7 + $0x700] sm:$0xff]  ;;  %v1096_v19 = vld [vmem:[#allocation7 + $0x710] sm:$0xff] }
 0x366   : > { %1729 = vmatpush2.msra.mxu1 %v1216_v30  ;;  %1842 = vmatpush2.msra.mxu0 %v1218_v29  ;;  %v1077_v30 = vld [vmem:[#allocation7 + $0x678] sm:$0xff]  ;;  %v1079_v29 = vld [vmem:[#allocation7 + $0x688] sm:$0xff] }
 0x367   : > { %1730 = vmatprep.subr.mxu1 %v1199_v59  ;;  %1843 = vmatprep.subr.mxu0 %v1201_v60  ;;  %v6792_v59 = vpop.permute.xlu1 %2796  ;;  %v1076_v60 = vld [vmem:[#allocation7 + $0x670] sm:$0xff] }
 0x368   : > { %1731 = vmatpush2.msra.mxu1 %v1198_v4  ;;  %1844 = vmatpush2.msra.mxu0 %v1200_v11  ;;  %8919 = vst [vmem:[#allocation23_spill] sm:$0xff] %v6792_v59  ;;  %v1078_v4 = vld [vmem:[#allocation7 + $0x680] sm:$0xff]  ;;  %v1059_v11 = vld [vmem:[#allocation7 + $0x5e8] sm:$0xff] }
 0x369   : > { %1732 = vmatprep.subr.mxu1 %v1181_v61  ;;  %1845 = vmatprep.subr.mxu0 %v1183_v62  ;;  %v1061_v61 = vld [vmem:[#allocation7 + $0x5f8] sm:$0xff]  ;;  %v1058_v62 = vld [vmem:[#allocation7 + $0x5e0] sm:$0xff] }
 0x36a   : > { %1733 = vmatpush2.msra.mxu1 %v1180_v0  ;;  %1846 = vmatpush2.msra.mxu0 %v1182_v51  ;;  %v1060_v0 = vld [vmem:[#allocation7 + $0x5f0] sm:$0xff]  ;;  %v1041_v51 = vld [vmem:[#allocation7 + $0x558] sm:$0xff] }
 0x36b   : > { %1734 = vmatprep.subr.mxu1 %v1163_v34  ;;  %1847 = vmatprep.subr.mxu0 %v1165_v40  ;;  %v1043_v34 = vld [vmem:[#allocation7 + $0x568] sm:$0xff]  ;;  %v6798_v40 = vpop.permute.xlu1 %2540 }
 0x36c   : > { %1735 = vmatpush2.msra.mxu1 %v1162_v54  ;;  %1848 = vmatpush2.msra.mxu0 %v1164_v6  ;;  %v1040_v54 = vld [vmem:[#allocation7 + $0x550] sm:$0xff]  ;;  %v1042_v6 = vld [vmem:[#allocation7 + $0x560] sm:$0xff] }
 0x36d   : > { %1737 = vmatmul.mubr.f32.vlgmr.msra.gmra.mxu1 %v6698_v9  ;;  %1850 = vmatmul.mubr.f32.vlgmr.msra.gmra.mxu0 %v6698_v9 }
 0x36e   : > { %1898 = vmatprep.subr.mxu1 %v1149_v26  ;;  %2011 = vmatprep.subr.mxu0 %v1151_v22  ;;  %v1023_v26 = vld [vmem:[#allocation7 + $0x4c8] sm:$0xff]  ;;  %v1025_v22 = vld [vmem:[#allocation7 + $0x4d8] sm:$0xff] }
 0x36f   : > { %1742 = vmatprep.mubr.f32.mxu1 %v6704_v32  ;;  %1855 = vmatprep.mubr.f32.mxu0 %v6704_v32 }
 0x370   : > { %1899 = vmatpush1.msra.mxu1 %v1148_v28  ;;  %2012 = vmatpush1.msra.mxu0 %v1150_v13  ;;  %v1022_v28 = vld [vmem:[#allocation7 + $0x4c0] sm:$0xff]  ;;  %v1024_v13 = vld [vmem:[#allocation7 + $0x4d0] sm:$0xff] }
 0x371   : > { %1900 = vmatprep.subr.mxu1 %v1131_v48  ;;  %2013 = vmatprep.subr.mxu0 %v1133_v7  ;;  %v1005_v48 = vld [vmem:[#allocation7 + $0x438] sm:$0xff]  ;;  %v1007_v7 = vld [vmem:[#allocation7 + $0x448] sm:$0xff] }
 0x372   : > { %1901 = vmatpush1.msra.mxu1 %v1130_v10  ;;  %2014 = vmatpush1.msra.mxu0 %v1132_v15  ;;  %v6804_v10 = vpop.permute.xlu1 %2588  ;;  %v1004_v15 = vld [vmem:[#allocation7 + $0x430] sm:$0xff] }
 0x373   : > { %1743 = vmatmul.mubr.f32.gmra.mxu1 %v6706_v44  ;;  %1856 = vmatmul.mubr.f32.gmra.mxu0 %v6706_v44 }
 0x374   : > { %1902 = vmatprep.subr.mxu1 %v1113_v21  ;;  %2015 = vmatprep.subr.mxu0 %v1115_v39  ;;  %v1006_v21 = vld [vmem:[#allocation7 + $0x440] sm:$0xff]  ;;  %v987_v39 = vld [vmem:[#allocation7 + $0x3a8] sm:$0xff] }
 0x375   : > { %1748 = vmatprep.mubr.f32.mxu1 %v6712_v45  ;;  %1861 = vmatprep.mubr.f32.mxu0 %v6712_v45 }
 0x376   : > { %1903 = vmatpush1.msra.mxu1 %v1112_v23  ;;  %2016 = vmatpush1.msra.mxu0 %v1114_v18  ;;  %v989_v23 = vld [vmem:[#allocation7 + $0x3b8] sm:$0xff]  ;;  %v986_v18 = vld [vmem:[#allocation7 + $0x3a0] sm:$0xff] }
 0x377   : > { %1904 = vmatprep.subr.mxu1 %v1095_v31  ;;  %2017 = vmatprep.subr.mxu0 %v1097_v43  ;;  %v988_v31 = vld [vmem:[#allocation7 + $0x3b0] sm:$0xff]  ;;  %v969_v43 = vld [vmem:[#allocation7 + $0x318] sm:$0xff] }
 0x378   : > { %1905 = vmatpush1.msra.mxu1 %v1094_v55  ;;  %2018 = vmatpush1.msra.mxu0 %v1096_v19  ;;  %v971_v55 = vld [vmem:[#allocation7 + $0x328] sm:$0xff]  ;;  %v6810_v19 = vpop.permute.xlu1 %2724 }
 0x379   : > { %1749 = vmatmul.mubr.f32.gmra.mxu1 %v6714_v2  ;;  %1862 = vmatmul.mubr.f32.gmra.mxu0 %v6714_v2  ;;  %8920 = vst [vmem:[#allocation24_spill] sm:$0xff] %v6810_v19  ;;  %v936_v19 = vld [vmem:[#allocation7 + $0x210] sm:$0xff] }
 0x37a   : > { %1906 = vmatprep.subr.mxu1 %v1077_v30  ;;  %2019 = vmatprep.subr.mxu0 %v1079_v29  ;;  %v968_v30 = vld [vmem:[#allocation7 + $0x310] sm:$0xff]  ;;  %v970_v29 = vld [vmem:[#allocation7 + $0x320] sm:$0xff] }
 0x37b   : > { %1754 = vmatprep.mubr.f32.mxu1 %v6718_v3  ;;  %1867 = vmatprep.mubr.f32.mxu0 %v6718_v3 }
 0x37c   : > { %1907 = vmatpush1.msra.mxu1 %v1076_v60  ;;  %2020 = vmatpush1.msra.mxu0 %v1078_v4  ;;  %v951_v60 = vld [vmem:[#allocation7 + $0x288] sm:$0xff]  ;;  %v953_v4 = vld [vmem:[#allocation7 + $0x298] sm:$0xff] }
 0x37d   : > { %1908 = vmatprep.subr.mxu1 %v1059_v11  ;;  %2021 = vmatprep.subr.mxu0 %v1061_v61  ;;  %v950_v11 = vld [vmem:[#allocation7 + $0x280] sm:$0xff]  ;;  %v952_v61 = vld [vmem:[#allocation7 + $0x290] sm:$0xff] }
 0x37e   : > { %1909 = vmatpush1.msra.mxu1 %v1058_v62  ;;  %2022 = vmatpush1.msra.mxu0 %v1060_v0  ;;  %v933_v62 = vld [vmem:[#allocation7 + $0x1f8] sm:$0xff]  ;;  %v935_v0 = vld [vmem:[#allocation7 + $0x208] sm:$0xff] }
 0x37f   : > { %1755 = vmatmul.mubr.f32.gmra.mxu1 %v6722_v5  ;;  %1868 = vmatmul.mubr.f32.gmra.mxu0 %v6722_v5 }
 0x380   : > { %1910 = vmatprep.subr.mxu1 %v1041_v51  ;;  %2023 = vmatprep.subr.mxu0 %v1043_v34  ;;  %v6816_v51 = vpop.permute.xlu1 %2792  ;;  %v932_v34 = vld [vmem:[#allocation7 + $0x1f0] sm:$0xff] }
 0x381   : > { %1760 = vmatprep.mubr.f32.mxu1 %v6726_v58  ;;  %1873 = vmatprep.mubr.f32.mxu0 %v6726_v58  ;;  %8921 = vst [vmem:[#allocation25_spill] sm:$0xff] %v6816_v51  ;;  %v955_v51 = vld [vmem:[#allocation7 + $0x2a8] sm:$0xff] }
 0x382   : > { %1911 = vmatpush1.msra.mxu1 %v1040_v54  ;;  %2024 = vmatpush1.msra.mxu0 %v1042_v6  ;;  %v934_v54 = vld [vmem:[#allocation7 + $0x200] sm:$0xff]  ;;  %v915_v6 = vld [vmem:[#allocation7 + $0x168] sm:$0xff] }
 0x383   : > { %1912 = vmatprep.subr.mxu1 %v1023_v26  ;;  %2025 = vmatprep.subr.mxu0 %v1025_v22  ;;  %v917_v26 = vld [vmem:[#allocation7 + $0x178] sm:$0xff]  ;;  %v914_v22 = vld [vmem:[#allocation7 + $0x160] sm:$0xff] }
 0x384   : > { %1913 = vmatpush1.msra.mxu1 %v1022_v28  ;;  %2026 = vmatpush1.msra.mxu0 %v1024_v13  ;;  %v916_v28 = vld [vmem:[#allocation7 + $0x170] sm:$0xff]  ;;  %v897_v13 = vld [vmem:[#allocation7 + $0xd8] sm:$0xff] }
 0x385   : > { %1761 = vmatmul.mubr.f32.gmra.mxu1 %v6730_v35  ;;  %1874 = vmatmul.mubr.f32.gmra.mxu0 %v6730_v35 }
 0x386   : > { %1914 = vmatprep.subr.mxu1 %v1005_v48  ;;  %2027 = vmatprep.subr.mxu0 %v1007_v7  ;;  %v899_v48 = vld [vmem:[#allocation7 + $0xe8] sm:$0xff]  ;;  %v6822_v7 = vpop.permute.xlu1 %2478 }
 0x387   : > { %1766 = vmatprep.mubr.f32.mxu1 %v6738_v17  ;;  %1879 = vmatprep.mubr.f32.mxu0 %v6738_v17 }
 0x388   : > { %1915 = vmatpush1.msra.mxu1 %v1004_v15  ;;  %2028 = vmatpush1.msra.mxu0 %v1006_v21  ;;  %v6824_v15 = vpop.permute.xlu0 %2600  ;;  %v896_v21 = vld [vmem:[#allocation7 + $0xd0] sm:$0xff] }
 0x389   : > { %1916 = vmatprep.subr.mxu1 %v987_v39  ;;  %2029 = vmatprep.subr.mxu0 %v989_v23  ;;  %v898_v39 = vld [vmem:[#allocation7 + $0xe0] sm:$0xff]  ;;  %v879_v23 = vld [vmem:[#allocation7 + $0x48] sm:$0xff] }
 0x38a   : > { %1917 = vmatpush1.msra.mxu1 %v986_v18  ;;  %2030 = vmatpush1.msra.mxu0 %v988_v31  ;;  %v881_v18 = vld [vmem:[#allocation7 + $0x58] sm:$0xff]  ;;  %v878_v31 = vld [vmem:[#allocation7 + $0x40] sm:$0xff] }
 0x38b   : > { %1767 = vmatmul.mubr.f32.gmra.mxu1 %v6740_v50  ;;  %1880 = vmatmul.mubr.f32.gmra.mxu0 %v6740_v50 }
 0x38c   : > { %1918 = vmatprep.subr.mxu1 %v969_v43  ;;  %2031 = vmatprep.subr.mxu0 %v971_v55  ;;  %v880_v43 = vld [vmem:[#allocation7 + $0x50] sm:$0xff]  ;;  %v1437_v55 = vld [vmem:[#allocation7 + $0x11b8] sm:$0xff] }
 0x38d   : > { %1772 = vmatprep.mubr.f32.mxu1 %v6746_v57  ;;  %1885 = vmatprep.mubr.f32.mxu0 %v6746_v57 }
 0x38e   : > { %1919 = vmatpush1.msra.mxu1 %v968_v30  ;;  %2032 = vmatpush1.msra.mxu0 %v970_v29  ;;  %v1439_v30 = vld [vmem:[#allocation7 + $0x11c8] sm:$0xff]  ;;  %v1436_v29 = vld [vmem:[#allocation7 + $0x11b0] sm:$0xff] }
 0x38f   : > { %1920 = vmatprep.subr.mxu1 %v951_v60  ;;  %2033 = vmatprep.subr.mxu0 %v953_v4  ;;  %v1438_v60 = vld [vmem:[#allocation7 + $0x11c0] sm:$0xff]  ;;  %v6830_v4 = vpop.permute.xlu1 %2536 }
 0x390   : > { %1921 = vmatpush1.msra.mxu1 %v950_v11  ;;  %2034 = vmatpush1.msra.mxu0 %v952_v61  ;;  %v6832_v11 = vpop.permute.xlu0 %2584  ;;  %v1419_v61 = vld [vmem:[#allocation7 + $0x1128] sm:$0xff] }
 0x391   : > { %1773 = vmatmul.mubr.f32.gmra.mxu1 %v6750_v12  ;;  %1886 = vmatmul.mubr.f32.gmra.mxu0 %v6750_v12 }
 0x392   : > { %1922 = vmatprep.subr.mxu1 %v933_v62  ;;  %2035 = vmatprep.subr.mxu0 %v935_v0  ;;  %v1421_v62 = vld [vmem:[#allocation7 + $0x1138] sm:$0xff]  ;;  %v1418_v0 = vld [vmem:[#allocation7 + $0x1120] sm:$0xff] }
 0x393   : > { %1778 = vmatprep.mubr.f32.mxu1 %v6758_v63  ;;  %1891 = vmatprep.mubr.f32.mxu0 %v6758_v63 }
 0x394   : > { %1923 = vmatpush1.msra.mxu1 %v932_v34  ;;  %2036 = vmatpush1.msra.mxu0 %v934_v54  ;;  %v1420_v34 = vld [vmem:[#allocation7 + $0x1130] sm:$0xff]  ;;  %v1401_v54 = vld [vmem:[#allocation7 + $0x1098] sm:$0xff] }
 0x395   : > { %1924 = vmatprep.subr.mxu1 %v915_v6  ;;  %2037 = vmatprep.subr.mxu0 %v917_v26  ;;  %v1403_v6 = vld [vmem:[#allocation7 + $0x10a8] sm:$0xff]  ;;  %v1400_v26 = vld [vmem:[#allocation7 + $0x1090] sm:$0xff] }
 0x396   : > { %1925 = vmatpush1.msra.mxu1 %v914_v22  ;;  %2038 = vmatpush1.msra.mxu0 %v916_v28  ;;  %v1402_v22 = vld [vmem:[#allocation7 + $0x10a0] sm:$0xff]  ;;  %v1383_v28 = vld [vmem:[#allocation7 + $0x1008] sm:$0xff] }
 0x397   : > { %1779 = vmatmul.mubr.f32.gmra.mxu1 %v6760_v16  ;;  %1892 = vmatmul.mubr.f32.gmra.mxu0 %v6760_v16 }
 0x398   : > { %1926 = vmatprep.subr.mxu1 %v897_v13  ;;  %2039 = vmatprep.subr.mxu0 %v899_v48  ;;  %v1385_v13 = vld [vmem:[#allocation7 + $0x1018] sm:$0xff]  ;;  %v1382_v48 = vld [vmem:[#allocation7 + $0x1000] sm:$0xff] }
 0x399   : > { %1927 = vmatpush1.msra.mxu1 %v896_v21  ;;  %1962 = vmatprep.mubr.f32.mxu1 %v6695_v37  ;;  %v1384_v21 = vld [vmem:[#allocation7 + $0x1010] sm:$0xff] }
 0x39a   : > { %2040 = vmatpush1.msra.mxu0 %v898_v39  ;;  %2075 = vmatprep.mubr.f32.mxu0 %v6695_v37  ;;  %v6834_v39 = vpop.permute.xlu1 %2652 }
 0x39b   : > { %1928 = vmatprep.subr.mxu1 %v879_v23  ;;  %2041 = vmatprep.subr.mxu0 %v881_v18  ;;  %v6836_v23 = vpop.permute.xlu0 %2503  ;;  %v1365_v18 = vld [vmem:[#allocation7 + $0xf78] sm:$0xff] }
 0x39c   : > { %1929 = vmatpush1.msra.mxu1 %v878_v31  ;;  %2042 = vmatpush1.msra.mxu0 %v880_v43  ;;  %v1367_v31 = vld [vmem:[#allocation7 + $0xf88] sm:$0xff]  ;;  %v1364_v43 = vld [vmem:[#allocation7 + $0xf70] sm:$0xff] }
 0x39d   : > { %1930 = vmatprep.subr.mxu1 %v1437_v55  ;;  %2043 = vmatprep.subr.mxu0 %v1439_v30  ;;  %v1366_v55 = vld [vmem:[#allocation7 + $0xf80] sm:$0xff]  ;;  %v1347_v30 = vld [vmem:[#allocation7 + $0xee8] sm:$0xff] }
 0x39e   : > { %1931 = vmatpush2.msra.mxu1 %v1436_v29  ;;  %2044 = vmatpush2.msra.mxu0 %v1438_v60  ;;  %v1349_v29 = vld [vmem:[#allocation7 + $0xef8] sm:$0xff]  ;;  %v1346_v60 = vld [vmem:[#allocation7 + $0xee0] sm:$0xff] }
 0x39f   : > { %1932 = vmatprep.subr.mxu1 %v1419_v61  ;;  %2045 = vmatprep.subr.mxu0 %v1421_v62  ;;  %v1348_v61 = vld [vmem:[#allocation7 + $0xef0] sm:$0xff]  ;;  %v1329_v62 = vld [vmem:[#allocation7 + $0xe58] sm:$0xff] }
 0x3a0   : > { %1933 = vmatpush2.msra.mxu1 %v1418_v0  ;;  %2046 = vmatpush2.msra.mxu0 %v1420_v34  ;;  %v1331_v0 = vld [vmem:[#allocation7 + $0xe68] sm:$0xff]  ;;  %v1328_v34 = vld [vmem:[#allocation7 + $0xe50] sm:$0xff] }
 0x3a1   : > { %1934 = vmatprep.subr.mxu1 %v1401_v54  ;;  %2047 = vmatprep.subr.mxu0 %v1403_v6  ;;  %v1330_v54 = vld [vmem:[#allocation7 + $0xe60] sm:$0xff]  ;;  %v6838_v6 = vpop.permute.xlu1 %2720 }
 0x3a2   : > { %1935 = vmatpush2.msra.mxu1 %v1400_v26  ;;  %2048 = vmatpush2.msra.mxu0 %v1402_v22  ;;  %8922 = vst [vmem:[#allocation26_spill] sm:$0xff] %v6838_v6  ;;  %v6840_v26 = vpop.permute.xlu0 %2498  ;;  %v1311_v22 = vld [vmem:[#allocation7 + $0xdc8] sm:$0xff] }
 0x3a3   : > { %1936 = vmatprep.subr.mxu1 %v1383_v28  ;;  %2049 = vmatprep.subr.mxu0 %v1385_v13  ;;  %v1313_v28 = vld [vmem:[#allocation7 + $0xdd8] sm:$0xff]  ;;  %v1310_v13 = vld [vmem:[#allocation7 + $0xdc0] sm:$0xff] }
 0x3a4   : > { %1937 = vmatpush2.msra.mxu1 %v1382_v48  ;;  %2050 = vmatpush2.msra.mxu0 %v1384_v21  ;;  %v1312_v48 = vld [vmem:[#allocation7 + $0xdd0] sm:$0xff]  ;;  %v1293_v21 = vld [vmem:[#allocation7 + $0xd38] sm:$0xff] }
 0x3a5   : > { %1938 = vmatprep.subr.mxu1 %v1365_v18  ;;  %2051 = vmatprep.subr.mxu0 %v1367_v31  ;;  %v1295_v18 = vld [vmem:[#allocation7 + $0xd48] sm:$0xff]  ;;  %v1292_v31 = vld [vmem:[#allocation7 + $0xd30] sm:$0xff] }
 0x3a6   : > { %1939 = vmatpush2.msra.mxu1 %v1364_v43  ;;  %2052 = vmatpush2.msra.mxu0 %v1366_v55  ;;  %v1294_v43 = vld [vmem:[#allocation7 + $0xd40] sm:$0xff]  ;;  %v1275_v55 = vld [vmem:[#allocation7 + $0xca8] sm:$0xff] }
 0x3a7   : > { %1940 = vmatprep.subr.mxu1 %v1347_v30  ;;  %2053 = vmatprep.subr.mxu0 %v1349_v29  ;;  %v1277_v30 = vld [vmem:[#allocation7 + $0xcb8] sm:$0xff]  ;;  %v1274_v29 = vld [vmem:[#allocation7 + $0xca0] sm:$0xff] }
 0x3a8   : > { %1941 = vmatpush2.msra.mxu1 %v1346_v60  ;;  %2054 = vmatpush2.msra.mxu0 %v1348_v61  ;;  %v1276_v60 = vld [vmem:[#allocation7 + $0xcb0] sm:$0xff]  ;;  %v6842_v61 = vpop.permute.xlu1 %2856 }
 0x3a9   : > { %1942 = vmatprep.subr.mxu1 %v1329_v62  ;;  %2055 = vmatprep.subr.mxu0 %v1331_v0  ;;  %8923 = vst [vmem:[#allocation27_spill] sm:$0xff] %v6842_v61  ;;  %v6844_v62 = vpop.permute.xlu0 %2483  ;;  %v1257_v0 = vld [vmem:[#allocation7 + $0xc18] sm:$0xff] }
 0x3aa   : > { %1943 = vmatpush2.msra.mxu1 %v1328_v34  ;;  %2056 = vmatpush2.msra.mxu0 %v1330_v54  ;;  %v1259_v34 = vld [vmem:[#allocation7 + $0xc28] sm:$0xff]  ;;  %v1256_v54 = vld [vmem:[#allocation7 + $0xc10] sm:$0xff] }
 0x3ab   : > { %1944 = vmatprep.subr.mxu1 %v1311_v22  ;;  %2057 = vmatprep.subr.mxu0 %v1313_v28  ;;  %v1258_v22 = vld [vmem:[#allocation7 + $0xc20] sm:$0xff]  ;;  %v1239_v28 = vld [vmem:[#allocation7 + $0xb88] sm:$0xff] }
 0x3ac   : > { %1945 = vmatpush2.msra.mxu1 %v1310_v13  ;;  %2058 = vmatpush2.msra.mxu0 %v1312_v48  ;;  %v1241_v13 = vld [vmem:[#allocation7 + $0xb98] sm:$0xff]  ;;  %v1238_v48 = vld [vmem:[#allocation7 + $0xb80] sm:$0xff] }
 0x3ad   : > { %1946 = vmatprep.subr.mxu1 %v1293_v21  ;;  %2059 = vmatprep.subr.mxu0 %v1295_v18  ;;  %v1240_v21 = vld [vmem:[#allocation7 + $0xb90] sm:$0xff]  ;;  %v1221_v18 = vld [vmem:[#allocation7 + $0xaf8] sm:$0xff] }
 0x3ae   : > { %1947 = vmatpush2.msra.mxu1 %v1292_v31  ;;  %2060 = vmatpush2.msra.mxu0 %v1294_v43  ;;  %v1220_v31 = vld [vmem:[#allocation7 + $0xaf0] sm:$0xff]  ;;  %v1222_v43 = vld [vmem:[#allocation7 + $0xb00] sm:$0xff] }
 0x3af   : > { %1948 = vmatprep.subr.mxu1 %v1275_v55  ;;  %2061 = vmatprep.subr.mxu0 %v1277_v30  ;;  %v6846_v55 = vpop.permute.xlu1 %2924  ;;  %v6848_v30 = vpop.permute.xlu0 %2473 }
 0x3b0   : > { %1949 = vmatpush2.msra.mxu1 %v1274_v29  ;;  %2062 = vmatpush2.msra.mxu0 %v1276_v60  ;;  %8924 = vst [vmem:[#allocation28_spill] sm:$0xff] %v6846_v55  ;;  %v1203_v29 = vld [vmem:[#allocation7 + $0xa68] sm:$0xff]  ;;  %v1205_v60 = vld [vmem:[#allocation7 + $0xa78] sm:$0xff] }
 0x3b1   : > { %1950 = vmatprep.subr.mxu1 %v1257_v0  ;;  %2063 = vmatprep.subr.mxu0 %v1259_v34  ;;  %v1202_v0 = vld [vmem:[#allocation7 + $0xa60] sm:$0xff]  ;;  %v1204_v34 = vld [vmem:[#allocation7 + $0xa70] sm:$0xff] }
 0x3b2   : > { %1951 = vmatpush2.msra.mxu1 %v1256_v54  ;;  %2064 = vmatpush2.msra.mxu0 %v1258_v22  ;;  %v1185_v54 = vld [vmem:[#allocation7 + $0x9d8] sm:$0xff]  ;;  %v1187_v22 = vld [vmem:[#allocation7 + $0x9e8] sm:$0xff] }
 0x3b3   : > { %1952 = vmatprep.subr.mxu1 %v1239_v28  ;;  %2065 = vmatprep.subr.mxu0 %v1241_v13  ;;  %v1184_v28 = vld [vmem:[#allocation7 + $0x9d0] sm:$0xff]  ;;  %v1186_v13 = vld [vmem:[#allocation7 + $0x9e0] sm:$0xff] }
 0x3b4   : > { %1953 = vmatpush2.msra.mxu1 %v1238_v48  ;;  %2066 = vmatpush2.msra.mxu0 %v1240_v21  ;;  %v1166_v48 = vld [vmem:[#allocation7 + $0x940] sm:$0xff]  ;;  %v6850_v21 = vpop.permute.xlu1 %2532 }
 0x3b5   : > { %1954 = vmatprep.subr.mxu1 %v1221_v18  ;;  %2067 = vmatprep.subr.mxu0 %v1223_v20  ;;  %v6852_v20 = vpop.permute.xlu0 %2660  ;;  %v1168_v18 = vld [vmem:[#allocation7 + $0x950] sm:$0xff] }
 0x3b6   : > { %1955 = vmatpush2.msra.mxu1 %v1220_v31  ;;  %2068 = vmatpush2.msra.mxu0 %v1222_v43  ;;  %8925 = vst [vmem:[#allocation29_spill] sm:$0xff] %v6852_v20  ;;  %v8814_v31 = vmov 8   ;;  %v1153_v43 = vld [vmem:[#allocation7 + $0x8d8] sm:$0xff] }
 0x3b7   : > { %1956 = vmatprep.subr.mxu1 %v1203_v29  ;;  %2069 = vmatprep.subr.mxu0 %v1205_v60  ;;  %v1155_v29 = vld [vmem:[#allocation7 + $0x8e8] sm:$0xff]  ;;  %v5717_v60 = vld [vmem:[%s8794_s2 + $0x30] sm:$0xff] }
 0x3b8   : > { %1957 = vmatpush2.msra.mxu1 %v1202_v0  ;;  %2070 = vmatpush2.msra.mxu0 %v1204_v34  ;;  %v1152_v0 = vld [vmem:[#allocation7 + $0x8d0] sm:$0xff]  ;;  %v1154_v34 = vld [vmem:[#allocation7 + $0x8e0] sm:$0xff] }
 0x3b9   : > { %1958 = vmatprep.subr.mxu1 %v1185_v54  ;;  %2071 = vmatprep.subr.mxu0 %v1187_v22  ;;  %v6860_v54 = vpop.permute.xlu1 %2580  ;;  %v6862_v22 = vpop.permute.xlu0 %2656 }
 0x3ba   : > { %1959 = vmatpush2.msra.mxu1 %v1184_v28  ;;  %2072 = vmatpush2.msra.mxu0 %v1186_v13  ;;  %v1134_v28 = vld [vmem:[#allocation7 + $0x840] sm:$0xff]  ;;  %v1136_v13 = vld [vmem:[#allocation7 + $0x850] sm:$0xff] }
 0x3bb   : > { %1960 = vmatprep.subr.mxu1 %v1167_v24  ;;  %2073 = vmatprep.subr.mxu0 %v1169_v14  ;;  %v1135_v24 = vld [vmem:[#allocation7 + $0x848] sm:$0xff]  ;;  %v1137_v14 = vld [vmem:[#allocation7 + $0x858] sm:$0xff] }
 0x3bc   : > { %5537 = vset.pattern.permute.xlu1 %v8814_v31  ;;  %1961 = vmatpush2.msra.mxu1 %v1166_v48  ;;  %v1117_v48 = vld [vmem:[#allocation7 + $0x7b8] sm:$0xff] }
 0x3bd   : > { %2074 = vmatpush2.msra.mxu0 %v1168_v18  ;;  %3048 = vperm.xlu1 %5537, %v5717_v60   ;;  %v1119_v18 = vld [vmem:[#allocation7 + $0x7c8] sm:$0xff]  ;;  %v6869_v60 = vpop.permute.xlu1 %2716  ;;  %v6871_v33 = vpop.permute.xlu0 %2648 }
 0x3be   : > { %1963 = vmatmul.mubr.f32.vlgmr.msra.gmra.mxu1 %v6698_v9  ;;  %2076 = vmatmul.mubr.f32.vlgmr.msra.gmra.mxu0 %v6698_v9 }
 0x3bf   : > { %2124 = vmatprep.subr.mxu1 %v1153_v43  ;;  %2237 = vmatprep.subr.mxu0 %v1155_v29  ;;  %v1116_v43 = vld [vmem:[#allocation7 + $0x7b0] sm:$0xff]  ;;  %v1118_v29 = vld [vmem:[#allocation7 + $0x7c0] sm:$0xff] }
 0x3c0   : > { %1968 = vmatprep.mubr.f32.mxu1 %v6704_v32  ;;  %2081 = vmatprep.mubr.f32.mxu0 %v6704_v32 }
 0x3c1   : > { %2125 = vmatpush1.msra.mxu1 %v1152_v0  ;;  %2238 = vmatpush1.msra.mxu0 %v1154_v34  ;;  %v6876_v0 = vld [vmem:[%s8794_s2] sm:$0xff]  ;;  %v1101_v34 = vld [vmem:[#allocation7 + $0x738] sm:$0xff]  ;;  %v6883_v31 = vpop.permute.xlu1 %2784  ;;  %v6885_v25 = vpop.permute.xlu0 %2548 }
 0x3c2   : > { %2126 = vmatprep.subr.mxu1 %v1135_v24  ;;  %2239 = vmatprep.subr.mxu0 %v1137_v14  ;;  %v1098_v24 = vld [vmem:[#allocation7 + $0x720] sm:$0xff]  ;;  %v1100_v14 = vld [vmem:[#allocation7 + $0x730] sm:$0xff]  ;;  %8926 = vst [vmem:[#allocation30_spill] sm:$0xff] %v6883_v31 }
 0x3c3   : > { %2127 = vmatpush1.msra.mxu1 %v1134_v28  ;;  %2240 = vmatpush1.msra.mxu0 %v1136_v13  ;;  %v1081_v28 = vld [vmem:[#allocation7 + $0x698] sm:$0xff]  ;;  %v1083_v13 = vld [vmem:[#allocation7 + $0x6a8] sm:$0xff] }
 0x3c4   : > { %5538 = vset.pattern.permute.xlu1 %v6037_v38  ;;  %1969 = vmatmul.mubr.f32.gmra.mxu1 %v6706_v44  ;;  %v1099_v38 = vld [vmem:[#allocation7 + $0x728] sm:$0xff] }
 0x3c5   : > { %2082 = vmatmul.mubr.f32.gmra.mxu0 %v6706_v44  ;;  %2128 = vmatprep.subr.mxu1 %v1117_v48  ;;  %v1080_v48 = vld [vmem:[#allocation7 + $0x690] sm:$0xff]  ;;  %v6891_v53 = vpop.permute.xlu1 %2920  ;;  %v6893_v55 = vpop.permute.xlu0 %2732 }
 0x3c6   : > { %2241 = vmatprep.subr.mxu0 %v1119_v18  ;;  %2704 = vperm.xlu1 %5538, %v6876_v0   ;;  %v1082_v18 = vld [vmem:[#allocation7 + $0x6a0] sm:$0xff]  ;;  %8927 = vst [vmem:[#allocation31_spill] sm:$0xff] %v6891_v53  ;;  %8928 = vst [vmem:[#allocation32_spill] sm:$0xff] %v6893_v55  ;;  %v957_v55 = vld [vmem:[#allocation7 + $0x2b8] sm:$0xff] }
 0x3c7   : > { %1974 = vmatprep.mubr.f32.mxu1 %v6712_v45  ;;  %2087 = vmatprep.mubr.f32.mxu0 %v6712_v45 }
 0x3c8   : > { %2129 = vmatpush1.msra.mxu1 %v1116_v43  ;;  %2242 = vmatpush1.msra.mxu0 %v1118_v29  ;;  %v1063_v43 = vld [vmem:[#allocation7 + $0x608] sm:$0xff]  ;;  %v1065_v29 = vld [vmem:[#allocation7 + $0x618] sm:$0xff] }
 0x3c9   : > { %2130 = vmatprep.subr.mxu1 %v1099_v38  ;;  %2243 = vmatprep.subr.mxu0 %v1101_v34  ;;  %v1062_v38 = vld [vmem:[#allocation7 + $0x600] sm:$0xff]  ;;  %v1064_v34 = vld [vmem:[#allocation7 + $0x610] sm:$0xff]  ;;  %v6899_v53 = vpop.permute.xlu1 %2988  ;;  %v6901_v61 = vpop.permute.xlu0 %2544 }
 0x3ca   : > { %2131 = vmatpush1.msra.mxu1 %v1098_v24  ;;  %2244 = vmatpush1.msra.mxu0 %v1100_v14  ;;  %v1045_v24 = vld [vmem:[#allocation7 + $0x578] sm:$0xff]  ;;  %v1047_v14 = vld [vmem:[#allocation7 + $0x588] sm:$0xff]  ;;  %8929 = vst [vmem:[#allocation33_spill] sm:$0xff] %v6899_v53 }
 0x3cb   : > { %1975 = vmatmul.mubr.f32.gmra.mxu1 %v6714_v2  ;;  %2088 = vmatmul.mubr.f32.gmra.mxu0 %v6714_v2 }
 0x3cc   : > { %2132 = vmatprep.subr.mxu1 %v1081_v28  ;;  %2245 = vmatprep.subr.mxu0 %v1083_v13  ;;  %v1044_v28 = vld [vmem:[#allocation7 + $0x570] sm:$0xff]  ;;  %v1046_v13 = vld [vmem:[#allocation7 + $0x580] sm:$0xff] }
 0x3cd   : > { %1980 = vmatprep.mubr.f32.mxu1 %v6718_v3  ;;  %2093 = vmatprep.mubr.f32.mxu0 %v6718_v3  ;;  %v2577_v53 = vpop.permute.xlu1 %2576  ;;  %v2529_v59 = vpop.permute.xlu0 %2528 }
 0x3ce   : > { %2133 = vmatpush1.msra.mxu1 %v1080_v48  ;;  %2246 = vmatpush1.msra.mxu0 %v1082_v18  ;;  %v1027_v48 = vld [vmem:[#allocation7 + $0x4e8] sm:$0xff]  ;;  %v1029_v18 = vld [vmem:[#allocation7 + $0x4f8] sm:$0xff] }
 0x3cf   : > { %2134 = vmatprep.subr.mxu1 %v1063_v43  ;;  %2247 = vmatprep.subr.mxu0 %v1065_v29  ;;  %v1026_v43 = vld [vmem:[#allocation7 + $0x4e0] sm:$0xff]  ;;  %v1028_v29 = vld [vmem:[#allocation7 + $0x4f0] sm:$0xff] }
 0x3d0   : > { %2135 = vmatpush1.msra.mxu1 %v1062_v38  ;;  %2248 = vmatpush1.msra.mxu0 %v1064_v34  ;;  %v1009_v38 = vld [vmem:[#allocation7 + $0x458] sm:$0xff]  ;;  %v1011_v34 = vld [vmem:[#allocation7 + $0x468] sm:$0xff] }
 0x3d1   : > { %1981 = vmatmul.mubr.f32.gmra.mxu1 %v6722_v5  ;;  %2094 = vmatmul.mubr.f32.gmra.mxu0 %v6722_v5 }
 0x3d2   : > { %2136 = vmatprep.subr.mxu1 %v1045_v24  ;;  %2249 = vmatprep.subr.mxu0 %v1047_v14  ;;  %v1008_v24 = vld [vmem:[#allocation7 + $0x450] sm:$0xff]  ;;  %v1010_v14 = vld [vmem:[#allocation7 + $0x460] sm:$0xff] }
 0x3d3   : > { %1986 = vmatprep.mubr.f32.mxu1 %v6726_v58  ;;  %2099 = vmatprep.mubr.f32.mxu0 %v6726_v58 }
 0x3d4   : > { %2137 = vmatpush1.msra.mxu1 %v1044_v28  ;;  %2250 = vmatpush1.msra.mxu0 %v1046_v13  ;;  %v991_v28 = vld [vmem:[#allocation7 + $0x3c8] sm:$0xff]  ;;  %v993_v13 = vld [vmem:[#allocation7 + $0x3d8] sm:$0xff] }
 0x3d5   : > { %2138 = vmatprep.subr.mxu1 %v1027_v48  ;;  %2251 = vmatprep.subr.mxu0 %v1029_v18  ;;  %v990_v48 = vld [vmem:[#allocation7 + $0x3c0] sm:$0xff]  ;;  %v992_v18 = vld [vmem:[#allocation7 + $0x3d0] sm:$0xff] }
 0x3d6   : > { %2139 = vmatpush1.msra.mxu1 %v1026_v43  ;;  %2252 = vmatpush1.msra.mxu0 %v1028_v29  ;;  %v973_v43 = vld [vmem:[#allocation7 + $0x338] sm:$0xff]  ;;  %v975_v29 = vld [vmem:[#allocation7 + $0x348] sm:$0xff] }
 0x3d7   : > { %1987 = vmatmul.mubr.f32.gmra.mxu1 %v6730_v35  ;;  %2100 = vmatmul.mubr.f32.gmra.mxu0 %v6730_v35 }
 0x3d8   : > { %2140 = vmatprep.subr.mxu1 %v1009_v38  ;;  %2253 = vmatprep.subr.mxu0 %v1011_v34  ;;  %v972_v38 = vld [vmem:[#allocation7 + $0x330] sm:$0xff]  ;;  %v974_v34 = vld [vmem:[#allocation7 + $0x340] sm:$0xff] }
 0x3d9   : > { %1992 = vmatprep.mubr.f32.mxu1 %v6738_v17  ;;  %2105 = vmatprep.mubr.f32.mxu0 %v6738_v17 }
 0x3da   : > { %2141 = vmatpush1.msra.mxu1 %v1008_v24  ;;  %2254 = vmatpush1.msra.mxu0 %v1010_v14 }
 0x3db   : > { %2142 = vmatprep.subr.mxu1 %v991_v28  ;;  %2255 = vmatprep.subr.mxu0 %v993_v13  ;;  %v954_v28 = vld [vmem:[#allocation7 + $0x2a0] sm:$0xff]  ;;  %v956_v13 = vld [vmem:[#allocation7 + $0x2b0] sm:$0xff] }
 0x3dc   : > { %2143 = vmatpush1.msra.mxu1 %v990_v48  ;;  %2256 = vmatpush1.msra.mxu0 %v992_v18 }
 0x3dd   : > { %1993 = vmatmul.mubr.f32.gmra.mxu1 %v6740_v50  ;;  %2106 = vmatmul.mubr.f32.gmra.mxu0 %v6740_v50 }
 0x3de   : > { %2144 = vmatprep.subr.mxu1 %v973_v43  ;;  %2257 = vmatprep.subr.mxu0 %v975_v29  ;;  %v1512_v24 = vpop.f32.mrf.mxu1  ;;  %v1625_v14 = vpop.f32.mrf.mxu0  ;;  %v937_v43 = vld [vmem:[#allocation7 + $0x218] sm:$0xff]  ;;  %v939_v29 = vld [vmem:[#allocation7 + $0x228] sm:$0xff] }
 0x3df   : > { %1998 = vmatprep.mubr.f32.mxu1 %v6746_v57  ;;  %2111 = vmatprep.mubr.f32.mxu0 %v6746_v57  ;;  %v2511_v48 = vmul.f32 %v6848_v30, %v1512_v24  ;;  %v2607_v31 = vmul.f32 %v2577_v53, %v1625_v14  ;;  %v938_v24 = vld [vmem:[#allocation7 + $0x220] sm:$0xff] }
 0x3e0   : > { %2145 = vmatpush1.msra.mxu1 %v972_v38  ;;  %2258 = vmatpush1.msra.mxu0 %v974_v34  ;;  %v1514_v18 = vpop.f32.mrf.mxu1  ;;  %v1627_v42 = vpop.f32.mrf.mxu0 }
 0x3e1   : > { %2146 = vmatprep.subr.mxu1 %v955_v51  ;;  %2259 = vmatprep.subr.mxu0 %v957_v55  ;;  %v2512_v36 = vmul.f32 %v6848_v30, %v1514_v18  ;;  %v2559_v49 = vadd.f32 %v2529_v59, %v2511_v48  ;;  %v2608_v38 = vmul.f32 %v2577_v53, %v1627_v42  ;;  %v919_v51 = vld [vmem:[#allocation7 + $0x188] sm:$0xff]  ;;  %v921_v55 = vld [vmem:[#allocation7 + $0x198] sm:$0xff]  ;;  %v918_v30 = vld [vmem:[#allocation7 + $0x180] sm:$0xff] }
 0x3e2   : > { %2147 = vmatpush1.msra.mxu1 %v954_v28  ;;  %2260 = vmatpush1.msra.mxu0 %v956_v13  ;;  %v920_v28 = vld [vmem:[#allocation7 + $0x190] sm:$0xff]  ;;  %v903_v42 = vld [vmem:[#allocation7 + $0x108] sm:$0xff] }
 0x3e3   : > { %1999 = vmatmul.mubr.f32.gmra.mxu1 %v6750_v12  ;;  %2112 = vmatmul.mubr.f32.gmra.mxu0 %v6750_v12  ;;  %v2560_v34 = vadd.f32 %v2529_v59, %v2512_v36  ;;  %v6913_v20 = vadd.f32 %v2607_v31, %v2559_v49  ;;  %v901_v49 = vld [vmem:[#allocation7 + $0xf8] sm:$0xff] }
 0x3e4   : > { %2148 = vmatprep.subr.mxu1 %v937_v43  ;;  %2261 = vmatprep.subr.mxu0 %v939_v29  ;;  %v1518_v14 = vpop.f32.mrf.mxu1  ;;  %v1631_v6 = vpop.f32.mrf.mxu0  ;;  %v900_v43 = vld [vmem:[#allocation7 + $0xf0] sm:$0xff] }
 0x3e5   : > { %2004 = vmatprep.mubr.f32.mxu1 %v6758_v63  ;;  %2117 = vmatprep.mubr.f32.mxu0 %v6758_v63  ;;  %v2513_v13 = vmul.f32 %v6822_v7, %v1518_v14  ;;  %v6918_v48 = vadd.f32 %v2608_v38, %v2560_v34  ;;  %v2609_v31 = vmul.f32 %v6860_v54, %v1631_v6  ;;  %v883_v34 = vld [vmem:[#allocation7 + $0x68] sm:$0xff]  ;;  %v885_v6 = vld [vmem:[#allocation7 + $0x78] sm:$0xff]  ;;  %v884_v14 = vld [vmem:[#allocation7 + $0x70] sm:$0xff] }
 0x3e6   : > { %2149 = vmatpush1.msra.mxu1 %v936_v19  ;;  %2262 = vmatpush1.msra.mxu0 %v938_v24  ;;  %v1520_v53 = vpop.f32.mrf.mxu1  ;;  %v1633_v36 = vpop.f32.mrf.mxu0  ;;  %v902_v19 = vld [vmem:[#allocation7 + $0x100] sm:$0xff] }
 0x3e7   : > { %2150 = vmatprep.subr.mxu1 %v919_v51  ;;  %2263 = vmatprep.subr.mxu0 %v921_v55  ;;  %v2561_v59 = vadd.f32 %v6850_v21, %v2513_v13  ;;  %v2514_v18 = vmul.f32 %v6822_v7, %v1520_v53  ;;  %v2610_v38 = vmul.f32 %v6860_v54, %v1633_v36  ;;  %v882_v55 = vld [vmem:[#allocation7 + $0x60] sm:$0xff]  ;;  %v1443_v54 = vld [vmem:[#allocation7 + $0x11e8] sm:$0xff] }
 0x3e8   : > { %2151 = vmatpush1.msra.mxu1 %v918_v30  ;;  %2264 = vmatpush1.msra.mxu0 %v920_v28 }
 0x3e9   : > { %2005 = vmatmul.mubr.f32.gmra.mxu1 %v6760_v16  ;;  %2118 = vmatmul.mubr.f32.gmra.mxu0 %v6760_v16  ;;  %v6925_v29 = vadd.f32 %v2609_v31, %v2561_v59  ;;  %v2562_v24 = vadd.f32 %v6850_v21, %v2514_v18  ;;  %v1441_v21 = vld [vmem:[#allocation7 + $0x11d8] sm:$0xff] }
 0x3ea   : > { %2152 = vmatprep.subr.mxu1 %v901_v49  ;;  %2265 = vmatprep.subr.mxu0 %v903_v42  ;;  %v1524_v51 = vpop.f32.mrf.mxu1  ;;  %v1637_v7 = vpop.f32.mrf.mxu0  ;;  %v1440_v49 = vld [vmem:[#allocation7 + $0x11d0] sm:$0xff]  ;;  %v1442_v42 = vld [vmem:[#allocation7 + $0x11e0] sm:$0xff] }
 0x3eb   : > { %2153 = vmatpush1.msra.mxu1 %v900_v43  ;;  %2188 = vmatprep.mubr.f32.mxu1 %v6695_v37  ;;  %v6930_v30 = vadd.f32 %v2610_v38, %v2562_v24  ;;  %v2515_v28 = vmul.f32 %v6844_v62, %v1524_v51  ;;  %v2611_v13 = vmul.f32 %v6832_v11, %v1637_v7  ;;  %v1423_v43 = vld [vmem:[#allocation7 + $0x1148] sm:$0xff]  ;;  %v1422_v24 = vld [vmem:[#allocation7 + $0x1140] sm:$0xff]  ;;  %v1424_v38 = vld [vmem:[#allocation7 + $0x1150] sm:$0xff] }
 0x3ec   : > { %2266 = vmatpush1.msra.mxu0 %v902_v19  ;;  %2301 = vmatprep.mubr.f32.mxu0 %v6695_v37  ;;  %v1526_v53 = vpop.f32.mrf.mxu1  ;;  %v1639_v36 = vpop.f32.mrf.mxu0  ;;  %v1425_v19 = vld [vmem:[#allocation7 + $0x1158] sm:$0xff]  ;;  %v1407_v7 = vld [vmem:[#allocation7 + $0x10c8] sm:$0xff] }
 0x3ed   : > { %2154 = vmatprep.subr.mxu1 %v883_v34  ;;  %2267 = vmatprep.subr.mxu0 %v885_v6  ;;  %v2563_v59 = vadd.f32 %v6830_v4, %v2515_v28  ;;  %v2516_v31 = vmul.f32 %v6844_v62, %v1526_v53  ;;  %v2612_v18 = vmul.f32 %v6832_v11, %v1639_v36  ;;  %v1405_v6 = vld [vmem:[#allocation7 + $0x10b8] sm:$0xff]  ;;  %v1404_v11 = vld [vmem:[#allocation7 + $0x10b0] sm:$0xff] }
 0x3ee   : > { %2155 = vmatpush1.msra.mxu1 %v882_v55  ;;  %2268 = vmatpush1.msra.mxu0 %v884_v14  ;;  %v1406_v55 = vld [vmem:[#allocation7 + $0x10c0] sm:$0xff] }
 0x3ef   : > { %2156 = vmatprep.subr.mxu1 %v1441_v21  ;;  %2269 = vmatprep.subr.mxu0 %v1443_v54  ;;  %v6938_v51 = vadd.f32 %v2611_v13, %v2563_v59  ;;  %v2564_v34 = vadd.f32 %v6830_v4, %v2516_v31  ;;  %v1387_v13 = vld [vmem:[#allocation7 + $0x1028] sm:$0xff]  ;;  %v1389_v4 = vld [vmem:[#allocation7 + $0x1038] sm:$0xff]  ;;  %v1386_v59 = vld [vmem:[#allocation7 + $0x1020] sm:$0xff] }
 0x3f0   : > { %2157 = vmatpush2.msra.mxu1 %v1440_v49  ;;  %2270 = vmatpush2.msra.mxu0 %v1442_v42  ;;  %v1530_v28 = vpop.f32.mrf.mxu1  ;;  %v1643_v62 = vpop.f32.mrf.mxu0  ;;  %v1388_v31 = vld [vmem:[#allocation7 + $0x1030] sm:$0xff] }
 0x3f1   : > { %2158 = vmatprep.subr.mxu1 %v1423_v43  ;;  %2271 = vmatprep.subr.mxu0 %v1425_v19  ;;  %v6941_v14 = vadd.f32 %v2612_v18, %v2564_v34  ;;  %v2517_v21 = vmul.f32 %v6778_v46, %v1530_v28  ;;  %v2613_v49 = vmul.f32 %v6804_v10, %v1643_v62  ;;  %v8930_v18 = vmov 5   ;;  %v1369_v43 = vld [vmem:[#allocation7 + $0xf98] sm:$0xff]  ;;  %v1371_v19 = vld [vmem:[#allocation7 + $0xfa8] sm:$0xff] }
 0x3f2   : > { %2159 = vmatpush2.msra.mxu1 %v1422_v24  ;;  %2272 = vmatpush2.msra.mxu0 %v1424_v38  ;;  %v1532_v54 = vpop.f32.mrf.mxu1  ;;  %v1645_v53 = vpop.f32.mrf.mxu0 }
 0x3f3   : > { %2160 = vmatprep.subr.mxu1 %v1405_v6  ;;  %2273 = vmatprep.subr.mxu0 %v1407_v7  ;;  %v2565_v36 = vadd.f32 %v6798_v40, %v2517_v21  ;;  %v2518_v42 = vmul.f32 %v6778_v46, %v1532_v54  ;;  %v2614_v34 = vmul.f32 %v6804_v10, %v1645_v53  ;;  %v6955_v46 = vld [vmem:[%s8794_s2 + $0x10] sm:$0xff]  ;;  %v1370_v7 = vld [vmem:[#allocation7 + $0xfa0] sm:$0xff] }
 0x3f4   : > { %2161 = vmatpush2.msra.mxu1 %v1404_v11  ;;  %2274 = vmatpush2.msra.mxu0 %v1406_v55  ;;  %v1368_v6 = vld [vmem:[#allocation7 + $0xf90] sm:$0xff]  ;;  %v1351_v11 = vld [vmem:[#allocation7 + $0xf08] sm:$0xff]  ;;  %v1353_v55 = vld [vmem:[#allocation7 + $0xf18] sm:$0xff] }
 0x3f5   : > { %5540 = vset.pattern.permute.xlu1 %v8930_v18  ;;  %2162 = vmatprep.subr.mxu1 %v1387_v13  ;;  %v6948_v24 = vadd.f32 %v2613_v49, %v2565_v36  ;;  %v2566_v38 = vadd.f32 %v6798_v40, %v2518_v42  ;;  %v1350_v10 = vld [vmem:[#allocation7 + $0xf00] sm:$0xff]  ;;  %v1352_v53 = vld [vmem:[#allocation7 + $0xf10] sm:$0xff]  ;;  %v1333_v42 = vld [vmem:[#allocation7 + $0xe78] sm:$0xff] }
 0x3f6   : > { %2275 = vmatprep.subr.mxu0 %v1389_v4  ;;  %2840 = vperm.xlu1 %5540, %v6955_v46   ;;  %v1536_v28 = vpop.f32.mrf.mxu1  ;;  %v1649_v62 = vpop.f32.mrf.mxu0 }
 0x3f7   : > { %2163 = vmatpush2.msra.mxu1 %v1386_v59  ;;  %2276 = vmatpush2.msra.mxu0 %v1388_v31  ;;  %v6958_v21 = vadd.f32 %v2614_v34, %v2566_v38  ;;  %v2519_v40 = vmul.f32 %v6772_v1, %v1536_v28  ;;  %v2615_v36 = vmul.f32 %v6780_v27, %v1649_v62  ;;  %v1335_v59 = vld [vmem:[#allocation7 + $0xe88] sm:$0xff]  ;;  %v8931_v31 = vmov 6   ;;  %v1317_v28 = vld [vmem:[#allocation7 + $0xdf8] sm:$0xff] }
 0x3f8   : > { %2164 = vmatprep.subr.mxu1 %v1369_v43  ;;  %2277 = vmatprep.subr.mxu0 %v1371_v19  ;;  %v1538_v13 = vpop.f32.mrf.mxu1  ;;  %v1651_v54 = vpop.f32.mrf.mxu0  ;;  %v1332_v43 = vld [vmem:[#allocation7 + $0xe70] sm:$0xff]  ;;  %v1334_v19 = vld [vmem:[#allocation7 + $0xe80] sm:$0xff] }
 0x3f9   : > { %2165 = vmatpush2.msra.mxu1 %v1368_v6  ;;  %2278 = vmatpush2.msra.mxu0 %v1370_v7  ;;  %v2567_v4 = vadd.f32 %v6901_v61, %v2519_v40  ;;  %v2520_v49 = vmul.f32 %v6772_v1, %v1538_v13  ;;  %v2616_v6 = vmul.f32 %v6780_v27, %v1651_v54  ;;  %v6972_v1 = vld [vmem:[%s8794_s2 + $0x18] sm:$0xff]  ;;  %v1315_v7 = vld [vmem:[#allocation7 + $0xde8] sm:$0xff]  ;;  %v1316_v40 = vld [vmem:[#allocation7 + $0xdf0] sm:$0xff] }
 0x3fa   : > { %2166 = vmatprep.subr.mxu1 %v1351_v11  ;;  %2279 = vmatprep.subr.mxu0 %v1353_v55  ;;  %v1314_v55 = vld [vmem:[#allocation7 + $0xde0] sm:$0xff]  ;;  %v1297_v13 = vld [vmem:[#allocation7 + $0xd58] sm:$0xff] }
 0x3fb   : > { %5541 = vset.pattern.permute.xlu1 %v8931_v31  ;;  %2167 = vmatpush2.msra.mxu1 %v1350_v10  ;;  %v6965_v38 = vadd.f32 %v2615_v36, %v2567_v4  ;;  %v2568_v34 = vadd.f32 %v6901_v61, %v2520_v49  ;;  %v1299_v4 = vld [vmem:[#allocation7 + $0xd68] sm:$0xff] }
 0x3fc   : > { %2280 = vmatpush2.msra.mxu0 %v1352_v53  ;;  %2908 = vperm.xlu1 %5541, %v6972_v1   ;;  %v1542_v62 = vpop.f32.mrf.mxu1  ;;  %v1655_v11 = vpop.f32.mrf.mxu0 }
 0x3fd   : > { %2168 = vmatprep.subr.mxu1 %v1333_v42  ;;  %2281 = vmatprep.subr.mxu0 %v1335_v59  ;;  %v6975_v10 = vadd.f32 %v2616_v6, %v2568_v34  ;;  %v2521_v27 = vmul.f32 %v6840_v26, %v1542_v62  ;;  %v2617_v61 = vmul.f32 %v6774_v41, %v1655_v11  ;;  %v1296_v59 = vld [vmem:[#allocation7 + $0xd50] sm:$0xff]  ;;  %v1298_v34 = vld [vmem:[#allocation7 + $0xd60] sm:$0xff]  ;;  %v8932_v6 = vmov 8  }
 0x3fe   : > { %2169 = vmatpush2.msra.mxu1 %v1332_v43  ;;  %2282 = vmatpush2.msra.mxu0 %v1334_v19  ;;  %v1544_v54 = vpop.f32.mrf.mxu1  ;;  %v1657_v53 = vpop.f32.mrf.mxu0  ;;  %v1279_v43 = vld [vmem:[#allocation7 + $0xcc8] sm:$0xff]  ;;  %v1281_v19 = vld [vmem:[#allocation7 + $0xcd8] sm:$0xff] }
 0x3ff   : > { %2170 = vmatprep.subr.mxu1 %v1315_v7  ;;  %2283 = vmatprep.subr.mxu0 %v1317_v28  ;;  %v2569_v36 = vadd.f32 %v6885_v25, %v2521_v27  ;;  %v2522_v49 = vmul.f32 %v6840_v26, %v1544_v54  ;;  %v2618_v42 = vmul.f32 %v6774_v41, %v1657_v53  ;;  %v6989_v26 = vld [vmem:[%s8794_s2 + $0x28] sm:$0xff]  ;;  %v1278_v41 = vld [vmem:[#allocation7 + $0xcc0] sm:$0xff]  ;;  %v1280_v28 = vld [vmem:[#allocation7 + $0xcd0] sm:$0xff] }
 0x400   : > { %2171 = vmatpush2.msra.mxu1 %v1314_v55  ;;  %2284 = vmatpush2.msra.mxu0 %v1316_v40  ;;  %v1261_v40 = vld [vmem:[#allocation7 + $0xc38] sm:$0xff]  ;;  %v1263_v27 = vld [vmem:[#allocation7 + $0xc48] sm:$0xff] }
 0x401   : > { %5542 = vset.pattern.permute.xlu1 %v8932_v6  ;;  %2172 = vmatprep.subr.mxu1 %v1297_v13  ;;  %v6983_v62 = vadd.f32 %v2617_v61, %v2569_v36  ;;  %v2570_v7 = vadd.f32 %v6885_v25, %v2522_v49  ;;  %v1260_v13 = vld [vmem:[#allocation7 + $0xc30] sm:$0xff] }
 0x402   : > { %2285 = vmatprep.subr.mxu0 %v1299_v4  ;;  %3044 = vperm.xlu1 %5542, %v6989_v26   ;;  %v1548_v11 = vpop.f32.mrf.mxu1  ;;  %v1661_v55 = vpop.f32.mrf.mxu0  ;;  %v1262_v4 = vld [vmem:[#allocation7 + $0xc40] sm:$0xff] }
 0x403   : > { %2173 = vmatpush2.msra.mxu1 %v1296_v59  ;;  %2286 = vmatpush2.msra.mxu0 %v1298_v34  ;;  %v6992_v61 = vadd.f32 %v2618_v42, %v2570_v7  ;;  %v2523_v25 = vmul.f32 %v6836_v23, %v1548_v11  ;;  %v2619_v49 = vmul.f32 %v6824_v15, %v1661_v55  ;;  %v1243_v42 = vld [vmem:[#allocation7 + $0xba8] sm:$0xff]  ;;  %v1245_v34 = vld [vmem:[#allocation7 + $0xbb8] sm:$0xff]  ;;  %v8933_v7 = vmov 4  }
 0x404   : > { %2174 = vmatprep.subr.mxu1 %v1279_v43  ;;  %2287 = vmatprep.subr.mxu0 %v1281_v19  ;;  %v1550_v54 = vpop.f32.mrf.mxu1  ;;  %v1663_v53 = vpop.f32.mrf.mxu0  ;;  %v1242_v43 = vld [vmem:[#allocation7 + $0xba0] sm:$0xff]  ;;  %v1244_v19 = vld [vmem:[#allocation7 + $0xbb0] sm:$0xff]  ;;  %v1225_v55 = vld [vmem:[#allocation7 + $0xb18] sm:$0xff] }
 0x405   : > { %2175 = vmatpush2.msra.mxu1 %v1278_v41  ;;  %2288 = vmatpush2.msra.mxu0 %v1280_v28  ;;  %v2571_v36 = vadd.f32 %v6764_v8, %v2523_v25  ;;  %v2524_v59 = vmul.f32 %v6836_v23, %v1550_v54  ;;  %v2620_v28 = vmul.f32 %v6824_v15, %v1663_v53  ;;  %v1227_v23 = vld [vmem:[#allocation7 + $0xb28] sm:$0xff]  ;;  %v1224_v25 = vld [vmem:[#allocation7 + $0xb10] sm:$0xff]  ;;  %v1226_v54 = vld [vmem:[#allocation7 + $0xb20] sm:$0xff] }
 0x406   : > { %2176 = vmatprep.subr.mxu1 %v1261_v40  ;;  %2289 = vmatprep.subr.mxu0 %v1263_v27  ;;  %v1207_v15 = vld [vmem:[#allocation7 + $0xa88] sm:$0xff] }
 0x407   : > { %5543 = vset.pattern.permute.xlu1 %v8933_v7  ;;  %2177 = vmatpush2.msra.mxu1 %v1260_v13  ;;  %v6999_v11 = vadd.f32 %v2619_v49, %v2571_v36  ;;  %v2572_v41 = vadd.f32 %v6764_v8, %v2524_v59  ;;  %v7006_v7 = vpop.permute.xlu1 %2644  ;;  %v1209_v49 = vld [vmem:[#allocation7 + $0xa98] sm:$0xff] }
 0x408   : > { %2290 = vmatpush2.msra.mxu0 %v1262_v4  ;;  %2768 = vperm.xlu1 %5543, %v6876_v0   ;;  %v1554_v40 = vpop.f32.mrf.mxu1  ;;  %v1667_v27 = vpop.f32.mrf.mxu0 }
 0x409   : > { %2178 = vmatprep.subr.mxu1 %v1243_v42  ;;  %2291 = vmatprep.subr.mxu0 %v1245_v34  ;;  %v7004_v13 = vadd.f32 %v2620_v28, %v2572_v41  ;;  %v2525_v36 = vmul.f32 %v6734_v47, %v1554_v40  ;;  %v2621_v8 = vmul.f32 %v6754_v52, %v1667_v27  ;;  %v1206_v41 = vld [vmem:[#allocation7 + $0xa80] sm:$0xff]  ;;  %v1208_v28 = vld [vmem:[#allocation7 + $0xa90] sm:$0xff]  ;;  %v1173_v27 = vld [vmem:[#allocation7 + $0x978] sm:$0xff] }
 0x40a   : > { %2179 = vmatpush2.msra.mxu1 %v1242_v43  ;;  %2292 = vmatpush2.msra.mxu0 %v1244_v19  ;;  %v1556_v53 = vpop.f32.mrf.mxu1  ;;  %v1669_v4 = vpop.f32.mrf.mxu0  ;;  %v1189_v43 = vld [vmem:[#allocation7 + $0x9f8] sm:$0xff]  ;;  %v1191_v19 = vld [vmem:[#allocation7 + $0xa08] sm:$0xff] }
 0x40b   : > { %2180 = vmatprep.subr.mxu1 %v1225_v55  ;;  %2293 = vmatprep.subr.mxu0 %v1227_v23  ;;  %v2573_v59 = vadd.f32 %v6744_v56, %v2525_v36  ;;  %v2526_v42 = vmul.f32 %v6734_v47, %v1556_v53  ;;  %v2622_v34 = vmul.f32 %v6754_v52, %v1669_v4  ;;  %v1188_v23 = vld [vmem:[#allocation7 + $0x9f0] sm:$0xff]  ;;  %v1190_v47 = vld [vmem:[#allocation7 + $0xa00] sm:$0xff]  ;;  %v1171_v52 = vld [vmem:[#allocation7 + $0x968] sm:$0xff]  ;;  %v7020_v36 = vpop.permute.xlu1 %2780 }
 0x40c   : > { %2181 = vmatpush2.msra.mxu1 %v1224_v25  ;;  %2294 = vmatpush2.msra.mxu0 %v1226_v54  ;;  %v1170_v54 = vld [vmem:[#allocation7 + $0x960] sm:$0xff]  ;;  %v1156_v53 = vld [vmem:[#allocation7 + $0x8f0] sm:$0xff]  ;;  %v1139_v4 = vld [vmem:[#allocation7 + $0x868] sm:$0xff] }
 0x40d   : > { %5545 = vset.pattern.permute.xlu1 %v8931_v31  ;;  %2182 = vmatprep.subr.mxu1 %v1207_v15  ;;  %v2574_v40 = vadd.f32 %v6744_v56, %v2526_v42  ;;  %v7015_v55 = vadd.f32 %v2621_v8, %v2573_v59  ;;  %v1172_v56 = vld [vmem:[#allocation7 + $0x970] sm:$0xff]  ;;  %v8934_v8 = vmov 7   ;;  %v1157_v15 = vld [vmem:[#allocation7 + $0x8f8] sm:$0xff] }
 0x40e   : > { %2295 = vmatprep.subr.mxu0 %v1209_v49  ;;  %2904 = vperm.xlu1 %5545, %v6955_v46   ;;  %v1138_v49 = vld [vmem:[#allocation7 + $0x860] sm:$0xff]  ;;  %v1121_v42 = vld [vmem:[#allocation7 + $0x7d8] sm:$0xff] }
 0x40f   : > { %2183 = vmatpush2.msra.mxu1 %v1206_v41  ;;  %2296 = vmatpush2.msra.mxu0 %v1208_v28  ;;  %v7018_v25 = vadd.f32 %v2622_v34, %v2574_v40  ;;  %v7027_v59 = vpop.permute.xlu1 %2916  ;;  %v1120_v34 = vld [vmem:[#allocation7 + $0x7d0] sm:$0xff]  ;;  %v1103_v41 = vld [vmem:[#allocation7 + $0x748] sm:$0xff]  ;;  %v1102_v28 = vld [vmem:[#allocation7 + $0x740] sm:$0xff] }
 0x410   : > { %2184 = vmatprep.subr.mxu1 %v1189_v43  ;;  %2297 = vmatprep.subr.mxu0 %v1191_v19  ;;  %8935 = vst [vmem:[#allocation34_spill] sm:$0xff] %v7027_v59  ;;  %v1085_v43 = vld [vmem:[#allocation7 + $0x6b8] sm:$0xff]  ;;  %v1067_v40 = vld [vmem:[#allocation7 + $0x628] sm:$0xff] }
 0x411   : > { %2185 = vmatpush2.msra.mxu1 %v1188_v23  ;;  %2298 = vmatpush2.msra.mxu0 %v1190_v47  ;;  %v1049_v23 = vld [vmem:[#allocation7 + $0x598] sm:$0xff]  ;;  %v1048_v47 = vld [vmem:[#allocation7 + $0x590] sm:$0xff]  ;;  %v1391_v59 = vld [vmem:[#allocation7 + $0x1048] sm:$0xff] }
 0x412   : > { %2186 = vmatprep.subr.mxu1 %v1171_v52  ;;  %2299 = vmatprep.subr.mxu0 %v1173_v27  ;;  %v1031_v52 = vld [vmem:[#allocation7 + $0x508] sm:$0xff] }
 0x413   : > { %5546 = vset.pattern.permute.xlu1 %v8934_v8  ;;  %2187 = vmatpush2.msra.mxu1 %v1170_v54  ;;  %v7036_v19 = vpop.permute.xlu1 %2984  ;;  %v1030_v54 = vld [vmem:[#allocation7 + $0x500] sm:$0xff] }
 0x414   : > { %2300 = vmatpush2.msra.mxu0 %v1172_v56  ;;  %2972 = vperm.xlu1 %5546, %v6972_v1   ;;  %8936 = vst [vmem:[#allocation35_spill] sm:$0xff] %v7036_v19  ;;  %v1013_v56 = vld [vmem:[#allocation7 + $0x478] sm:$0xff] }
 0x415   : > { %2189 = vmatmul.mubr.f32.vlgmr.msra.gmra.mxu1 %v6698_v9  ;;  %2302 = vmatmul.mubr.f32.vlgmr.msra.gmra.mxu0 %v6698_v9 }
 0x416   : > { %2350 = vmatprep.subr.mxu1 %v1157_v15  ;;  %2194 = vmatprep.mubr.f32.mxu1 %v6704_v32  ;;  %v1012_v15 = vld [vmem:[#allocation7 + $0x470] sm:$0xff] }
 0x417   : > { %2307 = vmatprep.mubr.f32.mxu0 %v6704_v32  ;;  %2351 = vmatpush1.msra.mxu1 %v1156_v53  ;;  %v2641_v27 = vpop.permute.xlu1 %2640  ;;  %v995_v53 = vld [vmem:[#allocation7 + $0x3e8] sm:$0xff] }
 0x418   : > { %2352 = vmatprep.subr.mxu1 %v1139_v4  ;;  %5548 = vset.pattern.permute.xlu1 %v8930_v18  ;;  %v1084_v18 = vld [vmem:[#allocation7 + $0x6b0] sm:$0xff]  ;;  %v994_v4 = vld [vmem:[#allocation7 + $0x3e0] sm:$0xff] }
 0x419   : > { %2353 = vmatpush1.msra.mxu1 %v1138_v49  ;;  %2308 = vmatmul.mubr.f32.gmra.mxu0 %v6706_v44  ;;  %v977_v49 = vld [vmem:[#allocation7 + $0x358] sm:$0xff] }
 0x41a   : > { %2195 = vmatmul.mubr.f32.gmra.mxu1 %v6706_v44  ;;  %2354 = vmatprep.subr.mxu1 %v1121_v42 }
 0x41b   : > { %2832 = vperm.xlu1 %5548, %v6876_v0   ;;  %2200 = vmatprep.mubr.f32.mxu1 %v6712_v45  ;;  %v1066_v0 = vld [vmem:[#allocation7 + $0x620] sm:$0xff]  ;;  %v7050_v42 = vpop.permute.xlu1 %2708 }
 0x41c   : > { %2313 = vmatprep.mubr.f32.mxu0 %v6712_v45  ;;  %2355 = vmatpush1.msra.mxu1 %v1120_v34  ;;  %v976_v34 = vld [vmem:[#allocation7 + $0x350] sm:$0xff] }
 0x41d   : > { %2356 = vmatprep.subr.mxu1 %v1103_v41  ;;  %2314 = vmatmul.mubr.f32.gmra.mxu0 %v6714_v2  ;;  %v959_v41 = vld [vmem:[#allocation7 + $0x2c8] sm:$0xff] }
 0x41e   : > { %2357 = vmatpush1.msra.mxu1 %v1102_v28  ;;  %2319 = vmatprep.mubr.f32.mxu0 %v6718_v3  ;;  %v958_v28 = vld [vmem:[#allocation7 + $0x2c0] sm:$0xff] }
 0x41f   : > { %2201 = vmatmul.mubr.f32.gmra.mxu1 %v6714_v2  ;;  %2358 = vmatprep.subr.mxu1 %v1085_v43  ;;  %v941_v43 = vld [vmem:[#allocation7 + $0x238] sm:$0xff] }
 0x420   : > { %2206 = vmatprep.mubr.f32.mxu1 %v6718_v3  ;;  %2359 = vmatpush1.msra.mxu1 %v1084_v18  ;;  %v940_v18 = vld [vmem:[#allocation7 + $0x230] sm:$0xff] }
 0x421   : > { %2360 = vmatprep.subr.mxu1 %v1067_v40  ;;  %2320 = vmatmul.mubr.f32.gmra.mxu0 %v6722_v5 }
 0x422   : > { %2361 = vmatpush1.msra.mxu1 %v1066_v0  ;;  %2325 = vmatprep.mubr.f32.mxu0 %v6726_v58 }
 0x423   : > { %2207 = vmatmul.mubr.f32.gmra.mxu1 %v6722_v5  ;;  %2362 = vmatprep.subr.mxu1 %v1049_v23  ;;  %v923_v23 = vld [vmem:[#allocation7 + $0x1a8] sm:$0xff] }
 0x424   : > { %2212 = vmatprep.mubr.f32.mxu1 %v6726_v58  ;;  %2363 = vmatpush1.msra.mxu1 %v1048_v47  ;;  %v7060_v47 = vpop.permute.xlu1 %2844 }
 0x425   : > { %2364 = vmatprep.subr.mxu1 %v1031_v52  ;;  %2326 = vmatmul.mubr.f32.gmra.mxu0 %v6730_v35 }
 0x426   : > { %2365 = vmatpush1.msra.mxu1 %v1030_v54  ;;  %2331 = vmatprep.mubr.f32.mxu0 %v6738_v17  ;;  %v922_v54 = vld [vmem:[#allocation7 + $0x1a0] sm:$0xff] }
 0x427   : > { %2213 = vmatmul.mubr.f32.gmra.mxu1 %v6730_v35  ;;  %2366 = vmatprep.subr.mxu1 %v1013_v56 }
 0x428   : > { %2218 = vmatprep.mubr.f32.mxu1 %v6738_v17  ;;  %2367 = vmatpush1.msra.mxu1 %v1012_v15 }
 0x429   : > { %2368 = vmatprep.subr.mxu1 %v995_v53  ;;  %2332 = vmatmul.mubr.f32.gmra.mxu0 %v6740_v50  ;;  %v905_v53 = vld [vmem:[#allocation7 + $0x118] sm:$0xff] }
 0x42a   : > { %2369 = vmatpush1.msra.mxu1 %v994_v4  ;;  %2337 = vmatprep.mubr.f32.mxu0 %v6746_v57 }
 0x42b   : > { %2219 = vmatmul.mubr.f32.gmra.mxu1 %v6740_v50  ;;  %2370 = vmatprep.subr.mxu1 %v977_v49 }
 0x42c   : > { %2224 = vmatprep.mubr.f32.mxu1 %v6746_v57  ;;  %2371 = vmatpush1.msra.mxu1 %v976_v34  ;;  %v904_v34 = vld [vmem:[#allocation7 + $0x110] sm:$0xff] }
 0x42d   : > { %2372 = vmatprep.subr.mxu1 %v959_v41  ;;  %2338 = vmatmul.mubr.f32.gmra.mxu0 %v6750_v12  ;;  %v1738_v40 = vpop.f32.mrf.mxu1  ;;  %v7057_v0 = vpop.f32.mrf.mxu0  ;;  %v887_v41 = vld [vmem:[#allocation7 + $0x88] sm:$0xff] }
 0x42e   : > { %2373 = vmatpush1.msra.mxu1 %v958_v28  ;;  %2343 = vmatprep.mubr.f32.mxu0 %v6758_v63  ;;  %v2671_v52 = vmul.f32 %v2641_v27, %v1738_v40 }
 0x42f   : > { %2225 = vmatmul.mubr.f32.gmra.mxu1 %v6750_v12  ;;  %2374 = vmatprep.subr.mxu1 %v941_v43  ;;  %v1740_v56 = vpop.f32.mrf.mxu1  ;;  %v7063_v15 = vpop.f32.mrf.mxu0  ;;  %v886_v43 = vld [vmem:[#allocation7 + $0x80] sm:$0xff] }
 0x430   : > { %2230 = vmatprep.mubr.f32.mxu1 %v6758_v63  ;;  %2375 = vmatpush1.msra.mxu1 %v940_v18  ;;  %v7067_v4 = vadd.f32 %v2671_v52, %v6913_v20  ;;  %v2672_v49 = vmul.f32 %v2641_v27, %v1740_v56  ;;  %v1445_v20 = vld [vmem:[#allocation7 + $0x11f8] sm:$0xff]  ;;  %v7076_v27 = vpop.permute.xlu1 %2912  ;;  %v1444_v52 = vld [vmem:[#allocation7 + $0x11f0] sm:$0xff] }
 0x431   : > { %2376 = vmatprep.subr.mxu1 %v923_v23  ;;  %2344 = vmatmul.mubr.f32.gmra.mxu0 %v6760_v16  ;;  %8937 = vst [vmem:[#allocation36_spill] sm:$0xff] %v7076_v27 }
 0x432   : > { %2377 = vmatpush1.msra.mxu1 %v922_v54  ;;  %5544 = vset.pattern.permute.xlu0 %v8932_v6  ;;  %v7072_v28 = vadd.f32 %v2672_v49, %v6918_v48  ;;  %v5722_v48 = vld [vmem:[%s8794_s2 + $0x38] sm:$0xff] }
 0x433   : > { %2231 = vmatmul.mubr.f32.gmra.mxu1 %v6760_v16  ;;  %2378 = vmatprep.subr.mxu1 %v905_v53  ;;  %v1744_v18 = vpop.f32.mrf.mxu1  ;;  %v1857_v40 = vpop.f32.mrf.mxu0  ;;  %v1427_v53 = vld [vmem:[#allocation7 + $0x1168] sm:$0xff] }
 0x434   : > { %2379 = vmatpush1.msra.mxu1 %v904_v34  ;;  %2414 = vmatprep.mubr.f32.mxu1 %v6695_v37  ;;  %v2673_v23 = vmul.f32 %v7006_v7, %v1744_v18  ;;  %v2737_v49 = vmul.f32 %v7050_v42, %v1857_v40  ;;  %v7089_v18 = vld [vmem:[%s8794_s2 + $0x8] sm:$0xff]  ;;  %v2713_v40 = vpop.permute.xlu0 %2712 }
 0x435   : > { %2380 = vmatprep.subr.mxu1 %v887_v41  ;;  %3052 = vperm.xlu0 %5544, %v5722_v48   ;;  %v1746_v54 = vpop.f32.mrf.mxu1  ;;  %v1859_v56 = vpop.f32.mrf.mxu0  ;;  %v1426_v41 = vld [vmem:[#allocation7 + $0x1160] sm:$0xff] }
 0x436   : > { %2381 = vmatpush1.msra.mxu1 %v886_v43  ;;  %5549 = vset.pattern.permute.xlu1 %v8931_v31  ;;  %v2689_v37 = vadd.f32 %v2673_v23, %v6925_v29  ;;  %v2674_v34 = vmul.f32 %v7006_v7, %v1746_v54  ;;  %v1409_v43 = vld [vmem:[#allocation7 + $0x10d8] sm:$0xff]  ;;  %v2738_v29 = vmul.f32 %v7050_v42, %v1859_v56  ;;  %v1408_v7 = vld [vmem:[#allocation7 + $0x10d0] sm:$0xff]  ;;  %v1390_v42 = vld [vmem:[#allocation7 + $0x1040] sm:$0xff] }
 0x437   : > { %2382 = vmatprep.subr.mxu1 %v1445_v20  ;;  %2900 = vperm.xlu1 %5549, %v7089_v18   ;;  %v5724_v20 = vld [vmem:[%s8794_s2 + $0x20] sm:$0xff] }
 0x438   : > { %2383 = vmatpush2.msra.mxu1 %v1444_v52  ;;  %v7092_v48 = vadd.f32 %v2737_v49, %v2689_v37  ;;  %v2690_v19 = vadd.f32 %v2674_v34, %v6930_v30  ;;  %v7099_v52 = vpop.permute.xlu1 %3048  ;;  %v1373_v49 = vld [vmem:[#allocation7 + $0xfb8] sm:$0xff] }
 0x439   : > { %2384 = vmatprep.subr.mxu1 %v1427_v53  ;;  %3040 = vperm.xlu0 %5544, %v5724_v20   ;;  %v1750_v23 = vpop.f32.mrf.mxu1  ;;  %v1863_v54 = vpop.f32.mrf.mxu0  ;;  %8938 = vst [vmem:[#allocation37_spill] sm:$0xff] %v7099_v52 }
 0x43a   : > { %2385 = vmatpush2.msra.mxu1 %v1426_v41  ;;  %v7101_v37 = vadd.f32 %v2738_v29, %v2690_v19  ;;  %v2675_v30 = vmul.f32 %v6871_v33, %v1750_v23  ;;  %v2739_v41 = vmul.f32 %v2713_v40, %v1863_v54  ;;  %v1372_v19 = vld [vmem:[#allocation7 + $0xfb0] sm:$0xff]  ;;  %v1337_v54 = vld [vmem:[#allocation7 + $0xe98] sm:$0xff] }
 0x43b   : > { %2386 = vmatprep.subr.mxu1 %v1409_v43  ;;  %5550 = vset.pattern.permute.xlu1 %v8932_v6  ;;  %v1752_v56 = vpop.f32.mrf.mxu1  ;;  %v1865_v53 = vpop.f32.mrf.mxu0  ;;  %v1355_v43 = vld [vmem:[#allocation7 + $0xf28] sm:$0xff] }
 0x43c   : > { %2387 = vmatpush2.msra.mxu1 %v1408_v7  ;;  %3036 = vperm.xlu1 %5550, %v6972_v1   ;;  %v2691_v34 = vadd.f32 %v2675_v30, %v6938_v51  ;;  %v2676_v27 = vmul.f32 %v6871_v33, %v1752_v56  ;;  %v2740_v23 = vmul.f32 %v2713_v40, %v1865_v53  ;;  %v1354_v1 = vld [vmem:[#allocation7 + $0xf20] sm:$0xff]  ;;  %v1336_v30 = vld [vmem:[#allocation7 + $0xe90] sm:$0xff] }
 0x43d   : > { %2388 = vmatprep.subr.mxu1 %v1391_v59  ;;  %5547 = vset.pattern.permute.xlu0 %v8934_v8 }
 0x43e   : > { %2389 = vmatpush2.msra.mxu1 %v1390_v42  ;;  %2980 = vperm.xlu0 %5547, %v6989_v26   ;;  %v2692_v29 = vadd.f32 %v2676_v27, %v6941_v14  ;;  %v7111_v7 = vadd.f32 %v2739_v41, %v2691_v34  ;;  %v7120_v14 = vld [vmem:[%s8794_s2] sm:$0xff]  ;;  %v1319_v42 = vld [vmem:[#allocation7 + $0xe08] sm:$0xff] }
 0x43f   : > { %2390 = vmatprep.subr.mxu1 %v1373_v49  ;;  %v1756_v52 = vpop.f32.mrf.mxu1  ;;  %v1869_v51 = vpop.f32.mrf.mxu0  ;;  %v1318_v34 = vld [vmem:[#allocation7 + $0xe00] sm:$0xff] }
 0x440   : > { %2391 = vmatpush2.msra.mxu1 %v1372_v19  ;;  %5551 = vset.pattern.permute.xlu1 %v8931_v31  ;;  %v7114_v33 = vadd.f32 %v2740_v23, %v2692_v29  ;;  %v2677_v59 = vmul.f32 %v6834_v39, %v1756_v52  ;;  %v2741_v27 = vmul.f32 %v6869_v60, %v1869_v51  ;;  %v1301_v19 = vld [vmem:[#allocation7 + $0xd78] sm:$0xff] }
 0x441   : > { %2392 = vmatprep.subr.mxu1 %v1355_v43  ;;  %v2705_v26 = vpop.permute.xlu1 %2704  ;;  %2896 = vperm.xlu1 %5551, %v7120_v14   ;;  %v1758_v40 = vpop.f32.mrf.mxu1 }
 0x442   : > { %2393 = vmatpush2.msra.mxu1 %v1354_v1  ;;  %2976 = vperm.xlu0 %5547, %v5724_v20   ;;  %v2735_v56 = vmul.f32 %v2705_v26, %v7057_v0  ;;  %v2736_v52 = vmul.f32 %v2705_v26, %v7063_v15  ;;  %v2693_v53 = vadd.f32 %v2677_v59, %v6948_v24  ;;  %v1871_v49 = vpop.f32.mrf.mxu0  ;;  %v1300_v0 = vld [vmem:[#allocation7 + $0xd70] sm:$0xff] }
 0x443   : > { %2394 = vmatprep.subr.mxu1 %v1337_v54  ;;  %v2678_v41 = vmul.f32 %v6834_v39, %v1758_v40  ;;  %v2742_v24 = vmul.f32 %v6869_v60, %v1871_v49  ;;  %v1283_v39 = vld [vmem:[#allocation7 + $0xce8] sm:$0xff]  ;;  %v1265_v60 = vld [vmem:[#allocation7 + $0xc58] sm:$0xff]  ;;  %v1264_v40 = vld [vmem:[#allocation7 + $0xc50] sm:$0xff] }
 0x444   : > { %2395 = vmatpush2.msra.mxu1 %v1336_v30  ;;  %v7129_v43 = vadd.f32 %v2735_v56, %v7067_v4  ;;  %v7132_v29 = vadd.f32 %v2736_v52, %v7072_v28  ;;  %v7134_v20 = vadd.f32 %v2741_v27, %v2693_v53  ;;  %v1282_v28 = vld [vmem:[#allocation7 + $0xce0] sm:$0xff]  ;;  %v8939_v30 = vld [vmem:[#allocation26_spill] sm:$0xff] }
 0x445   : > { %2396 = vmatprep.subr.mxu1 %v1319_v42  ;;  %v2694_v15 = vadd.f32 %v2678_v41, %v6958_v21  ;;  %v1762_v23 = vpop.f32.mrf.mxu1  ;;  %v1875_v1 = vpop.f32.mrf.mxu0  ;;  %5552 = vset.pattern.permute.xlu1 %v8932_v6  ;;  %v1247_v42 = vld [vmem:[#allocation7 + $0xbc8] sm:$0xff]  ;;  %v1246_v53 = vld [vmem:[#allocation7 + $0xbc0] sm:$0xff] }
 0x446   : > { %2397 = vmatpush2.msra.mxu1 %v1318_v34  ;;  %2968 = vperm.xlu0 %5547, %v6955_v46   ;;  %v2679_v4 = vmul.f32 %v6862_v22, %v1762_v23  ;;  %v2743_v26 = vmul.f32 %v8939_v30, %v1875_v1  ;;  %v8940_v41 = vld [vmem:[#allocation29_spill] sm:$0xff]  ;;  %v8941_v1 = vld [vmem:[#allocation24_spill] sm:$0xff] }
 0x447   : > { %2398 = vmatprep.subr.mxu1 %v1301_v19  ;;  %v7141_v51 = vadd.f32 %v2742_v24, %v2694_v15  ;;  %v1764_v54 = vpop.f32.mrf.mxu1  ;;  %v1877_v59 = vpop.f32.mrf.mxu0  ;;  %3032 = vperm.xlu1 %5552, %v6955_v46  }
 0x448   : > { %2399 = vmatpush2.msra.mxu1 %v1300_v0  ;;  %v2695_v21 = vadd.f32 %v2679_v4, %v6965_v38  ;;  %v2680_v27 = vmul.f32 %v6862_v22, %v1764_v54  ;;  %v2744_v46 = vmul.f32 %v8939_v30, %v1877_v59  ;;  %v1229_v22 = vld [vmem:[#allocation7 + $0xb38] sm:$0xff]  ;;  %v1228_v0 = vld [vmem:[#allocation7 + $0xb30] sm:$0xff]  ;;  %v1210_v4 = vld [vmem:[#allocation7 + $0xaa0] sm:$0xff] }
 0x449   : > { %2400 = vmatprep.subr.mxu1 %v1283_v39  ;;  %v1193_v54 = vld [vmem:[#allocation7 + $0xa18] sm:$0xff]  ;;  %v1192_v30 = vld [vmem:[#allocation7 + $0xa10] sm:$0xff] }
 0x44a   : > { %2401 = vmatpush2.msra.mxu1 %v1282_v28  ;;  %2964 = vperm.xlu0 %5547, %v7089_v18   ;;  %v7148_v56 = vadd.f32 %v2743_v26, %v2695_v21  ;;  %v2696_v52 = vadd.f32 %v2680_v27, %v6975_v10  ;;  %v1211_v10 = vld [vmem:[#allocation7 + $0xaa8] sm:$0xff]  ;;  %v8942_v28 = vmov 0  }
 0x44b   : > { %2402 = vmatprep.subr.mxu1 %v1265_v60  ;;  %v1768_v49 = vpop.f32.mrf.mxu1  ;;  %v1881_v38 = vpop.f32.mrf.mxu0  ;;  %3028 = vperm.xlu1 %5552, %v7089_v18  }
 0x44c   : > { %2403 = vmatpush2.msra.mxu1 %v1264_v40  ;;  %v7153_v34 = vadd.f32 %v2744_v46, %v2696_v52  ;;  %v2681_v19 = vmul.f32 %v8940_v41, %v1768_v49  ;;  %v2745_v39 = vmul.f32 %v8941_v1, %v1881_v38  ;;  %v8943_v40 = vld [vmem:[#allocation21_spill] sm:$0xff]  ;;  %v1174_v52 = vld [vmem:[#allocation7 + $0x980] sm:$0xff] }
 0x44d   : > { %2404 = vmatprep.subr.mxu1 %v1247_v42  ;;  %v1770_v15 = vpop.f32.mrf.mxu1  ;;  %v1883_v24 = vpop.f32.mrf.mxu0 }
 0x44e   : > { %2405 = vmatpush2.msra.mxu1 %v1246_v53  ;;  %2960 = vperm.xlu0 %5547, %v7120_v14   ;;  %v2697_v23 = vadd.f32 %v2681_v19, %v6983_v62  ;;  %v2682_v18 = vmul.f32 %v8940_v41, %v1770_v15  ;;  %v2746_v21 = vmul.f32 %v8941_v1, %v1883_v24  ;;  %v1175_v62 = vld [vmem:[#allocation7 + $0x988] sm:$0xff] }
 0x44f   : > { %2406 = vmatprep.subr.mxu1 %v1229_v22  ;;  %5555 = vset.pattern.permute.xlu1 %v8942_v28  ;;  %v8944_v22 = vld [vmem:[#allocation20_spill] sm:$0xff] }
 0x450   : > { %2407 = vmatpush2.msra.mxu1 %v1228_v0  ;;  %v7161_v59 = vadd.f32 %v2745_v39, %v2697_v23  ;;  %v2698_v60 = vadd.f32 %v2682_v18, %v6992_v61 }
 0x451   : > { %2408 = vmatprep.subr.mxu1 %v1211_v10  ;;  %v1774_v26 = vpop.f32.mrf.mxu1 }
 0x452   : > { %2409 = vmatpush2.msra.mxu1 %v1210_v4  ;;  %v7165_v27 = vadd.f32 %v2746_v21, %v2698_v60  ;;  %v2683_v42 = vmul.f32 %v8943_v40, %v1774_v26  ;;  %5553 = vset.pattern.permute.xlu0 %v8932_v6 }
 0x453   : > { %2410 = vmatprep.subr.mxu1 %v1193_v54  ;;  %v1776_v46 = vpop.f32.mrf.mxu1  ;;  %3024 = vperm.xlu0 %5553, %v7120_v14  }
 0x454   : > { %2411 = vmatpush2.msra.mxu1 %v1192_v30  ;;  %v7171_v61 = vadd.f32 %v2683_v42, %v6999_v11  ;;  %v2684_v53 = vmul.f32 %v8943_v40, %v1776_v46 }
 0x455   : > { %2412 = vmatprep.subr.mxu1 %v1175_v62 }
 0x456   : > { %2413 = vmatpush2.msra.mxu1 %v1174_v52  ;;  %v7175_v49 = vadd.f32 %v2684_v53, %v7004_v13 }
 0x457   : > { %2415 = vmatmul.mubr.f32.vlgmr.msra.gmra.mxu1 %v6698_v9  ;;  %v1780_v38 = vpop.f32.mrf.mxu1  ;;  %5554 = vset.pattern.permute.xlu0 %v8942_v28  ;;  %v7191_v9 = vpop.permute.xlu0 %2788 }
 0x458   : > { %2420 = vmatprep.mubr.f32.mxu1 %v6704_v32  ;;  %v2685_v14 = vmul.f32 %v8944_v22, %v1780_v38 }
 0x459   : > { %v1782_v41 = vpop.f32.mrf.mxu1 }
 0x45a   : > { %v7182_v11 = vadd.f32 %v2685_v14, %v7015_v55  ;;  %v2686_v19 = vmul.f32 %v8944_v22, %v1782_v41 }
 0x45b   : > { %2421 = vmatmul.mubr.f32.gmra.mxu1 %v6706_v44  ;;  %v2777_v32 = vpop.permute.xlu0 %2776 }
 0x45c   : > { %2426 = vmatprep.mubr.f32.mxu1 %v6712_v45  ;;  %v7188_v13 = vadd.f32 %v2686_v19, %v7018_v25  ;;  %v7201_v45 = vpop.f32.mrf.mxu0 }
 0x45f   : > { %2427 = vmatmul.mubr.f32.gmra.mxu1 %v6714_v2  ;;  %v2773_v44 = vpop.permute.xlu0 %2772 }
 0x460   : > { %2432 = vmatprep.mubr.f32.mxu1 %v6718_v3 }
 0x463   : > { %2433 = vmatmul.mubr.f32.gmra.mxu1 %v6722_v5  ;;  %v7206_v3 = vpop.permute.xlu0 %2860  ;;  %v7209_v5 = vpop.f32.mrf.mxu0 }
 0x464   : > { %2438 = vmatprep.mubr.f32.mxu1 %v6726_v58  ;;  %v8945_v58 = vmov 0.0  }
 0x467   : > { %2439 = vmatmul.mubr.f32.gmra.mxu1 %v6730_v35 }
 0x468   : > { %2444 = vmatprep.mubr.f32.mxu1 %v6738_v17  ;;  %v7214_v17 = vpop.permute.xlu0 %2852 }
 0x46b   : > { %2445 = vmatmul.mubr.f32.gmra.mxu1 %v6740_v50  ;;  %v7216_v50 = vpop.f32.mrf.mxu0 }
 0x46c   : > { %2450 = vmatprep.mubr.f32.mxu1 %v6746_v57 }
 0x46d   : > { %v7218_v57 = vpop.f32.mrf.mxu0 }
 0x46f   : > { %2451 = vmatmul.mubr.f32.gmra.mxu1 %v6750_v12 }
 0x470   : > { %2456 = vmatprep.mubr.f32.mxu1 %v6758_v63  ;;  %v7222_v63 = vpop.permute.xlu0 %2848 }
 0x471   : > { %v7204_v2 = vpop.permute.xlu1 %2840 }
 0x473   : > { %2457 = vmatmul.mubr.f32.gmra.mxu1 %v6760_v16 }
 0x474   : > { %4969 = vmatprep.mubr.f32.mxu1 %v8945_v58  ;;  %v2837_v1 = vpop.permute.xlu0 %2836 }
 0x477   : > { %v7212_v35 = vpop.permute.xlu1 %2908 }
 0x47d   : > { %v7220_v12 = vpop.permute.xlu1 %3044 }
 0x47e   : > { %8946 = vst [vmem:[#allocation26_spill] sm:$0xff] %v7220_v12  ;;  %v1964_v55 = vpop.f32.mrf.mxu1  ;;  %v2077_v25 = vpop.f32.mrf.mxu0 }
 0x480   : > { %v1966_v0 = vpop.f32.mrf.mxu1  ;;  %v2079_v16 = vpop.f32.mrf.mxu0 }
 0x483   : > { %v2769_v15 = vpop.permute.xlu1 %2768 }
 0x484   : > { %v2799_v24 = vmul.f32 %v2769_v15, %v1964_v55  ;;  %v2800_v10 = vmul.f32 %v2769_v15, %v1966_v0  ;;  %v1970_v23 = vpop.f32.mrf.mxu1 }
 0x485   : > { %v2801_v39 = vmul.f32 %v2773_v44, %v1970_v23  ;;  %v2083_v18 = vpop.f32.mrf.mxu0 }
 0x486   : > { %v2815_v4 = vadd.f32 %v2799_v24, %v7129_v43  ;;  %v2816_v28 = vadd.f32 %v2800_v10, %v7132_v29  ;;  %v1972_v54 = vpop.f32.mrf.mxu1  ;;  %v2865_v21 = vmul.f32 %v2837_v1, %v2083_v18  ;;  %v8948_v10 = vld [vmem:[#allocation30_spill] sm:$0xff] }
 0x487   : > { %v2817_v60 = vadd.f32 %v2801_v39, %v7092_v48  ;;  %v2802_v30 = vmul.f32 %v2773_v44, %v1972_v54  ;;  %v2085_v26 = vpop.f32.mrf.mxu0 }
 0x488   : > { %v2866_v42 = vmul.f32 %v2837_v1, %v2085_v26 }
 0x489   : > { %v2881_v62 = vadd.f32 %v2865_v21, %v2817_v60  ;;  %v2818_v40 = vadd.f32 %v2802_v30, %v7101_v37  ;;  %v7228_v52 = vpop.permute.xlu1 %2904 }
 0x48b   : > { %v2882_v46 = vadd.f32 %v2866_v42, %v2818_v40  ;;  %v1976_v53 = vpop.f32.mrf.mxu1 }
 0x48c   : > { %v2803_v38 = vmul.f32 %v2777_v32, %v1976_v53 }
 0x48d   : > { %v1978_v22 = vpop.f32.mrf.mxu1 }
 0x48e   : > { %v7231_v43 = vadd.f32 %v2803_v38, %v7111_v7  ;;  %v2804_v29 = vmul.f32 %v2777_v32, %v1978_v22 }
 0x48f   : > { %v7233_v14 = vpop.permute.xlu1 %2972 }
 0x490   : > { %8947 = vst [vmem:[#allocation29_spill] sm:$0xff] %v7233_v14  ;;  %v7236_v48 = vadd.f32 %v2804_v29, %v7114_v33 }
 0x491   : > { %v1982_v41 = vpop.f32.mrf.mxu1 }
 0x492   : > { %v2805_v19 = vmul.f32 %v7020_v36, %v1982_v41 }
 0x493   : > { %v1984_v37 = vpop.f32.mrf.mxu1 }
 0x494   : > { %v7240_v44 = vadd.f32 %v2805_v19, %v7134_v20  ;;  %v2806_v55 = vmul.f32 %v7020_v36, %v1984_v37 }
 0x496   : > { %v2833_v0 = vpop.permute.xlu1 %2832  ;;  %v7244_v15 = vadd.f32 %v2806_v55, %v7141_v51 }
 0x497   : > { %v2863_v7 = vmul.f32 %v2833_v0, %v2077_v25  ;;  %v2864_v32 = vmul.f32 %v2833_v0, %v2079_v16  ;;  %v1988_v24 = vpop.f32.mrf.mxu1 }
 0x498   : > { %v2807_v23 = vmul.f32 %v8948_v10, %v1988_v24 }
 0x499   : > { %v2879_v33 = vadd.f32 %v2863_v7, %v2815_v4  ;;  %v2880_v1 = vadd.f32 %v2864_v32, %v2816_v28  ;;  %v1990_v39 = vpop.f32.mrf.mxu1  ;;  %v2089_v28 = vpop.f32.mrf.mxu0 }
 0x49a   : > { %v7248_v18 = vadd.f32 %v2807_v23, %v7148_v56  ;;  %v2808_v20 = vmul.f32 %v8948_v10, %v1990_v39 }
 0x49b   : > { %v2091_v56 = vpop.f32.mrf.mxu0 }
 0x49c   : > { %v7252_v54 = vadd.f32 %v2808_v20, %v7153_v34 }
 0x49d   : > { %v1994_v36 = vpop.f32.mrf.mxu1  ;;  %v2095_v21 = vpop.f32.mrf.mxu0 }
 0x49e   : > { %v2809_v51 = vmul.f32 %v7191_v9, %v1994_v36 }
 0x49f   : > { %v1996_v60 = vpop.f32.mrf.mxu1  ;;  %v2097_v30 = vpop.f32.mrf.mxu0 }
 0x4a0   : > { %v7256_v25 = vadd.f32 %v2809_v51, %v7161_v59  ;;  %v2810_v16 = vmul.f32 %v7191_v9, %v1996_v60 }
 0x4a1   : > { %v7262_v34 = vpop.f32.mrf.mxu0 }
 0x4a2   : > { %v7260_v4 = vadd.f32 %v2810_v16, %v7165_v27 }
 0x4a3   : > { %v2000_v26 = vpop.f32.mrf.mxu1  ;;  %v7266_v38 = vpop.f32.mrf.mxu0 }
 0x4a5   : > { %v2002_v42 = vpop.f32.mrf.mxu1  ;;  %v7268_v22 = vpop.f32.mrf.mxu0 }
 0x4a7   : > { %v7270_v41 = vpop.f32.mrf.mxu0 }
 0x4a9   : > { %v2006_v59 = vpop.f32.mrf.mxu1  ;;  %v7274_v7 = vpop.f32.mrf.mxu0 }
 0x4ab   : > { %v2008_v9 = vpop.f32.mrf.mxu1  ;;  %v7280_v36 = vpop.f32.mrf.mxu0 }
 0x4ad   : > { %v7284_v60 = vpop.f32.mrf.mxu0 }
 0x4af   : > { %v7286_v16 = vpop.f32.mrf.mxu0 }
 0x4b2   : > { %v2901_v40 = vpop.permute.xlu1 %2900 }
 0x4b7   : > { %v7264_v53 = vpop.permute.xlu1 %3036 }
 0x4b8   : > { %8949 = vst [vmem:[#allocation24_spill] sm:$0xff] %v7264_v53 }
 0x4bc   : > { %v2897_v29 = vpop.permute.xlu1 %2896 }
 0x4d5   : > { %v2190_v27 = vpop.f32.mrf.mxu1 }
 0x4d6   : > { %v2927_v19 = vmul.f32 %v2897_v29, %v2190_v27  ;;  %v7294_v27 = vpop.permute.xlu0 %3052 }
 0x4d7   : > { %v2192_v37 = vpop.f32.mrf.mxu1  ;;  %8952 = vst [vmem:[#allocation30_spill] sm:$0xff] %v7294_v27 }
 0x4d8   : > { %v7272_v55 = vadd.f32 %v2927_v19, %v2879_v33  ;;  %v2928_v0 = vmul.f32 %v2897_v29, %v2192_v37  ;;  %v7288_v33 = vpop.f32.mrf.mxu0 }
 0x4da   : > { %v7276_v32 = vadd.f32 %v2928_v0, %v2880_v1  ;;  %v2196_v24 = vpop.f32.mrf.mxu1  ;;  %v7292_v1 = vpop.f32.mrf.mxu0 }
 0x4db   : > { %v2929_v10 = vmul.f32 %v2901_v40, %v2196_v24 }
 0x4dc   : > { %v2198_v23 = vpop.f32.mrf.mxu1 }
 0x4dd   : > { %v7278_v39 = vadd.f32 %v2929_v10, %v2881_v62  ;;  %v2930_v20 = vmul.f32 %v2901_v40, %v2198_v23  ;;  %v7298_v62 = vpop.f32.mrf.mxu0 }
 0x4df   : > { %8950 = vst [vmem:[#allocation21_spill] sm:$0xff] %v7278_v39  ;;  %v7282_v51 = vadd.f32 %v2930_v20, %v2882_v46  ;;  %v7290_v29 = vpop.f32.mrf.mxu1  ;;  %v7302_v46 = vpop.permute.xlu0 %3040 }
 0x4e0   : > { %8953 = vst [vmem:[#allocation38_spill] sm:$0xff] %v7302_v46  ;;  %v7304_v37 = vpop.f32.mrf.mxu0 }
 0x4e1   : > { %8951 = vst [vmem:[#allocation20_spill] sm:$0xff] %v7282_v51  ;;  %v7296_v19 = vpop.f32.mrf.mxu1  ;;  %v8966_v51 = vld [vmem:[#allocation22_spill] sm:$0xff] }
 0x4e2   : > { %v7308_v24 = vpop.f32.mrf.mxu0 }
 0x4e3   : > { %v7300_v40 = vpop.f32.mrf.mxu1  ;;  %v7310_v10 = vpop.permute.xlu0 %2980 }
 0x4e4   : > { %8954 = vst [vmem:[#allocation39_spill] sm:$0xff] %v7310_v10  ;;  %v7314_v20 = vpop.f32.mrf.mxu0 }
 0x4e5   : > { %v7306_v0 = vpop.f32.mrf.mxu1  ;;  %8956 = vst [vmem:[#allocation41_spill] sm:$0xff] %v7314_v20  ;;  %v8968_v20 = vld [vmem:[#allocation25_spill] sm:$0xff] }
 0x4e6   : > { %v7320_v31 = vpop.f32.mrf.mxu0  ;;  %v2811_v39 = vmul.f32 %v8968_v20, %v2000_v26 }
 0x4e7   : > { %v7312_v23 = vpop.f32.mrf.mxu1  ;;  %v7318_v8 = vpop.permute.xlu0 %2976  ;;  %8959 = vst [vmem:[#allocation44_spill] sm:$0xff] %v7320_v31  ;;  %v8967_v31 = vld [vmem:[#allocation32_spill] sm:$0xff] }
 0x4e8   : > { %8955 = vst [vmem:[#allocation40_spill] sm:$0xff] %v7312_v23  ;;  %8958 = vst [vmem:[#allocation43_spill] sm:$0xff] %v7318_v8  ;;  %v7324_v27 = vpop.f32.mrf.mxu0  ;;  %v2748_v8 = vmul.f32 %v8966_v51, %v7209_v5  ;;  %v2870_v5 = vmul.f32 %v7060_v47, %v2097_v30 }
 0x4e9   : > { %v7316_v6 = vpop.f32.mrf.mxu1  ;;  %8961 = vst [vmem:[#allocation46_spill] sm:$0xff] %v7324_v27  ;;  %v2750_v27 = vmul.f32 %v8967_v31, %v7218_v57 }
 0x4ea   : > { %8957 = vst [vmem:[#allocation42_spill] sm:$0xff] %v7316_v6  ;;  %v7330_v53 = vpop.f32.mrf.mxu0  ;;  %v2747_v6 = vmul.f32 %v8966_v51, %v7201_v45  ;;  %v2812_v51 = vmul.f32 %v8968_v20, %v2002_v42  ;;  %v2886_v30 = vadd.f32 %v2870_v5, %v7244_v15 }
 0x4eb   : > { %v7322_v58 = vpop.f32.mrf.mxu1  ;;  %v7326_v12 = vpop.permute.xlu0 %2968  ;;  %8964 = vst [vmem:[#allocation49_spill] sm:$0xff] %v7330_v53  ;;  %v2868_v53 = vmul.f32 %v7204_v2, %v2091_v56  ;;  %v2766_v56 = vadd.f32 %v2750_v27, %v7188_v13  ;;  %v2874_v13 = vmul.f32 %v7214_v17, %v7270_v41  ;;  %v2931_v41 = vmul.f32 %v7228_v52, %v7290_v29 }
 0x4ec   : > { %8960 = vst [vmem:[#allocation45_spill] sm:$0xff] %v7322_v58  ;;  %8962 = vst [vmem:[#allocation47_spill] sm:$0xff] %v7326_v12  ;;  %v2749_v58 = vmul.f32 %v8967_v31, %v7216_v50  ;;  %v7342_v23 = vpop.f32.mrf.mxu0  ;;  %v8969_v50 = vld [vmem:[#allocation23_spill] sm:$0xff]  ;;  %v2763_v57 = vadd.f32 %v2747_v6, %v7171_v61  ;;  %v2872_v6 = vmul.f32 %v7222_v63, %v7266_v38  ;;  %v7381_v38 = vpop.permute.xlu1 %3032 }
 0x4ed   : > { %v7328_v46 = vpop.f32.mrf.mxu1  ;;  %v2813_v12 = vmul.f32 %v8969_v50, %v2006_v59  ;;  %v2814_v31 = vmul.f32 %v8969_v50, %v2008_v9  ;;  %v2884_v26 = vadd.f32 %v2868_v53, %v7236_v48  ;;  %v2871_v59 = vmul.f32 %v7222_v63, %v7262_v34  ;;  %v8970_v63 = vld [vmem:[#allocation27_spill] sm:$0xff]  ;;  %v8972_v50 = vld [vmem:[#allocation21_spill] sm:$0xff] }
 0x4ee   : > { %8963 = vst [vmem:[#allocation48_spill] sm:$0xff] %v7328_v46  ;;  %v2867_v46 = vmul.f32 %v7204_v2, %v2089_v28  ;;  %v2764_v28 = vadd.f32 %v2748_v8, %v7175_v49  ;;  %v2765_v2 = vadd.f32 %v2749_v58, %v7182_v11  ;;  %v7362_v42 = vpop.f32.mrf.mxu0  ;;  %v2873_v8 = vmul.f32 %v7214_v17, %v7268_v22 }
 0x4ef   : > { %v7332_v10 = vpop.f32.mrf.mxu1  ;;  %v2965_v14 = vpop.permute.xlu0 %2964  ;;  %v2827_v61 = vadd.f32 %v2811_v39, %v2763_v57  ;;  %v2830_v48 = vadd.f32 %v2814_v31, %v2766_v56  ;;  %v2888_v15 = vadd.f32 %v2872_v6, %v7252_v54  ;;  %v2875_v53 = vmul.f32 %v8970_v63, %v7274_v7  ;;  %v8973_v57 = vld [vmem:[#allocation41_spill] sm:$0xff] }
 0x4f0   : > { %8965 = vst [vmem:[#allocation50_spill] sm:$0xff] %v7332_v10  ;;  %v2869_v10 = vmul.f32 %v7060_v47, %v2095_v21  ;;  %v2883_v21 = vadd.f32 %v2867_v46, %v7231_v43  ;;  %v2828_v58 = vadd.f32 %v2812_v51, %v2764_v28  ;;  %v2829_v43 = vadd.f32 %v2813_v12, %v2765_v2  ;;  %v7392_v54 = vpop.f32.mrf.mxu0  ;;  %v3029_v2 = vpop.permute.xlu1 %3028 }
 0x4f1   : > { %v7348_v45 = vpop.f32.mrf.mxu1  ;;  %v7377_v34 = vadd.f32 %v2873_v8, %v7256_v25  ;;  %v7384_v22 = vadd.f32 %v2874_v13, %v7260_v4  ;;  %v2876_v17 = vmul.f32 %v8970_v63, %v7280_v36  ;;  %v2877_v12 = vmul.f32 %v7206_v3, %v7284_v60 }
 0x4f2   : > { %v2885_v47 = vadd.f32 %v2869_v10, %v7240_v44  ;;  %v2887_v44 = vadd.f32 %v2871_v59, %v7248_v18  ;;  %v2878_v18 = vmul.f32 %v7206_v3, %v7286_v16  ;;  %v7394_v25 = vadd.f32 %v2875_v53, %v2827_v61  ;;  %v2339_v51 = vpop.f32.mrf.mxu0  ;;  %v8978_v59 = vld [vmem:[#allocation20_spill] sm:$0xff] }
 0x4f3   : > { %v2961_v49 = vpop.permute.xlu0 %2960  ;;  %v7370_v11 = vpop.f32.mrf.mxu1  ;;  %v2932_v4 = vmul.f32 %v7228_v52, %v7296_v19  ;;  %v7403_v36 = vadd.f32 %v2876_v17, %v2828_v58  ;;  %v7405_v60 = vadd.f32 %v2877_v12, %v2829_v43  ;;  %v2933_v29 = vmul.f32 %v7212_v35, %v7300_v40  ;;  %v8971_v20 = vld [vmem:[#allocation47_spill] sm:$0xff]  ;;  %v8979_v61 = vld [vmem:[#allocation44_spill] sm:$0xff]  ;;  %v8981_v58 = vld [vmem:[#allocation45_spill] sm:$0xff] }
 0x4f4   : > { %v2991_v9 = vmul.f32 %v2961_v49, %v7288_v33  ;;  %v7407_v3 = vadd.f32 %v2878_v18, %v2830_v48  ;;  %v2992_v16 = vmul.f32 %v2961_v49, %v7292_v1  ;;  %v2993_v33 = vmul.f32 %v2965_v14, %v7298_v62  ;;  %v8982_v43 = vld [vmem:[#allocation34_spill] sm:$0xff]  ;;  %v2341_v63 = vpop.f32.mrf.mxu0 }
 0x4f5   : > { %v7401_v7 = vpop.f32.mrf.mxu1  ;;  %v2934_v52 = vmul.f32 %v7212_v35, %v7306_v0  ;;  %v2994_v10 = vmul.f32 %v2965_v14, %v7304_v37  ;;  %v2995_v5 = vmul.f32 %v8971_v20, %v7308_v24  ;;  %v2947_v31 = vadd.f32 %v2931_v41, %v2883_v21  ;;  %v8974_v35 = vld [vmem:[#allocation40_spill] sm:$0xff]  ;;  %v8980_v21 = vld [vmem:[#allocation29_spill] sm:$0xff]  ;;  %v8985_v41 = vld [vmem:[#allocation46_spill] sm:$0xff] }
 0x4f6   : > { %v3007_v27 = vadd.f32 %v2991_v9, %v7272_v55  ;;  %v3008_v46 = vadd.f32 %v2992_v16, %v7276_v32  ;;  %v3009_v55 = vadd.f32 %v2993_v33, %v8972_v50  ;;  %v2948_v62 = vadd.f32 %v2932_v4, %v2884_v26  ;;  %v8975_v0 = vld [vmem:[#allocation36_spill] sm:$0xff]  ;;  %v8976_v32 = vld [vmem:[#allocation42_spill] sm:$0xff]  ;;  %v8988_v33 = vld [vmem:[#allocation43_spill] sm:$0xff] }
 0x4f7   : > { %v3025_v39 = vpop.permute.xlu0 %3024  ;;  %v2996_v40 = vmul.f32 %v8971_v20, %v8973_v57  ;;  %v2935_v56 = vmul.f32 %v8975_v0, %v8974_v35  ;;  %v2936_v14 = vmul.f32 %v8975_v0, %v8976_v32  ;;  %v3010_v6 = vadd.f32 %v2994_v10, %v8978_v59  ;;  %v8986_v4 = vld [vmem:[#allocation48_spill] sm:$0xff]  ;;  %v8991_v10 = vld [vmem:[#allocation31_spill] sm:$0xff] }
 0x4f8   : > { %v2949_v8 = vadd.f32 %v2933_v29, %v2885_v47  ;;  %v2997_v26 = vmul.f32 %v8980_v21, %v8979_v61  ;;  %v2950_v49 = vadd.f32 %v2934_v52, %v2886_v30  ;;  %v2937_v48 = vmul.f32 %v8982_v43, %v8981_v58  ;;  %v8996_v61 = vld [vmem:[#allocation35_spill] sm:$0xff] }
 0x4f9   : > { %v3011_v18 = vadd.f32 %v2995_v5, %v2947_v31  ;;  %v3012_v9 = vadd.f32 %v2996_v40, %v2948_v62  ;;  %v2998_v47 = vmul.f32 %v8980_v21, %v8985_v41  ;;  %v2951_v16 = vadd.f32 %v2935_v56, %v2887_v44 }
 0x4fa   : > { %v2952_v52 = vadd.f32 %v2936_v14, %v2888_v15  ;;  %v3013_v62 = vadd.f32 %v2997_v26, %v2949_v8  ;;  %v3000_v44 = vmul.f32 %v8988_v33, %v7342_v23  ;;  %v2953_v40 = vadd.f32 %v2937_v48, %v7377_v34  ;;  %v2345_v15 = vpop.f32.mrf.mxu0  ;;  %v8997_v26 = vld [vmem:[#allocation28_spill] sm:$0xff] }
 0x4fb   : > { %v3014_v57 = vadd.f32 %v2998_v47, %v2950_v49  ;;  %v2940_v56 = vmul.f32 %v8991_v10, %v7348_v45  ;;  %v3003_v21 = vmul.f32 %v8996_v61, %v2339_v51  ;;  %v2941_v49 = vmul.f32 %v8997_v26, %v7370_v11  ;;  %v8999_v11 = vld [vmem:[#allocation33_spill] sm:$0xff] }
 0x517   : > { %v2416_v19 = vpop.f32.mrf.mxu1 }
 0x518   : > { %v3055_v1 = vmul.f32 %v3025_v39, %v2416_v19 }
 0x519   : > { %v2418_v28 = vpop.f32.mrf.mxu1 }
 0x51a   : > { %v7427_v37 = vadd.f32 %v3055_v1, %v3007_v27  ;;  %v3056_v24 = vmul.f32 %v3025_v39, %v2418_v28  ;;  %v2938_v39 = vmul.f32 %v8982_v43, %v8986_v4  ;;  %v8987_v27 = vld [vmem:[#allocation49_spill] sm:$0xff]  ;;  %v8993_v28 = vld [vmem:[#allocation39_spill] sm:$0xff]  ;;  %v2956_v43 = vadd.f32 %v2940_v56, %v7403_v36 }
 0x51b   : > { %v2422_v13 = vpop.f32.mrf.mxu1  ;;  %v2999_v29 = vmul.f32 %v8988_v33, %v8987_v27  ;;  %v3001_v35 = vmul.f32 %v8993_v28, %v7362_v42  ;;  %v3002_v42 = vmul.f32 %v8993_v28, %v7392_v54  ;;  %v3004_v54 = vmul.f32 %v8996_v61, %v2341_v63 }
 0x51c   : > { %8977 = vst [vmem:[#allocation22_spill] sm:$0xff] %v7427_v37  ;;  %v7435_v53 = vmul.f32 0.70710677, %v7427_v37  ;;  %v7437_v17 = vadd.f32 %v3056_v24, %v3008_v46  ;;  %v3057_v12 = vmul.f32 %v3029_v2, %v2422_v13  ;;  %v8990_v46 = vld [vmem:[#allocation50_spill] sm:$0xff]  ;;  %v2954_v0 = vadd.f32 %v2938_v39, %v7384_v22 }
 0x51d   : > { %v2424_v30 = vpop.f32.mrf.mxu1  ;;  %v2939_v20 = vmul.f32 %v8991_v10, %v8990_v46  ;;  %v7464_v32 = vadd.f32 %v2999_v29, %v2951_v16  ;;  %v7470_v24 = vadd.f32 %v3000_v44, %v2952_v52  ;;  %v7475_v8 = vadd.f32 %v3001_v35, %v2953_v40 }
 0x51e   : > { %8983 = vst [vmem:[#allocation32_spill] sm:$0xff] %v7435_v53  ;;  %8984 = vst [vmem:[#allocation25_spill] sm:$0xff] %v7437_v17  ;;  %v7446_v19 = vmul.f32 0.70710677, %v7437_v17  ;;  %v3103_v5 = vand.u32 2147483647, %v7435_v53  ;;  %v7451_v1 = vadd.f32 %v3057_v12, %v3009_v55  ;;  %v3058_v50 = vmul.f32 %v3029_v2, %v2424_v30 }
 0x51f   : > { %v2428_v31 = vpop.f32.mrf.mxu1  ;;  %v2955_v22 = vadd.f32 %v2939_v20, %v7394_v25  ;;  %v7481_v58 = vadd.f32 %v3002_v42, %v2954_v0  ;;  %v3005_v39 = vmul.f32 %v8999_v11, %v2345_v15  ;;  %v2957_v36 = vadd.f32 %v2941_v49, %v7405_v60 }
 0x520   : > { %8989 = vst [vmem:[#allocation23_spill] sm:$0xff] %v7446_v19  ;;  %8992 = vst [vmem:[#allocation27_spill] sm:$0xff] %v7451_v1  ;;  %v7462_v55 = vmul.f32 0.70710677, %v7451_v1  ;;  %v3104_v14 = vand.u32 2147483647, %v7446_v19  ;;  %v7467_v23 = vadd.f32 %v3058_v50, %v3010_v6  ;;  %v3059_v34 = vmul.f32 %v7381_v38, %v2428_v31  ;;  %v2347_v6 = vpop.f32.mrf.mxu0 }
 0x521   : > { %v2430_v2 = vpop.f32.mrf.mxu1  ;;  %v3327_v45 = vsub.f32 0.0, %v3103_v5  ;;  %v3119_v48 = vmul.f32 0.3275911, %v3103_v5  ;;  %v7489_v4 = vadd.f32 %v3003_v21, %v2955_v22  ;;  %v3006_v30 = vmul.f32 %v8999_v11, %v2347_v6 }
 0x522   : > { %8994 = vst [vmem:[#allocation47_spill] sm:$0xff] %v7462_v55  ;;  %8995 = vst [vmem:[#allocation21_spill] sm:$0xff] %v7467_v23  ;;  %v3105_v13 = vand.u32 2147483647, %v7462_v55  ;;  %v3328_v12 = vsub.f32 0.0, %v3104_v14  ;;  %v3075_v47 = vadd.f32 %v3059_v34, %v3011_v18  ;;  %v3060_v51 = vmul.f32 %v7381_v38, %v2430_v2 }
 0x523   : > { %v2434_v59 = vpop.f32.mrf.mxu1  ;;  %v7486_v41 = vmul.f32 0.70710677, %v7467_v23  ;;  %v3343_v16 = vmul.f32 %v3327_v45, %v3103_v5  ;;  %v2942_v63 = vmul.f32 %v8997_v26, %v7401_v7  ;;  %v7498_v52 = vadd.f32 %v3004_v54, %v2956_v43  ;;  %v9000_v5 = vld [vmem:[#allocation24_spill] sm:$0xff]  ;;  %v9003_v45 = vld [vmem:[#allocation38_spill] sm:$0xff] }
 0x524   : > { %v3329_v33 = vsub.f32 0.0, %v3105_v13  ;;  %v7496_v29 = vmul.f32 0.70710677, %v3075_v47  ;;  %v3135_v18 = vadd.f32 1.0, %v3119_v48  ;;  %v3120_v38 = vmul.f32 0.3275911, %v3104_v14 }
 0x525   : > { %v2436_v25 = vpop.f32.mrf.mxu1  ;;  %8998 = vst [vmem:[#allocation41_spill] sm:$0xff] %v7486_v41  ;;  %v3076_v46 = vadd.f32 %v3060_v51, %v3012_v9  ;;  %v3344_v10 = vmul.f32 %v3328_v12, %v3104_v14  ;;  %v3106_v20 = vand.u32 2147483647, %v7486_v41  ;;  %v3061_v31 = vmul.f32 %v9000_v5, %v2434_v59 }
 0x526   : > { %v3107_v50 = vand.u32 2147483647, %v7496_v29  ;;  %v3359_v44 = vmul.f32 1.442695, %v3343_v16  ;;  %v3121_v60 = vmul.f32 0.3275911, %v3105_v13  ;;  %v3062_v7 = vmul.f32 %v9000_v5, %v2436_v25 }
 0x527   : > { %v2440_v27 = vpop.f32.mrf.mxu1  ;;  %v7503_v40 = vmul.f32 0.70710677, %v3076_v46  ;;  %v7506_v28 = vadd.f32 %v3005_v39, %v2957_v36  ;;  %v2958_v35 = vadd.f32 %v2942_v63, %v7407_v3  ;;  %v3345_v0 = vmul.f32 %v3329_v33, %v3105_v13 }
 0x528   : > { %v3331_v9 = vsub.f32 0.0, %v3107_v50  ;;  %v3136_v56 = vadd.f32 1.0, %v3120_v38  ;;  %v7510_v14 = vadd.f32 %v3061_v31, %v3013_v62  ;;  %v7512_v34 = vadd.f32 %v3062_v7, %v3014_v57 }
 0x529   : > { %v2442_v15 = vpop.f32.mrf.mxu1  ;;  %v3108_v2 = vand.u32 2147483647, %v7503_v40  ;;  %5586 = vrcp.f32 %v3135_v18  ;;  %v3361_v42 = vmul.f32 1.442695, %v3344_v10  ;;  %v3122_v22 = vmul.f32 0.3275911, %v3106_v20 }
 0x52a   : > { %9001 = vst [vmem:[#allocation40_spill] sm:$0xff] %v7510_v14  ;;  %9002 = vst [vmem:[#allocation36_spill] sm:$0xff] %v7512_v34  ;;  %v3063_v59 = vmul.f32 %v9003_v45, %v2440_v27  ;;  %5588 = vpow2.f32 %v3359_v44  ;;  %v3137_v61 = vadd.f32 1.0, %v3121_v60  ;;  %v3123_v21 = vmul.f32 0.3275911, %v3107_v50 }
 0x52b   : > { %v7516_v26 = vmul.f32 0.70710677, %v7510_v14  ;;  %v2446_v3 = vpop.f32.mrf.mxu1  ;;  %v3363_v49 = vmul.f32 1.442695, %v3345_v0  ;;  %v3330_v6 = vsub.f32 0.0, %v3106_v20  ;;  %v3347_v13 = vmul.f32 %v3331_v9, %v3107_v50 }
 0x52c   : > { %v7519_v62 = vmul.f32 0.70710677, %v7512_v34  ;;  %v7521_v57 = vadd.f32 %v3006_v30, %v2958_v35  ;;  %5590 = vrcp.f32 %v3136_v56  ;;  %v3124_v43 = vmul.f32 0.3275911, %v3108_v2 }
 0x52d   : > { %9004 = vst [vmem:[#allocation42_spill] sm:$0xff] %v7516_v26  ;;  %v3332_v54 = vsub.f32 0.0, %v3108_v2  ;;  %5592 = vpow2.f32 %v3361_v42  ;;  %v3138_v48 = vadd.f32 1.0, %v3122_v22  ;;  %v3109_v25 = vand.u32 2147483647, %v7516_v26  ;;  %v2448_v16 = vpop.f32.mrf.mxu1 }
 0x52e   : > { %9005 = vst [vmem:[#allocation20_spill] sm:$0xff] %v7519_v62  ;;  %v7525_v12 = vadd.f32 %v3063_v59, %v7464_v32  ;;  %5594 = vrcp.f32 %v3137_v61  ;;  %v3139_v51 = vadd.f32 1.0, %v3123_v21  ;;  %v7527_v11 = vmul.f32 0.5, %v3075_v47 }
 0x52f   : > { %v3110_v39 = vand.u32 2147483647, %v7519_v62  ;;  %5596 = vpow2.f32 %v3363_v49  ;;  %v3346_v30 = vmul.f32 %v3330_v6, %v3106_v20  ;;  %v3367_v27 = vmul.f32 1.442695, %v3347_v13  ;;  %v9006_v20 = vld [vmem:[#allocation26_spill] sm:$0xff]  ;;  %v2452_v44 = vpop.f32.mrf.mxu1  ;;  %v9009_v6 = vld [vmem:[#allocation37_spill] sm:$0xff] }
 0x530   : > { %v7531_v36 = vmul.f32 0.70710677, %v7525_v12  ;;  %v3140_v63 = vadd.f32 1.0, %v3124_v43  ;;  %v3348_v33 = vmul.f32 %v3332_v54, %v3108_v2  ;;  %v7533_v18 = vmul.f32 0.5, %v3076_v46 }
 0x531   : > { %v3064_v32 = vmul.f32 %v9003_v45, %v2442_v15  ;;  %5598 = vrcp.f32 %v3138_v48  ;;  %v3125_v38 = vmul.f32 0.3275911, %v3109_v25  ;;  %v3333_v10 = vsub.f32 0.0, %v3109_v25  ;;  %v2454_v21 = vpop.f32.mrf.mxu1 }
 0x532   : > { %v3111_v47 = vand.u32 2147483647, %v7531_v36  ;;  %5600 = vrcp.f32 %v3139_v51  ;;  %v3334_v50 = vsub.f32 0.0, %v3110_v39  ;;  %v3065_v31 = vmul.f32 %v9006_v20, %v2446_v3 }
 0x533   : > { %v7538_v5 = vadd.f32 %v3064_v32, %v7470_v24  ;;  %v7541_v60 = vmul.f32 1.442695, %v3346_v30  ;;  %5602 = vpow2.f32 %v3367_v27  ;;  %v3126_v46 = vmul.f32 0.3275911, %v3110_v39  ;;  %v2458_v32 = vpop.f32.mrf.mxu1 }
 0x534   : > { %v3127_v7 = vmul.f32 0.3275911, %v3111_v47  ;;  %5604 = vrcp.f32 %v3140_v63  ;;  %v3369_v15 = vmul.f32 1.442695, %v3348_v33  ;;  %v7547_v0 = vadd.f32 %v3065_v31, %v7475_v8 }
 0x535   : > { %9007 = vst [vmem:[#allocation44_spill] sm:$0xff] %v7541_v60  ;;  %v7544_v35 = vmul.f32 0.70710677, %v7538_v5  ;;  %v3141_v9 = vadd.f32 1.0, %v3125_v38  ;;  %v3349_v56 = vmul.f32 %v3333_v10, %v3109_v25  ;;  %v3066_v2 = vmul.f32 %v9006_v20, %v2448_v16 }
 0x536   : > { %v3143_v24 = vadd.f32 1.0, %v3127_v7  ;;  %v7550_v42 = vpop.eup %5586  ;;  %v3350_v22 = vmul.f32 %v3334_v50, %v3110_v39  ;;  %v3335_v45 = vsub.f32 0.0, %v3111_v47  ;;  %v7554_v61 = vmul.f32 0.70710677, %v7547_v0 }
 0x537   : > { %v3112_v59 = vand.u32 2147483647, %v7544_v35  ;;  %v7556_v3 = vpop.eup %5588  ;;  %v3142_v49 = vadd.f32 1.0, %v3126_v46  ;;  %v3082_v8 = vadd.f32 %v3066_v2, %v7481_v58  ;;  %v3067_v13 = vmul.f32 %v9009_v6, %v2452_v44  ;;  %v9012_v2 = vld [vmem:[#allocation30_spill] sm:$0xff] }
 0x538   : > { %9008 = vst [vmem:[#allocation29_spill] sm:$0xff] %v7556_v3  ;;  %5606 = vrcp.f32 %v3143_v24  ;;  %v3113_v48 = vand.u32 2147483647, %v7554_v61  ;;  %v3371_v51 = vmul.f32 1.442695, %v3349_v56  ;;  %v3351_v63 = vmul.f32 %v3335_v45, %v3111_v47  ;;  %v2460_v45 = vpop.f32.mrf.mxu1 }
 0x539   : > { %5608 = vpow2.f32 %v3369_v15  ;;  %v3128_v43 = vmul.f32 0.3275911, %v3112_v59  ;;  %v3336_v54 = vsub.f32 0.0, %v3112_v59  ;;  %v7561_v25 = vpop.eup %5590  ;;  %v7563_v39 = vmul.f32 0.70710677, %v3082_v8 }
 0x53a   : > { %5610 = vrcp.f32 %v3141_v9  ;;  %v3083_v16 = vadd.f32 %v3067_v13, %v7489_v4  ;;  %v7566_v30 = vpop.eup %5592  ;;  %v3373_v27 = vmul.f32 1.442695, %v3350_v22  ;;  %v3129_v33 = vmul.f32 0.3275911, %v3113_v48 }
 0x53b   : > { %9010 = vst [vmem:[#allocation45_spill] sm:$0xff] %v7566_v30  ;;  %v3144_v58 = vadd.f32 1.0, %v3128_v43  ;;  %v7568_v38 = vpop.eup %5594  ;;  %5612 = vrcp.f32 %v3142_v49  ;;  %v3352_v10 = vmul.f32 %v3336_v54, %v3112_v59  ;;  %v3114_v50 = vand.u32 2147483647, %v7563_v39 }
 0x53c   : > { %v7571_v20 = vmul.f32 0.70710677, %v3083_v16  ;;  %v7573_v31 = vpop.eup %5596  ;;  %v7576_v44 = vmul.f32 0.5, %v7525_v12  ;;  %v3145_v4 = vadd.f32 1.0, %v3129_v33  ;;  %v3337_v46 = vsub.f32 0.0, %v3113_v48 }
 0x53d   : > { %9011 = vst [vmem:[#allocation34_spill] sm:$0xff] %v7573_v31  ;;  %5614 = vrcp.f32 %v3144_v58  ;;  %v3130_v47 = vmul.f32 0.3275911, %v3114_v50  ;;  %v3338_v7 = vsub.f32 0.0, %v3114_v50  ;;  %v3375_v56 = vmul.f32 1.442695, %v3351_v63 }
 0x53e   : > { %5616 = vpow2.f32 %v3371_v51  ;;  %v3115_v15 = vand.u32 2147483647, %v7571_v20  ;;  %v7579_v9 = vpop.eup %5598  ;;  %v3068_v24 = vmul.f32 %v9009_v6, %v2454_v21  ;;  %v3069_v22 = vmul.f32 %v9012_v2, %v2458_v32 }
 0x53f   : > { %5618 = vpow2.f32 %v3373_v27  ;;  %v7583_v59 = vpop.eup %5600  ;;  %v3377_v12 = vmul.f32 1.442695, %v3352_v10  ;;  %v3146_v49 = vadd.f32 1.0, %v3130_v47  ;;  %v3353_v54 = vmul.f32 %v3337_v46, %v3113_v48 }
 0x540   : > { %5620 = vrcp.f32 %v3145_v4  ;;  %v3131_v13 = vmul.f32 0.3275911, %v3115_v15  ;;  %v7585_v43 = vpop.eup %5602  ;;  %v3354_v51 = vmul.f32 %v3338_v7, %v3114_v50  ;;  %v3084_v58 = vadd.f32 %v3068_v24, %v7498_v52 }
 0x541   : > { %v3085_v27 = vadd.f32 %v3069_v22, %v7506_v28  ;;  %v7589_v63 = vpop.eup %5604  ;;  %5622 = vrcp.f32 %v3146_v49  ;;  %v3339_v6 = vsub.f32 0.0, %v3115_v15  ;;  %v3070_v33 = vmul.f32 %v9012_v2, %v2460_v45 }
 0x542   : > { %v3147_v21 = vadd.f32 1.0, %v3131_v13  ;;  %5624 = vpow2.f32 %v3375_v56  ;;  %v7593_v32 = vmul.f32 0.5, %v7538_v5  ;;  %v7595_v10 = vmul.f32 0.70710677, %v3084_v58 }
 0x543   : > { %v7597_v4 = vmul.f32 0.70710677, %v3085_v27  ;;  %5626 = vpow2.f32 %v3377_v12  ;;  %v7600_v52 = vmul.f32 0.5, %v7547_v0  ;;  %v7602_v28 = vmul.f32 0.5, %v3082_v8 }
 0x544   : > { %v3086_v48 = vadd.f32 %v3070_v33, %v7521_v57  ;;  %v3379_v46 = vmul.f32 1.442695, %v3353_v54  ;;  %5628 = vrcp.f32 %v3147_v21  ;;  %v7607_v47 = vmul.f32 0.5, %v3083_v16 }
 0x545   : > { %v7605_v50 = vpop.eup %5606  ;;  %v3116_v5 = vand.u32 2147483647, %v7595_v10  ;;  %v3381_v56 = vmul.f32 1.442695, %v3354_v51  ;;  %v3355_v24 = vmul.f32 %v3339_v6, %v3115_v15  ;;  %v3117_v2 = vand.u32 2147483647, %v7597_v4 }
 0x546   : > { %v7610_v7 = vpop.eup %5608  ;;  %v7613_v0 = vmul.f32 0.70710677, %v3086_v48  ;;  %v7617_v45 = vmul.f32 0.5, %v3084_v58  ;;  %v3191_v12 = vmul.f32 1.0614054, %v7605_v50  ;;  %v7620_v13 = vmul.f32 0.5, %v3085_v27 }
 0x547   : > { %v7615_v8 = vpop.eup %5610  ;;  %v3132_v22 = vmul.f32 0.3275911, %v3116_v5  ;;  %v3340_v57 = vsub.f32 0.0, %v3116_v5  ;;  %v3133_v16 = vmul.f32 0.3275911, %v3117_v2  ;;  %v3341_v49 = vsub.f32 0.0, %v3117_v2 }
 0x548   : > { %v3118_v54 = vand.u32 2147483647, %v7613_v0  ;;  %v7623_v51 = vpop.eup %5612  ;;  %v3207_v6 = vadd.f32 -1.4531521, %v3191_v12  ;;  %v3187_v33 = vmul.f32 1.0614054, %v7583_v59 }
 0x549   : > { %v3148_v15 = vadd.f32 1.0, %v3132_v22  ;;  %v3356_v21 = vmul.f32 %v3340_v57, %v3116_v5  ;;  %v3149_v1 = vadd.f32 1.0, %v3133_v16  ;;  %v3188_v55 = vmul.f32 1.0614054, %v7589_v63 }
 0x54a   : > { %v7626_v23 = vpop.eup %5614  ;;  %v3134_v58 = vmul.f32 0.3275911, %v3118_v54  ;;  %v3342_v41 = vsub.f32 0.0, %v3118_v54  ;;  %v3383_v27 = vmul.f32 1.442695, %v3355_v24  ;;  %v3223_v19 = vmul.f32 %v7605_v50, %v3207_v6 }
 0x54b   : > { %v7629_v17 = vpop.eup %5616  ;;  %5630 = vrcp.f32 %v3148_v15  ;;  %v3192_v37 = vmul.f32 1.0614054, %v7626_v23  ;;  %v3357_v5 = vmul.f32 %v3341_v49, %v3117_v2  ;;  %v7635_v12 = vmul.f32 0.5, %v3086_v48 }
 0x54c   : > { %9013 = vst [vmem:[#allocation46_spill] sm:$0xff] %v7629_v17  ;;  %v7633_v22 = vpop.eup %5618  ;;  %5632 = vrcp.f32 %v3149_v1  ;;  %v3150_v57 = vadd.f32 1.0, %v3134_v58  ;;  %v3239_v53 = vadd.f32 1.4214138, %v3223_v19  ;;  %v3203_v30 = vadd.f32 -1.4531521, %v3187_v33 }
 0x54d   : > { %9014 = vst [vmem:[#allocation48_spill] sm:$0xff] %v7633_v22  ;;  %v7637_v16 = vpop.eup %5620  ;;  %5634 = vpow2.f32 %v3379_v46  ;;  %v3208_v31 = vadd.f32 -1.4531521, %v3192_v37  ;;  %v3385_v3 = vmul.f32 1.442695, %v3356_v21  ;;  %v3358_v24 = vmul.f32 %v3342_v41, %v3118_v54 }
 0x54e   : > { %v3193_v15 = vmul.f32 1.0614054, %v7637_v16  ;;  %v3204_v34 = vadd.f32 -1.4531521, %v3188_v55  ;;  %v7640_v62 = vpop.eup %5622  ;;  %5636 = vrcp.f32 %v3150_v57  ;;  %v3255_v2 = vmul.f32 %v7605_v50, %v3239_v53 }
 0x54f   : > { %v3224_v1 = vmul.f32 %v7626_v23, %v3208_v31  ;;  %v3219_v48 = vmul.f32 %v7583_v59, %v3203_v30  ;;  %v5625_v49 = vpop.eup %5624  ;;  %v3387_v6 = vmul.f32 1.442695, %v3357_v5  ;;  %v3194_v37 = vmul.f32 1.0614054, %v7640_v62 }
 0x550   : > { %v3209_v19 = vadd.f32 -1.4531521, %v3193_v15  ;;  %v3220_v46 = vmul.f32 %v7589_v63, %v3204_v34  ;;  %v5627_v41 = vpop.eup %5626  ;;  %5638 = vpow2.f32 %v3381_v56  ;;  %v3271_v55 = vadd.f32 -0.28449672, %v3255_v2 }
 0x551   : > { %v3240_v54 = vadd.f32 1.4214138, %v3224_v1  ;;  %v3235_v21 = vadd.f32 1.4214138, %v3219_v48  ;;  %v7647_v33 = vpop.eup %5628  ;;  %v3389_v58 = vmul.f32 1.442695, %v3358_v24  ;;  %5640 = vpow2.f32 %v3383_v27 }
 0x552   : > { %v3210_v31 = vadd.f32 -1.4531521, %v3194_v37  ;;  %v3225_v53 = vmul.f32 %v7637_v16, %v3209_v19  ;;  %v3236_v57 = vadd.f32 1.4214138, %v3220_v46  ;;  %v3195_v30 = vmul.f32 1.0614054, %v7647_v33 }
 0x553   : > { %v3256_v5 = vmul.f32 %v7626_v23, %v3240_v54  ;;  %v3287_v15 = vmul.f32 %v7605_v50, %v3271_v55  ;;  %v3251_v34 = vmul.f32 %v7583_v59, %v3235_v21  ;;  %5642 = vpow2.f32 %v3385_v3 }
 0x554   : > { %v3226_v56 = vmul.f32 %v7640_v62, %v3210_v31  ;;  %v3241_v1 = vadd.f32 1.4214138, %v3225_v53  ;;  %v3252_v2 = vmul.f32 %v7589_v63, %v3236_v57  ;;  %v3211_v24 = vadd.f32 -1.4531521, %v3195_v30 }
 0x555   : > { %v3272_v48 = vadd.f32 -0.28449672, %v3256_v5  ;;  %v3303_v37 = vadd.f32 0.2548296, %v3287_v15  ;;  %5644 = vpow2.f32 %v3387_v6  ;;  %v3267_v26 = vadd.f32 -0.28449672, %v3251_v34 }
 0x556   : > { %v3242_v19 = vadd.f32 1.4214138, %v3226_v56  ;;  %v3257_v46 = vmul.f32 %v7637_v16, %v3241_v1  ;;  %vm3431_vm1 = vcmp.ge.f32.partialorder %v7531_v36, 0.0  ;;  %5646 = vpow2.f32 %v3389_v58 }
 0x557   : > { %v3227_v54 = vmul.f32 %v7647_v33, %v3211_v24  ;;  %v3288_v27 = vmul.f32 %v7626_v23, %v3272_v48  ;;  %v3319_v55 = vmul.f32 %v7605_v50, %v3303_v37  ;;  %v3268_v53 = vadd.f32 -0.28449672, %v3252_v2 }
 0x558   : > { %v7661_v21 = vpop.eup %5630  ;;  %v3258_v3 = vmul.f32 %v7640_v62, %v3242_v19  ;;  %v3273_v31 = vadd.f32 -0.28449672, %v3257_v46  ;;  %v7665_v6 = vmul.f32 1.0614054, %v7615_v8  ;;  %vm3432_vm2 = vcmp.ge.f32.partialorder %v7544_v35, 0.0 }
 0x559   : > { %v7667_v57 = vpop.eup %5632  ;;  %v3196_v30 = vmul.f32 1.0614054, %v7661_v21  ;;  %v3243_v58 = vadd.f32 1.4214138, %v3227_v54  ;;  %v3304_v5 = vadd.f32 0.2548296, %v3288_v27  ;;  %v3399_v15 = vmul.f32 %v5625_v49, %v3319_v55 }
 0x55a   : > { %v5635_v34 = vpop.eup %5634  ;;  %v3197_v50 = vmul.f32 1.0614054, %v7667_v57  ;;  %v3274_v56 = vadd.f32 -0.28449672, %v3258_v3  ;;  %v3289_v1 = vmul.f32 %v7637_v16, %v3273_v31  ;;  %v3283_v2 = vmul.f32 %v7583_v59, %v3267_v26 }
 0x55b   : > { %v3212_v24 = vadd.f32 -1.4531521, %v3196_v30  ;;  %v3259_v48 = vmul.f32 %v7647_v33, %v3243_v58  ;;  %v3320_v37 = vmul.f32 %v7626_v23, %v3304_v5  ;;  %v3415_v19 = vsub.f32 1.0, %v3399_v15  ;;  %v7676_v46 = vpop.eup %5636 }
 0x55c   : > { %v3213_v54 = vadd.f32 -1.4531521, %v3197_v50  ;;  %v3290_v49 = vmul.f32 %v7640_v62, %v3274_v56  ;;  %v3305_v27 = vadd.f32 0.2548296, %v3289_v1  ;;  %v3284_v55 = vmul.f32 %v7589_v63, %v3268_v53 }
 0x55d   : > { %v3228_v3 = vmul.f32 %v7661_v21, %v3212_v24  ;;  %v3275_v14 = vadd.f32 -0.28449672, %v3259_v48  ;;  %v3198_v31 = vmul.f32 1.0614054, %v7676_v46  ;;  %v3400_v26 = vmul.f32 %v5627_v41, %v3320_v37  ;;  %v5639_v30 = vpop.eup %5638 }
 0x55e   : > { %v3229_v58 = vmul.f32 %v7667_v57, %v3213_v54  ;;  %v3447_v22 = vsub.f32 0.0, %v3415_v19  ;;  %v3306_v23 = vadd.f32 0.2548296, %v3290_v49  ;;  %v3321_v5 = vmul.f32 %v7637_v16, %v3305_v27  ;;  %v5641_v37 = vpop.eup %5640 }
 0x55f   : > { %v3244_v15 = vadd.f32 1.4214138, %v3228_v3  ;;  %v3291_v50 = vmul.f32 %v7647_v33, %v3275_v14  ;;  %v3214_v56 = vadd.f32 -1.4531521, %v3198_v31  ;;  %v3416_v1 = vsub.f32 1.0, %v3400_v26 }
 0x560   : > { %vm3433_vm3 = vcmp.ge.f32.partialorder %v7554_v61, 0.0  ;;  %v3245_v53 = vadd.f32 1.4214138, %v3229_v58  ;;  %v3463_v24 = vsel %vm3431_vm1, %v3415_v19, %v3447_v22  ;;  %v3322_v41 = vmul.f32 %v7640_v62, %v3306_v23  ;;  %v5643_v27 = vpop.eup %5642 }
 0x561   : > { %v3401_v48 = vmul.f32 %v5635_v34, %v3321_v5  ;;  %vm3434_vm4 = vcmp.ge.f32.partialorder %v7563_v39, 0.0  ;;  %v3260_v54 = vmul.f32 %v7661_v21, %v3244_v15  ;;  %v3307_v16 = vadd.f32 0.2548296, %v3291_v50 }
 0x562   : > { %v3230_v49 = vmul.f32 %v7676_v46, %v3214_v56  ;;  %v3448_v14 = vsub.f32 0.0, %v3416_v1  ;;  %vm3435_vm5 = vcmp.ge.f32.partialorder %v7571_v20, 0.0  ;;  %v3261_v3 = vmul.f32 %v7667_v57, %v3245_v53  ;;  %v5645_v19 = vpop.eup %5644 }
 0x563   : > { %v3402_v31 = vmul.f32 %v5639_v30, %v3322_v41  ;;  %v3417_v36 = vsub.f32 1.0, %v3401_v48  ;;  %v3299_v22 = vadd.f32 0.2548296, %v3283_v2  ;;  %v3276_v62 = vadd.f32 -0.28449672, %v3260_v54  ;;  %v5647_v23 = vpop.eup %5646 }
 0x564   : > { %v3323_v34 = vmul.f32 %v7647_v33, %v3307_v16  ;;  %v3246_v26 = vadd.f32 1.4214138, %v3230_v49  ;;  %v3464_v58 = vsel %vm3432_vm2, %v3416_v1, %v3448_v14  ;;  %v3277_v5 = vadd.f32 -0.28449672, %v3261_v3 }
 0x565   : > { %v3495_v15 = vadd.f32 1.0, %v3463_v24  ;;  %v3496_v50 = vadd.f32 1.0, %v3464_v58  ;;  %v3418_v56 = vsub.f32 1.0, %v3402_v31  ;;  %v3292_v17 = vmul.f32 %v7661_v21, %v3276_v62 }
 0x566   : > { %v3403_v60 = vmul.f32 %v5641_v37, %v3323_v34  ;;  %v3262_v30 = vmul.f32 %v7676_v46, %v3246_v26  ;;  %v3449_v53 = vsub.f32 0.0, %v3417_v36  ;;  %v3293_v2 = vmul.f32 %v7667_v57, %v3277_v5 }
 0x567   : > { %v3450_v41 = vsub.f32 0.0, %v3418_v56  ;;  %v3300_v48 = vadd.f32 0.2548296, %v3284_v55  ;;  %v3315_v33 = vmul.f32 %v7583_v59, %v3299_v22  ;;  %vm3427_vm6 = vcmp.ge.f32.partialorder %v7496_v29, 0.0 }
 0x568   : > { %v3308_v35 = vadd.f32 0.2548296, %v3292_v17  ;;  %v3419_v1 = vsub.f32 1.0, %v3403_v60  ;;  %v3278_v54 = vadd.f32 -0.28449672, %v3262_v30  ;;  %v7703_v24 = vmul.f32 %v3496_v50, %v7593_v32 }
 0x569   : > { %vm3436_vm7 = vcmp.ge.f32.partialorder %v7595_v10, 0.0  ;;  %v3309_v37 = vadd.f32 0.2548296, %v3293_v2  ;;  %v7707_v16 = vmul.f32 %v3495_v15, %v7576_v44  ;;  %v3190_v49 = vmul.f32 1.0614054, %v7623_v51 }
 0x56a   : > { %v3205_v55 = vadd.f32 -1.4531521, %v7665_v6  ;;  %vm3428_vm8 = vcmp.ge.f32.partialorder %v7503_v40, 0.0  ;;  %vm3437_vm9 = vcmp.ge.f32.partialorder %v7597_v4, 0.0  ;;  %v3324_v17 = vmul.f32 %v7661_v21, %v3308_v35 }
 0x56b   : > { %v3451_v60 = vsub.f32 0.0, %v3419_v1  ;;  %v3294_v59 = vmul.f32 %v7676_v46, %v3278_v54  ;;  %v3465_v32 = vsel %vm3433_vm3, %v3417_v36, %v3449_v53  ;;  %v3325_v14 = vmul.f32 %v7667_v57, %v3309_v37 }
 0x56c   : > { %v3466_v44 = vsel %vm3434_vm4, %v3418_v56, %v3450_v41  ;;  %v3316_v3 = vmul.f32 %v7589_v63, %v3300_v48  ;;  %v3395_v6 = vmul.f32 %v7585_v43, %v3315_v33  ;;  %v3404_v31 = vmul.f32 %v5643_v27, %v3324_v17 }
 0x56d   : > { %v3467_v22 = vsel %vm3435_vm5, %v3419_v1, %v3451_v60  ;;  %v3310_v21 = vadd.f32 0.2548296, %v3294_v59  ;;  %v7726_v62 = vadd.f32 %v7703_v24, %v7707_v16  ;;  %vm3438_vm10 = vcmp.ge.f32.partialorder %v7613_v0, 0.0 }
 0x56e   : > { %v3405_v61 = vmul.f32 %v5645_v19, %v3325_v14  ;;  %v3497_v57 = vadd.f32 1.0, %v3465_v32  ;;  %v3396_v39 = vmul.f32 %v7610_v7, %v3316_v3  ;;  %v3411_v36 = vsub.f32 1.0, %v3395_v6 }
 0x56f   : > { %v3420_v34 = vsub.f32 1.0, %v3404_v31  ;;  %v3326_v63 = vmul.f32 %v7676_v46, %v3310_v21  ;;  %v3498_v43 = vadd.f32 1.0, %v3466_v44  ;;  %v3206_v27 = vadd.f32 -1.4531521, %v3190_v49 }
 0x570   : > { %v3499_v26 = vadd.f32 1.0, %v3467_v22  ;;  %v3421_v20 = vsub.f32 1.0, %v3405_v61  ;;  %v3412_v58 = vsub.f32 1.0, %v3396_v39  ;;  %v3443_v5 = vsub.f32 0.0, %v3411_v36 }
 0x571   : > { %v3452_v15 = vsub.f32 0.0, %v3420_v34  ;;  %v3406_v50 = vmul.f32 %v5647_v23, %v3326_v63  ;;  %v3221_v56 = vmul.f32 %v7615_v8, %v3205_v55  ;;  %v3222_v30 = vmul.f32 %v7623_v51, %v3206_v27 }
 0x572   : > { %v3453_v19 = vsub.f32 0.0, %v3421_v20  ;;  %v7734_v53 = vmul.f32 %v3497_v57, %v7600_v52  ;;  %v3444_v7 = vsub.f32 0.0, %v3412_v58  ;;  %v3459_v46 = vsel %vm3427_vm6, %v3411_v36, %v3443_v5 }
 0x573   : > { %v3468_v2 = vsel %vm3436_vm7, %v3420_v34, %v3452_v15  ;;  %v3422_v41 = vsub.f32 1.0, %v3406_v50  ;;  %v3237_v48 = vadd.f32 1.4214138, %v3221_v56  ;;  %v3183_v33 = vmul.f32 1.0614054, %v7550_v42 }
 0x574   : > { %v3500_v23 = vadd.f32 1.0, %v3468_v2  ;;  %v3469_v35 = vsel %vm3437_vm9, %v3421_v20, %v3453_v19  ;;  %v3460_v1 = vsel %vm3428_vm8, %v3412_v58, %v3444_v7  ;;  %v3238_v52 = vadd.f32 1.4214138, %v3222_v30 }
 0x575   : > { %v7746_v54 = vmul.f32 %v3499_v26, %v7607_v47  ;;  %v3454_v29 = vsub.f32 0.0, %v3422_v41  ;;  %v3501_v37 = vadd.f32 1.0, %v3469_v35  ;;  %v7749_v10 = vmul.f32 %v3498_v43, %v7602_v28 }
 0x576   : > { %v7752_v49 = vmul.f32 %v3500_v23, %v7617_v45  ;;  %v3253_v55 = vmul.f32 %v7615_v8, %v3237_v48  ;;  %v3254_v4 = vmul.f32 %v7623_v51, %v3238_v52  ;;  %v3184_v17 = vmul.f32 1.0614054, %v7561_v25  ;;  %v9018_v52 = vld [vmem:[#allocation40_spill] sm:$0xff] }
 0x577   : > { %v3470_v40 = vsel %vm3438_vm10, %v3422_v41, %v3454_v29  ;;  %v3491_v60 = vadd.f32 1.0, %v3459_v46  ;;  %v3492_v47 = vadd.f32 1.0, %v3460_v1  ;;  %v3199_v59 = vadd.f32 -1.4531521, %v3183_v33  ;;  %v9016_v46 = vld [vmem:[#allocation46_spill] sm:$0xff]  ;;  %v9017_v41 = vld [vmem:[#allocation48_spill] sm:$0xff] }
 0x578   : > { %v3537_v32 = vadd.f32 %v7752_v49, %v7746_v54  ;;  %v3502_v28 = vadd.f32 1.0, %v3470_v40  ;;  %v3269_v14 = vadd.f32 -0.28449672, %v3253_v55  ;;  %v3270_v44 = vadd.f32 -0.28449672, %v3254_v4 }
 0x579   : > { %v7762_v45 = vmul.f32 %v3501_v37, %v7620_v13  ;;  %v3200_v3 = vadd.f32 -1.4531521, %v3184_v17  ;;  %v3215_v6 = vmul.f32 %v7550_v42, %v3199_v59  ;;  %v3185_v31 = vmul.f32 1.0614054, %v7568_v38  ;;  %v9019_v17 = vld [vmem:[#allocation42_spill] sm:$0xff]  ;;  %v9020_v59 = vld [vmem:[#allocation20_spill] sm:$0xff] }
 0x57a   : > { %3538 = vadd.xlane.f32.xlu0 %v3537_v32  ;;  %v7767_v0 = vmul.f32 %v3502_v28, %v7635_v12  ;;  %v3285_v22 = vmul.f32 %v7615_v8, %v3269_v14  ;;  %v3286_v21 = vmul.f32 %v7623_v51, %v3270_v44  ;;  %v3186_v61 = vmul.f32 1.0614054, %v7579_v9  ;;  %v9021_v44 = vld [vmem:[#allocation36_spill] sm:$0xff] }
 0x57b   : > { %v7773_v57 = vmul.f32 %v3492_v47, %v7533_v18  ;;  %v3216_v13 = vmul.f32 %v7561_v25, %v3200_v3  ;;  %v3231_v39 = vadd.f32 1.4214138, %v3215_v6  ;;  %v3201_v36 = vadd.f32 -1.4531521, %v3185_v31  ;;  %v9015_v18 = vld [vmem:[#allocation44_spill] sm:$0xff] }
 0x57c   : > { %v3540_v34 = vadd.f32 %v7767_v0, %v7762_v45  ;;  %v3301_v63 = vadd.f32 0.2548296, %v3285_v22  ;;  %v3302_v43 = vadd.f32 0.2548296, %v3286_v21  ;;  %v3202_v12 = vadd.f32 -1.4531521, %v3186_v61 }
 0x57d   : > { %v7779_v27 = vmul.f32 %v3491_v60, %v7527_v11  ;;  %v3232_v26 = vadd.f32 1.4214138, %v3216_v13  ;;  %v3247_v20 = vmul.f32 %v7550_v42, %v3231_v39  ;;  %v3217_v58 = vmul.f32 %v7568_v38, %v3201_v36  ;;  %v9022_v39 = vld [vmem:[#allocation29_spill] sm:$0xff] }
 0x57e   : > { %5648 = vpow2.f32 %v9015_v18  ;;  %3541 = vadd.xlane.f32.xlu1 %v3540_v34  ;;  %3532 = vadd.xlane.f32.xlu0 %v7726_v62  ;;  %v3317_v5 = vmul.f32 %v7615_v8, %v3301_v63  ;;  %v3318_v15 = vmul.f32 %v7623_v51, %v3302_v43  ;;  %v3218_v50 = vmul.f32 %v7579_v9, %v3202_v12 }
 0x57f   : > { %v3534_v11 = vadd.f32 %v7749_v10, %v7734_v53  ;;  %v3248_v56 = vmul.f32 %v7561_v25, %v3232_v26  ;;  %v3263_v30 = vadd.f32 -0.28449672, %v3247_v20  ;;  %v3233_v19 = vadd.f32 1.4214138, %v3217_v58 }
 0x580   : > { %v3525_v7 = vadd.f32 %v7773_v57, %v7779_v27  ;;  %v3397_v2 = vmul.f32 %v9016_v46, %v3317_v5  ;;  %v3398_v62 = vmul.f32 %v9017_v41, %v3318_v15  ;;  %v3234_v48 = vadd.f32 1.4214138, %v3218_v50 }
 0x581   : > { %v3264_v8 = vadd.f32 -0.28449672, %v3248_v56  ;;  %v3279_v51 = vmul.f32 %v7550_v42, %v3263_v30  ;;  %v3249_v33 = vmul.f32 %v7568_v38, %v3233_v19  ;;  %v3477_v29 = vmul.f32 0.5, %v9018_v52  ;;  %v9025_v56 = vld [vmem:[#allocation34_spill] sm:$0xff]  ;;  %v9029_v52 = vld [vmem:[#allocation47_spill] sm:$0xff] }
 0x582   : > { %3535 = vadd.xlane.f32.xlu1 %v3534_v11  ;;  %3526 = vadd.xlane.f32.xlu0 %v3525_v7  ;;  %v3413_v23 = vsub.f32 1.0, %v3397_v2  ;;  %v3414_v35 = vsub.f32 1.0, %v3398_v62  ;;  %v3250_v1 = vmul.f32 %v7579_v9, %v3234_v48  ;;  %vm3429_vm11 = vcmp.ge.f32.partialorder %v9019_v17, 0.0  ;;  %v9024_v11 = vld [vmem:[#allocation32_spill] sm:$0xff]  ;;  %v9026_v2 = vld [vmem:[#allocation23_spill] sm:$0xff]  ;;  %v9027_v48 = vld [vmem:[#allocation22_spill] sm:$0xff] }
 0x583   : > { %v3280_v37 = vmul.f32 %v7561_v25, %v3264_v8  ;;  %v3295_v55 = vadd.f32 0.2548296, %v3279_v51  ;;  %v3265_v4 = vadd.f32 -0.28449672, %v3249_v33  ;;  %vm3430_vm12 = vcmp.ge.f32.partialorder %v9020_v59, 0.0  ;;  %v9028_v51 = vld [vmem:[#allocation25_spill] sm:$0xff] }
 0x584   : > { %v3445_v40 = vsub.f32 0.0, %v3413_v23  ;;  %v3446_v60 = vsub.f32 0.0, %v3414_v35  ;;  %v3266_v47 = vadd.f32 -0.28449672, %v3250_v1  ;;  %v3478_v3 = vmul.f32 0.5, %v9021_v44 }
 0x585   : > { %v3296_v32 = vadd.f32 0.2548296, %v3280_v37  ;;  %v3311_v28 = vmul.f32 %v7550_v42, %v3295_v55  ;;  %v3281_v14 = vmul.f32 %v7568_v38, %v3265_v4  ;;  %v9023_v42 = vld [vmem:[#allocation45_spill] sm:$0xff]  ;;  %vm3423_vm13 = vcmp.ge.f32.partialorder %v9024_v11, 0.0 }
 0x586   : > { %v3461_v6 = vsel %vm3429_vm11, %v3413_v23, %v3445_v40  ;;  %v3462_v31 = vsel %vm3430_vm12, %v3414_v35, %v3446_v60  ;;  %v3282_v22 = vmul.f32 %v7579_v9, %v3266_v47  ;;  %vm3424_vm14 = vcmp.ge.f32.partialorder %v9026_v2, 0.0  ;;  %v9031_v40 = vld [vmem:[#allocation27_spill] sm:$0xff]  ;;  %v9032_v47 = vld [vmem:[#allocation21_spill] sm:$0xff] }
 0x587   : > { %v3493_v21 = vadd.f32 1.0, %v3461_v6  ;;  %v3494_v61 = vadd.f32 1.0, %v3462_v31  ;;  %v3312_v13 = vmul.f32 %v7561_v25, %v3296_v32  ;;  %v3391_v36 = vmul.f32 %v9022_v39, %v3311_v28  ;;  %v3552_v31 = vld [vmem:[#allocation8] sm:$0xff] }
 0x588   : > { %v3297_v34 = vadd.f32 0.2548296, %v3281_v14  ;;  %v3298_v63 = vadd.f32 0.2548296, %v3282_v22  ;;  %v3471_v8 = vmul.f32 0.5, %v9027_v48  ;;  %v3472_v33 = vmul.f32 0.5, %v9028_v51  ;;  %5342 = vmatprep.mubr.msk.f32.mxu0 %vm732_vm0, %v3552_v31 }
 0x589   : > { %v7808_v43 = vmul.f32 %v3493_v21, %v3477_v29  ;;  %v7810_v12 = vmul.f32 %v3494_v61, %v3478_v3  ;;  %v3392_v26 = vmul.f32 %v9023_v42, %v3312_v13  ;;  %v3407_v20 = vsub.f32 1.0, %v3391_v36  ;;  %v9030_v29 = vld [vmem:[#allocation41_spill] sm:$0xff]  ;;  %v7842_v22 = vld [vmem:[%s8800_s8 + $0x38] sm:$0xff]  ;;  %v7848_v21 = vld [vmem:[%s8800_s8 + $0x30] sm:$0xff] }
 0x58a   : > { %v3313_v58 = vmul.f32 %v7568_v38, %v3297_v34  ;;  %v3314_v18 = vmul.f32 %v7579_v9, %v3298_v63  ;;  %vm3425_vm15 = vcmp.ge.f32.partialorder %v9029_v52, 0.0  ;;  %vm3426_vm1 = vcmp.ge.f32.partialorder %v9030_v29, 0.0  ;;  %v7854_v61 = vld [vmem:[%s8800_s8 + $0x28] sm:$0xff]  ;;  %v7860_v13 = vld [vmem:[%s8800_s8 + $0x18] sm:$0xff]  ;;  %v7866_v39 = vld [vmem:[%s8800_s8 + $0x20] sm:$0xff] }
 0x58b   : > { %v5649_v5 = vpop.eup %5648  ;;  %v3528_v15 = vadd.f32 %v7810_v12, %v7808_v43  ;;  %v3408_v25 = vsub.f32 1.0, %v3392_v26  ;;  %v3439_v50 = vsub.f32 0.0, %v3407_v20  ;;  %v3473_v60 = vmul.f32 0.5, %v9031_v40  ;;  %v7872_v36 = vld [vmem:[%s8800_s8 + $0x8] sm:$0xff]  ;;  %v7878_v34 = vld [vmem:[%s8800_s8 + $0x10] sm:$0xff]  ;;  %v7884_v63 = vld [vmem:[%s8800_s8] sm:$0xff] }
 0x58c   : > { %v3393_v30 = vmul.f32 %v9025_v56, %v3313_v58  ;;  %v3394_v19 = vmul.f32 %v5649_v5, %v3314_v18  ;;  %v3474_v59 = vmul.f32 0.5, %v9032_v47  ;;  %v3557_v48 = vld [vmem:[#allocation8 + $0x28] sm:$0xff]  ;;  %v3559_v51 = vld [vmem:[#allocation8 + $0x38] sm:$0xff] }
 0x58d   : > { %3529 = vadd.xlane.f32.xlu1 %v3528_v15  ;;  %v3440_v7 = vsub.f32 0.0, %v3408_v25  ;;  %v3455_v46 = vsel %vm3423_vm13, %v3407_v20, %v3439_v50 }
 0x58e   : > { %v3487_v41 = vadd.f32 1.0, %v3455_v46  ;;  %v3409_v38 = vsub.f32 1.0, %v3393_v30  ;;  %v3410_v62 = vsub.f32 1.0, %v3394_v19 }
 0x58f   : > { %v3456_v9 = vsel %vm3424_vm14, %v3408_v25, %v3440_v7 }
 0x590   : > { %v3488_v23 = vadd.f32 1.0, %v3456_v9  ;;  %v3441_v35 = vsub.f32 0.0, %v3409_v38  ;;  %v3442_v1 = vsub.f32 0.0, %v3410_v62  ;;  %v7824_v37 = vmul.f32 %v3487_v41, %v3471_v8  ;;  %v3553_v41 = vld [vmem:[#allocation8 + $0x8] sm:$0xff]  ;;  %v3556_v9 = vld [vmem:[#allocation8 + $0x20] sm:$0xff]  ;;  %v3558_v8 = vld [vmem:[#allocation8 + $0x30] sm:$0xff] }
 0x592   : > { %v7826_v55 = vmul.f32 %v3488_v23, %v3472_v33  ;;  %v3457_v4 = vsel %vm3425_vm15, %v3409_v38, %v3441_v35  ;;  %v3458_v17 = vsel %vm3426_vm1, %v3410_v62, %v3442_v1  ;;  %v3554_v38 = vld [vmem:[#allocation8 + $0x10] sm:$0xff]  ;;  %v3555_v62 = vld [vmem:[#allocation8 + $0x18] sm:$0xff]  ;;  %v9033_v33 = vmov 0.0  }
 0x593   : > { %v3489_v32 = vadd.f32 1.0, %v3457_v4  ;;  %v3490_v28 = vadd.f32 1.0, %v3458_v17 }
 0x594   : > { %v3519_v14 = vadd.f32 %v7826_v55, %v7824_v37 }
 0x595   : > { %v7832_v44 = vmul.f32 %v3489_v32, %v3473_v60  ;;  %v7834_v3 = vmul.f32 %v3490_v28, %v3474_v59 }
 0x596   : > { %3520 = vadd.xlane.f32.xlu0 %v3519_v14 }
 0x597   : > { %v3522_v6 = vadd.f32 %v7834_v3, %v7832_v44 }
 0x599   : > { %3523 = vadd.xlane.f32.xlu1 %v3522_v6 }
 0x5aa   : > { %3574 = vrot.lane.b32.xlu1 %v7842_v22, %s6043_s17 }
 0x5ac   : > { %3572 = vrot.lane.b32.xlu0 %v7848_v21, %s6043_s17 }
 0x5ae   : > { %3570 = vrot.lane.b32.xlu1 %v7854_v61, %s6043_s17 }
 0x5b0   : > { %3566 = vrot.lane.b32.xlu0 %v7860_v13, %s6043_s17 }
 0x5b2   : > { %3568 = vrot.lane.b32.xlu1 %v7866_v39, %s6043_s17 }
 0x5b4   : > { %3562 = vrot.lane.b32.xlu0 %v7872_v36, %s6043_s17 }
 0x5b6   : > { %3564 = vrot.lane.b32.xlu1 %v7878_v34, %s6043_s17 }
 0x5ba   : > { %3560 = vrot.lane.b32.xlu1 %v7884_v63, %s6043_s17 }
 0x603   : > { %v3539_v42 = vpop.xlane.xlu0 %3538 }
 0x604   : > { %v3550_v58 = vmul.f32 0.00390625, %v3539_v42 }
 0x607   : > { %v3542_v26 = vpop.xlane.xlu1 %3541  ;;  %v3533_v18 = vpop.xlane.xlu0 %3532 }
 0x608   : > { %v3551_v20 = vmul.f32 0.00390625, %v3542_v26  ;;  %v3548_v25 = vmul.f32 0.00390625, %v3533_v18 }
 0x60a   : > { %5326 = vmatprep.subr.mxu0 %v3551_v20 }
 0x60b   : > { %5327 = vmatpush3.msra.mxu0 %v3551_v20  ;;  %v3536_v5 = vpop.xlane.xlu1 %3535  ;;  %v3527_v50 = vpop.xlane.xlu0 %3526 }
 0x60c   : > { %v3549_v15 = vmul.f32 0.00390625, %v3536_v5  ;;  %5328 = vmatprep.subr.mxu0 %v3550_v58  ;;  %v3546_v30 = vmul.f32 0.00390625, %v3527_v50  ;;  %v9034_v50 = vmov 4  }
 0x60d   : > { %5329 = vmatpush3.msra.mxu0 %v3550_v58 }
 0x60e   : > { %5330 = vmatprep.subr.mxu0 %v3549_v15 }
 0x60f   : > { %5331 = vmatpush3.msra.mxu0 %v3549_v15 }
 0x610   : > { %5332 = vmatprep.subr.mxu0 %v3548_v25 }
 0x611   : > { %5333 = vmatpush3.msra.mxu0 %v3548_v25 }
 0x616   : > { %v3530_v11 = vpop.xlane.xlu1 %3529 }
 0x617   : > { %v3547_v56 = vmul.f32 0.00390625, %v3530_v11  ;;  %v9035_v11 = vmov 6  }
 0x619   : > { %5334 = vmatprep.subr.mxu0 %v3547_v56 }
 0x61a   : > { %5335 = vmatpush3.msra.mxu0 %v3547_v56  ;;  %v9036_v56 = vmov 7  }
 0x61b   : > { %5336 = vmatprep.subr.mxu0 %v3546_v30 }
 0x61c   : > { %5337 = vmatpush3.msra.mxu0 %v3546_v30 }
 0x61f   : > { %v3521_v19 = vpop.xlane.xlu0 %3520 }
 0x620   : > { %v3544_v2 = vmul.f32 0.00390625, %v3521_v19 }
 0x622   : > { %v3524_v7 = vpop.xlane.xlu1 %3523 }
 0x623   : > { %v3545_v46 = vmul.f32 0.00390625, %v3524_v7  ;;  %v3573_v47 = vpop.permute.xlu0 %3572 }
 0x625   : > { %5338 = vmatprep.subr.mxu0 %v3545_v46 }
 0x626   : > { %5339 = vmatpush3.msra.mxu0 %v3545_v46  ;;  %v3575_v23 = vpop.permute.xlu1 %3574 }
 0x627   : > { %5340 = vmatprep.subr.mxu0 %v3544_v2  ;;  %v3567_v42 = vpop.permute.xlu0 %3566 }
 0x628   : > { %5341 = vmatpush3.msra.mxu0 %v3544_v2 }
 0x629   : > { %5343 = vmatmul.mubr.msk.f32.vlgmr.msra.gmra.mxu0 %vm732_vm0, %v3553_v41 }
 0x62a   : > { %5345 = vmatprep.mubr.msk.f32.mxu0 %vm732_vm0, %v3554_v38  ;;  %v3571_v52 = vpop.permute.xlu1 %3570 }
 0x62b   : > { %v3563_v5 = vpop.permute.xlu0 %3562 }
 0x62d   : > { %5346 = vmatmul.mubr.msk.f32.gmra.mxu0 %vm732_vm0, %v3555_v62 }
 0x62e   : > { %5348 = vmatprep.mubr.msk.f32.mxu0 %vm732_vm0, %v3556_v9  ;;  %v3569_v40 = vpop.permute.xlu1 %3568 }
 0x631   : > { %5349 = vmatmul.mubr.msk.f32.gmra.mxu0 %vm732_vm0, %v3557_v48 }
 0x632   : > { %5351 = vmatprep.mubr.msk.f32.mxu0 %vm732_vm0, %v3558_v8  ;;  %v3565_v6 = vpop.permute.xlu1 %3564 }
 0x635   : > { %5352 = vmatmul.mubr.msk.f32.gmra.mxu0 %vm732_vm0, %v3559_v51 }
 0x636   : > { %3897 = vmatprep.mubr.f32.mxu0 %v9033_v33  ;;  %v3561_v58 = vpop.permute.xlu1 %3560 }
 0x6e9   : > { %v5344_v35 = vpop.f32.mrf.mxu0 }
 0x6ea   : > { %v3680_v25 = vadd.f32 %v5344_v35, %v3563_v5 }
 0x6eb   : > { %v3674_v1 = vpop.f32.mrf.mxu0 }
 0x6ec   : > { %v3675_v15 = vadd.f32 %v3674_v1, %v3561_v58  ;;  %v3769_v1 = vld [vmem:[#allocation10] sm:$0xff] }
 0x6ed   : > { %v5347_v29 = vpop.f32.mrf.mxu0 }
 0x6ee   : > { %v3690_v18 = vadd.f32 %v5347_v29, %v3567_v42 }
 0x6ef   : > { %v3684_v4 = vpop.f32.mrf.mxu0 }
 0x6f0   : > { %v3685_v20 = vadd.f32 %v3684_v4, %v3565_v6 }
 0x6f1   : > { %v5350_v17 = vpop.f32.mrf.mxu0 }
 0x6f2   : > { %v3700_v26 = vadd.f32 %v5350_v17, %v3571_v52  ;;  %v3776_v52 = vld [vmem:[#allocation10 + $0x38] sm:$0xff] }
 0x6f3   : > { %v3694_v60 = vpop.f32.mrf.mxu0 }
 0x6f4   : > { %v3695_v31 = vadd.f32 %v3694_v60, %v3569_v40 }
 0x6f5   : > { %v5353_v59 = vpop.f32.mrf.mxu0 }
 0x6f6   : > { %v3710_v32 = vadd.f32 %v5353_v59, %v3575_v23 }
 0x6f7   : > { %v3704_v28 = vpop.f32.mrf.mxu0 }
 0x6f8   : > { %v3705_v14 = vadd.f32 %v3704_v28, %v3573_v47  ;;  %3750 = vperm.xlu0 %5554, %v3710_v32  }
 0x6fa   : > { %3745 = vperm.xlu1 %5555, %v3705_v14  }
 0x6fc   : > { %3735 = vperm.xlu0 %5554, %v3695_v31  }
 0x6fe   : > { %3740 = vperm.xlu1 %5555, %v3700_v26  }
 0x700   : > { %3725 = vperm.xlu0 %5554, %v3685_v20  }
 0x702   : > { %3730 = vperm.xlu1 %5555, %v3690_v18  }
 0x704   : > { %3715 = vperm.xlu0 %5554, %v3675_v15  }
 0x706   : > { %3720 = vperm.xlu1 %5555, %v3680_v25   ;;  %v5734_v25 = vld [vmem:[%s6296_s19] sm:$0xff] }
 0x708   : > { %5557 = vset.pattern.permute.xlu0 %v9034_v50 }
 0x709   : > { %3782 = vperm.xlu0 %5557, %v7872_v36  }
 0x70a   : > { %5556 = vset.pattern.permute.xlu1 %v9034_v50 }
 0x70b   : > { %3778 = vperm.xlu1 %5556, %v7884_v63  }
 0x70d   : > { %3794 = vperm.xlu0 %5557, %v7866_v39  }
 0x70f   : > { %3786 = vperm.xlu1 %5556, %v7878_v34  }
 0x711   : > { %5561 = vset.pattern.permute.xlu0 %v9035_v11 }
 0x712   : > { %3951 = vperm.xlu0 %5561, %v7872_v36  }
 0x713   : > { %5558 = vset.pattern.permute.xlu1 %v9035_v11 }
 0x714   : > { %3947 = vperm.xlu1 %5558, %v7884_v63  }
 0x716   : > { %3963 = vperm.xlu0 %5561, %v7866_v39  }
 0x718   : > { %5559 = vset.pattern.permute.xlu1 %v9034_v50 }
 0x719   : > { %3790 = vperm.xlu1 %5559, %v7860_v13  }
 0x71a   : > { %5564 = vset.pattern.permute.xlu0 %v9034_v50 }
 0x71b   : > { %3806 = vperm.xlu0 %5564, %v7842_v22  }
 0x71d   : > { %5560 = vset.pattern.permute.xlu1 %v9035_v11 }
 0x71e   : > { %3955 = vperm.xlu1 %5560, %v7878_v34  }
 0x71f   : > { %5566 = vset.pattern.permute.xlu0 %v9036_v56 }
 0x722   : > { %3959 = vperm.xlu1 %5560, %v7860_v13  }
 0x726   : > { %5562 = vset.pattern.permute.xlu1 %v9034_v50 }
 0x727   : > { %3798 = vperm.xlu1 %5562, %v7854_v61  }
 0x72b   : > { %3802 = vperm.xlu1 %5562, %v7848_v21  }
 0x72f   : > { %5563 = vset.pattern.permute.xlu1 %v9035_v11  ;;  %v5735_v11 = vld [vmem:[%s6296_s19 + $0x8] sm:$0xff] }
 0x730   : > { %3967 = vperm.xlu1 %5563, %v7854_v61  }
 0x734   : > { %3971 = vperm.xlu1 %5563, %v7848_v21  }
 0x738   : > { %3975 = vperm.xlu1 %5563, %v7842_v22  }
 0x73c   : > { %5565 = vset.pattern.permute.xlu1 %v9036_v56 }
 0x773   : > { %v3751_v30 = vpop.permute.xlu0 %3750 }
 0x774   : > { %v3767_v19 = vmul.f32 %v3751_v30, %v7762_v45  ;;  %v3768_v7 = vmul.f32 %v3751_v30, %v7767_v0 }
 0x775   : > { %v3746_v46 = vpop.permute.xlu1 %3745 }
 0x776   : > { %v3765_v2 = vmul.f32 %v3746_v46, %v7746_v54  ;;  %v3766_v41 = vmul.f32 %v3746_v46, %v7752_v49  ;;  %3849 = vmatprep.subr.mxu0 %v3768_v7 }
 0x777   : > { %3850 = vmatpush1.msra.mxu0 %v3767_v19  ;;  %v3736_v38 = vpop.permute.xlu0 %3735 }
 0x778   : > { %3851 = vmatprep.subr.mxu0 %v3766_v41  ;;  %v3762_v45 = vmul.f32 %v3736_v38, %v7703_v24  ;;  %v3761_v0 = vmul.f32 %v3736_v38, %v7707_v16 }
 0x779   : > { %v3741_v62 = vpop.permute.xlu1 %3740  ;;  %3852 = vmatpush1.msra.mxu0 %v3765_v2 }
 0x77a   : > { %v3763_v9 = vmul.f32 %v3741_v62, %v7734_v53  ;;  %v3764_v48 = vmul.f32 %v3741_v62, %v7749_v10 }
 0x77b   : > { %v3726_v8 = vpop.permute.xlu0 %3725 }
 0x77c   : > { %3853 = vmatprep.subr.mxu0 %v3764_v48  ;;  %v3758_v23 = vmul.f32 %v3726_v8, %v7773_v57  ;;  %v3757_v53 = vmul.f32 %v3726_v8, %v7779_v27  ;;  %v3770_v57 = vld [vmem:[#allocation10 + $0x8] sm:$0xff]  ;;  %v3771_v27 = vld [vmem:[#allocation10 + $0x10] sm:$0xff]  ;;  %v5737_v8 = vld [vmem:[%s6296_s19 + $0x18] sm:$0xff] }
 0x77d   : > { %v3731_v51 = vpop.permute.xlu1 %3730  ;;  %3854 = vmatpush1.msra.mxu0 %v3763_v9  ;;  %v5736_v9 = vld [vmem:[%s6296_s19 + $0x10] sm:$0xff] }
 0x77e   : > { %v3759_v54 = vmul.f32 %v3731_v51, %v7808_v43  ;;  %v3760_v49 = vmul.f32 %v3731_v51, %v7810_v12  ;;  %3855 = vmatprep.subr.mxu0 %v3762_v45 }
 0x77f   : > { %3856 = vmatpush1.msra.mxu0 %v3761_v0  ;;  %v3716_v10 = vpop.permute.xlu0 %3715 }
 0x780   : > { %3857 = vmatprep.subr.mxu0 %v3760_v49  ;;  %v3754_v43 = vmul.f32 %v3716_v10, %v7826_v55  ;;  %v3753_v12 = vmul.f32 %v3716_v10, %v7824_v37  ;;  %v3772_v55 = vld [vmem:[#allocation10 + $0x18] sm:$0xff]  ;;  %v3773_v37 = vld [vmem:[#allocation10 + $0x20] sm:$0xff] }
 0x781   : > { %v3721_v35 = vpop.permute.xlu1 %3720  ;;  %3858 = vmatpush1.msra.mxu0 %v3759_v54 }
 0x782   : > { %v3755_v24 = vmul.f32 %v3721_v35, %v7832_v44  ;;  %v3756_v16 = vmul.f32 %v3721_v35, %v7834_v3  ;;  %3859 = vmatprep.subr.mxu0 %v3758_v23  ;;  %v3774_v44 = vld [vmem:[#allocation10 + $0x28] sm:$0xff]  ;;  %v3775_v3 = vld [vmem:[#allocation10 + $0x30] sm:$0xff] }
 0x783   : > { %3860 = vmatpush1.msra.mxu0 %v3757_v53 }
 0x784   : > { %3861 = vmatprep.subr.mxu0 %v3756_v16  ;;  %v3783_v60 = vpop.permute.xlu0 %3782 }
 0x785   : > { %3862 = vmatpush1.msra.mxu0 %v3755_v24  ;;  %v5738_v24 = vld [vmem:[%s6296_s19 + $0x20] sm:$0xff] }
 0x786   : > { %3863 = vmatprep.subr.mxu0 %v3754_v43  ;;  %v3779_v29 = vpop.permute.xlu1 %3778  ;;  %v5739_v43 = vld [vmem:[%s6296_s19 + $0x28] sm:$0xff] }
 0x787   : > { %3864 = vmatpush1.msra.mxu0 %v3753_v12 }
 0x788   : > { %5279 = vmatmul.mubr.msk.f32.vlgmr.msra.gmra.mxu0 %vm732_vm0, %v3769_v1  ;;  %v3795_v59 = vpop.permute.xlu0 %3794 }
 0x789   : > { %3903 = vmatprep.mubr.f32.mxu0 %v9033_v33 }
 0x78a   : > { %v3787_v4 = vpop.permute.xlu1 %3786 }
 0x78c   : > { %5280 = vmatmul.mubr.msk.f32.gmra.mxu0 %vm732_vm0, %v3770_v57 }
 0x78d   : > { %3909 = vmatprep.mubr.f32.mxu0 %v9033_v33  ;;  %v3952_v20 = vpop.permute.xlu0 %3951 }
 0x78f   : > { %v3948_v17 = vpop.permute.xlu1 %3947 }
 0x790   : > { %5281 = vmatmul.mubr.msk.f32.gmra.mxu0 %vm732_vm0, %v3771_v27 }
 0x791   : > { %3915 = vmatprep.mubr.f32.mxu0 %v9033_v33 }
 0x794   : > { %5282 = vmatmul.mubr.msk.f32.gmra.mxu0 %vm732_vm0, %v3772_v55  ;;  %v3791_v40 = vpop.permute.xlu1 %3790  ;;  %v3964_v55 = vpop.permute.xlu0 %3963 }
 0x795   : > { %3921 = vmatprep.mubr.f32.mxu0 %v9033_v33 }
 0x798   : > { %5283 = vmatmul.mubr.msk.f32.gmra.mxu0 %vm732_vm0, %v3773_v37 }
 0x799   : > { %3927 = vmatprep.mubr.f32.mxu0 %v9033_v33  ;;  %v3956_v47 = vpop.permute.xlu1 %3955 }
 0x79c   : > { %5284 = vmatmul.mubr.msk.f32.gmra.mxu0 %vm732_vm0, %v3774_v44 }
 0x79d   : > { %3933 = vmatprep.mubr.f32.mxu0 %v9033_v33  ;;  %v3960_v28 = vpop.permute.xlu1 %3959 }
 0x7a0   : > { %5285 = vmatmul.mubr.msk.f32.gmra.mxu0 %vm732_vm0, %v3775_v3 }
 0x7a1   : > { %3939 = vmatprep.mubr.f32.mxu0 %v9033_v33 }
 0x7a2   : > { %v3799_v15 = vpop.permute.xlu1 %3798 }
 0x7a4   : > { %5286 = vmatmul.mubr.msk.f32.gmra.mxu0 %vm732_vm0, %v3776_v52 }
 0x7a5   : > { %4360 = vmatprep.mubr.f32.mxu0 %v9033_v33 }
 0x7a6   : > { %v3803_v54 = vpop.permute.xlu1 %3802 }
 0x7ab   : > { %v3968_v52 = vpop.permute.xlu1 %3967 }
 0x848   : > { %v3899_v32 = vpop.f32.mrf.mxu0 }
 0x849   : > { %v3900_v14 = vadd.f32 %v3899_v32, %v3779_v29 }
 0x84a   : > { %v3901_v6 = vpop.f32.mrf.mxu0 }
 0x84b   : > { %v3978_v31 = vmul.f32 %v3948_v17, %v3900_v14  ;;  %v3902_v42 = vadd.f32 %v3901_v6, %v3779_v29 }
 0x84c   : > { %v3905_v26 = vpop.f32.mrf.mxu0 }
 0x84d   : > { %v3979_v58 = vmul.f32 %v3948_v17, %v3902_v42  ;;  %v3906_v18 = vadd.f32 %v3905_v26, %v3783_v60  ;;  %v7955_v50 = vadd.f32 %v5734_v25, %v3978_v31  ;;  %v5742_v26 = vld [vmem:[%s6296_s19 + $0x40] sm:$0xff] }
 0x84e   : > { %v3907_v5 = vpop.f32.mrf.mxu0 }
 0x84f   : > { %9037 = vst [vmem:[#allocation49_spill] sm:$0xff] %v7955_v50  ;;  %v7958_v30 = vadd.f32 %v5735_v11, %v3979_v58  ;;  %v3908_v19 = vadd.f32 %v3907_v5, %v3783_v60  ;;  %v3980_v7 = vmul.f32 %v3952_v20, %v3906_v18  ;;  %v5741_v60 = vld [vmem:[%s6296_s19 + $0x38] sm:$0xff]  ;;  %v5743_v58 = vld [vmem:[%s6296_s19 + $0x48] sm:$0xff] }
 0x850   : > { %v3911_v46 = vpop.f32.mrf.mxu0 }
 0x851   : > { %9038 = vst [vmem:[#allocation43_spill] sm:$0xff] %v7958_v30  ;;  %v3981_v2 = vmul.f32 %v3952_v20, %v3908_v19  ;;  %v3912_v41 = vadd.f32 %v3911_v46, %v3787_v4  ;;  %v4010_v38 = vadd.f32 %v7958_v30, %v7955_v50  ;;  %v7963_v48 = vadd.f32 %v5736_v9, %v3980_v7  ;;  %v5745_v9 = vld [vmem:[%s6296_s19 + $0x58] sm:$0xff] }
 0x852   : > { %v3913_v62 = vpop.f32.mrf.mxu0 }
 0x853   : > { %9039 = vst [vmem:[#allocation50_spill] sm:$0xff] %v7963_v48  ;;  %v7966_v45 = vadd.f32 %v5737_v8, %v3981_v2  ;;  %v3982_v0 = vmul.f32 %v3956_v47, %v3912_v41  ;;  %v3914_v51 = vadd.f32 %v3913_v62, %v3787_v4  ;;  %4011 = vadd.xlane.f32.xlu0 %v4010_v38  ;;  %v5740_v4 = vld [vmem:[%s6296_s19 + $0x30] sm:$0xff]  ;;  %v3807_v41 = vpop.permute.xlu0 %3806 }
 0x854   : > { %v3917_v49 = vpop.f32.mrf.mxu0  ;;  %v5744_v38 = vld [vmem:[%s6296_s19 + $0x50] sm:$0xff] }
 0x855   : > { %9040 = vst [vmem:[#allocation31_spill] sm:$0xff] %v7966_v45  ;;  %v3983_v23 = vmul.f32 %v3956_v47, %v3914_v51  ;;  %v3918_v53 = vadd.f32 %v3917_v49, %v3791_v40  ;;  %v4013_v10 = vadd.f32 %v7966_v45, %v7963_v48  ;;  %v7971_v16 = vadd.f32 %v5738_v24, %v3982_v0  ;;  %v5746_v24 = vld [vmem:[%s6296_s19 + $0x60] sm:$0xff] }
 0x856   : > { %v3919_v35 = vpop.f32.mrf.mxu0 }
 0x857   : > { %9041 = vst [vmem:[#allocation39_spill] sm:$0xff] %v7971_v16  ;;  %v7974_v12 = vadd.f32 %v5739_v43, %v3983_v23  ;;  %v3984_v1 = vmul.f32 %v3960_v28, %v3918_v53  ;;  %v3920_v57 = vadd.f32 %v3919_v35, %v3791_v40  ;;  %4014 = vadd.xlane.f32.xlu1 %v4013_v10 }
 0x858   : > { %v3923_v27 = vpop.f32.mrf.mxu0 }
 0x859   : > { %9042 = vst [vmem:[#allocation35_spill] sm:$0xff] %v7974_v12  ;;  %v3985_v37 = vmul.f32 %v3960_v28, %v3920_v57  ;;  %v3924_v44 = vadd.f32 %v3923_v27, %v3795_v59  ;;  %v4016_v3 = vadd.f32 %v7974_v12, %v7971_v16  ;;  %v7979_v17 = vadd.f32 %v5740_v4, %v3984_v1  ;;  %v5747_v1 = vld [vmem:[%s6296_s19 + $0x68] sm:$0xff] }
 0x85a   : > { %v3925_v29 = vpop.f32.mrf.mxu0 }
 0x85b   : > { %9043 = vst [vmem:[#allocation28_spill] sm:$0xff] %v7979_v17  ;;  %v7982_v47 = vadd.f32 %v5741_v60, %v3985_v37  ;;  %v3926_v32 = vadd.f32 %v3925_v29, %v3795_v59  ;;  %v3986_v40 = vmul.f32 %v3964_v55, %v3924_v44  ;;  %4017 = vadd.xlane.f32.xlu0 %v4016_v3  ;;  %v3972_v59 = vpop.permute.xlu1 %3971  ;;  %v5748_v44 = vld [vmem:[%s6296_s19 + $0x70] sm:$0xff] }
 0x85c   : > { %v3929_v14 = vpop.f32.mrf.mxu0 }
 0x85d   : > { %9044 = vst [vmem:[#allocation33_spill] sm:$0xff] %v7982_v47  ;;  %v3987_v6 = vmul.f32 %v3964_v55, %v3926_v32  ;;  %v3930_v28 = vadd.f32 %v3929_v14, %v3799_v15  ;;  %v4019_v31 = vadd.f32 %v7982_v47, %v7979_v17  ;;  %v7987_v20 = vadd.f32 %v5742_v26, %v3986_v40 }
 0x85e   : > { %v3931_v42 = vpop.f32.mrf.mxu0 }
 0x85f   : > { %9045 = vst [vmem:[#allocation24_spill] sm:$0xff] %v7987_v20  ;;  %v7990_v18 = vadd.f32 %v5743_v58, %v3987_v6  ;;  %v3988_v5 = vmul.f32 %v3968_v52, %v3930_v28  ;;  %v3932_v25 = vadd.f32 %v3931_v42, %v3799_v15  ;;  %4020 = vadd.xlane.f32.xlu0 %v4019_v31  ;;  %v3976_v10 = vpop.permute.xlu1 %3975 }
 0x860   : > { %v3935_v11 = vpop.f32.mrf.mxu0 }
 0x861   : > { %9046 = vst [vmem:[#allocation38_spill] sm:$0xff] %v7990_v18  ;;  %v3989_v19 = vmul.f32 %v3968_v52, %v3932_v25  ;;  %v3936_v7 = vadd.f32 %v3935_v11, %v3803_v54  ;;  %v4022_v46 = vadd.f32 %v7990_v18, %v7987_v20  ;;  %v7995_v62 = vadd.f32 %v5744_v38, %v3988_v5  ;;  %v5749_v52 = vld [vmem:[%s6296_s19 + $0x78] sm:$0xff] }
 0x862   : > { %v3937_v2 = vpop.f32.mrf.mxu0 }
 0x863   : > { %9047 = vst [vmem:[#allocation26_spill] sm:$0xff] %v7995_v62  ;;  %v7998_v8 = vadd.f32 %v5745_v9, %v3989_v19  ;;  %v3990_v0 = vmul.f32 %v3972_v59, %v3936_v7  ;;  %v3938_v15 = vadd.f32 %v3937_v2, %v3803_v54  ;;  %4023 = vadd.xlane.f32.xlu1 %v4022_v46 }
 0x864   : > { %v3941_v51 = vpop.f32.mrf.mxu0 }
 0x865   : > { %9048 = vst [vmem:[#allocation37_spill] sm:$0xff] %v7998_v8  ;;  %v3991_v49 = vmul.f32 %v3972_v59, %v3938_v15  ;;  %v3942_v23 = vadd.f32 %v3941_v51, %v3807_v41  ;;  %v4025_v53 = vadd.f32 %v7998_v8, %v7995_v62  ;;  %v8003_v43 = vadd.f32 %v5746_v24, %v3990_v0 }
 0x866   : > { %v3943_v35 = vpop.f32.mrf.mxu0 }
 0x867   : > { %9049 = vst [vmem:[#allocation30_spill] sm:$0xff] %v8003_v43  ;;  %v8006_v57 = vadd.f32 %v5747_v1, %v3991_v49  ;;  %v3992_v27 = vmul.f32 %v3976_v10, %v3942_v23  ;;  %v3944_v55 = vadd.f32 %v3943_v35, %v3807_v41  ;;  %4026 = vadd.xlane.f32.xlu0 %v4025_v53 }
 0x869   : > { %9050 = vst [vmem:[#allocation44_spill] sm:$0xff] %v8006_v57  ;;  %v3993_v54 = vmul.f32 %v3976_v10, %v3944_v55  ;;  %v4028_v37 = vadd.f32 %v8006_v57, %v8003_v43  ;;  %v8011_v3 = vadd.f32 %v5748_v44, %v3992_v27 }
 0x86b   : > { %9051 = vst [vmem:[#allocation46_spill] sm:$0xff] %v8011_v3  ;;  %v8014_v29 = vadd.f32 %v5749_v52, %v3993_v54  ;;  %4029 = vadd.xlane.f32.xlu1 %v4028_v37 }
 0x86d   : > { %9052 = vst [vmem:[#allocation48_spill] sm:$0xff] %v8014_v29  ;;  %v4031_v4 = vadd.f32 %v8014_v29, %v8011_v3 }
 0x86f   : > { %4032 = vadd.xlane.f32.xlu0 %v4031_v4 }
 0x8dc   : > { %v4012_v60 = vpop.xlane.xlu0 %4011 }
 0x8e0   : > { %v4015_v40 = vpop.xlane.xlu1 %4014 }
 0x8e1   : > { %v4034_v14 = vadd.f32 %v4015_v40, %v4012_v60 }
 0x8e4   : > { %v4018_v32 = vpop.xlane.xlu0 %4017 }
 0x8e5   : > { %v4035_v28 = vadd.f32 %v4034_v14, %v4018_v32 }
 0x8e8   : > { %v4021_v6 = vpop.xlane.xlu0 %4020 }
 0x8e9   : > { %v4036_v42 = vadd.f32 %v4035_v28, %v4021_v6 }
 0x8ec   : > { %v4024_v31 = vpop.xlane.xlu1 %4023 }
 0x8ed   : > { %v4037_v58 = vadd.f32 %v4036_v42, %v4024_v31 }
 0x8f0   : > { %v4027_v26 = vpop.xlane.xlu0 %4026 }
 0x8f1   : > { %v4038_v25 = vadd.f32 %v4037_v58, %v4027_v26 }
 0x8f4   : > { %v4030_v5 = vpop.xlane.xlu1 %4029 }
 0x8f5   : > { %v4039_v59 = vadd.f32 %v4038_v25, %v4030_v5 }
 0x8f8   : > { %v4033_v11 = vpop.xlane.xlu0 %4032 }
 0x8f9   : > { %v4040_v19 = vadd.f32 %v4039_v59, %v4033_v11 }
 0x8fb   : > { %v4041_v7 = vrot.slane %v4040_v19, 4 }
 0x8fd   : > { %v4042_v46 = vadd.f32 %v4041_v7, %v4040_v19 }
 0x8ff   : > { %v4043_v2 = vrot.slane %v4042_v46, 2 }
 0x901   : > { %v4044_v41 = vadd.f32 %v4043_v2, %v4042_v46 }
 0x903   : > { %v4045_v38 = vrot.slane %v4044_v41, 1 }
 0x905   : > { %v4046_v9 = vadd.f32 %v4045_v38, %v4044_v41 }
 0x907   : > { %v4047_v0 = vmul.f32 6.1035156e-05, %v4046_v9 }
 0x909   : > { %v8019_v15 = vsub.f32 %v7963_v48, %v4047_v0  ;;  %v8022_v51 = vsub.f32 %v7966_v45, %v4047_v0  ;;  %v8025_v49 = vsub.f32 %v7955_v50, %v4047_v0  ;;  %v8028_v23 = vsub.f32 %v7958_v30, %v4047_v0 }
 0x90a   : > { %v8031_v53 = vsub.f32 %v7979_v17, %v4047_v0  ;;  %v8034_v10 = vsub.f32 %v7982_v47, %v4047_v0  ;;  %v8037_v35 = vsub.f32 %v7971_v16, %v4047_v0  ;;  %v8040_v24 = vsub.f32 %v7974_v12, %v4047_v0 }
 0x90b   : > { %v4066_v1 = vmul.f32 %v8019_v15, %v8019_v15  ;;  %v4067_v27 = vmul.f32 %v8022_v51, %v8022_v51  ;;  %v4064_v55 = vmul.f32 %v8025_v49, %v8025_v49  ;;  %v4065_v54 = vmul.f32 %v8028_v23, %v8028_v23 }
 0x90c   : > { %v4070_v37 = vmul.f32 %v8031_v53, %v8031_v53  ;;  %v4071_v44 = vmul.f32 %v8034_v10, %v8034_v10  ;;  %v4068_v52 = vmul.f32 %v8037_v35, %v8037_v35  ;;  %v4069_v4 = vmul.f32 %v8040_v24, %v8040_v24 }
 0x90d   : > { %v4083_v60 = vadd.f32 %v4067_v27, %v4066_v1  ;;  %v4080_v32 = vadd.f32 %v4065_v54, %v4064_v55  ;;  %v8059_v40 = vsub.f32 %v7995_v62, %v4047_v0  ;;  %v8062_v14 = vsub.f32 %v7998_v8, %v4047_v0 }
 0x90e   : > { %v8065_v6 = vsub.f32 %v7987_v20, %v4047_v0  ;;  %v8068_v28 = vsub.f32 %v7990_v18, %v4047_v0  ;;  %v4089_v31 = vadd.f32 %v4071_v44, %v4070_v37  ;;  %v4086_v42 = vadd.f32 %v4069_v4, %v4068_v52 }
 0x90f   : > { %4084 = vadd.xlane.f32.xlu0 %v4083_v60  ;;  %4081 = vadd.xlane.f32.xlu1 %v4080_v32  ;;  %v4074_v26 = vmul.f32 %v8059_v40, %v8059_v40  ;;  %v4075_v58 = vmul.f32 %v8062_v14, %v8062_v14  ;;  %v8077_v25 = vsub.f32 %v8011_v3, %v4047_v0  ;;  %v9053_v55 = vmov 8  }
 0x910   : > { %v4072_v5 = vmul.f32 %v8065_v6, %v8065_v6  ;;  %v4073_v59 = vmul.f32 %v8068_v28, %v8068_v28  ;;  %v8082_v11 = vsub.f32 %v8014_v29, %v4047_v0  ;;  %v8085_v19 = vsub.f32 %v8003_v43, %v4047_v0 }
 0x911   : > { %v8088_v7 = vsub.f32 %v8006_v57, %v4047_v0  ;;  %v4095_v46 = vadd.f32 %v4075_v58, %v4074_v26  ;;  %v4078_v2 = vmul.f32 %v8077_v25, %v8077_v25  ;;  %v6044_v54 = vmov 9  }
 0x912   : > { %v4092_v41 = vadd.f32 %v4073_v59, %v4072_v5  ;;  %v4079_v38 = vmul.f32 %v8082_v11, %v8082_v11  ;;  %v4076_v9 = vmul.f32 %v8085_v19, %v8085_v19 }
 0x913   : > { %4090 = vadd.xlane.f32.xlu0 %v4089_v31  ;;  %4087 = vadd.xlane.f32.xlu1 %v4086_v42  ;;  %v4077_v1 = vmul.f32 %v8088_v7, %v8088_v7 }
 0x914   : > { %v4101_v0 = vadd.f32 %v4079_v38, %v4078_v2 }
 0x915   : > { %v4098_v27 = vadd.f32 %v4077_v1, %v4076_v9 }
 0x917   : > { %4096 = vadd.xlane.f32.xlu0 %v4095_v46  ;;  %4093 = vadd.xlane.f32.xlu1 %v4092_v41 }
 0x91b   : > { %4102 = vadd.xlane.f32.xlu0 %v4101_v0  ;;  %4099 = vadd.xlane.f32.xlu1 %v4098_v27 }
 0x92c   : > { %4165 = vperm.xlu1 %5565, %v7842_v22  }
 0x930   : > { %5567 = vset.pattern.permute.xlu1 %v9053_v55 }
 0x931   : > { %4213 = vperm.xlu1 %5567, %v7842_v22   ;;  %4161 = vperm.xlu0 %5566, %v7848_v21  }
 0x935   : > { %5568 = vset.pattern.permute.xlu1 %v9036_v56  ;;  %5575 = vset.pattern.permute.xlu0 %v9053_v55 }
 0x936   : > { %4157 = vperm.xlu1 %5568, %v7854_v61   ;;  %4197 = vperm.xlu0 %5575, %v7860_v13  }
 0x93a   : > { %5569 = vset.pattern.permute.xlu1 %v9053_v55  ;;  %5577 = vset.pattern.permute.xlu0 %v9036_v56 }
 0x93b   : > { %4209 = vperm.xlu1 %5569, %v7848_v21   ;;  %4137 = vperm.xlu0 %5577, %v7884_v63  }
 0x93f   : > { %5570 = vset.pattern.permute.xlu1 %v9036_v56  ;;  %5578 = vset.pattern.permute.xlu0 %v6044_v54 }
 0x940   : > { %4153 = vperm.xlu1 %5570, %v7866_v39   ;;  %4269 = vperm.xlu0 %5578, %v7842_v22  }
 0x944   : > { %5571 = vset.pattern.permute.xlu1 %v9053_v55  ;;  %4257 = vperm.xlu0 %5578, %v7866_v39  }
 0x945   : > { %4205 = vperm.xlu1 %5571, %v7854_v61  }
 0x948   : > { %4249 = vperm.xlu0 %5578, %v7878_v34  }
 0x949   : > { %5572 = vset.pattern.permute.xlu1 %v9036_v56 }
 0x94a   : > { %4149 = vperm.xlu1 %5572, %v7860_v13  }
 0x94c   : > { %4241 = vperm.xlu0 %5578, %v7884_v63  }
 0x94e   : > { %5573 = vset.pattern.permute.xlu1 %v9053_v55 }
 0x94f   : > { %4201 = vperm.xlu1 %5573, %v7866_v39  }
 0x953   : > { %5574 = vset.pattern.permute.xlu1 %v9036_v56 }
 0x954   : > { %4145 = vperm.xlu1 %5574, %v7878_v34  }
 0x958   : > { %4141 = vperm.xlu1 %5574, %v7872_v36  }
 0x95c   : > { %5576 = vset.pattern.permute.xlu1 %v9053_v55 }
 0x95d   : > { %4193 = vperm.xlu1 %5576, %v7878_v34  }
 0x961   : > { %4189 = vperm.xlu1 %5576, %v7872_v36  }
 0x965   : > { %4185 = vperm.xlu1 %5576, %v7884_v63  }
 0x969   : > { %5579 = vset.pattern.permute.xlu1 %v6044_v54 }
 0x96a   : > { %4265 = vperm.xlu1 %5579, %v7848_v21  }
 0x96e   : > { %4261 = vperm.xlu1 %5579, %v7854_v61  }
 0x972   : > { %4253 = vperm.xlu1 %5579, %v7860_v13  }
 0x976   : > { %4245 = vperm.xlu1 %5579, %v7872_v36  }
 0x998   : > { %v4085_v56 = vpop.xlane.xlu0 %4084  ;;  %v4082_v37 = vpop.xlane.xlu1 %4081 }
 0x999   : > { %v4104_v44 = vadd.f32 %v4085_v56, %v4082_v37 }
 0x99c   : > { %v4091_v52 = vpop.xlane.xlu0 %4090  ;;  %v4088_v4 = vpop.xlane.xlu1 %4087 }
 0x99d   : > { %v4105_v22 = vadd.f32 %v4104_v44, %v4088_v4 }
 0x99f   : > { %v4106_v60 = vadd.f32 %v4105_v22, %v4091_v52 }
 0x9a0   : > { %v4097_v21 = vpop.xlane.xlu0 %4096  ;;  %v4094_v32 = vpop.xlane.xlu1 %4093 }
 0x9a1   : > { %v4107_v39 = vadd.f32 %v4106_v60, %v4094_v32 }
 0x9a3   : > { %v4108_v31 = vadd.f32 %v4107_v39, %v4097_v21 }
 0x9a4   : > { %v4100_v61 = vpop.xlane.xlu1 %4099  ;;  %v4103_v34 = vpop.xlane.xlu0 %4102 }
 0x9a5   : > { %v4109_v42 = vadd.f32 %v4108_v31, %v4100_v61 }
 0x9a7   : > { %v4110_v26 = vadd.f32 %v4109_v42, %v4103_v34 }
 0x9a8   : > { %v4166_v13 = vpop.permute.xlu1 %4165 }
 0x9a9   : > { %v4111_v58 = vrot.slane %v4110_v26, 4 }
 0x9ab   : > { %v4112_v63 = vadd.f32 %v4111_v58, %v4110_v26 }
 0x9ac   : > { %v4214_v5 = vpop.permute.xlu1 %4213  ;;  %v4162_v39 = vpop.permute.xlu0 %4161 }
 0x9ad   : > { %v4113_v36 = vrot.slane %v4112_v63, 2 }
 0x9af   : > { %v4114_v59 = vadd.f32 %v4113_v36, %v4112_v63 }
 0x9b1   : > { %v4115_v46 = vrot.slane %v4114_v59, 1  ;;  %v4158_v2 = vpop.permute.xlu1 %4157 }
 0x9b3   : > { %v4116_v41 = vadd.f32 %v4115_v46, %v4114_v59 }
 0x9b5   : > { %v4117_v38 = vmul.f32 6.1035156e-05, %v4116_v41 }
 0x9b6   : > { %v4210_v9 = vpop.permute.xlu1 %4209 }
 0x9b7   : > { %v4118_v1 = vadd.f32 1e-05, %v4117_v38 }
 0x9b9   : > { %5650 = vrsqrt.f32 %v4118_v1 }
 0x9bb   : > { %v4154_v0 = vpop.permute.xlu1 %4153 }
 0x9c0   : > { %v4206_v27 = vpop.permute.xlu1 %4205 }
 0x9c5   : > { %v4150_v55 = vpop.permute.xlu1 %4149 }
 0x9c6   : > { %v5651_v54 = vpop.eup %5650 }
 0x9c7   : > { %v4134_v56 = vmul.f32 %v5651_v54, %v8077_v25  ;;  %v4135_v37 = vmul.f32 %v5651_v54, %v8082_v11  ;;  %v4131_v44 = vmul.f32 %v5651_v54, %v8062_v14  ;;  %v4130_v52 = vmul.f32 %v5651_v54, %v8059_v40 }
 0x9c8   : > { %v4132_v4 = vmul.f32 %v5651_v54, %v8085_v19  ;;  %v4133_v22 = vmul.f32 %v5651_v54, %v8088_v7  ;;  %v4129_v32 = vmul.f32 %v5651_v54, %v8068_v28  ;;  %v4128_v31 = vmul.f32 %v5651_v54, %v8065_v6 }
 0x9c9   : > { %v4182_v60 = vmul.f32 %v4166_v13, %v4134_v56  ;;  %v4183_v21 = vmul.f32 %v4166_v13, %v4135_v37  ;;  %v4179_v26 = vmul.f32 %v4158_v2, %v4131_v44  ;;  %v4178_v14 = vmul.f32 %v4158_v2, %v4130_v52  ;;  %v4198_v2 = vpop.permute.xlu0 %4197 }
 0x9ca   : > { %v4180_v61 = vmul.f32 %v4162_v39, %v4132_v4  ;;  %v4181_v42 = vmul.f32 %v4162_v39, %v4133_v22  ;;  %v4202_v25 = vpop.permute.xlu1 %4201  ;;  %v4126_v40 = vmul.f32 %v5651_v54, %v8031_v53  ;;  %v4127_v19 = vmul.f32 %v5651_v54, %v8034_v10 }
 0x9cb   : > { %v4230_v34 = vadd.f32 %v4214_v5, %v4182_v60  ;;  %v4231_v11 = vadd.f32 %v4214_v5, %v4183_v21  ;;  %v4177_v58 = vmul.f32 %v4154_v0, %v4129_v32  ;;  %v4176_v13 = vmul.f32 %v4154_v0, %v4128_v31 }
 0x9cc   : > { %v4229_v7 = vadd.f32 %v4210_v9, %v4181_v42  ;;  %v4228_v63 = vadd.f32 %v4210_v9, %v4180_v61  ;;  %v4227_v28 = vadd.f32 %v4206_v27, %v4179_v26  ;;  %v4175_v36 = vmul.f32 %v4150_v55, %v4127_v19  ;;  %v4238_v26 = vld [vmem:[#allocation11 + $0x30] sm:$0xff] }
 0x9cd   : > { %4312 = vmatprep.subr.mxu0 %v4231_v11  ;;  %v4226_v59 = vadd.f32 %v4206_v27, %v4178_v14  ;;  %v4174_v46 = vmul.f32 %v4150_v55, %v4126_v40  ;;  %v4225_v5 = vadd.f32 %v4202_v25, %v4177_v58  ;;  %v4224_v41 = vadd.f32 %v4202_v25, %v4176_v13  ;;  %v4232_v25 = vld [vmem:[#allocation11] sm:$0xff]  ;;  %v4237_v11 = vld [vmem:[#allocation11 + $0x28] sm:$0xff]  ;;  %v4239_v14 = vld [vmem:[#allocation11 + $0x38] sm:$0xff] }
 0x9ce   : > { %4313 = vmatpush1.msra.mxu0 %v4230_v34  ;;  %v4223_v53 = vadd.f32 %v4198_v2, %v4175_v36  ;;  %v4124_v9 = vmul.f32 %v5651_v54, %v8037_v35  ;;  %v4125_v1 = vmul.f32 %v5651_v54, %v8040_v24  ;;  %v4122_v56 = vmul.f32 %v5651_v54, %v8019_v15  ;;  %v4138_v35 = vpop.permute.xlu0 %4137  ;;  %v4236_v34 = vld [vmem:[#allocation11 + $0x20] sm:$0xff] }
 0x9cf   : > { %4314 = vmatprep.subr.mxu0 %v4229_v7  ;;  %v4146_v6 = vpop.permute.xlu1 %4145  ;;  %v4222_v38 = vadd.f32 %v4198_v2, %v4174_v46  ;;  %v4123_v37 = vmul.f32 %v5651_v54, %v8022_v51  ;;  %v4120_v4 = vmul.f32 %v5651_v54, %v8025_v49  ;;  %v4121_v22 = vmul.f32 %v5651_v54, %v8028_v23  ;;  %v4233_v49 = vld [vmem:[#allocation11 + $0x8] sm:$0xff]  ;;  %v4234_v23 = vld [vmem:[#allocation11 + $0x10] sm:$0xff]  ;;  %v4235_v54 = vld [vmem:[#allocation11 + $0x18] sm:$0xff] }
 0x9d0   : > { %4315 = vmatpush1.msra.mxu0 %v4228_v63  ;;  %v4172_v0 = vmul.f32 %v4146_v6, %v4124_v9  ;;  %v4173_v27 = vmul.f32 %v4146_v6, %v4125_v1 }
 0x9d1   : > { %4316 = vmatprep.subr.mxu0 %v4227_v28  ;;  %v4168_v31 = vmul.f32 %v4138_v35, %v4120_v4  ;;  %v4169_v61 = vmul.f32 %v4138_v35, %v4121_v22 }
 0x9d2   : > { %4317 = vmatpush1.msra.mxu0 %v4226_v59  ;;  %v8164_v40 = vpop.permute.xlu0 %4269 }
 0x9d3   : > { %4318 = vmatprep.subr.mxu0 %v4225_v5  ;;  %v4142_v10 = vpop.permute.xlu1 %4141 }
 0x9d4   : > { %4319 = vmatpush1.msra.mxu0 %v4224_v41  ;;  %v4170_v60 = vmul.f32 %v4142_v10, %v4122_v56  ;;  %v4171_v21 = vmul.f32 %v4142_v10, %v4123_v37 }
 0x9d5   : > { %4320 = vmatprep.subr.mxu0 %v4223_v53 }
 0x9d6   : > { %4321 = vmatpush1.msra.mxu0 %v4222_v38  ;;  %v8168_v58 = vpop.permute.xlu0 %4257 }
 0x9d8   : > { %v4194_v55 = vpop.permute.xlu1 %4193 }
 0x9d9   : > { %v4220_v44 = vadd.f32 %v4194_v55, %v4172_v0  ;;  %v4221_v52 = vadd.f32 %v4194_v55, %v4173_v27 }
 0x9da   : > { %v4250_v13 = vpop.permute.xlu0 %4249 }
 0x9db   : > { %4322 = vmatprep.subr.mxu0 %v4221_v52 }
 0x9dc   : > { %4323 = vmatpush1.msra.mxu0 %v4220_v44  ;;  %v4190_v24 = vpop.permute.xlu1 %4189 }
 0x9dd   : > { %v4218_v32 = vadd.f32 %v4190_v24, %v4170_v60  ;;  %v4219_v39 = vadd.f32 %v4190_v24, %v4171_v21 }
 0x9de   : > { %v4242_v28 = vpop.permute.xlu0 %4241 }
 0x9df   : > { %4324 = vmatprep.subr.mxu0 %v4219_v39 }
 0x9e0   : > { %4325 = vmatpush1.msra.mxu0 %v4218_v32  ;;  %v4186_v15 = vpop.permute.xlu1 %4185 }
 0x9e1   : > { %v4216_v51 = vadd.f32 %v4186_v15, %v4168_v31  ;;  %v4217_v42 = vadd.f32 %v4186_v15, %v4169_v61 }
 0x9e3   : > { %4326 = vmatprep.subr.mxu0 %v4217_v42 }
 0x9e4   : > { %4327 = vmatpush1.msra.mxu0 %v4216_v51 }
 0x9e5   : > { %5287 = vmatmul.mubr.msk.f32.vlgmr.msra.gmra.mxu0 %vm732_vm0, %v4232_v25  ;;  %v8166_v19 = vpop.permute.xlu1 %4265 }
 0x9e6   : > { %4366 = vmatprep.mubr.f32.mxu0 %v9033_v33 }
 0x9e9   : > { %5288 = vmatmul.mubr.msk.f32.gmra.mxu0 %vm732_vm0, %v4233_v49  ;;  %v8170_v7 = vpop.permute.xlu1 %4261 }
 0x9ea   : > { %4372 = vmatprep.mubr.f32.mxu0 %v9033_v33 }
 0x9ed   : > { %5289 = vmatmul.mubr.msk.f32.gmra.mxu0 %vm732_vm0, %v4234_v23  ;;  %v4254_v63 = vpop.permute.xlu1 %4253 }
 0x9ee   : > { %4378 = vmatprep.mubr.f32.mxu0 %v9033_v33 }
 0x9f1   : > { %5290 = vmatmul.mubr.msk.f32.gmra.mxu0 %vm732_vm0, %v4235_v54  ;;  %v4246_v5 = vpop.permute.xlu1 %4245 }
 0x9f2   : > { %4384 = vmatprep.mubr.f32.mxu0 %v9033_v33 }
 0x9f5   : > { %5291 = vmatmul.mubr.msk.f32.gmra.mxu0 %vm732_vm0, %v4236_v34 }
 0x9f6   : > { %4390 = vmatprep.mubr.f32.mxu0 %v9033_v33 }
 0x9f9   : > { %5292 = vmatmul.mubr.msk.f32.gmra.mxu0 %vm732_vm0, %v4237_v11 }
 0x9fa   : > { %4396 = vmatprep.mubr.f32.mxu0 %v9033_v33 }
 0x9fd   : > { %5293 = vmatmul.mubr.msk.f32.gmra.mxu0 %vm732_vm0, %v4238_v26 }
 0x9fe   : > { %4402 = vmatprep.mubr.f32.mxu0 %v9033_v33 }
 0xa01   : > { %5294 = vmatmul.mubr.msk.f32.gmra.mxu0 %vm732_vm0, %v4239_v14 }
 0xaa5   : > { %v4362_v36 = vpop.f32.mrf.mxu0 }
 0xaa6   : > { %v8172_v6 = vadd.f32 %v4362_v36, %v4242_v28 }
 0xaa7   : > { %v4364_v59 = vpop.f32.mrf.mxu0 }
 0xaa8   : > { %9054 = vst [vmem:[#allocation40_spill] sm:$0xff] %v8172_v6  ;;  %v8175_v46 = vmul.f32 0.70710677, %v8172_v6  ;;  %v8189_v22 = vadd.f32 %v4364_v59, %v4242_v28 }
 0xaa9   : > { %v4368_v2 = vpop.f32.mrf.mxu0 }
 0xaaa   : > { %9055 = vst [vmem:[#allocation42_spill] sm:$0xff] %v8175_v46  ;;  %v4425_v41 = vand.u32 2147483647, %v8175_v46  ;;  %v8178_v53 = vadd.f32 %v4368_v2, %v4246_v5  ;;  %9059 = vst [vmem:[#allocation45_spill] sm:$0xff] %v8189_v22  ;;  %v8201_v39 = vmul.f32 0.70710677, %v8189_v22 }
 0xaab   : > { %v4370_v10 = vpop.f32.mrf.mxu0 }
 0xaac   : > { %9056 = vst [vmem:[#allocation20_spill] sm:$0xff] %v8178_v53  ;;  %v4441_v38 = vmul.f32 0.3275911, %v4425_v41  ;;  %v8181_v9 = vmul.f32 0.70710677, %v8178_v53  ;;  %9061 = vst [vmem:[#allocation34_spill] sm:$0xff] %v8201_v39  ;;  %v8208_v42 = vadd.f32 %v4370_v10, %v4246_v5 }
 0xaad   : > { %v4374_v1 = vpop.f32.mrf.mxu0  ;;  %v4426_v23 = vand.u32 2147483647, %v8201_v39  ;;  %v4649_v11 = vsub.f32 0.0, %v4425_v41 }
 0xaae   : > { %9057 = vst [vmem:[#allocation36_spill] sm:$0xff] %v8181_v9  ;;  %v4457_v0 = vadd.f32 1.0, %v4441_v38  ;;  %v4427_v27 = vand.u32 2147483647, %v8181_v9  ;;  %v8184_v37 = vadd.f32 %v4374_v1, %v4250_v13  ;;  %9062 = vst [vmem:[#allocation23_spill] sm:$0xff] %v8208_v42 }
 0xaaf   : > { %v4376_v55 = vpop.f32.mrf.mxu0  ;;  %v8217_v14 = vmul.f32 0.70710677, %v8208_v42  ;;  %v4650_v2 = vsub.f32 0.0, %v4426_v23 }
 0xab0   : > { %5652 = vrcp.f32 %v4457_v0  ;;  %v4443_v56 = vmul.f32 0.3275911, %v4427_v27  ;;  %9058 = vst [vmem:[#allocation29_spill] sm:$0xff] %v8184_v37  ;;  %v8187_v4 = vmul.f32 0.70710677, %v8184_v37  ;;  %v8219_v28 = vadd.f32 %v4376_v55, %v4250_v13 }
 0xab1   : > { %v4380_v44 = vpop.f32.mrf.mxu0  ;;  %9064 = vst [vmem:[#allocation25_spill] sm:$0xff] %v8217_v14  ;;  %v4651_v1 = vsub.f32 0.0, %v4427_v27  ;;  %v4665_v0 = vmul.f32 %v4649_v11, %v4425_v41 }
 0xab2   : > { %v4459_v52 = vadd.f32 1.0, %v4443_v56  ;;  %v8192_v60 = vand.u32 2147483647, %v8187_v4  ;;  %v8194_v35 = vadd.f32 %v4380_v44, %v4254_v63  ;;  %9065 = vst [vmem:[#allocation47_spill] sm:$0xff] %v8219_v28  ;;  %v4442_v56 = vmul.f32 0.3275911, %v4426_v23 }
 0xab3   : > { %v4382_v21 = vpop.f32.mrf.mxu0  ;;  %v4428_v44 = vand.u32 2147483647, %v8217_v14  ;;  %v4681_v29 = vmul.f32 1.442695, %v4665_v0  ;;  %vm4749_vm13 = vcmp.ge.f32.partialorder %v8187_v4, 0.0 }
 0xab4   : > { %5654 = vrcp.f32 %v4459_v52  ;;  %9060 = vst [vmem:[#allocation32_spill] sm:$0xff] %v8194_v35  ;;  %v4445_v24 = vmul.f32 0.3275911, %v8192_v60  ;;  %v8198_v32 = vmul.f32 0.70710677, %v8194_v35  ;;  %v4458_v41 = vadd.f32 1.0, %v4442_v56 }
 0xab5   : > { %v4386_v31 = vpop.f32.mrf.mxu0  ;;  %v8229_v52 = vmul.f32 0.70710677, %v8219_v28  ;;  %v4652_v3 = vsub.f32 0.0, %v4428_v44 }
 0xab6   : > { %v4461_v61 = vadd.f32 1.0, %v4445_v24  ;;  %v8204_v15 = vand.u32 2147483647, %v8198_v32  ;;  %v8214_v34 = vadd.f32 %v4386_v31, %v8168_v58  ;;  %v4666_v24 = vmul.f32 %v4650_v2, %v4426_v23 }
 0xab7   : > { %v4388_v54 = vpop.f32.mrf.mxu0  ;;  %v8235_v31 = vadd.f32 %v4382_v21, %v4254_v63  ;;  %v4430_v57 = vand.u32 2147483647, %v8229_v52  ;;  %v4668_v0 = vmul.f32 %v4652_v3, %v4428_v44  ;;  %vm4751_vm10 = vcmp.ge.f32.partialorder %v8198_v32, 0.0 }
 0xab8   : > { %v4447_v25 = vmul.f32 0.3275911, %v8204_v15  ;;  %5656 = vrcp.f32 %v4461_v61  ;;  %9063 = vst [vmem:[#allocation22_spill] sm:$0xff] %v8214_v34  ;;  %v8222_v36 = vmul.f32 0.70710677, %v8214_v34  ;;  %v8238_v11 = vadd.f32 %v4388_v54, %v8168_v58 }
 0xab9   : > { %v4392_v10 = vpop.f32.mrf.mxu0  ;;  %v4683_v21 = vmul.f32 1.442695, %v4666_v24  ;;  %v4444_v54 = vmul.f32 0.3275911, %v4428_v44  ;;  %v4654_v56 = vsub.f32 0.0, %v4430_v57  ;;  %v8333_v22 = vmul.f32 0.5, %v8235_v31 }
 0xaba   : > { %v4463_v26 = vadd.f32 1.0, %v4447_v25  ;;  %v8232_v13 = vand.u32 2147483647, %v8222_v36  ;;  %vm4753_vm8 = vcmp.ge.f32.partialorder %v8222_v36, 0.0  ;;  %vm4750_vm12 = vcmp.ge.f32.partialorder %v8229_v52, 0.0 }
 0xabb   : > { %v4394_v61 = vpop.f32.mrf.mxu0  ;;  %v4670_v47 = vmul.f32 %v4654_v56, %v4430_v57  ;;  %9067 = vst [vmem:[#allocation27_spill] sm:$0xff] %v8333_v22 }
 0xabc   : > { %5658 = vrcp.f32 %v4463_v26  ;;  %v8241_v26 = vadd.f32 %v4392_v10, %v8170_v7  ;;  %v4449_v43 = vmul.f32 0.3275911, %v8232_v13  ;;  %v8246_v23 = vadd.f32 %v4394_v61, %v8170_v7 }
 0xabd   : > { %v8206_v51 = vpop.eup %5652  ;;  %5660 = vpow2.f32 %v4681_v29  ;;  %v8259_v7 = vmul.f32 0.70710677, %v8238_v11  ;;  %v4398_v44 = vpop.f32.mrf.mxu0  ;;  %v4691_v56 = vmul.f32 1.442695, %v4670_v47 }
 0xabe   : > { %v4505_v49 = vmul.f32 1.0614054, %v8206_v51  ;;  %v8253_v2 = vmul.f32 0.70710677, %v8241_v26  ;;  %5662 = vrcp.f32 %v4458_v41  ;;  %v4687_v41 = vmul.f32 1.442695, %v4668_v0 }
 0xabf   : > { %5664 = vpow2.f32 %v4683_v21  ;;  %vm4754_vm7 = vcmp.ge.f32.partialorder %v8259_v7, 0.0 }
 0xac0   : > { %v4521_v5 = vadd.f32 -1.4531521, %v4505_v49  ;;  %v4667_v49 = vmul.f32 %v4651_v1, %v4427_v27  ;;  %v8249_v27 = vmul.f32 0.70710677, %v8235_v31  ;;  %v8262_v1 = vmul.f32 0.70710677, %v8246_v23 }
 0xac1   : > { %v8224_v59 = vpop.eup %5654  ;;  %v8265_v24 = vand.u32 2147483647, %v8253_v2  ;;  %vm4755_vm6 = vcmp.ge.f32.partialorder %v8253_v2, 0.0 }
 0xac2   : > { %v4507_v38 = vmul.f32 1.0614054, %v8224_v59  ;;  %v4537_v55 = vmul.f32 %v8206_v51, %v4521_v5  ;;  %v4685_v58 = vmul.f32 1.442695, %v4667_v49  ;;  %v8269_v49 = vand.u32 2147483647, %v8249_v27 }
 0xac3   : > { %v8272_v29 = vand.u32 2147483647, %v8262_v1  ;;  %v4451_v3 = vmul.f32 0.3275911, %v8265_v24  ;;  %vm4756_vm4 = vcmp.ge.f32.partialorder %v8262_v1, 0.0  ;;  %vm4752_vm9 = vcmp.ge.f32.partialorder %v8249_v27, 0.0 }
 0xac4   : > { %v4523_v25 = vadd.f32 -1.4531521, %v4507_v38  ;;  %v4553_v63 = vadd.f32 1.4214138, %v4537_v55  ;;  %v4653_v38 = vsub.f32 0.0, %v8192_v60  ;;  %v4465_v55 = vadd.f32 1.0, %v4449_v43 }
 0xac5   : > { %v8255_v10 = vpop.eup %5656  ;;  %v4460_v43 = vadd.f32 1.0, %v4444_v54  ;;  %v4467_v17 = vadd.f32 1.0, %v4451_v3  ;;  %v4448_v54 = vmul.f32 0.3275911, %v8269_v49 }
 0xac6   : > { %v4539_v5 = vmul.f32 %v8224_v59, %v4523_v25  ;;  %v4569_v61 = vmul.f32 %v8206_v51, %v4553_v63  ;;  %v4446_v25 = vmul.f32 0.3275911, %v4430_v57  ;;  %v4509_v62 = vmul.f32 1.0614054, %v8255_v10 }
 0xac7   : > { %v4669_v18 = vmul.f32 %v4653_v38, %v8192_v60  ;;  %v8278_v63 = vand.u32 2147483647, %v8259_v7  ;;  %5666 = vrcp.f32 %v4465_v55  ;;  %v4400_v60 = vpop.f32.mrf.mxu0  ;;  %v4655_v55 = vsub.f32 0.0, %v8204_v15 }
 0xac8   : > { %v4555_v8 = vadd.f32 1.4214138, %v4539_v5  ;;  %v4585_v12 = vadd.f32 -0.28449672, %v4569_v61  ;;  %5668 = vpow2.f32 %v4685_v58  ;;  %v4452_v5 = vmul.f32 0.3275911, %v8272_v29 }
 0xac9   : > { %v8280_v20 = vpop.eup %5658  ;;  %v4525_v45 = vadd.f32 -1.4531521, %v4509_v62  ;;  %v4462_v21 = vadd.f32 1.0, %v4446_v25  ;;  %5670 = vrcp.f32 %v4460_v43  ;;  %v4689_v38 = vmul.f32 1.442695, %v4669_v18 }
 0xaca   : > { %v4571_v16 = vmul.f32 %v8224_v59, %v4555_v8  ;;  %v4511_v48 = vmul.f32 1.0614054, %v8280_v20  ;;  %v4450_v57 = vmul.f32 0.3275911, %v8278_v63  ;;  %5672 = vrcp.f32 %v4467_v17 }
 0xacb   : > { %v8289_v58 = vadd.f32 %v4398_v44, %v8166_v19  ;;  %v4601_v8 = vmul.f32 %v8206_v51, %v4585_v12  ;;  %5674 = vpow2.f32 %v4687_v41  ;;  %v4468_v62 = vadd.f32 1.0, %v4452_v5  ;;  %v5661_v44 = vpop.eup %5660 }
 0xacc   : > { %v8293_v0 = vadd.f32 %v4400_v60, %v8166_v19  ;;  %v4587_v61 = vadd.f32 -0.28449672, %v4571_v16  ;;  %v4541_v18 = vmul.f32 %v8255_v10, %v4525_v45  ;;  %5676 = vrcp.f32 %v4462_v21 }
 0xacd   : > { %v4464_v25 = vadd.f32 1.0, %v4448_v54  ;;  %5678 = vpow2.f32 %v4689_v38  ;;  %v4527_v47 = vadd.f32 -1.4531521, %v4511_v48  ;;  %v4466_v3 = vadd.f32 1.0, %v4450_v57  ;;  %v4404_v54 = vpop.f32.mrf.mxu0 }
 0xace   : > { %v8297_v17 = vmul.f32 0.70710677, %v8289_v58  ;;  %5680 = vpow2.f32 %v4691_v56  ;;  %v4671_v12 = vmul.f32 %v4655_v55, %v8204_v15  ;;  %v4656_v43 = vsub.f32 0.0, %v8269_v49  ;;  %v8310_v15 = vpop.eup %5662 }
 0xacf   : > { %v4657_v19 = vsub.f32 0.0, %v8232_v13  ;;  %v4617_v41 = vadd.f32 0.2548296, %v4601_v8  ;;  %5682 = vrcp.f32 %v4468_v62  ;;  %v8306_v16 = vmul.f32 0.70710677, %v8293_v0  ;;  %v8315_v56 = vpop.eup %5664 }
 0xad0   : > { %v8303_v45 = vand.u32 2147483647, %v8297_v17  ;;  %v4603_v48 = vmul.f32 %v8224_v59, %v4587_v61  ;;  %v4557_v5 = vadd.f32 1.4214138, %v4541_v18  ;;  %5684 = vrcp.f32 %v4464_v25  ;;  %9066 = vst [vmem:[#allocation41_spill] sm:$0xff] %v8315_v56 }
 0xad1   : > { %v4658_v21 = vsub.f32 0.0, %v8278_v63  ;;  %v4543_v60 = vmul.f32 %v8280_v20, %v4527_v47  ;;  %5686 = vrcp.f32 %v4466_v3  ;;  %v4659_v38 = vsub.f32 0.0, %v8265_v24 }
 0xad2   : > { %v4453_v57 = vmul.f32 0.3275911, %v8303_v45  ;;  %v4693_v55 = vmul.f32 1.442695, %v4671_v12  ;;  %v4672_v8 = vmul.f32 %v4656_v43, %v8269_v49  ;;  %v4660_v62 = vsub.f32 0.0, %v8272_v29 }
 0xad3   : > { %v8320_v61 = vand.u32 2147483647, %v8306_v16  ;;  %v4633_v25 = vmul.f32 %v8206_v51, %v4617_v41  ;;  %v4673_v47 = vmul.f32 %v4657_v19, %v8232_v13  ;;  %v8327_v30 = vadd.f32 %v4404_v54, %v8164_v40  ;;  %v4406_v13 = vpop.f32.mrf.mxu0 }
 0xad4   : > { %v8322_v18 = vpop.eup %5666  ;;  %v4469_v3 = vadd.f32 1.0, %v4453_v57  ;;  %v4619_v33 = vadd.f32 0.2548296, %v4603_v48  ;;  %v4573_v12 = vmul.f32 %v8255_v10, %v4557_v5  ;;  %v4674_v49 = vmul.f32 %v4658_v21, %v8278_v63 }
 0xad5   : > { %v5669_v50 = vpop.eup %5668  ;;  %v4454_v43 = vmul.f32 0.3275911, %v8320_v61  ;;  %v4559_v6 = vadd.f32 1.4214138, %v4543_v60  ;;  %v4675_v51 = vmul.f32 %v4659_v38, %v8265_v24  ;;  %v4695_v41 = vmul.f32 1.442695, %v4672_v8 }
 0xad6   : > { %5688 = vrcp.f32 %v4469_v3  ;;  %v8336_v19 = vpop.eup %5670  ;;  %v4513_v54 = vmul.f32 1.0614054, %v8322_v18  ;;  %v4676_v48 = vmul.f32 %v4660_v62, %v8272_v29  ;;  %v8342_v63 = vmul.f32 %v5661_v44, %v4633_v25 }
 0xad7   : > { %v4470_v5 = vadd.f32 1.0, %v4454_v43  ;;  %v8340_v57 = vpop.eup %5672  ;;  %5690 = vpow2.f32 %v4693_v55  ;;  %v4697_v21 = vmul.f32 1.442695, %v4673_v47  ;;  %v8345_v31 = vmul.f32 0.70710677, %v8327_v30  ;;  %v9087_v52 = vld [vmem:[#allocation41_spill] sm:$0xff] }
 0xad8   : > { %9068 = vst [vmem:[#allocation21_spill] sm:$0xff] %v8342_v63  ;;  %v8347_v24 = vpop.eup %5674  ;;  %v4635_v60 = vmul.f32 %v8224_v59, %v4619_v33  ;;  %v4589_v38 = vadd.f32 -0.28449672, %v4573_v12  ;;  %v4699_v8 = vmul.f32 1.442695, %v4674_v49  ;;  %v8351_v3 = vadd.f32 %v4406_v13, %v8164_v40 }
 0xad9   : > { %9069 = vst [vmem:[#allocation51_spill] sm:$0xff] %v8347_v24  ;;  %v8353_v29 = vpop.eup %5676  ;;  %v4575_v62 = vmul.f32 %v8280_v20, %v4559_v6  ;;  %v4701_v44 = vmul.f32 1.442695, %v4675_v51  ;;  %5692 = vrcp.f32 %v4470_v5  ;;  %v8357_v55 = vand.u32 2147483647, %v8345_v31 }
 0xada   : > { %v8359_v25 = vpop.eup %5678  ;;  %5694 = vpow2.f32 %v4695_v41  ;;  %v4529_v47 = vadd.f32 -1.4531521, %v4513_v54  ;;  %v4515_v33 = vmul.f32 1.0614054, %v8340_v57  ;;  %v4703_v59 = vmul.f32 1.442695, %v4676_v48 }
 0xadb   : > { %v8362_v12 = vpop.eup %5680  ;;  %5696 = vpow2.f32 %v4697_v21  ;;  %v8366_v49 = vmul.f32 0.5, %v8238_v11  ;;  %v4455_v6 = vmul.f32 0.3275911, %v8357_v55  ;;  %v8371_v51 = vmul.f32 %v5669_v50, %v4635_v60 }
 0xadc   : > { %v8369_v43 = vpop.eup %5682  ;;  %v4605_v13 = vmul.f32 %v8255_v10, %v4589_v38  ;;  %5698 = vpow2.f32 %v4699_v8  ;;  %v8375_v41 = vmul.f32 0.70710677, %v8351_v3  ;;  %v4591_v48 = vadd.f32 -0.28449672, %v4575_v62 }
 0xadd   : > { %9070 = vst [vmem:[#allocation52_spill] sm:$0xff] %v8366_v49  ;;  %v8377_v54 = vpop.eup %5684  ;;  %5700 = vpow2.f32 %v4701_v44  ;;  %v8380_v5 = vmul.f32 0.5, %v8241_v26  ;;  %v4471_v11 = vadd.f32 1.0, %v4455_v6  ;;  %v4545_v40 = vmul.f32 %v8322_v18, %v4529_v47 }
 0xade   : > { %v8382_v21 = vpop.eup %5686  ;;  %v4531_v50 = vadd.f32 -1.4531521, %v4515_v33  ;;  %5702 = vpow2.f32 %v4703_v59  ;;  %v8386_v60 = vand.u32 2147483647, %v8375_v41  ;;  %v9072_v38 = vsub.f32 1.0, %v8342_v63 }
 0xadf   : > { %9071 = vst [vmem:[#allocation53_spill] sm:$0xff] %v8380_v5  ;;  %v8393_v62 = vmul.f32 0.5, %v8246_v23  ;;  %5704 = vrcp.f32 %v4471_v11  ;;  %v4516_v26 = vmul.f32 1.0614054, %v8369_v43  ;;  %v4621_v6 = vadd.f32 0.2548296, %v4605_v13 }
 0xae0   : > { %v8390_v8 = vsub.f32 0.0, %v9072_v38  ;;  %v4662_v47 = vsub.f32 0.0, %v8320_v61  ;;  %v4456_v33 = vmul.f32 0.3275911, %v8386_v60  ;;  %v4607_v59 = vmul.f32 %v8280_v20, %v4591_v48 }
 0xae1   : > { %9074 = vst [vmem:[#allocation55_spill] sm:$0xff] %v8393_v62  ;;  %v4532_v53 = vadd.f32 -1.4531521, %v4516_v26  ;;  %v4514_v42 = vmul.f32 1.0614054, %v8382_v21  ;;  %v4547_v11 = vmul.f32 %v8340_v57, %v4531_v50  ;;  %v4661_v37 = vsub.f32 0.0, %v8303_v45 }
 0xae2   : > { %9073 = vst [vmem:[#allocation54_spill] sm:$0xff] %v8390_v8  ;;  %v4512_v38 = vmul.f32 1.0614054, %v8377_v54  ;;  %v4561_v23 = vadd.f32 1.4214138, %v4545_v40  ;;  %v4472_v44 = vadd.f32 1.0, %v4456_v33  ;;  %v4678_v33 = vmul.f32 %v4662_v47, %v8320_v61 }
 0xae3   : > { %v8402_v39 = vpop.eup %5688  ;;  %v4548_v22 = vmul.f32 %v8369_v43, %v4532_v53  ;;  %v4530_v28 = vadd.f32 -1.4531521, %v4514_v42  ;;  %v8411_v26 = vmul.f32 0.5, %v8289_v58  ;;  %v8414_v8 = vmul.f32 0.5, %v8293_v0 }
 0xae4   : > { %v4517_v13 = vmul.f32 1.0614054, %v8402_v39  ;;  %v4528_v63 = vadd.f32 -1.4531521, %v4512_v38  ;;  %v8408_v48 = vpop.eup %5690  ;;  %v4663_v40 = vsub.f32 0.0, %v8357_v55  ;;  %5706 = vrcp.f32 %v4472_v44 }
 0xae5   : > { %9075 = vst [vmem:[#allocation56_spill] sm:$0xff] %v8411_v26  ;;  %9076 = vst [vmem:[#allocation57_spill] sm:$0xff] %v8414_v8  ;;  %v4564_v35 = vadd.f32 1.4214138, %v4548_v22  ;;  %v4546_v49 = vmul.f32 %v8382_v21, %v4530_v28  ;;  %v4563_v42 = vadd.f32 1.4214138, %v4547_v11  ;;  %v4677_v38 = vmul.f32 %v4661_v37, %v8303_v45 }
 0xae6   : > { %v4533_v50 = vadd.f32 -1.4531521, %v4517_v13  ;;  %v8419_v53 = vpop.eup %5692  ;;  %v4544_v58 = vmul.f32 %v8377_v54, %v4528_v63  ;;  %v4510_v56 = vmul.f32 1.0614054, %v8353_v29  ;;  %v4623_v5 = vadd.f32 0.2548296, %v4607_v59 }
 0xae7   : > { %v8424_v0 = vpop.eup %5694  ;;  %v4577_v44 = vmul.f32 %v8322_v18, %v4561_v23  ;;  %v4518_v22 = vmul.f32 1.0614054, %v8419_v53  ;;  %v4679_v28 = vmul.f32 %v4663_v40, %v8357_v55  ;;  %v4580_v47 = vmul.f32 %v8369_v43, %v4564_v35 }
 0xae8   : > { %v4549_v13 = vmul.f32 %v8402_v39, %v4533_v50  ;;  %v8429_v61 = vpop.eup %5696  ;;  %v4562_v37 = vadd.f32 1.4214138, %v4546_v49  ;;  %v4526_v45 = vadd.f32 -1.4531521, %v4510_v56  ;;  %v4637_v11 = vmul.f32 %v8255_v10, %v4621_v6 }
 0xae9   : > { %v8433_v63 = vpop.eup %5698  ;;  %v4707_v59 = vmul.f32 1.442695, %v4678_v33  ;;  %v4534_v62 = vadd.f32 -1.4531521, %v4518_v22  ;;  %v4579_v50 = vmul.f32 %v8340_v57, %v4563_v42  ;;  %v4705_v26 = vmul.f32 1.442695, %v4677_v38 }
 0xaea   : > { %v4565_v34 = vadd.f32 1.4214138, %v4549_v13  ;;  %v8436_v23 = vpop.eup %5700  ;;  %v4664_v8 = vsub.f32 0.0, %v8386_v60  ;;  %v4560_v24 = vadd.f32 1.4214138, %v4544_v58  ;;  %v4578_v10 = vmul.f32 %v8382_v21, %v4562_v37 }
 0xaeb   : > { %v8440_v55 = vpop.eup %5702  ;;  %v4593_v35 = vadd.f32 -0.28449672, %v4577_v44  ;;  %v4550_v49 = vmul.f32 %v8419_v53, %v4534_v62  ;;  %v4709_v40 = vmul.f32 1.442695, %v4679_v28  ;;  %v4596_v33 = vadd.f32 -0.28449672, %v4580_v47 }
 0xaec   : > { %v4581_v56 = vmul.f32 %v8402_v39, %v4565_v34  ;;  %v8445_v6 = vpop.eup %5704  ;;  %v4542_v13 = vmul.f32 %v8353_v29, %v4526_v45  ;;  %5708 = vpow2.f32 %v4707_v59  ;;  %v6045_v22 = vmov 10   ;;  %v8457_v28 = vld [vmem:[%s8800_s8] sm:$0xff]  ;;  %v8463_v47 = vld [vmem:[%s8800_s8 + $0x8] sm:$0xff] }
 0xaed   : > { %v4519_v38 = vmul.f32 1.0614054, %v8445_v6  ;;  %v4566_v58 = vadd.f32 1.4214138, %v4550_v49  ;;  %5580 = vset.pattern.permute.xlu1 %v6045_v22  ;;  %5581 = vset.pattern.permute.xlu0 %v6045_v22  ;;  %v8450_v34 = vmul.f32 %v8359_v25, %v4637_v11  ;;  %v4595_v62 = vadd.f32 -0.28449672, %v4579_v50 }
 0xaee   : > { %v4597_v42 = vadd.f32 -0.28449672, %v4581_v56  ;;  %v4680_v44 = vmul.f32 %v4664_v8, %v8386_v60  ;;  %v4576_v37 = vmul.f32 %v8377_v54, %v4560_v24  ;;  %4850 = vperm.xlu1 %5580, %v8457_v28   ;;  %4854 = vperm.xlu0 %5581, %v8463_v47   ;;  %5710 = vpow2.f32 %v4705_v26  ;;  %v9082_v7 = vld [vmem:[#allocation57_spill] sm:$0xff] }
 0xaef   : > { %v4535_v25 = vadd.f32 -1.4531521, %v4519_v38  ;;  %v4582_v60 = vmul.f32 %v8419_v53, %v4566_v58  ;;  %v4594_v8 = vadd.f32 -0.28449672, %v4578_v10  ;;  %v4639_v24 = vmul.f32 %v8280_v20, %v4623_v5  ;;  %v8479_v20 = vld [vmem:[%s8800_s8 + $0x10] sm:$0xff]  ;;  %v8485_v5 = vld [vmem:[%s8800_s8 + $0x20] sm:$0xff] }
 0xaf0   : > { %v4609_v45 = vmul.f32 %v8322_v18, %v4593_v35  ;;  %v4612_v11 = vmul.f32 %v8369_v43, %v4596_v33  ;;  %v4558_v59 = vadd.f32 1.4214138, %v4542_v13  ;;  %v4613_v56 = vmul.f32 %v8402_v39, %v4597_v42 }
 0xaf1   : > { %v8470_v50 = vpop.eup %5706  ;;  %v4551_v49 = vmul.f32 %v8445_v6, %v4535_v25  ;;  %5712 = vpow2.f32 %v4709_v40  ;;  %v4598_v22 = vadd.f32 -0.28449672, %v4582_v60  ;;  %v4611_v26 = vmul.f32 %v8340_v57, %v4595_v62 }
 0xaf2   : > { %v4711_v38 = vmul.f32 1.442695, %v4680_v44  ;;  %v4520_v10 = vmul.f32 1.0614054, %v8470_v50  ;;  %v4592_v58 = vadd.f32 -0.28449672, %v4576_v37  ;;  %4858 = vperm.xlu1 %5580, %v8479_v20   ;;  %4866 = vperm.xlu0 %5581, %v8485_v5   ;;  %v4610_v33 = vmul.f32 %v8382_v21, %v4594_v8 }
 0xaf3   : > { %v4567_v35 = vadd.f32 1.4214138, %v4551_v49  ;;  %v4614_v40 = vmul.f32 %v8419_v53, %v4598_v22  ;;  %v4574_v13 = vmul.f32 %v8353_v29, %v4558_v59  ;;  %v8492_v42 = vmul.f32 %v8408_v48, %v4639_v24  ;;  %v8500_v8 = vld [vmem:[%s8800_s8 + $0x18] sm:$0xff]  ;;  %v8506_v48 = vld [vmem:[%s8800_s8 + $0x30] sm:$0xff] }
 0xaf4   : > { %v4625_v62 = vadd.f32 0.2548296, %v4609_v45  ;;  %v4536_v44 = vadd.f32 -1.4531521, %v4520_v10  ;;  %v4628_v37 = vadd.f32 0.2548296, %v4612_v11  ;;  %5714 = vpow2.f32 %v4711_v38 }
 0xaf5   : > { %v4629_v25 = vadd.f32 0.2548296, %v4613_v56  ;;  %v4583_v60 = vmul.f32 %v8445_v6, %v4567_v35  ;;  %v4630_v46 = vadd.f32 0.2548296, %v4614_v40  ;;  %v4590_v14 = vadd.f32 -0.28449672, %v4574_v13 }
 0xaf6   : > { %v4627_v9 = vadd.f32 0.2548296, %v4611_v26  ;;  %v4552_v49 = vmul.f32 %v8470_v50, %v4536_v44  ;;  %v4608_v22 = vmul.f32 %v8377_v54, %v4592_v58  ;;  %4862 = vperm.xlu1 %5580, %v8500_v8   ;;  %4874 = vperm.xlu0 %5581, %v8506_v48   ;;  %v4733_v24 = vsub.f32 1.0, %v8450_v34  ;;  %v9089_v34 = vld [vmem:[#allocation52_spill] sm:$0xff] }
 0xaf7   : > { %v4599_v45 = vadd.f32 -0.28449672, %v4583_v60  ;;  %v4646_v11 = vmul.f32 %v8419_v53, %v4630_v46  ;;  %v4626_v59 = vadd.f32 0.2548296, %v4610_v33  ;;  %v9077_v56 = vsub.f32 1.0, %v8371_v51 }
 0xaf8   : > { %v4735_v38 = vsub.f32 1.0, %v8492_v42  ;;  %v4568_v10 = vadd.f32 1.4214138, %v4552_v49  ;;  %v4606_v58 = vmul.f32 %v8353_v29, %v4590_v14  ;;  %v4645_v35 = vmul.f32 %v8402_v39, %v4629_v25  ;;  %v8527_v14 = vld [vmem:[%s8800_s8 + $0x28] sm:$0xff]  ;;  %v9084_v42 = vld [vmem:[#allocation55_spill] sm:$0xff] }
 0xaf9   : > { %v8513_v26 = vsub.f32 0.0, %v9077_v56  ;;  %v4615_v40 = vmul.f32 %v8445_v6, %v4599_v45  ;;  %v4644_v13 = vmul.f32 %v8369_v43, %v4628_v37  ;;  %v4508_v44 = vmul.f32 1.0614054, %v8336_v19  ;;  %v5709_v60 = vpop.eup %5708 }
 0xafa   : > { %v4641_v46 = vmul.f32 %v8322_v18, %v4625_v62  ;;  %v4643_v53 = vmul.f32 %v8340_v57, %v4627_v9  ;;  %v4584_v33 = vmul.f32 %v8470_v50, %v4568_v10  ;;  %v4624_v56 = vadd.f32 0.2548296, %v4608_v22  ;;  %4870 = vperm.xlu1 %5580, %v8527_v14  }
 0xafb   : > { %v8532_v39 = vsub.f32 0.0, %v4733_v24  ;;  %v4631_v43 = vadd.f32 0.2548296, %v4615_v40  ;;  %v8534_v37 = vmul.f32 %v5709_v60, %v4646_v11  ;;  %v4642_v18 = vmul.f32 %v8382_v21, %v4626_v59  ;;  %v5711_v9 = vpop.eup %5710 }
 0xafc   : > { %v8539_v57 = vsub.f32 0.0, %v4735_v38  ;;  %v8542_v62 = vmul.f32 0.5, %v8327_v30  ;;  %v4600_v25 = vadd.f32 -0.28449672, %v4584_v33  ;;  %v4622_v49 = vadd.f32 0.2548296, %v4606_v58 }
 0xafd   : > { %v8544_v22 = vmul.f32 %v5711_v9, %v4645_v35  ;;  %v4647_v45 = vmul.f32 %v8445_v6, %v4631_v43  ;;  %v8548_v10 = vmul.f32 %v8440_v55, %v4644_v13  ;;  %v4524_v11 = vadd.f32 -1.4531521, %v4508_v44  ;;  %v8562_v6 = vld [vmem:[%s8800_s8 + $0x38] sm:$0xff] }
 0xafe   : > { %v5713_v40 = vpop.eup %5712  ;;  %v8551_v21 = vmul.f32 %v8429_v61, %v4641_v46  ;;  %v8554_v59 = vmul.f32 %v8436_v23, %v4643_v53  ;;  %vm4759_vm2 = vcmp.ge.f32.partialorder %v8345_v31, 0.0  ;;  %v4616_v30 = vmul.f32 %v8470_v50, %v4600_v25  ;;  %4878 = vperm.xlu1 %5580, %v8562_v6  }
 0xaff   : > { %v4640_v58 = vmul.f32 %v8377_v54, %v4624_v56  ;;  %vm4758_vm3 = vcmp.ge.f32.partialorder %v8306_v16, 0.0  ;;  %v4727_v61 = vmul.f32 %v5713_v40, %v4647_v45  ;;  %v4742_v55 = vsub.f32 1.0, %v8534_v37 }
 0xb00   : > { %v8568_v23 = vmul.f32 %v8433_v63, %v4642_v18  ;;  %v4540_v35 = vmul.f32 %v8336_v19, %v4524_v11  ;;  %vm4757_vm5 = vcmp.ge.f32.partialorder %v8297_v17, 0.0  ;;  %v4632_v54 = vadd.f32 0.2548296, %v4616_v30 }
 0xb01   : > { %v4638_v13 = vmul.f32 %v8353_v29, %v4622_v49  ;;  %v4506_v44 = vmul.f32 1.0614054, %v8310_v15  ;;  %v4741_v60 = vsub.f32 1.0, %v8544_v22  ;;  %v4743_v46 = vsub.f32 1.0, %v4727_v61  ;;  %v5715_v18 = vpop.eup %5714 }
 0xb02   : > { %v4740_v53 = vsub.f32 1.0, %v8548_v10  ;;  %v4556_v33 = vadd.f32 1.4214138, %v4540_v35  ;;  %v6046_v56 = vmov 11   ;;  %v8579_v63 = vmul.f32 0.5, %v8351_v3 }
 0xb03   : > { %5582 = vset.pattern.permute.xlu0 %v6046_v56  ;;  %v4648_v43 = vmul.f32 %v8470_v50, %v4632_v54  ;;  %v8583_v37 = vmul.f32 %v8424_v0, %v4640_v58  ;;  %v4522_v29 = vadd.f32 -1.4531521, %v4506_v44  ;;  %5583 = vset.pattern.permute.xlu1 %v6046_v56  ;;  %v4739_v9 = vsub.f32 1.0, %v8554_v59 }
 0xb04   : > { %5019 = vperm.xlu0 %5582, %v8457_v28   ;;  %v4775_v25 = vsub.f32 0.0, %v4743_v46  ;;  %v4738_v49 = vsub.f32 1.0, %v8568_v23  ;;  %v4572_v3 = vmul.f32 %v8336_v19, %v4556_v33  ;;  %5023 = vperm.xlu1 %5583, %v8463_v47   ;;  %v4774_v50 = vsub.f32 0.0, %v4742_v55  ;;  %v9078_v33 = vld [vmem:[#allocation36_spill] sm:$0xff] }
 0xb05   : > { %v4728_v0 = vmul.f32 %v5715_v18, %v4648_v43  ;;  %v8593_v22 = vmul.f32 %v8362_v12, %v4638_v13  ;;  %v4538_v28 = vmul.f32 %v8310_v15, %v4522_v29  ;;  %v4737_v45 = vsub.f32 1.0, %v8551_v21 }
 0xb06   : > { %v4773_v10 = vsub.f32 0.0, %v4741_v60  ;;  %v4772_v11 = vsub.f32 0.0, %v4740_v53  ;;  %v4588_v40 = vadd.f32 -0.28449672, %v4572_v3  ;;  %vm4760_vm11 = vcmp.ge.f32.partialorder %v8375_v41, 0.0  ;;  %v9081_v3 = vld [vmem:[#allocation51_spill] sm:$0xff] }
 0xb07   : > { %v4744_v47 = vsub.f32 1.0, %v4728_v0  ;;  %v4736_v59 = vsub.f32 1.0, %v8583_v37  ;;  %v4554_v30 = vadd.f32 1.4214138, %v4538_v28  ;;  %v4771_v12 = vsub.f32 0.0, %v4739_v9 }
 0xb08   : > { %5031 = vperm.xlu0 %5582, %v8500_v8   ;;  %v4791_v58 = vsel %vm4759_vm2, %v4743_v46, %v4775_v25  ;;  %v4770_v21 = vsub.f32 0.0, %v4738_v49  ;;  %v4604_v61 = vmul.f32 %v8336_v19, %v4588_v40  ;;  %5027 = vperm.xlu1 %5583, %v8479_v20   ;;  %v4790_v35 = vsel %vm4758_vm3, %v4742_v55, %v4774_v50  ;;  %v9079_v20 = vld [vmem:[#allocation25_spill] sm:$0xff]  ;;  %v9085_v40 = vld [vmem:[#allocation22_spill] sm:$0xff] }
 0xb09   : > { %v4776_v23 = vsub.f32 0.0, %v4744_v47  ;;  %v4734_v54 = vsub.f32 1.0, %v8593_v22  ;;  %v4570_v8 = vmul.f32 %v8310_v15, %v4554_v30  ;;  %v4769_v13 = vsub.f32 0.0, %v4737_v45 }
 0xb0a   : > { %v4789_v31 = vsel %vm4757_vm5, %v4741_v60, %v4773_v10  ;;  %v4788_v44 = vsel %vm4756_vm4, %v4740_v53, %v4772_v11  ;;  %v4620_v46 = vadd.f32 0.2548296, %v4604_v61  ;;  %vm4747_vm14 = vcmp.ge.f32.partialorder %v9078_v33, 0.0  ;;  %v9080_v53 = vld [vmem:[#allocation42_spill] sm:$0xff]  ;;  %v9090_v61 = vld [vmem:[#allocation32_spill] sm:$0xff] }
 0xb0b   : > { %vm4748_vm15 = vcmp.ge.f32.partialorder %v9079_v20, 0.0  ;;  %v4823_v56 = vadd.f32 1.0, %v4791_v58  ;;  %v4792_v16 = vsel %vm4760_vm11, %v4744_v47, %v4776_v23  ;;  %v4768_v55 = vsub.f32 0.0, %v4736_v59 }
 0xb0c   : > { %v4586_v43 = vadd.f32 -0.28449672, %v4570_v8  ;;  %5039 = vperm.xlu0 %5582, %v8527_v14   ;;  %v4787_v17 = vsel %vm4755_vm6, %v4739_v9, %v4771_v12  ;;  %v4824_v60 = vadd.f32 1.0, %v4792_v16  ;;  %v4822_v37 = vadd.f32 1.0, %v4790_v35  ;;  %5035 = vperm.xlu1 %5583, %v8485_v5   ;;  %v9091_v8 = vld [vmem:[#allocation54_spill] sm:$0xff]  ;;  %v9096_v16 = vld [vmem:[#allocation29_spill] sm:$0xff] }
 0xb0d   : > { %v4636_v1 = vmul.f32 %v8336_v19, %v4620_v46  ;;  %vm4745_vm1 = vcmp.ge.f32.partialorder %v9080_v53, 0.0  ;;  %v4821_v29 = vadd.f32 1.0, %v4789_v31  ;;  %v4786_v41 = vsel %vm4754_vm7, %v4738_v49, %v4770_v21  ;;  %v9095_v46 = vld [vmem:[#allocation27_spill] sm:$0xff] }
 0xb0e   : > { %v4766_v18 = vsub.f32 0.0, %v4734_v54  ;;  %v4602_v25 = vmul.f32 %v8310_v15, %v4586_v43  ;;  %v4785_v14 = vsel %vm4753_vm8, %v4737_v45, %v4769_v13  ;;  %v4840_v2 = vmul.f32 %v4824_v60, %v8579_v63  ;;  %v9083_v45 = vld [vmem:[#allocation56_spill] sm:$0xff]  ;;  %v9092_v13 = vld [vmem:[#allocation21_spill] sm:$0xff]  ;;  %v9097_v60 = vld [vmem:[#allocation34_spill] sm:$0xff] }
 0xb0f   : > { %v4820_v9 = vadd.f32 1.0, %v4788_v44  ;;  %v4716_v0 = vmul.f32 %v9081_v3, %v4636_v1  ;;  %v4819_v19 = vadd.f32 1.0, %v4787_v17  ;;  %v4839_v5 = vmul.f32 %v4823_v56, %v8542_v62 }
 0xb10   : > { %v4784_v50 = vsel %vm4752_vm9, %v4736_v59, %v4768_v55  ;;  %v4618_v22 = vadd.f32 0.2548296, %v4602_v25  ;;  %5047 = vperm.xlu0 %5582, %v8562_v6   ;;  %v4783_v36 = vsel %vm4751_vm10, %v4735_v38, %v8539_v57  ;;  %4921 = vmatprep.subr.mxu1 %v4840_v2  ;;  %v4838_v63 = vmul.f32 %v4822_v37, %v9082_v7  ;;  %v9086_v59 = vld [vmem:[#allocation53_spill] sm:$0xff]  ;;  %v9098_v37 = vld [vmem:[#allocation23_spill] sm:$0xff]  ;;  %v4841_v7 = vld [vmem:[#allocation13] sm:$0xff] }
 0xb11   : > { %v4818_v49 = vadd.f32 1.0, %v4786_v41  ;;  %v4732_v28 = vsub.f32 1.0, %v4716_v0  ;;  %5043 = vperm.xlu1 %5583, %v8506_v48   ;;  %v4817_v62 = vadd.f32 1.0, %v4785_v14  ;;  %v4837_v27 = vmul.f32 %v4821_v29, %v9083_v45  ;;  %4922 = vmatpush1.msra.mxu1 %v4839_v5  ;;  %v9099_v41 = vld [vmem:[#allocation20_spill] sm:$0xff]  ;;  %v9100_v2 = vld [vmem:[#allocation45_spill] sm:$0xff] }
 0xb12   : > { %v4782_v6 = vsel %vm4750_vm12, %v4734_v54, %v4766_v18  ;;  %v4634_v10 = vmul.f32 %v8310_v15, %v4618_v22  ;;  %v4781_v32 = vsel %vm4749_vm13, %v4733_v24, %v8532_v39  ;;  %4923 = vmatprep.subr.mxu1 %v4838_v63  ;;  %v4836_v38 = vmul.f32 %v4820_v9, %v9084_v42  ;;  %v4845_v45 = vld [vmem:[#allocation13 + $0x20] sm:$0xff] }
 0xb13   : > { %v4816_v57 = vadd.f32 1.0, %v4784_v50  ;;  %v4764_v48 = vsub.f32 0.0, %v4732_v28  ;;  %v4815_v11 = vadd.f32 1.0, %v4783_v36  ;;  %v4801_v47 = vmul.f32 0.5, %v9085_v40  ;;  %4924 = vmatpush1.msra.mxu1 %v4837_v27  ;;  %v4846_v27 = vld [vmem:[#allocation13 + $0x28] sm:$0xff] }
 0xb14   : > { %v4835_v30 = vmul.f32 %v4819_v19, %v9086_v59  ;;  %v4714_v12 = vmul.f32 %v9087_v52, %v4634_v10  ;;  %v9088_v15 = vsub.f32 1.0, %v8371_v51  ;;  %4925 = vmatprep.subr.mxu1 %v4836_v38  ;;  %v4834_v24 = vmul.f32 %v4818_v49, %v9089_v34  ;;  %v9101_v19 = vld [vmem:[#allocation40_spill] sm:$0xff]  ;;  %v4842_v49 = vld [vmem:[#allocation13 + $0x8] sm:$0xff]  ;;  %v4848_v10 = vld [vmem:[#allocation13 + $0x38] sm:$0xff] }
 0xb15   : > { %v4814_v39 = vadd.f32 1.0, %v4782_v6  ;;  %v4780_v58 = vsel %vm4748_vm15, %v4732_v28, %v4764_v48  ;;  %v4813_v21 = vadd.f32 1.0, %v4781_v32  ;;  %v4799_v23 = vmul.f32 0.5, %v9090_v61  ;;  %v4843_v28 = vld [vmem:[#allocation13 + $0x10] sm:$0xff] }
 0xb16   : > { %v4779_v4 = vsel %vm4747_vm14, %v9088_v15, %v8513_v26  ;;  %v4833_v35 = vmul.f32 %v4817_v62, %v4801_v47  ;;  %4926 = vmatpush1.msra.mxu1 %v4835_v30  ;;  %v4730_v54 = vsub.f32 1.0, %v4714_v12  ;;  %v9093_v31 = vsub.f32 1.0, %v9092_v13  ;;  %v9094_v26 = vld [vmem:[#allocation47_spill] sm:$0xff]  ;;  %v4847_v6 = vld [vmem:[#allocation13 + $0x30] sm:$0xff] }
 0xb17   : > { %v4798_v44 = vmul.f32 0.5, %v9094_v26  ;;  %4927 = vmatprep.subr.mxu1 %v4834_v24  ;;  %v4832_v33 = vmul.f32 %v4816_v57, %v9095_v46  ;;  %v4812_v56 = vadd.f32 1.0, %v4780_v58  ;;  %v4811_v20 = vadd.f32 1.0, %v4779_v4  ;;  %v4844_v62 = vld [vmem:[#allocation13 + $0x18] sm:$0xff] }
 0xb18   : > { %v4777_v51 = vsel %vm4745_vm1, %v9093_v31, %v9091_v8  ;;  %v4797_v55 = vmul.f32 0.5, %v9096_v16  ;;  %v4831_v43 = vmul.f32 %v4815_v11, %v4799_v23  ;;  %4928 = vmatpush1.msra.mxu1 %v4833_v35  ;;  %v4762_v17 = vsub.f32 0.0, %v4730_v54  ;;  %v9104_v35 = vld [vmem:[#allocation43_spill] sm:$0xff] }
 0xb19   : > { %vm4746_vm2 = vcmp.ge.f32.partialorder %v9097_v60, 0.0  ;;  %v4796_v1 = vmul.f32 0.5, %v9098_v37  ;;  %4929 = vmatprep.subr.mxu1 %v4832_v33  ;;  %v4830_v29 = vmul.f32 %v4814_v39, %v4798_v44  ;;  %v4809_v53 = vadd.f32 1.0, %v4777_v51  ;;  %v9103_v39 = vld [vmem:[#allocation49_spill] sm:$0xff]  ;;  %v9105_v44 = vld [vmem:[#allocation50_spill] sm:$0xff]  ;;  %v9107_v37 = vld [vmem:[#allocation39_spill] sm:$0xff] }
 0xb1a   : > { %v4795_v18 = vmul.f32 0.5, %v9099_v41  ;;  %v4829_v25 = vmul.f32 %v4813_v21, %v4797_v55  ;;  %4930 = vmatpush1.msra.mxu1 %v4831_v43  ;;  %v4778_v14 = vsel %vm4746_vm2, %v4730_v54, %v4762_v17  ;;  %v4794_v9 = vmul.f32 0.5, %v9100_v2 }
 0xb1b   : > { %4931 = vmatprep.subr.mxu1 %v4830_v29  ;;  %v4828_v3 = vmul.f32 %v4812_v56, %v4796_v1  ;;  %v4810_v0 = vadd.f32 1.0, %v4778_v14  ;;  %v4793_v5 = vmul.f32 0.5, %v9101_v19  ;;  %v9102_v63 = vmov 0.0  }
 0xb1c   : > { %v4827_v50 = vmul.f32 %v4811_v20, %v4795_v18  ;;  %4932 = vmatpush1.msra.mxu1 %v4829_v25  ;;  %v9106_v20 = vld [vmem:[#allocation31_spill] sm:$0xff] }
 0xb1d   : > { %4933 = vmatprep.subr.mxu1 %v4828_v3  ;;  %v4826_v22 = vmul.f32 %v4810_v0, %v4794_v9  ;;  %v4825_v36 = vmul.f32 %v4809_v53, %v4793_v5  ;;  %v9108_v18 = vld [vmem:[#allocation35_spill] sm:$0xff]  ;;  %v9109_v3 = vld [vmem:[#allocation28_spill] sm:$0xff] }
 0xb1e   : > { %4934 = vmatpush1.msra.mxu1 %v4827_v50 }
 0xb1f   : > { %4935 = vmatprep.subr.mxu1 %v4826_v22 }
 0xb20   : > { %4936 = vmatpush1.msra.mxu1 %v4825_v36  ;;  %v9110_v36 = vld [vmem:[#allocation33_spill] sm:$0xff] }
 0xb21   : > { %5295 = vmatmul.mubr.msk.f32.vlgmr.msra.gmra.mxu1 %vm732_vm0, %v4841_v7 }
 0xb22   : > { %4975 = vmatprep.mubr.f32.mxu1 %v9102_v63 }
 0xb25   : > { %5296 = vmatmul.mubr.msk.f32.gmra.mxu1 %vm732_vm0, %v4842_v49 }
 0xb26   : > { %4981 = vmatprep.mubr.f32.mxu1 %v9102_v63 }
 0xb29   : > { %5297 = vmatmul.mubr.msk.f32.gmra.mxu1 %vm732_vm0, %v4843_v28 }
 0xb2a   : > { %4987 = vmatprep.mubr.f32.mxu1 %v9102_v63 }
 0xb2d   : > { %5298 = vmatmul.mubr.msk.f32.gmra.mxu1 %vm732_vm0, %v4844_v62 }
 0xb2e   : > { %4993 = vmatprep.mubr.f32.mxu1 %v9102_v63 }
 0xb31   : > { %5299 = vmatmul.mubr.msk.f32.gmra.mxu1 %vm732_vm0, %v4845_v45  ;;  %v9111_v45 = vld [vmem:[#allocation24_spill] sm:$0xff] }
 0xb32   : > { %4999 = vmatprep.mubr.f32.mxu1 %v9102_v63 }
 0xb35   : > { %5300 = vmatmul.mubr.msk.f32.gmra.mxu1 %vm732_vm0, %v4846_v27 }
 0xb36   : > { %5005 = vmatprep.mubr.f32.mxu1 %v9102_v63 }
 0xb39   : > { %5301 = vmatmul.mubr.msk.f32.gmra.mxu1 %vm732_vm0, %v4847_v6 }
 0xb3a   : > { %5011 = vmatprep.mubr.f32.mxu1 %v9102_v63 }
 0xb3d   : > { %5302 = vmatmul.mubr.msk.f32.gmra.mxu1 %vm732_vm0, %v4848_v10 }
 0xb69   : > { %v4851_v32 = vpop.permute.xlu1 %4850  ;;  %v4855_v38 = vpop.permute.xlu0 %4854 }
 0xb6d   : > { %v4859_v42 = vpop.permute.xlu1 %4858  ;;  %v4867_v48 = vpop.permute.xlu0 %4866 }
 0xb71   : > { %v4863_v57 = vpop.permute.xlu1 %4862  ;;  %v8696_v40 = vpop.permute.xlu0 %4874 }
 0xb75   : > { %v8694_v11 = vpop.permute.xlu1 %4870 }
 0xb79   : > { %v8698_v47 = vpop.permute.xlu1 %4878 }
 0xb7f   : > { %v5020_v30 = vpop.permute.xlu0 %5019  ;;  %v5024_v15 = vpop.permute.xlu1 %5023 }
 0xb83   : > { %v5028_v51 = vpop.permute.xlu1 %5027  ;;  %v5032_v53 = vpop.permute.xlu0 %5031 }
 0xb87   : > { %v5036_v22 = vpop.permute.xlu1 %5035  ;;  %v5040_v10 = vpop.permute.xlu0 %5039 }
 0xbe1   : > { %v4971_v59 = vpop.f32.mrf.mxu1 }
 0xbe2   : > { %v4972_v52 = vadd.f32 %v4971_v59, %v4851_v32 }
 0xbe3   : > { %v4973_v12 = vpop.f32.mrf.mxu1 }
 0xbe4   : > { %v5050_v4 = vmul.f32 %v5020_v30, %v4972_v52  ;;  %v4974_v34 = vadd.f32 %v4973_v12, %v4851_v32 }
 0xbe5   : > { %v4977_v24 = vpop.f32.mrf.mxu1 }
 0xbe6   : > { %v5066_v58 = vadd.f32 %v5050_v4, %v9103_v39  ;;  %v5051_v21 = vmul.f32 %v5020_v30, %v4974_v34  ;;  %v4978_v61 = vadd.f32 %v4977_v24, %v4855_v38  ;;  %v5044_v34 = vpop.permute.xlu1 %5043  ;;  %v9114_v24 = vld [vmem:[#allocation37_spill] sm:$0xff] }
 0xbe7   : > { %v4979_v23 = vpop.f32.mrf.mxu1 }
 0xbe8   : > { %5082 = vst [vmem:[%s8703_s28] sm:$0xff] %v5066_v58  ;;  %v5067_v54 = vadd.f32 %v5051_v21, %v9104_v35  ;;  %v4980_v8 = vadd.f32 %v4979_v23, %v4855_v38  ;;  %v5052_v13 = vmul.f32 %v5024_v15, %v4978_v61  ;;  %v9115_v23 = vld [vmem:[#allocation30_spill] sm:$0xff] }
 0xbe9   : > { %v4983_v31 = vpop.f32.mrf.mxu1 }
 0xbea   : > { %5083 = vst [vmem:[%s8703_s28 + $0x8] sm:$0xff] %v5067_v54  ;;  %v5053_v26 = vmul.f32 %v5024_v15, %v4980_v8  ;;  %v5068_v46 = vadd.f32 %v5052_v13, %v9105_v44  ;;  %v4984_v33 = vadd.f32 %v4983_v31, %v4859_v42  ;;  %v5048_v8 = vpop.permute.xlu0 %5047  ;;  %v9116_v31 = vld [vmem:[#allocation44_spill] sm:$0xff]  ;;  %v9117_v44 = vld [vmem:[#allocation46_spill] sm:$0xff] }
 0xbeb   : > { %v4985_v56 = vpop.f32.mrf.mxu1 }
 0xbec   : > { %v5069_v16 = vadd.f32 %v5053_v26, %v9106_v20  ;;  %5084 = vst [vmem:[%s8703_s28 + $0x10] sm:$0xff] %v5068_v46  ;;  %v4986_v55 = vadd.f32 %v4985_v56, %v4859_v42  ;;  %v5054_v43 = vmul.f32 %v5028_v51, %v4984_v33  ;;  %v9112_v42 = vld [vmem:[#allocation38_spill] sm:$0xff]  ;;  %v9118_v56 = vld [vmem:[#allocation48_spill] sm:$0xff] }
 0xbed   : > { %v4989_v17 = vpop.f32.mrf.mxu1 }
 0xbee   : > { %5085 = vst [vmem:[%s8703_s28 + $0x18] sm:$0xff] %v5069_v16  ;;  %v5055_v60 = vmul.f32 %v5028_v51, %v4986_v55  ;;  %v5070_v1 = vadd.f32 %v5054_v43, %v9107_v37  ;;  %v4990_v29 = vadd.f32 %v4989_v17, %v4863_v57 }
 0xbef   : > { %v4991_v41 = vpop.f32.mrf.mxu1 }
 0xbf0   : > { %v5071_v25 = vadd.f32 %v5055_v60, %v9108_v18  ;;  %5086 = vst [vmem:[%s8703_s28 + $0x20] sm:$0xff] %v5070_v1  ;;  %v5056_v14 = vmul.f32 %v5032_v53, %v4990_v29  ;;  %v4992_v2 = vadd.f32 %v4991_v41, %v4863_v57 }
 0xbf1   : > { %v4995_v9 = vpop.f32.mrf.mxu1 }
 0xbf2   : > { %5087 = vst [vmem:[%s8703_s28 + $0x28] sm:$0xff] %v5071_v25  ;;  %v5072_v0 = vadd.f32 %v5056_v14, %v9109_v3  ;;  %v5057_v19 = vmul.f32 %v5032_v53, %v4992_v2  ;;  %v4996_v5 = vadd.f32 %v4995_v9, %v4867_v48 }
 0xbf3   : > { %v4997_v50 = vpop.f32.mrf.mxu1 }
 0xbf4   : > { %5088 = vst [vmem:[%s8703_s28 + $0x30] sm:$0xff] %v5072_v0  ;;  %v5073_v7 = vadd.f32 %v5057_v19, %v9110_v36  ;;  %v4998_v63 = vadd.f32 %v4997_v50, %v4867_v48  ;;  %v5058_v49 = vmul.f32 %v5036_v22, %v4996_v5  ;;  %v9113_v48 = vld [vmem:[#allocation26_spill] sm:$0xff] }
 0xbf5   : > { %v5001_v28 = vpop.f32.mrf.mxu1 }
 0xbf6   : > { %5089 = vst [vmem:[%s8703_s28 + $0x38] sm:$0xff] %v5073_v7  ;;  %v5059_v62 = vmul.f32 %v5036_v22, %v4998_v63  ;;  %v5074_v27 = vadd.f32 %v5058_v49, %v9111_v45  ;;  %v5002_v6 = vadd.f32 %v5001_v28, %v8694_v11 }
 0xbf7   : > { %v5003_v32 = vpop.f32.mrf.mxu1 }
 0xbf8   : > { %v5075_v38 = vadd.f32 %v5059_v62, %v9112_v42  ;;  %5090 = vst [vmem:[%s8703_s28 + $0x40] sm:$0xff] %v5074_v27  ;;  %v5060_v57 = vmul.f32 %v5040_v10, %v5002_v6  ;;  %v5004_v59 = vadd.f32 %v5003_v32, %v8694_v11 }
 0xbf9   : > { %v5007_v30 = vpop.f32.mrf.mxu1 }
 0xbfa   : > { %5091 = vst [vmem:[%s8703_s28 + $0x48] sm:$0xff] %v5075_v38  ;;  %v5076_v52 = vadd.f32 %v5060_v57, %v9113_v48  ;;  %v5061_v12 = vmul.f32 %v5040_v10, %v5004_v59  ;;  %v5008_v15 = vadd.f32 %v5007_v30, %v8696_v40 }
 0xbfb   : > { %v5009_v4 = vpop.f32.mrf.mxu1 }
 0xbfc   : > { %5092 = vst [vmem:[%s8703_s28 + $0x50] sm:$0xff] %v5076_v52  ;;  %v5077_v39 = vadd.f32 %v5061_v12, %v9114_v24  ;;  %v5010_v58 = vadd.f32 %v5009_v4, %v8696_v40  ;;  %v5062_v21 = vmul.f32 %v5044_v34, %v5008_v15 }
 0xbfd   : > { %v5013_v11 = vpop.f32.mrf.mxu1 }
 0xbfe   : > { %5093 = vst [vmem:[%s8703_s28 + $0x58] sm:$0xff] %v5077_v39  ;;  %v5063_v61 = vmul.f32 %v5044_v34, %v5010_v58  ;;  %v5078_v35 = vadd.f32 %v5062_v21, %v9115_v23  ;;  %v5014_v54 = vadd.f32 %v5013_v11, %v8698_v47 }
 0xbff   : > { %v5015_v13 = vpop.f32.mrf.mxu1 }
 0xc00   : > { %v5079_v51 = vadd.f32 %v5063_v61, %v9116_v31  ;;  %5094 = vst [vmem:[%s8703_s28 + $0x60] sm:$0xff] %v5078_v35  ;;  %v5064_v26 = vmul.f32 %v5048_v8, %v5014_v54  ;;  %v5016_v40 = vadd.f32 %v5015_v13, %v8698_v47 }
 0xc02   : > { %5095 = vst [vmem:[%s8703_s28 + $0x68] sm:$0xff] %v5079_v51  ;;  %v5080_v46 = vadd.f32 %v5064_v26, %v9117_v44  ;;  %v5065_v33 = vmul.f32 %v5048_v8, %v5016_v40 }
 0xc04   : > { %5096 = vst [vmem:[%s8703_s28 + $0x70] sm:$0xff] %v5080_v46  ;;  %v5081_v20 = vadd.f32 %v5065_v33, %v9118_v56 }
 0xc06   : > { %5097 = vst [vmem:[%s8703_s28 + $0x78] sm:$0xff] %v5081_v20 }
 0xc07   : > { %5955 = shalt.err (!%p5952_p3)
}
 0xc08   : > { %s5956_s3 = scalar_lea.hbm %s8744_s29, 2048  ;;  %s5960_s27 = scalar_lea.hbm %s8801_s9, 4096 }
 0xc09   : > { %p5957_p6 = scmp.ne.s32.totalorder %s8744_s29, %s5956_s3  ;;  %p5961_p11 = scmp.lt.s32.totalorder %s8744_s29, %s8801_s9 }
 0xc0a   : > { %p5962_p7 = scmp.lt.s32.totalorder %s5960_s27, %s5956_s3 }
 0xc0b   : > { %p5958_p10 = pnand %p5957_p6, %p9119_p5 }
 0xc0c   : > { %p5963_p0 = por %p5962_p7, %p5961_p11 }
 0xc0d   : > { %p5959_p12 = pneg %p5958_p10 }
 0xc0f   : > { %p5964_p2 = pnand %p5963_p0, %p5959_p12 }
 0xc11   : > { %5967 = shalt.err (!%p5964_p2)
}
 0xc12   : > { %s6048_s16 = smov 256   ;;  %s6049_s24 = smov 16  }
 0xc13   : > { %5380 = dma.vmem_to_hbm [thread:$0]  (%p9119_p5), %s8746_s1, 2048, %s8744_s29, %s5099_s15, %s6048_s16, %s6048_s16, %s6049_s24  }
 0xc14 PF: > { %s5127_s21 = sand.u32 1, %s6006_s30   ;;  %p9120_p8 = scmp.ne.s32.totalorder %s8906_s18, 0 }
 0xc15   : > { %p9121_p9 = scmp.ge.s32.totalorder %s6018_s12, 2  ;;  %s5128_s13 = scalar_lea.sflag [#allocation4], %s5127_s21 }
 0xc17   : > { %p5406_p4 = pnand %p9121_p9, %p9120_p8 }
 0xc19   : > { %p5407_p13 = pneg %p5406_p4 }
 0xc1b   : > { %6001 = dma.done.wait (%p5407_p13), %s5128_s13, 2048  }
 0xc1c   : > { %6003 = vsyncadd (%p5407_p13), %s5128_s13, 4294965248  ;;  %p25_p1 = scmp.ge.s32.totalorder %s6218_s22, 4   ;;  %s9122_s30 = smov %s6010_s10 }
 0xc1d   : > { %s9123_s10 = smov %s6014_s11  ;;  %s9124_s11 = smov %s6229_s14 }
 0xc1e   : > { %s9125_s12 = smov %s6218_s22  ;;  %27 = sbr.rel (!%p25_p1) target bundleno = 12 (0xc), region = 125 }
 0xc23   :  { %5133 = vsyncpa [#allocation3], 1 }
 0xc24   :  { %5135 = vsyncpa [#allocation3 + $0x1], 1 }
 0xc25   :  { %5136 = vsyncpa [#allocation6], 1 }
 0xc26   :  { %5137 = vsyncpa [#allocation9], 1 }
 0xc27   :  { %5138 = vsyncpa [#allocation12], 1 }
 0xc28   :  { %5139 = vsyncpa [#allocation4], 1 }
 0xc29   :  { %5141 = vsyncpa [#allocation4 + $0x1], 1 }

</bundles_post_ra>
